<compile_context>
chip_gen: v7x
topology: tpu7x:2x2x1
jax: 0.10.0
libtpu: 0.0.40
codegen_flags: <defaults>
</compile_context>

<pallas_src>
import functools

import jax
import jax.numpy as jnp
from jax.experimental import pallas as pl
from jax.experimental.pallas import tpu as pltpu


def _round_up(x, m):
    return (x + m - 1) // m * m


# ---------------------------------------------------------------------------
# Kernels
# ---------------------------------------------------------------------------

def _matmul_bias_kernel(p_ref, w_ref, b_ref, o_ref, *, leaky, slope):
    """o = [LeakyReLU](p @ w + b) for one (sample, P-tile) block."""
    y = jnp.dot(p_ref[0], w_ref[...], preferred_element_type=jnp.float32)
    y = y + b_ref[...]
    if leaky:
        y = jnp.maximum(y, slope * y)
    o_ref[0] = y.astype(o_ref.dtype)


def _matmul_stats_kernel(p_ref, w_ref, b_ref, y_ref, sum_ref, sq_ref, *,
                         valid_p, tile_p):
    """Pass A for InstanceNorm layers: conv matmul + per-channel sum / sumsq.

    sum_ref / sq_ref have a constant block index along the P grid axis, so they
    stay resident in VMEM across that ("arbitrary") axis and act as f32
    accumulators; they are zeroed on the first P-tile via pl.when.
    """
    pt = pl.program_id(1)
    y = jnp.dot(p_ref[0], w_ref[...], preferred_element_type=jnp.float32)
    y = y + b_ref[...]
    y_ref[0] = y

    if valid_p % tile_p != 0:
        # Rows past the true P (zero-padded patch rows) must not pollute stats.
        rows = jax.lax.broadcasted_iota(jnp.int32, y.shape, 0) + pt * tile_p
        ym = jnp.where(rows < valid_p, y, 0.0)
    else:
        ym = y

    @pl.when(pt == 0)
    def _():
        sum_ref[...] = jnp.zeros_like(sum_ref)
        sq_ref[...] = jnp.zeros_like(sq_ref)

    sum_ref[0] += jnp.sum(ym, axis=0, keepdims=True)
    sq_ref[0] += jnp.sum(ym * ym, axis=0, keepdims=True)


def _inorm_lrelu_kernel(y_ref, sum_ref, sq_ref, o_ref, *, count, eps, slope):
    """Pass B: InstanceNorm2d (affine=False) + LeakyReLU on one P-tile."""
    y = y_ref[0]                                   # (TILE_P, Cout) f32
    inv_n = 1.0 / count
    mean = sum_ref[0] * inv_n                      # (1, Cout)
    var = sq_ref[0] * inv_n - mean * mean
    inv_std = jax.lax.rsqrt(jnp.maximum(var, 0.0) + eps)
    out = (y - mean) * inv_std
    out = jnp.maximum(out, slope * out)
    o_ref[0] = out.astype(o_ref.dtype)


# ---------------------------------------------------------------------------
# Per-layer wrapper
# ---------------------------------------------------------------------------

def conv_layer(x_nhwc, w_oihw, b, *, stride, pad, normalize, leaky,
               extra_pad=None, eps=1e-5, slope=0.2, pad_cout_to=None,
               out_dtype=jnp.bfloat16, max_tile_p=512):
    """Conv2d(k=4) [+ InstanceNorm] [+ LeakyReLU] with channels-last activations."""
    N, H, W, C = x_nhwc.shape
    Cout, Cin, K, _ = w_oihw.shape
    assert Cin == C

    xp = x_nhwc
    if extra_pad is not None:
        l, r, t, bo = extra_pad                    # ZeroPad2d((left, right, top, bottom))
        xp = jnp.pad(xp, ((0, 0), (t, bo), (l, r), (0, 0)))
    xp = jnp.pad(xp, ((0, 0), (pad, pad), (pad, pad), (0, 0)))

    Hp, Wp = xp.shape[1], xp.shape[2]
    OH = (Hp - K) // stride + 1
    OW = (Wp - K) // stride + 1
    OP = OH * OW

    # im2col glue (XLA): column order (kh, kw, c), matching the weight flattening.
    # TODO(synk): lower this into the kernel as a direct conv (K*K shifted
    # matmuls over the raw activation) to avoid the 4x-expanded patch tensor in HBM.
    cols = []
    for kh in range(K):
        for kw in range(K):
            cols.append(
                xp[:, kh:kh + stride * OH:stride, kw:kw + stride * OW:stride, :])
    patches = jnp.stack(cols, axis=3).reshape(N, OP, K * K * C)

    # PyTorch OIHW weight -> rows ordered (kh, kw, cin), columns Cout.
    w_flat = jnp.transpose(w_oihw, (2, 3, 1, 0)).reshape(K * K * Cin, Cout)

    # Lane-friendly padding: contraction dim to a multiple of 128 (exact zeros),
    # output channels up to `pad_cout_to` (extra channels sliced off below).
    CKK = K * K * C
    CKKp = _round_up(CKK, 128)
    Coutp = Cout if pad_cout_to is None else max(Cout, pad_cout_to)
    if CKKp != CKK:
        patches = jnp.pad(patches, ((0, 0), (0, 0), (0, CKKp - CKK)))
        w_flat = jnp.pad(w_flat, ((0, CKKp - CKK), (0, 0)))
    if Coutp != Cout:
        w_flat = jnp.pad(w_flat, ((0, 0), (0, Coutp - Cout)))
        b = jnp.pad(b, (0, Coutp - Cout))

    # Tile the spatial (P) axis.
    tile_p = min(max_tile_p, _round_up(OP, 8))
    OPp = _round_up(OP, tile_p)
    if OPp != OP:
        patches = jnp.pad(patches, ((0, 0), (0, OPp - OP), (0, 0)))
    n_pt = OPp // tile_p

    p_bf = patches.astype(jnp.bfloat16)            # MXU in bf16, f32 accumulate
    w_bf = w_flat.astype(jnp.bfloat16)
    b2 = b.reshape(1, Coutp).astype(jnp.float32)

    patch_spec = pl.BlockSpec((1, tile_p, CKKp), lambda n, pt: (n, pt, 0))
    w_spec = pl.BlockSpec((CKKp, Coutp), lambda n, pt: (0, 0))
    b_spec = pl.BlockSpec((1, Coutp), lambda n, pt: (0, 0))
    y_spec = pl.BlockSpec((1, tile_p, Coutp), lambda n, pt: (n, pt, 0))
    stat_spec = pl.BlockSpec((1, 1, Coutp), lambda n, pt: (n, 0, 0))

    if not normalize:
        kernel = functools.partial(_matmul_bias_kernel, leaky=leaky, slope=slope)
        y = pl.pallas_call(
            kernel,
            out_shape=jax.ShapeDtypeStruct((N, OPp, Coutp), out_dtype),
            grid_spec=pltpu.PrefetchScalarGridSpec(
                num_scalar_prefetch=0,
                grid=(N, n_pt),
                in_specs=[patch_spec, w_spec, b_spec],
                out_specs=y_spec,
            ),
            compiler_params=pltpu.CompilerParams(
                dimension_semantics=("parallel", "parallel")),
        )(p_bf, w_bf, b2)
    else:
        # Pass A: matmul + per-channel sum / sum-of-squares accumulation.
        kernel_a = functools.partial(_matmul_stats_kernel,
                                     valid_p=OP, tile_p=tile_p)
        y_raw, s_sum, s_sq = pl.pallas_call(
            kernel_a,
            out_shape=(
                jax.ShapeDtypeStruct((N, OPp, Coutp), jnp.float32),
                jax.ShapeDtypeStruct((N, 1, Coutp), jnp.float32),
                jax.ShapeDtypeStruct((N, 1, Coutp), jnp.float32),
            ),
            grid_spec=pltpu.PrefetchScalarGridSpec(
                num_scalar_prefetch=0,
                grid=(N, n_pt),
                in_specs=[patch_spec, w_spec, b_spec],
                out_specs=[y_spec, stat_spec, stat_spec],
            ),
            compiler_params=pltpu.CompilerParams(
                dimension_semantics=("parallel", "arbitrary")),
        )(p_bf, w_bf, b2)

        # Pass B: normalize + LeakyReLU, tiled over P.
        kernel_b = functools.partial(_inorm_lrelu_kernel,
                                     count=float(OP), eps=eps, slope=slope)
        y = pl.pallas_call(
            kernel_b,
            out_shape=jax.ShapeDtypeStruct((N, OPp, Coutp), out_dtype),
            grid_spec=pltpu.PrefetchScalarGridSpec(
                num_scalar_prefetch=0,
                grid=(N, n_pt),
                in_specs=[y_spec, stat_spec, stat_spec],
                out_specs=y_spec,
            ),
            compiler_params=pltpu.CompilerParams(
                dimension_semantics=("parallel", "parallel")),
        )(y_raw, s_sum, s_sq)

    return y[:, :OP, :Cout].reshape(N, OH, OW, Cout)


# ---------------------------------------------------------------------------
# Model
# ---------------------------------------------------------------------------

def init_params(key, channels=3):
    """Deterministic synthetic weights (Conv2d OIHW layout, like PyTorch)."""
    specs = [(channels, 64), (64, 128), (128, 256), (256, 512), (512, 1)]
    params = []
    for cin, cout in specs:
        key, k1, k2 = jax.random.split(key, 3)
        w = 0.02 * jax.random.normal(k1, (cout, cin, 4, 4), jnp.float32)
        b = 0.02 * jax.random.normal(k2, (cout,), jnp.float32)
        params.append((w, b))
    return params


def discriminator_forward(params, img_nchw):
    x = jnp.transpose(img_nchw, (0, 2, 3, 1))        # NCHW -> NHWC once
    x = conv_layer(x, *params[0], stride=2, pad=1, normalize=False, leaky=True)
    x = conv_layer(x, *params[1], stride=2, pad=1, normalize=True,  leaky=True)
    x = conv_layer(x, *params[2], stride=2, pad=1, normalize=True,  leaky=True)
    x = conv_layer(x, *params[3], stride=2, pad=1, normalize=True,  leaky=True)
    x = conv_layer(x, *params[4], stride=1, pad=1, normalize=False, leaky=False,
                   extra_pad=(1, 0, 1, 0), pad_cout_to=128, out_dtype=jnp.float32)
    return jnp.transpose(x, (0, 3, 1, 2))            # back to NCHW (N, 1, h, w)


# ---------------------------------------------------------------------------
# Reference (XLA) for correctness checking
# ---------------------------------------------------------------------------

def _reference_forward(params, img, conv_dtype=jnp.float32):
    """Pure-JAX reference.  conv_dtype=bfloat16 emulates the kernel's MXU
    precision choice (bf16 conv inputs, f32 accumulation)."""
    def conv(x, w, b, stride, pad):
        y = jax.lax.conv_general_dilated(
            x.astype(conv_dtype), w.astype(conv_dtype), (stride, stride),
            [(pad, pad), (pad, pad)],
            dimension_numbers=("NCHW", "OIHW", "NCHW"),
            preferred_element_type=jnp.float32)
        return y + b.reshape(1, -1, 1, 1)

    def inorm(x, eps=1e-5):
        m = jnp.mean(x, axis=(2, 3), keepdims=True)
        v = jnp.mean(jnp.square(x - m), axis=(2, 3), keepdims=True)
        return (x - m) * jax.lax.rsqrt(v + eps)

    def lrelu(x):
        return jnp.where(x >= 0.0, x, 0.2 * x)

    x = lrelu(conv(img, *params[0], 2, 1))
    x = lrelu(inorm(conv(x, *params[1], 2, 1)))
    x = lrelu(inorm(conv(x, *params[2], 2, 1)))
    x = lrelu(inorm(conv(x, *params[3], 2, 1)))
    x = jnp.pad(x, ((0, 0), (0, 0), (1, 0), (1, 0)))
    x = conv(x, *params[4], 1, 1)
    return x


if __name__ == "__main__":
    key = jax.random.PRNGKey(0)
    k_img, k_par = jax.random.split(key)

    N, C, H, W = 2, 3, 32, 32            # small input; output_shape = (1, H//16, W//16)
    img = jax.random.normal(k_img, (N, C, H, W), jnp.float32)
    params = init_params(k_par, channels=C)

    fwd = jax.jit(discriminator_forward)
    out = jax.block_until_ready(fwd(params, img))
    assert out.shape == (N, 1, H // 16, W // 16), out.shape

    # Compare against a reference that uses the same bf16-input / f32-accumulate
    # conv precision as the kernels (tolerance loosened for bf16, per review).
    ref = jax.block_until_ready(
        _reference_forward(params, img, conv_dtype=jnp.bfloat16))
    assert jnp.allclose(out, ref, atol=2e-2, rtol=2e-2), \
        float(jnp.max(jnp.abs(out - ref)))

    print("KERNEL_OK")
</pallas_src>

<mosaic_0001>
module attributes {stable_mosaic.version = 11 : i64} {
  func.func @_matmul_bias_kernel(%arg0: i32, %arg1: i32, %arg2: memref<1x256x128xbf16, #tpu.memory_space<vmem>>, %arg3: memref<128x64xbf16, #tpu.memory_space<vmem>>, %arg4: memref<1x64xf32, #tpu.memory_space<vmem>>, %arg5: memref<1x256x64xbf16, #tpu.memory_space<vmem>>) attributes {dimension_semantics = [#tpu.dimension_semantics<parallel>, #tpu.dimension_semantics<parallel>], iteration_bounds = array<i64: 2, 1>, scalar_prefetch = 0 : i64, scratch_operands = 0 : i64, tpu.core_type = #tpu.core_type<tc>, window_params = [{transform_indices = @transform_0, window_bounds = array<i64: 1, 256, 128>}, {pipeline_mode = #tpu.pipeline_mode<synchronous>, transform_indices = @transform_1, window_bounds = array<i64: 128, 64>}, {pipeline_mode = #tpu.pipeline_mode<synchronous>, transform_indices = @transform_2, window_bounds = array<i64: 1, 64>}, {transform_indices = @transform_3, window_bounds = array<i64: 1, 256, 64>}]} {
    %c0 = arith.constant 0 : index
    %c0_0 = arith.constant 0 : index
    %c0_1 = arith.constant 0 : index
    %0 = vector.load %arg2[%c0, %c0_0, %c0_1] : memref<1x256x128xbf16, #tpu.memory_space<vmem>>, vector<1x256x128xbf16>
    %1 = vector.shape_cast %0 : vector<1x256x128xbf16> to vector<256x128xbf16>
    %c0_2 = arith.constant 0 : index
    %c0_3 = arith.constant 0 : index
    %2 = vector.load %arg3[%c0_2, %c0_3] : memref<128x64xbf16, #tpu.memory_space<vmem>>, vector<128x64xbf16>
    %cst = arith.constant dense<0.000000e+00> : vector<256x64xf32>
    %3 = tpu.matmul %1, %2, %cst {dimension_numbers = #tpu.dot_dimension_numbers<[1], [0], [0], [1], [0, 0, 1, 1], [], []>} : vector<256x128xbf16>, vector<128x64xbf16>, vector<256x64xf32> -> vector<256x64xf32>
    %c0_4 = arith.constant 0 : index
    %c0_5 = arith.constant 0 : index
    %4 = vector.load %arg4[%c0_4, %c0_5] : memref<1x64xf32, #tpu.memory_space<vmem>>, vector<1x64xf32>
    %5 = vector.broadcast %4 : vector<1x64xf32> to vector<256x64xf32>
    %6 = arith.addf %3, %5 : vector<256x64xf32>
    %cst_6 = arith.constant 2.000000e-01 : f32
    %7 = vector.broadcast %cst_6 : f32 to vector<256x64xf32>
    %8 = arith.mulf %7, %6 : vector<256x64xf32>
    %9 = arith.maximumf %6, %8 : vector<256x64xf32>
    %10 = arith.truncf %9 : vector<256x64xf32> to vector<256x64xbf16>
    %c0_7 = arith.constant 0 : index
    %c0_8 = arith.constant 0 : index
    %c0_9 = arith.constant 0 : index
    %11 = vector.load %arg5[%c0_7, %c0_8, %c0_9] : memref<1x256x64xbf16, #tpu.memory_space<vmem>>, vector<1x256x64xbf16>
    %12 = vector.shape_cast %11 : vector<1x256x64xbf16> to vector<256x64xbf16>
    %13 = vector.shape_cast %10 : vector<256x64xbf16> to vector<1x256x64xbf16>
    tpu.vector_store %arg5[%c0_7, %c0_8, %c0_9], %13 {strides = array<i32>} : memref<1x256x64xbf16, #tpu.memory_space<vmem>>, vector<1x256x64xbf16>,
    return
  }
  func.func @transform_0(%arg0: i32, %arg1: i32) -> (i32, i32, i32) {
    %c0_i32 = arith.constant 0 : i32
    %c0_i32_0 = arith.constant 0 : i32
    return %arg0, %arg1, %c0_i32 : i32, i32, i32
  }
  func.func @transform_1(%arg0: i32, %arg1: i32) -> (i32, i32) {
    %c0_i32 = arith.constant 0 : i32
    %c0_i32_0 = arith.constant 0 : i32
    %c0_i32_1 = arith.constant 0 : i32
    return %c0_i32, %c0_i32_0 : i32, i32
  }
  func.func @transform_2(%arg0: i32, %arg1: i32) -> (i32, i32) {
    %c0_i32 = arith.constant 0 : i32
    %c0_i32_0 = arith.constant 0 : i32
    %c0_i32_1 = arith.constant 0 : i32
    return %c0_i32, %c0_i32_0 : i32, i32
  }
  func.func @transform_3(%arg0: i32, %arg1: i32) -> (i32, i32, i32) {
    %c0_i32 = arith.constant 0 : i32
    %c0_i32_0 = arith.constant 0 : i32
    return %arg0, %arg1, %c0_i32 : i32, i32, i32
  }
}

module attributes {stable_mosaic.version = 11 : i64} {
  func.func @_matmul_stats_kernel(%arg0: i32, %arg1: i32, %arg2: memref<1x64x1024xbf16, #tpu.memory_space<vmem>>, %arg3: memref<1024x128xbf16, #tpu.memory_space<vmem>>, %arg4: memref<1x128xf32, #tpu.memory_space<vmem>>, %arg5: memref<1x64x128xf32, #tpu.memory_space<vmem>>, %arg6: memref<1x1x128xf32, #tpu.memory_space<vmem>>, %arg7: memref<1x1x128xf32, #tpu.memory_space<vmem>>) attributes {dimension_semantics = [#tpu.dimension_semantics<parallel>, #tpu.dimension_semantics<arbitrary>], iteration_bounds = array<i64: 2, 1>, scalar_prefetch = 0 : i64, scratch_operands = 0 : i64, tpu.core_type = #tpu.core_type<tc>, window_params = [{transform_indices = @transform_0, window_bounds = array<i64: 1, 64, 1024>}, {pipeline_mode = #tpu.pipeline_mode<synchronous>, transform_indices = @transform_1, window_bounds = array<i64: 1024, 128>}, {pipeline_mode = #tpu.pipeline_mode<synchronous>, transform_indices = @transform_2, window_bounds = array<i64: 1, 128>}, {transform_indices = @transform_3, window_bounds = array<i64: 1, 64, 128>}, {transform_indices = @transform_4, window_bounds = array<i64: 1, 1, 128>}, {transform_indices = @transform_5, window_bounds = array<i64: 1, 1, 128>}]} {
    %c0 = arith.constant 0 : index
    %c0_0 = arith.constant 0 : index
    %c0_1 = arith.constant 0 : index
    %0 = vector.load %arg2[%c0, %c0_0, %c0_1] : memref<1x64x1024xbf16, #tpu.memory_space<vmem>>, vector<1x64x1024xbf16>
    %1 = vector.shape_cast %0 : vector<1x64x1024xbf16> to vector<64x1024xbf16>
    %c0_2 = arith.constant 0 : index
    %c0_3 = arith.constant 0 : index
    %2 = vector.load %arg3[%c0_2, %c0_3] : memref<1024x128xbf16, #tpu.memory_space<vmem>>, vector<1024x128xbf16>
    %cst = arith.constant dense<0.000000e+00> : vector<64x128xf32>
    %3 = tpu.matmul %1, %2, %cst {dimension_numbers = #tpu.dot_dimension_numbers<[1], [0], [0], [1], [0, 0, 1, 1], [], []>} : vector<64x1024xbf16>, vector<1024x128xbf16>, vector<64x128xf32> -> vector<64x128xf32>
    %c0_4 = arith.constant 0 : index
    %c0_5 = arith.constant 0 : index
    %4 = vector.load %arg4[%c0_4, %c0_5] : memref<1x128xf32, #tpu.memory_space<vmem>>, vector<1x128xf32>
    %5 = vector.broadcast %4 : vector<1x128xf32> to vector<64x128xf32>
    %6 = arith.addf %3, %5 : vector<64x128xf32>
    %c0_6 = arith.constant 0 : index
    %c0_7 = arith.constant 0 : index
    %c0_8 = arith.constant 0 : index
    %7 = vector.load %arg5[%c0_6, %c0_7, %c0_8] : memref<1x64x128xf32, #tpu.memory_space<vmem>>, vector<1x64x128xf32>
    %8 = vector.shape_cast %7 : vector<1x64x128xf32> to vector<64x128xf32>
    %9 = vector.shape_cast %6 : vector<64x128xf32> to vector<1x64x128xf32>
    tpu.vector_store %arg5[%c0_6, %c0_7, %c0_8], %9 {strides = array<i32>} : memref<1x64x128xf32, #tpu.memory_space<vmem>>, vector<1x64x128xf32>,
    %c0_i32 = arith.constant 0 : i32
    %10 = arith.cmpi eq, %arg1, %c0_i32 : i32
    %11 = arith.extui %10 : i1 to i32
    %c0_i32_9 = arith.constant 0 : i32
    %12 = arith.cmpi ne, %11, %c0_i32_9 : i32
    scf.if %12 {
      %cst_24 = arith.constant 0.000000e+00 : f32
      %30 = vector.broadcast %cst_24 : f32 to vector<1x1x128xf32>
      %c0_25 = arith.constant 0 : index
      %c0_26 = arith.constant 0 : index
      %c0_27 = arith.constant 0 : index
      %31 = vector.load %arg6[%c0_25, %c0_26, %c0_27] : memref<1x1x128xf32, #tpu.memory_space<vmem>>, vector<1x1x128xf32>
      tpu.vector_store %arg6[%c0_25, %c0_26, %c0_27], %30 {strides = array<i32>} : memref<1x1x128xf32, #tpu.memory_space<vmem>>, vector<1x1x128xf32>,
      %cst_28 = arith.constant 0.000000e+00 : f32
      %32 = vector.broadcast %cst_28 : f32 to vector<1x1x128xf32>
      %c0_29 = arith.constant 0 : index
      %c0_30 = arith.constant 0 : index
      %c0_31 = arith.constant 0 : index
      %33 = vector.load %arg7[%c0_29, %c0_30, %c0_31] : memref<1x1x128xf32, #tpu.memory_space<vmem>>, vector<1x1x128xf32>
      tpu.vector_store %arg7[%c0_29, %c0_30, %c0_31], %32 {strides = array<i32>} : memref<1x1x128xf32, #tpu.memory_space<vmem>>, vector<1x1x128xf32>,
    } else {
    }
    %c0_10 = arith.constant 0 : index
    %c0_11 = arith.constant 0 : index
    %c0_12 = arith.constant 0 : index
    %13 = vector.load %arg6[%c0_10, %c0_11, %c0_12] : memref<1x1x128xf32, #tpu.memory_space<vmem>>, vector<1x1x128xf32>
    %14 = vector.shape_cast %13 : vector<1x1x128xf32> to vector<1x128xf32>
    %cst_13 = arith.constant dense<0.000000e+00> : vector<128xf32>
    %15 = vector.multi_reduction <add>, %6, %cst_13 [0] : vector<64x128xf32> to vector<128xf32>
    %16 = vector.shape_cast %15 : vector<128xf32> to vector<1x128xf32>
    %17 = arith.addf %14, %16 : vector<1x128xf32>
    %c0_14 = arith.constant 0 : index
    %c0_15 = arith.constant 0 : index
    %c0_16 = arith.constant 0 : index
    %18 = vector.load %arg6[%c0_14, %c0_15, %c0_16] : memref<1x1x128xf32, #tpu.memory_space<vmem>>, vector<1x1x128xf32>
    %19 = vector.shape_cast %18 : vector<1x1x128xf32> to vector<1x128xf32>
    %20 = vector.shape_cast %17 : vector<1x128xf32> to vector<1x1x128xf32>
    tpu.vector_store %arg6[%c0_14, %c0_15, %c0_16], %20 {strides = array<i32>} : memref<1x1x128xf32, #tpu.memory_space<vmem>>, vector<1x1x128xf32>,
    %c0_17 = arith.constant 0 : index
    %c0_18 = arith.constant 0 : index
    %c0_19 = arith.constant 0 : index
    %21 = vector.load %arg7[%c0_17, %c0_18, %c0_19] : memref<1x1x128xf32, #tpu.memory_space<vmem>>, vector<1x1x128xf32>
    %22 = vector.shape_cast %21 : vector<1x1x128xf32> to vector<1x128xf32>
    %23 = arith.mulf %6, %6 : vector<64x128xf32>
    %cst_20 = arith.constant dense<0.000000e+00> : vector<128xf32>
    %24 = vector.multi_reduction <add>, %23, %cst_20 [0] : vector<64x128xf32> to vector<128xf32>
    %25 = vector.shape_cast %24 : vector<128xf32> to vector<1x128xf32>
    %26 = arith.addf %22, %25 : vector<1x128xf32>
    %c0_21 = arith.constant 0 : index
    %c0_22 = arith.constant 0 : index
    %c0_23 = arith.constant 0 : index
    %27 = vector.load %arg7[%c0_21, %c0_22, %c0_23] : memref<1x1x128xf32, #tpu.memory_space<vmem>>, vector<1x1x128xf32>
    %28 = vector.shape_cast %27 : vector<1x1x128xf32> to vector<1x128xf32>
    %29 = vector.shape_cast %26 : vector<1x128xf32> to vector<1x1x128xf32>
    tpu.vector_store %arg7[%c0_21, %c0_22, %c0_23], %29 {strides = array<i32>} : memref<1x1x128xf32, #tpu.memory_space<vmem>>, vector<1x1x128xf32>,
    return
  }
  func.func @transform_0(%arg0: i32, %arg1: i32) -> (i32, i32, i32) {
    %c0_i32 = arith.constant 0 : i32
    %c0_i32_0 = arith.constant 0 : i32
    return %arg0, %arg1, %c0_i32 : i32, i32, i32
  }
  func.func @transform_1(%arg0: i32, %arg1: i32) -> (i32, i32) {
    %c0_i32 = arith.constant 0 : i32
    %c0_i32_0 = arith.constant 0 : i32
    %c0_i32_1 = arith.constant 0 : i32
    return %c0_i32, %c0_i32_0 : i32, i32
  }
  func.func @transform_2(%arg0: i32, %arg1: i32) -> (i32, i32) {
    %c0_i32 = arith.constant 0 : i32
    %c0_i32_0 = arith.constant 0 : i32
    %c0_i32_1 = arith.constant 0 : i32
    return %c0_i32, %c0_i32_0 : i32, i32
  }
  func.func @transform_3(%arg0: i32, %arg1: i32) -> (i32, i32, i32) {
    %c0_i32 = arith.constant 0 : i32
    %c0_i32_0 = arith.constant 0 : i32
    return %arg0, %arg1, %c0_i32 : i32, i32, i32
  }
  func.func @transform_4(%arg0: i32, %arg1: i32) -> (i32, i32, i32) {
    %c0_i32 = arith.constant 0 : i32
    %c0_i32_0 = arith.constant 0 : i32
    %c0_i32_1 = arith.constant 0 : i32
    return %arg0, %c0_i32, %c0_i32_0 : i32, i32, i32
  }
  func.func @transform_5(%arg0: i32, %arg1: i32) -> (i32, i32, i32) {
    %c0_i32 = arith.constant 0 : i32
    %c0_i32_0 = arith.constant 0 : i32
    %c0_i32_1 = arith.constant 0 : i32
    return %arg0, %c0_i32, %c0_i32_0 : i32, i32, i32
  }
}

module attributes {stable_mosaic.version = 11 : i64} {
  func.func @_inorm_lrelu_kernel(%arg0: i32, %arg1: i32, %arg2: memref<1x64x128xf32, #tpu.memory_space<vmem>>, %arg3: memref<1x1x128xf32, #tpu.memory_space<vmem>>, %arg4: memref<1x1x128xf32, #tpu.memory_space<vmem>>, %arg5: memref<1x64x128xbf16, #tpu.memory_space<vmem>>) attributes {dimension_semantics = [#tpu.dimension_semantics<parallel>, #tpu.dimension_semantics<parallel>], iteration_bounds = array<i64: 2, 1>, scalar_prefetch = 0 : i64, scratch_operands = 0 : i64, tpu.core_type = #tpu.core_type<tc>, window_params = [{transform_indices = @transform_0, window_bounds = array<i64: 1, 64, 128>}, {transform_indices = @transform_1, window_bounds = array<i64: 1, 1, 128>}, {transform_indices = @transform_2, window_bounds = array<i64: 1, 1, 128>}, {transform_indices = @transform_3, window_bounds = array<i64: 1, 64, 128>}]} {
    %c0 = arith.constant 0 : index
    %c0_0 = arith.constant 0 : index
    %c0_1 = arith.constant 0 : index
    %0 = vector.load %arg2[%c0, %c0_0, %c0_1] : memref<1x64x128xf32, #tpu.memory_space<vmem>>, vector<1x64x128xf32>
    %1 = vector.shape_cast %0 : vector<1x64x128xf32> to vector<64x128xf32>
    %c0_2 = arith.constant 0 : index
    %c0_3 = arith.constant 0 : index
    %c0_4 = arith.constant 0 : index
    %2 = vector.load %arg3[%c0_2, %c0_3, %c0_4] : memref<1x1x128xf32, #tpu.memory_space<vmem>>, vector<1x1x128xf32>
    %3 = vector.shape_cast %2 : vector<1x1x128xf32> to vector<1x128xf32>
    %cst = arith.constant 1.562500e-02 : f32
    %4 = vector.broadcast %cst : f32 to vector<1x128xf32>
    %5 = arith.mulf %3, %4 : vector<1x128xf32>
    %c0_5 = arith.constant 0 : index
    %c0_6 = arith.constant 0 : index
    %c0_7 = arith.constant 0 : index
    %6 = vector.load %arg4[%c0_5, %c0_6, %c0_7] : memref<1x1x128xf32, #tpu.memory_space<vmem>>, vector<1x1x128xf32>
    %7 = vector.shape_cast %6 : vector<1x1x128xf32> to vector<1x128xf32>
    %cst_8 = arith.constant 1.562500e-02 : f32
    %8 = vector.broadcast %cst_8 : f32 to vector<1x128xf32>
    %9 = arith.mulf %7, %8 : vector<1x128xf32>
    %10 = arith.mulf %5, %5 : vector<1x128xf32>
    %11 = arith.subf %9, %10 : vector<1x128xf32>
    %cst_9 = arith.constant 0.000000e+00 : f32
    %12 = vector.broadcast %cst_9 : f32 to vector<1x128xf32>
    %13 = arith.maximumf %11, %12 : vector<1x128xf32>
    %cst_10 = arith.constant 9.99999974E-6 : f32
    %14 = vector.broadcast %cst_10 : f32 to vector<1x128xf32>
    %15 = arith.addf %13, %14 : vector<1x128xf32>
    %16 = math.rsqrt %15 : vector<1x128xf32>
    %17 = vector.broadcast %5 : vector<1x128xf32> to vector<64x128xf32>
    %18 = arith.subf %1, %17 : vector<64x128xf32>
    %19 = vector.broadcast %16 : vector<1x128xf32> to vector<64x128xf32>
    %20 = arith.mulf %18, %19 : vector<64x128xf32>
    %cst_11 = arith.constant 2.000000e-01 : f32
    %21 = vector.broadcast %cst_11 : f32 to vector<64x128xf32>
    %22 = arith.mulf %21, %20 : vector<64x128xf32>
    %23 = arith.maximumf %20, %22 : vector<64x128xf32>
    %24 = arith.truncf %23 : vector<64x128xf32> to vector<64x128xbf16>
    %c0_12 = arith.constant 0 : index
    %c0_13 = arith.constant 0 : index
    %c0_14 = arith.constant 0 : index
    %25 = vector.load %arg5[%c0_12, %c0_13, %c0_14] : memref<1x64x128xbf16, #tpu.memory_space<vmem>>, vector<1x64x128xbf16>
    %26 = vector.shape_cast %25 : vector<1x64x128xbf16> to vector<64x128xbf16>
    %27 = vector.shape_cast %24 : vector<64x128xbf16> to vector<1x64x128xbf16>
    tpu.vector_store %arg5[%c0_12, %c0_13, %c0_14], %27 {strides = array<i32>} : memref<1x64x128xbf16, #tpu.memory_space<vmem>>, vector<1x64x128xbf16>,
    return
  }
  func.func @transform_0(%arg0: i32, %arg1: i32) -> (i32, i32, i32) {
    %c0_i32 = arith.constant 0 : i32
    %c0_i32_0 = arith.constant 0 : i32
    return %arg0, %arg1, %c0_i32 : i32, i32, i32
  }
  func.func @transform_1(%arg0: i32, %arg1: i32) -> (i32, i32, i32) {
    %c0_i32 = arith.constant 0 : i32
    %c0_i32_0 = arith.constant 0 : i32
    %c0_i32_1 = arith.constant 0 : i32
    return %arg0, %c0_i32, %c0_i32_0 : i32, i32, i32
  }
  func.func @transform_2(%arg0: i32, %arg1: i32) -> (i32, i32, i32) {
    %c0_i32 = arith.constant 0 : i32
    %c0_i32_0 = arith.constant 0 : i32
    %c0_i32_1 = arith.constant 0 : i32
    return %arg0, %c0_i32, %c0_i32_0 : i32, i32, i32
  }
  func.func @transform_3(%arg0: i32, %arg1: i32) -> (i32, i32, i32) {
    %c0_i32 = arith.constant 0 : i32
    %c0_i32_0 = arith.constant 0 : i32
    return %arg0, %arg1, %c0_i32 : i32, i32, i32
  }
}

module attributes {stable_mosaic.version = 11 : i64} {
  func.func @_matmul_stats_kernel(%arg0: i32, %arg1: i32, %arg2: memref<1x16x2048xbf16, #tpu.memory_space<vmem>>, %arg3: memref<2048x256xbf16, #tpu.memory_space<vmem>>, %arg4: memref<1x256xf32, #tpu.memory_space<vmem>>, %arg5: memref<1x16x256xf32, #tpu.memory_space<vmem>>, %arg6: memref<1x1x256xf32, #tpu.memory_space<vmem>>, %arg7: memref<1x1x256xf32, #tpu.memory_space<vmem>>) attributes {dimension_semantics = [#tpu.dimension_semantics<parallel>, #tpu.dimension_semantics<arbitrary>], iteration_bounds = array<i64: 2, 1>, scalar_prefetch = 0 : i64, scratch_operands = 0 : i64, tpu.core_type = #tpu.core_type<tc>, window_params = [{transform_indices = @transform_0, window_bounds = array<i64: 1, 16, 2048>}, {pipeline_mode = #tpu.pipeline_mode<synchronous>, transform_indices = @transform_1, window_bounds = array<i64: 2048, 256>}, {pipeline_mode = #tpu.pipeline_mode<synchronous>, transform_indices = @transform_2, window_bounds = array<i64: 1, 256>}, {transform_indices = @transform_3, window_bounds = array<i64: 1, 16, 256>}, {transform_indices = @transform_4, window_bounds = array<i64: 1, 1, 256>}, {transform_indices = @transform_5, window_bounds = array<i64: 1, 1, 256>}]} {
    %c0 = arith.constant 0 : index
    %c0_0 = arith.constant 0 : index
    %c0_1 = arith.constant 0 : index
    %0 = vector.load %arg2[%c0, %c0_0, %c0_1] : memref<1x16x2048xbf16, #tpu.memory_space<vmem>>, vector<1x16x2048xbf16>
    %1 = vector.shape_cast %0 : vector<1x16x2048xbf16> to vector<16x2048xbf16>
    %c0_2 = arith.constant 0 : index
    %c0_3 = arith.constant 0 : index
    %2 = vector.load %arg3[%c0_2, %c0_3] : memref<2048x256xbf16, #tpu.memory_space<vmem>>, vector<2048x256xbf16>
    %cst = arith.constant dense<0.000000e+00> : vector<16x256xf32>
    %3 = tpu.matmul %1, %2, %cst {dimension_numbers = #tpu.dot_dimension_numbers<[1], [0], [0], [1], [0, 0, 1, 1], [], []>} : vector<16x2048xbf16>, vector<2048x256xbf16>, vector<16x256xf32> -> vector<16x256xf32>
    %c0_4 = arith.constant 0 : index
    %c0_5 = arith.constant 0 : index
    %4 = vector.load %arg4[%c0_4, %c0_5] : memref<1x256xf32, #tpu.memory_space<vmem>>, vector<1x256xf32>
    %5 = vector.broadcast %4 : vector<1x256xf32> to vector<16x256xf32>
    %6 = arith.addf %3, %5 : vector<16x256xf32>
    %c0_6 = arith.constant 0 : index
    %c0_7 = arith.constant 0 : index
    %c0_8 = arith.constant 0 : index
    %7 = vector.load %arg5[%c0_6, %c0_7, %c0_8] : memref<1x16x256xf32, #tpu.memory_space<vmem>>, vector<1x16x256xf32>
    %8 = vector.shape_cast %7 : vector<1x16x256xf32> to vector<16x256xf32>
    %9 = vector.shape_cast %6 : vector<16x256xf32> to vector<1x16x256xf32>
    tpu.vector_store %arg5[%c0_6, %c0_7, %c0_8], %9 {strides = array<i32>} : memref<1x16x256xf32, #tpu.memory_space<vmem>>, vector<1x16x256xf32>,
    %c0_i32 = arith.constant 0 : i32
    %10 = arith.cmpi eq, %arg1, %c0_i32 : i32
    %11 = arith.extui %10 : i1 to i32
    %c0_i32_9 = arith.constant 0 : i32
    %12 = arith.cmpi ne, %11, %c0_i32_9 : i32
    scf.if %12 {
      %cst_24 = arith.constant 0.000000e+00 : f32
      %30 = vector.broadcast %cst_24 : f32 to vector<1x1x256xf32>
      %c0_25 = arith.constant 0 : index
      %c0_26 = arith.constant 0 : index
      %c0_27 = arith.constant 0 : index
      %31 = vector.load %arg6[%c0_25, %c0_26, %c0_27] : memref<1x1x256xf32, #tpu.memory_space<vmem>>, vector<1x1x256xf32>
      tpu.vector_store %arg6[%c0_25, %c0_26, %c0_27], %30 {strides = array<i32>} : memref<1x1x256xf32, #tpu.memory_space<vmem>>, vector<1x1x256xf32>,
      %cst_28 = arith.constant 0.000000e+00 : f32
      %32 = vector.broadcast %cst_28 : f32 to vector<1x1x256xf32>
      %c0_29 = arith.constant 0 : index
      %c0_30 = arith.constant 0 : index
      %c0_31 = arith.constant 0 : index
      %33 = vector.load %arg7[%c0_29, %c0_30, %c0_31] : memref<1x1x256xf32, #tpu.memory_space<vmem>>, vector<1x1x256xf32>
      tpu.vector_store %arg7[%c0_29, %c0_30, %c0_31], %32 {strides = array<i32>} : memref<1x1x256xf32, #tpu.memory_space<vmem>>, vector<1x1x256xf32>,
    } else {
    }
    %c0_10 = arith.constant 0 : index
    %c0_11 = arith.constant 0 : index
    %c0_12 = arith.constant 0 : index
    %13 = vector.load %arg6[%c0_10, %c0_11, %c0_12] : memref<1x1x256xf32, #tpu.memory_space<vmem>>, vector<1x1x256xf32>
    %14 = vector.shape_cast %13 : vector<1x1x256xf32> to vector<1x256xf32>
    %cst_13 = arith.constant dense<0.000000e+00> : vector<256xf32>
    %15 = vector.multi_reduction <add>, %6, %cst_13 [0] : vector<16x256xf32> to vector<256xf32>
    %16 = vector.shape_cast %15 : vector<256xf32> to vector<1x256xf32>
    %17 = arith.addf %14, %16 : vector<1x256xf32>
    %c0_14 = arith.constant 0 : index
    %c0_15 = arith.constant 0 : index
    %c0_16 = arith.constant 0 : index
    %18 = vector.load %arg6[%c0_14, %c0_15, %c0_16] : memref<1x1x256xf32, #tpu.memory_space<vmem>>, vector<1x1x256xf32>
    %19 = vector.shape_cast %18 : vector<1x1x256xf32> to vector<1x256xf32>
    %20 = vector.shape_cast %17 : vector<1x256xf32> to vector<1x1x256xf32>
    tpu.vector_store %arg6[%c0_14, %c0_15, %c0_16], %20 {strides = array<i32>} : memref<1x1x256xf32, #tpu.memory_space<vmem>>, vector<1x1x256xf32>,
    %c0_17 = arith.constant 0 : index
    %c0_18 = arith.constant 0 : index
    %c0_19 = arith.constant 0 : index
    %21 = vector.load %arg7[%c0_17, %c0_18, %c0_19] : memref<1x1x256xf32, #tpu.memory_space<vmem>>, vector<1x1x256xf32>
    %22 = vector.shape_cast %21 : vector<1x1x256xf32> to vector<1x256xf32>
    %23 = arith.mulf %6, %6 : vector<16x256xf32>
    %cst_20 = arith.constant dense<0.000000e+00> : vector<256xf32>
    %24 = vector.multi_reduction <add>, %23, %cst_20 [0] : vector<16x256xf32> to vector<256xf32>
    %25 = vector.shape_cast %24 : vector<256xf32> to vector<1x256xf32>
    %26 = arith.addf %22, %25 : vector<1x256xf32>
    %c0_21 = arith.constant 0 : index
    %c0_22 = arith.constant 0 : index
    %c0_23 = arith.constant 0 : index
    %27 = vector.load %arg7[%c0_21, %c0_22, %c0_23] : memref<1x1x256xf32, #tpu.memory_space<vmem>>, vector<1x1x256xf32>
    %28 = vector.shape_cast %27 : vector<1x1x256xf32> to vector<1x256xf32>
    %29 = vector.shape_cast %26 : vector<1x256xf32> to vector<1x1x256xf32>
    tpu.vector_store %arg7[%c0_21, %c0_22, %c0_23], %29 {strides = array<i32>} : memref<1x1x256xf32, #tpu.memory_space<vmem>>, vector<1x1x256xf32>,
    return
  }
  func.func @transform_0(%arg0: i32, %arg1: i32) -> (i32, i32, i32) {
    %c0_i32 = arith.constant 0 : i32
    %c0_i32_0 = arith.constant 0 : i32
    return %arg0, %arg1, %c0_i32 : i32, i32, i32
  }
  func.func @transform_1(%arg0: i32, %arg1: i32) -> (i32, i32) {
    %c0_i32 = arith.constant 0 : i32
    %c0_i32_0 = arith.constant 0 : i32
    %c0_i32_1 = arith.constant 0 : i32
    return %c0_i32, %c0_i32_0 : i32, i32
  }
  func.func @transform_2(%arg0: i32, %arg1: i32) -> (i32, i32) {
    %c0_i32 = arith.constant 0 : i32
    %c0_i32_0 = arith.constant 0 : i32
    %c0_i32_1 = arith.constant 0 : i32
    return %c0_i32, %c0_i32_0 : i32, i32
  }
  func.func @transform_3(%arg0: i32, %arg1: i32) -> (i32, i32, i32) {
    %c0_i32 = arith.constant 0 : i32
    %c0_i32_0 = arith.constant 0 : i32
    return %arg0, %arg1, %c0_i32 : i32, i32, i32
  }
  func.func @transform_4(%arg0: i32, %arg1: i32) -> (i32, i32, i32) {
    %c0_i32 = arith.constant 0 : i32
    %c0_i32_0 = arith.constant 0 : i32
    %c0_i32_1 = arith.constant 0 : i32
    return %arg0, %c0_i32, %c0_i32_0 : i32, i32, i32
  }
  func.func @transform_5(%arg0: i32, %arg1: i32) -> (i32, i32, i32) {
    %c0_i32 = arith.constant 0 : i32
    %c0_i32_0 = arith.constant 0 : i32
    %c0_i32_1 = arith.constant 0 : i32
    return %arg0, %c0_i32, %c0_i32_0 : i32, i32, i32
  }
}

module attributes {stable_mosaic.version = 11 : i64} {
  func.func @_inorm_lrelu_kernel(%arg0: i32, %arg1: i32, %arg2: memref<1x16x256xf32, #tpu.memory_space<vmem>>, %arg3: memref<1x1x256xf32, #tpu.memory_space<vmem>>, %arg4: memref<1x1x256xf32, #tpu.memory_space<vmem>>, %arg5: memref<1x16x256xbf16, #tpu.memory_space<vmem>>) attributes {dimension_semantics = [#tpu.dimension_semantics<parallel>, #tpu.dimension_semantics<parallel>], iteration_bounds = array<i64: 2, 1>, scalar_prefetch = 0 : i64, scratch_operands = 0 : i64, tpu.core_type = #tpu.core_type<tc>, window_params = [{transform_indices = @transform_0, window_bounds = array<i64: 1, 16, 256>}, {transform_indices = @transform_1, window_bounds = array<i64: 1, 1, 256>}, {transform_indices = @transform_2, window_bounds = array<i64: 1, 1, 256>}, {transform_indices = @transform_3, window_bounds = array<i64: 1, 16, 256>}]} {
    %c0 = arith.constant 0 : index
    %c0_0 = arith.constant 0 : index
    %c0_1 = arith.constant 0 : index
    %0 = vector.load %arg2[%c0, %c0_0, %c0_1] : memref<1x16x256xf32, #tpu.memory_space<vmem>>, vector<1x16x256xf32>
    %1 = vector.shape_cast %0 : vector<1x16x256xf32> to vector<16x256xf32>
    %c0_2 = arith.constant 0 : index
    %c0_3 = arith.constant 0 : index
    %c0_4 = arith.constant 0 : index
    %2 = vector.load %arg3[%c0_2, %c0_3, %c0_4] : memref<1x1x256xf32, #tpu.memory_space<vmem>>, vector<1x1x256xf32>
    %3 = vector.shape_cast %2 : vector<1x1x256xf32> to vector<1x256xf32>
    %cst = arith.constant 6.250000e-02 : f32
    %4 = vector.broadcast %cst : f32 to vector<1x256xf32>
    %5 = arith.mulf %3, %4 : vector<1x256xf32>
    %c0_5 = arith.constant 0 : index
    %c0_6 = arith.constant 0 : index
    %c0_7 = arith.constant 0 : index
    %6 = vector.load %arg4[%c0_5, %c0_6, %c0_7] : memref<1x1x256xf32, #tpu.memory_space<vmem>>, vector<1x1x256xf32>
    %7 = vector.shape_cast %6 : vector<1x1x256xf32> to vector<1x256xf32>
    %cst_8 = arith.constant 6.250000e-02 : f32
    %8 = vector.broadcast %cst_8 : f32 to vector<1x256xf32>
    %9 = arith.mulf %7, %8 : vector<1x256xf32>
    %10 = arith.mulf %5, %5 : vector<1x256xf32>
    %11 = arith.subf %9, %10 : vector<1x256xf32>
    %cst_9 = arith.constant 0.000000e+00 : f32
    %12 = vector.broadcast %cst_9 : f32 to vector<1x256xf32>
    %13 = arith.maximumf %11, %12 : vector<1x256xf32>
    %cst_10 = arith.constant 9.99999974E-6 : f32
    %14 = vector.broadcast %cst_10 : f32 to vector<1x256xf32>
    %15 = arith.addf %13, %14 : vector<1x256xf32>
    %16 = math.rsqrt %15 : vector<1x256xf32>
    %17 = vector.broadcast %5 : vector<1x256xf32> to vector<16x256xf32>
    %18 = arith.subf %1, %17 : vector<16x256xf32>
    %19 = vector.broadcast %16 : vector<1x256xf32> to vector<16x256xf32>
    %20 = arith.mulf %18, %19 : vector<16x256xf32>
    %cst_11 = arith.constant 2.000000e-01 : f32
    %21 = vector.broadcast %cst_11 : f32 to vector<16x256xf32>
    %22 = arith.mulf %21, %20 : vector<16x256xf32>
    %23 = arith.maximumf %20, %22 : vector<16x256xf32>
    %24 = arith.truncf %23 : vector<16x256xf32> to vector<16x256xbf16>
    %c0_12 = arith.constant 0 : index
    %c0_13 = arith.constant 0 : index
    %c0_14 = arith.constant 0 : index
    %25 = vector.load %arg5[%c0_12, %c0_13, %c0_14] : memref<1x16x256xbf16, #tpu.memory_space<vmem>>, vector<1x16x256xbf16>
    %26 = vector.shape_cast %25 : vector<1x16x256xbf16> to vector<16x256xbf16>
    %27 = vector.shape_cast %24 : vector<16x256xbf16> to vector<1x16x256xbf16>
    tpu.vector_store %arg5[%c0_12, %c0_13, %c0_14], %27 {strides = array<i32>} : memref<1x16x256xbf16, #tpu.memory_space<vmem>>, vector<1x16x256xbf16>,
    return
  }
  func.func @transform_0(%arg0: i32, %arg1: i32) -> (i32, i32, i32) {
    %c0_i32 = arith.constant 0 : i32
    %c0_i32_0 = arith.constant 0 : i32
    return %arg0, %arg1, %c0_i32 : i32, i32, i32
  }
  func.func @transform_1(%arg0: i32, %arg1: i32) -> (i32, i32, i32) {
    %c0_i32 = arith.constant 0 : i32
    %c0_i32_0 = arith.constant 0 : i32
    %c0_i32_1 = arith.constant 0 : i32
    return %arg0, %c0_i32, %c0_i32_0 : i32, i32, i32
  }
  func.func @transform_2(%arg0: i32, %arg1: i32) -> (i32, i32, i32) {
    %c0_i32 = arith.constant 0 : i32
    %c0_i32_0 = arith.constant 0 : i32
    %c0_i32_1 = arith.constant 0 : i32
    return %arg0, %c0_i32, %c0_i32_0 : i32, i32, i32
  }
  func.func @transform_3(%arg0: i32, %arg1: i32) -> (i32, i32, i32) {
    %c0_i32 = arith.constant 0 : i32
    %c0_i32_0 = arith.constant 0 : i32
    return %arg0, %arg1, %c0_i32 : i32, i32, i32
  }
}

module attributes {stable_mosaic.version = 11 : i64} {
  func.func @_matmul_stats_kernel(%arg0: i32, %arg1: i32, %arg2: memref<1x8x4096xbf16, #tpu.memory_space<vmem>>, %arg3: memref<4096x512xbf16, #tpu.memory_space<vmem>>, %arg4: memref<1x512xf32, #tpu.memory_space<vmem>>, %arg5: memref<1x8x512xf32, #tpu.memory_space<vmem>>, %arg6: memref<1x1x512xf32, #tpu.memory_space<vmem>>, %arg7: memref<1x1x512xf32, #tpu.memory_space<vmem>>) attributes {dimension_semantics = [#tpu.dimension_semantics<parallel>, #tpu.dimension_semantics<arbitrary>], iteration_bounds = array<i64: 2, 1>, scalar_prefetch = 0 : i64, scratch_operands = 0 : i64, tpu.core_type = #tpu.core_type<tc>, window_params = [{transform_indices = @transform_0, window_bounds = array<i64: 1, 8, 4096>}, {pipeline_mode = #tpu.pipeline_mode<synchronous>, transform_indices = @transform_1, window_bounds = array<i64: 4096, 512>}, {pipeline_mode = #tpu.pipeline_mode<synchronous>, transform_indices = @transform_2, window_bounds = array<i64: 1, 512>}, {transform_indices = @transform_3, window_bounds = array<i64: 1, 8, 512>}, {transform_indices = @transform_4, window_bounds = array<i64: 1, 1, 512>}, {transform_indices = @transform_5, window_bounds = array<i64: 1, 1, 512>}]} {
    %c0 = arith.constant 0 : index
    %c0_0 = arith.constant 0 : index
    %c0_1 = arith.constant 0 : index
    %0 = vector.load %arg2[%c0, %c0_0, %c0_1] : memref<1x8x4096xbf16, #tpu.memory_space<vmem>>, vector<1x8x4096xbf16>
    %1 = vector.shape_cast %0 : vector<1x8x4096xbf16> to vector<8x4096xbf16>
    %c0_2 = arith.constant 0 : index
    %c0_3 = arith.constant 0 : index
    %2 = vector.load %arg3[%c0_2, %c0_3] : memref<4096x512xbf16, #tpu.memory_space<vmem>>, vector<4096x512xbf16>
    %cst = arith.constant dense<0.000000e+00> : vector<8x512xf32>
    %3 = tpu.matmul %1, %2, %cst {dimension_numbers = #tpu.dot_dimension_numbers<[1], [0], [0], [1], [0, 0, 1, 1], [], []>} : vector<8x4096xbf16>, vector<4096x512xbf16>, vector<8x512xf32> -> vector<8x512xf32>
    %c0_4 = arith.constant 0 : index
    %c0_5 = arith.constant 0 : index
    %4 = vector.load %arg4[%c0_4, %c0_5] : memref<1x512xf32, #tpu.memory_space<vmem>>, vector<1x512xf32>
    %5 = vector.broadcast %4 : vector<1x512xf32> to vector<8x512xf32>
    %6 = arith.addf %3, %5 : vector<8x512xf32>
    %c0_6 = arith.constant 0 : index
    %c0_7 = arith.constant 0 : index
    %c0_8 = arith.constant 0 : index
    %7 = vector.load %arg5[%c0_6, %c0_7, %c0_8] : memref<1x8x512xf32, #tpu.memory_space<vmem>>, vector<1x8x512xf32>
    %8 = vector.shape_cast %7 : vector<1x8x512xf32> to vector<8x512xf32>
    %9 = vector.shape_cast %6 : vector<8x512xf32> to vector<1x8x512xf32>
    tpu.vector_store %arg5[%c0_6, %c0_7, %c0_8], %9 {strides = array<i32>} : memref<1x8x512xf32, #tpu.memory_space<vmem>>, vector<1x8x512xf32>,
    %10 = tpu.iota {dimensions = array<i32: 0>} : vector<8x512xi32>
    %c8_i32 = arith.constant 8 : i32
    %11 = arith.muli %arg1, %c8_i32 : i32
    %12 = vector.broadcast %11 : i32 to vector<8x512xi32>
    %13 = arith.addi %10, %12 : vector<8x512xi32>
    %c4_i32 = arith.constant 4 : i32
    %14 = vector.broadcast %c4_i32 : i32 to vector<8x512xi32>
    %15 = arith.cmpi slt, %13, %14 : vector<8x512xi32>
    %cst_9 = arith.constant 0.000000e+00 : f32
    %16 = vector.broadcast %cst_9 : f32 to vector<8x512xf32>
    %17 = arith.select %15, %6, %16 : vector<8x512xi1>, vector<8x512xf32>
    %c0_i32 = arith.constant 0 : i32
    %18 = arith.cmpi eq, %arg1, %c0_i32 : i32
    %19 = arith.extui %18 : i1 to i32
    %c0_i32_10 = arith.constant 0 : i32
    %20 = arith.cmpi ne, %19, %c0_i32_10 : i32
    scf.if %20 {
      %cst_25 = arith.constant 0.000000e+00 : f32
      %38 = vector.broadcast %cst_25 : f32 to vector<1x1x512xf32>
      %c0_26 = arith.constant 0 : index
      %c0_27 = arith.constant 0 : index
      %c0_28 = arith.constant 0 : index
      %39 = vector.load %arg6[%c0_26, %c0_27, %c0_28] : memref<1x1x512xf32, #tpu.memory_space<vmem>>, vector<1x1x512xf32>
      tpu.vector_store %arg6[%c0_26, %c0_27, %c0_28], %38 {strides = array<i32>} : memref<1x1x512xf32, #tpu.memory_space<vmem>>, vector<1x1x512xf32>,
      %cst_29 = arith.constant 0.000000e+00 : f32
      %40 = vector.broadcast %cst_29 : f32 to vector<1x1x512xf32>
      %c0_30 = arith.constant 0 : index
      %c0_31 = arith.constant 0 : index
      %c0_32 = arith.constant 0 : index
      %41 = vector.load %arg7[%c0_30, %c0_31, %c0_32] : memref<1x1x512xf32, #tpu.memory_space<vmem>>, vector<1x1x512xf32>
      tpu.vector_store %arg7[%c0_30, %c0_31, %c0_32], %40 {strides = array<i32>} : memref<1x1x512xf32, #tpu.memory_space<vmem>>, vector<1x1x512xf32>,
    } else {
    }
    %c0_11 = arith.constant 0 : index
    %c0_12 = arith.constant 0 : index
    %c0_13 = arith.constant 0 : index
    %21 = vector.load %arg6[%c0_11, %c0_12, %c0_13] : memref<1x1x512xf32, #tpu.memory_space<vmem>>, vector<1x1x512xf32>
    %22 = vector.shape_cast %21 : vector<1x1x512xf32> to vector<1x512xf32>
    %cst_14 = arith.constant dense<0.000000e+00> : vector<512xf32>
    %23 = vector.multi_reduction <add>, %17, %cst_14 [0] : vector<8x512xf32> to vector<512xf32>
    %24 = vector.shape_cast %23 : vector<512xf32> to vector<1x512xf32>
    %25 = arith.addf %22, %24 : vector<1x512xf32>
    %c0_15 = arith.constant 0 : index
    %c0_16 = arith.constant 0 : index
    %c0_17 = arith.constant 0 : index
    %26 = vector.load %arg6[%c0_15, %c0_16, %c0_17] : memref<1x1x512xf32, #tpu.memory_space<vmem>>, vector<1x1x512xf32>
    %27 = vector.shape_cast %26 : vector<1x1x512xf32> to vector<1x512xf32>
    %28 = vector.shape_cast %25 : vector<1x512xf32> to vector<1x1x512xf32>
    tpu.vector_store %arg6[%c0_15, %c0_16, %c0_17], %28 {strides = array<i32>} : memref<1x1x512xf32, #tpu.memory_space<vmem>>, vector<1x1x512xf32>,
    %c0_18 = arith.constant 0 : index
    %c0_19 = arith.constant 0 : index
    %c0_20 = arith.constant 0 : index
    %29 = vector.load %arg7[%c0_18, %c0_19, %c0_20] : memref<1x1x512xf32, #tpu.memory_space<vmem>>, vector<1x1x512xf32>
    %30 = vector.shape_cast %29 : vector<1x1x512xf32> to vector<1x512xf32>
    %31 = arith.mulf %17, %17 : vector<8x512xf32>
    %cst_21 = arith.constant dense<0.000000e+00> : vector<512xf32>
    %32 = vector.multi_reduction <add>, %31, %cst_21 [0] : vector<8x512xf32> to vector<512xf32>
    %33 = vector.shape_cast %32 : vector<512xf32> to vector<1x512xf32>
    %34 = arith.addf %30, %33 : vector<1x512xf32>
    %c0_22 = arith.constant 0 : index
    %c0_23 = arith.constant 0 : index
    %c0_24 = arith.constant 0 : index
    %35 = vector.load %arg7[%c0_22, %c0_23, %c0_24] : memref<1x1x512xf32, #tpu.memory_space<vmem>>, vector<1x1x512xf32>
    %36 = vector.shape_cast %35 : vector<1x1x512xf32> to vector<1x512xf32>
    %37 = vector.shape_cast %34 : vector<1x512xf32> to vector<1x1x512xf32>
    tpu.vector_store %arg7[%c0_22, %c0_23, %c0_24], %37 {strides = array<i32>} : memref<1x1x512xf32, #tpu.memory_space<vmem>>, vector<1x1x512xf32>,
    return
  }
  func.func @transform_0(%arg0: i32, %arg1: i32) -> (i32, i32, i32) {
    %c0_i32 = arith.constant 0 : i32
    %c0_i32_0 = arith.constant 0 : i32
    return %arg0, %arg1, %c0_i32 : i32, i32, i32
  }
  func.func @transform_1(%arg0: i32, %arg1: i32) -> (i32, i32) {
    %c0_i32 = arith.constant 0 : i32
    %c0_i32_0 = arith.constant 0 : i32
    %c0_i32_1 = arith.constant 0 : i32
    return %c0_i32, %c0_i32_0 : i32, i32
  }
  func.func @transform_2(%arg0: i32, %arg1: i32) -> (i32, i32) {
    %c0_i32 = arith.constant 0 : i32
    %c0_i32_0 = arith.constant 0 : i32
    %c0_i32_1 = arith.constant 0 : i32
    return %c0_i32, %c0_i32_0 : i32, i32
  }
  func.func @transform_3(%arg0: i32, %arg1: i32) -> (i32, i32, i32) {
    %c0_i32 = arith.constant 0 : i32
    %c0_i32_0 = arith.constant 0 : i32
    return %arg0, %arg1, %c0_i32 : i32, i32, i32
  }
  func.func @transform_4(%arg0: i32, %arg1: i32) -> (i32, i32, i32) {
    %c0_i32 = arith.constant 0 : i32
    %c0_i32_0 = arith.constant 0 : i32
    %c0_i32_1 = arith.constant 0 : i32
    return %arg0, %c0_i32, %c0_i32_0 : i32, i32, i32
  }
  func.func @transform_5(%arg0: i32, %arg1: i32) -> (i32, i32, i32) {
    %c0_i32 = arith.constant 0 : i32
    %c0_i32_0 = arith.constant 0 : i32
    %c0_i32_1 = arith.constant 0 : i32
    return %arg0, %c0_i32, %c0_i32_0 : i32, i32, i32
  }
}

module attributes {stable_mosaic.version = 11 : i64} {
  func.func @_inorm_lrelu_kernel(%arg0: i32, %arg1: i32, %arg2: memref<1x8x512xf32, #tpu.memory_space<vmem>>, %arg3: memref<1x1x512xf32, #tpu.memory_space<vmem>>, %arg4: memref<1x1x512xf32, #tpu.memory_space<vmem>>, %arg5: memref<1x8x512xbf16, #tpu.memory_space<vmem>>) attributes {dimension_semantics = [#tpu.dimension_semantics<parallel>, #tpu.dimension_semantics<parallel>], iteration_bounds = array<i64: 2, 1>, scalar_prefetch = 0 : i64, scratch_operands = 0 : i64, tpu.core_type = #tpu.core_type<tc>, window_params = [{transform_indices = @transform_0, window_bounds = array<i64: 1, 8, 512>}, {transform_indices = @transform_1, window_bounds = array<i64: 1, 1, 512>}, {transform_indices = @transform_2, window_bounds = array<i64: 1, 1, 512>}, {transform_indices = @transform_3, window_bounds = array<i64: 1, 8, 512>}]} {
    %c0 = arith.constant 0 : index
    %c0_0 = arith.constant 0 : index
    %c0_1 = arith.constant 0 : index
    %0 = vector.load %arg2[%c0, %c0_0, %c0_1] : memref<1x8x512xf32, #tpu.memory_space<vmem>>, vector<1x8x512xf32>
    %1 = vector.shape_cast %0 : vector<1x8x512xf32> to vector<8x512xf32>
    %c0_2 = arith.constant 0 : index
    %c0_3 = arith.constant 0 : index
    %c0_4 = arith.constant 0 : index
    %2 = vector.load %arg3[%c0_2, %c0_3, %c0_4] : memref<1x1x512xf32, #tpu.memory_space<vmem>>, vector<1x1x512xf32>
    %3 = vector.shape_cast %2 : vector<1x1x512xf32> to vector<1x512xf32>
    %cst = arith.constant 2.500000e-01 : f32
    %4 = vector.broadcast %cst : f32 to vector<1x512xf32>
    %5 = arith.mulf %3, %4 : vector<1x512xf32>
    %c0_5 = arith.constant 0 : index
    %c0_6 = arith.constant 0 : index
    %c0_7 = arith.constant 0 : index
    %6 = vector.load %arg4[%c0_5, %c0_6, %c0_7] : memref<1x1x512xf32, #tpu.memory_space<vmem>>, vector<1x1x512xf32>
    %7 = vector.shape_cast %6 : vector<1x1x512xf32> to vector<1x512xf32>
    %cst_8 = arith.constant 2.500000e-01 : f32
    %8 = vector.broadcast %cst_8 : f32 to vector<1x512xf32>
    %9 = arith.mulf %7, %8 : vector<1x512xf32>
    %10 = arith.mulf %5, %5 : vector<1x512xf32>
    %11 = arith.subf %9, %10 : vector<1x512xf32>
    %cst_9 = arith.constant 0.000000e+00 : f32
    %12 = vector.broadcast %cst_9 : f32 to vector<1x512xf32>
    %13 = arith.maximumf %11, %12 : vector<1x512xf32>
    %cst_10 = arith.constant 9.99999974E-6 : f32
    %14 = vector.broadcast %cst_10 : f32 to vector<1x512xf32>
    %15 = arith.addf %13, %14 : vector<1x512xf32>
    %16 = math.rsqrt %15 : vector<1x512xf32>
    %17 = vector.broadcast %5 : vector<1x512xf32> to vector<8x512xf32>
    %18 = arith.subf %1, %17 : vector<8x512xf32>
    %19 = vector.broadcast %16 : vector<1x512xf32> to vector<8x512xf32>
    %20 = arith.mulf %18, %19 : vector<8x512xf32>
    %cst_11 = arith.constant 2.000000e-01 : f32
    %21 = vector.broadcast %cst_11 : f32 to vector<8x512xf32>
    %22 = arith.mulf %21, %20 : vector<8x512xf32>
    %23 = arith.maximumf %20, %22 : vector<8x512xf32>
    %24 = arith.truncf %23 : vector<8x512xf32> to vector<8x512xbf16>
    %c0_12 = arith.constant 0 : index
    %c0_13 = arith.constant 0 : index
    %c0_14 = arith.constant 0 : index
    %25 = vector.load %arg5[%c0_12, %c0_13, %c0_14] : memref<1x8x512xbf16, #tpu.memory_space<vmem>>, vector<1x8x512xbf16>
    %26 = vector.shape_cast %25 : vector<1x8x512xbf16> to vector<8x512xbf16>
    %27 = vector.shape_cast %24 : vector<8x512xbf16> to vector<1x8x512xbf16>
    tpu.vector_store %arg5[%c0_12, %c0_13, %c0_14], %27 {strides = array<i32>} : memref<1x8x512xbf16, #tpu.memory_space<vmem>>, vector<1x8x512xbf16>,
    return
  }
  func.func @transform_0(%arg0: i32, %arg1: i32) -> (i32, i32, i32) {
    %c0_i32 = arith.constant 0 : i32
    %c0_i32_0 = arith.constant 0 : i32
    return %arg0, %arg1, %c0_i32 : i32, i32, i32
  }
  func.func @transform_1(%arg0: i32, %arg1: i32) -> (i32, i32, i32) {
    %c0_i32 = arith.constant 0 : i32
    %c0_i32_0 = arith.constant 0 : i32
    %c0_i32_1 = arith.constant 0 : i32
    return %arg0, %c0_i32, %c0_i32_0 : i32, i32, i32
  }
  func.func @transform_2(%arg0: i32, %arg1: i32) -> (i32, i32, i32) {
    %c0_i32 = arith.constant 0 : i32
    %c0_i32_0 = arith.constant 0 : i32
    %c0_i32_1 = arith.constant 0 : i32
    return %arg0, %c0_i32, %c0_i32_0 : i32, i32, i32
  }
  func.func @transform_3(%arg0: i32, %arg1: i32) -> (i32, i32, i32) {
    %c0_i32 = arith.constant 0 : i32
    %c0_i32_0 = arith.constant 0 : i32
    return %arg0, %arg1, %c0_i32 : i32, i32, i32
  }
}

module attributes {stable_mosaic.version = 11 : i64} {
  func.func @_matmul_bias_kernel(%arg0: i32, %arg1: i32, %arg2: memref<1x8x8192xbf16, #tpu.memory_space<vmem>>, %arg3: memref<8192x128xbf16, #tpu.memory_space<vmem>>, %arg4: memref<1x128xf32, #tpu.memory_space<vmem>>, %arg5: memref<1x8x128xf32, #tpu.memory_space<vmem>>) attributes {dimension_semantics = [#tpu.dimension_semantics<parallel>, #tpu.dimension_semantics<parallel>], iteration_bounds = array<i64: 2, 1>, scalar_prefetch = 0 : i64, scratch_operands = 0 : i64, tpu.core_type = #tpu.core_type<tc>, window_params = [{transform_indices = @transform_0, window_bounds = array<i64: 1, 8, 8192>}, {pipeline_mode = #tpu.pipeline_mode<synchronous>, transform_indices = @transform_1, window_bounds = array<i64: 8192, 128>}, {pipeline_mode = #tpu.pipeline_mode<synchronous>, transform_indices = @transform_2, window_bounds = array<i64: 1, 128>}, {transform_indices = @transform_3, window_bounds = array<i64: 1, 8, 128>}]} {
    %c0 = arith.constant 0 : index
    %c0_0 = arith.constant 0 : index
    %c0_1 = arith.constant 0 : index
    %0 = vector.load %arg2[%c0, %c0_0, %c0_1] : memref<1x8x8192xbf16, #tpu.memory_space<vmem>>, vector<1x8x8192xbf16>
    %1 = vector.shape_cast %0 : vector<1x8x8192xbf16> to vector<8x8192xbf16>
    %c0_2 = arith.constant 0 : index
    %c0_3 = arith.constant 0 : index
    %2 = vector.load %arg3[%c0_2, %c0_3] : memref<8192x128xbf16, #tpu.memory_space<vmem>>, vector<8192x128xbf16>
    %cst = arith.constant dense<0.000000e+00> : vector<8x128xf32>
    %3 = tpu.matmul %1, %2, %cst {dimension_numbers = #tpu.dot_dimension_numbers<[1], [0], [0], [1], [0, 0, 1, 1], [], []>} : vector<8x8192xbf16>, vector<8192x128xbf16>, vector<8x128xf32> -> vector<8x128xf32>
    %c0_4 = arith.constant 0 : index
    %c0_5 = arith.constant 0 : index
    %4 = vector.load %arg4[%c0_4, %c0_5] : memref<1x128xf32, #tpu.memory_space<vmem>>, vector<1x128xf32>
    %5 = vector.broadcast %4 : vector<1x128xf32> to vector<8x128xf32>
    %6 = arith.addf %3, %5 : vector<8x128xf32>
    %c0_6 = arith.constant 0 : index
    %c0_7 = arith.constant 0 : index
    %c0_8 = arith.constant 0 : index
    %7 = vector.load %arg5[%c0_6, %c0_7, %c0_8] : memref<1x8x128xf32, #tpu.memory_space<vmem>>, vector<1x8x128xf32>
    %8 = vector.shape_cast %7 : vector<1x8x128xf32> to vector<8x128xf32>
    %9 = vector.shape_cast %6 : vector<8x128xf32> to vector<1x8x128xf32>
    tpu.vector_store %arg5[%c0_6, %c0_7, %c0_8], %9 {strides = array<i32>} : memref<1x8x128xf32, #tpu.memory_space<vmem>>, vector<1x8x128xf32>,
    return
  }
  func.func @transform_0(%arg0: i32, %arg1: i32) -> (i32, i32, i32) {
    %c0_i32 = arith.constant 0 : i32
    %c0_i32_0 = arith.constant 0 : i32
    return %arg0, %arg1, %c0_i32 : i32, i32, i32
  }
  func.func @transform_1(%arg0: i32, %arg1: i32) -> (i32, i32) {
    %c0_i32 = arith.constant 0 : i32
    %c0_i32_0 = arith.constant 0 : i32
    %c0_i32_1 = arith.constant 0 : i32
    return %c0_i32, %c0_i32_0 : i32, i32
  }
  func.func @transform_2(%arg0: i32, %arg1: i32) -> (i32, i32) {
    %c0_i32 = arith.constant 0 : i32
    %c0_i32_0 = arith.constant 0 : i32
    %c0_i32_1 = arith.constant 0 : i32
    return %c0_i32, %c0_i32_0 : i32, i32
  }
  func.func @transform_3(%arg0: i32, %arg1: i32) -> (i32, i32, i32) {
    %c0_i32 = arith.constant 0 : i32
    %c0_i32_0 = arith.constant 0 : i32
    return %arg0, %arg1, %c0_i32 : i32, i32, i32
  }
}

</mosaic_0001>

<bundles_post_ra>
// kernel: discriminator_forward.8
= control target key start
LH: loop header
LB: loop body
LE: loop exit
PB: predicated region body
PF: predicated region fallthrough
CT: control target
= control target key end

     0   :  { %8 = vsyncpa [#allocation3], 0  ;;  %s1236_s12 = smov 0   ;;  %s1238_s13 = smov 0   ;;  %s1461_s0 = inlined_call_operand.vmem [shape: bf16[2,256,128], index: 0, kind: input, shape index: {}]   ;;  %s1462_s1 = inlined_call_operand.vmem [shape: bf16[128,64], index: 1, kind: input, shape index: {}]   ;;  %s1463_s2 = inlined_call_operand.hbm [shape: f32[1,64], index: 2, kind: input, shape index: {}]   ;;  %s1464_s3 = inlined_call_operand.vmem [shape: bf16[2,256,64], index: 3, kind: output, shape index: {}]  }
   0x1   :  { %s1240_s14 = smov 0  }
   0x2 LB: > { %s908_s15 = sadd.s32 4294967295, %s1213_s14   ;;  %s26_s16 = sadd.s32 1, %s1209_s13  ;;  %s1213_s14 = sphi %s1240_s14, %s14_s14   ;;  %s1209_s13 = sphi %s1238_s13, %s1474_s13   ;;  %s1205_s12 = sphi %s1236_s12, %s1473_s12  }
   0x3   : > { %p28_p0 = scmp.ge.s32.totalorder %s26_s16, 2  ;;  %p910_p1 = scmp.ge.s32.totalorder %s1213_s14, 1 }
   0x4   : > { %p129_p2 = scmp.lt.s32.totalorder %s1213_s14, 3  ;;  %p1261_p4 = scmp.eq.s32.totalorder %s908_s15, 0 }
   0x5   : > { %s1476_s16 = smov (%p28_p0, %s26_s16), 0  ;;  %s1215_s19 = smov [#allocation2]  }
   0x6   : > { %p1257_p3 = pnand %p910_p1, %p129_p2  ;;  %s145_s20 = sshll.u32 %s1215_s19, 4  ;;  %s146_s20 = int_to_ptr.vmem [resolvable:$true] %s145_s20 }
   0x7   : > { %s1469_s18 = scalar_select %p1261_p4, 1, 0 }
   0x8   : > { %s1468_s17 = scalar_select %p1257_p3, 1, 0 }
   0x9   : > { %p1104_p5 = pneg %p1257_p3  ;;  %s1159_s24 = scalar_lea.hbm %s1463_s2, 16 }
   0xa   : > { %p1160_p7 = scmp.ne.s32.totalorder %s1463_s2, %s1159_s24  ;;  %p1166_p11 = scmp.lt.u32.totalorder %s1159_s24, %s1463_s2 }
   0xb   : > { %p1269_p6 = pnand %p1261_p4, %p1104_p5 }
   0xd   : > { %p1161_p8 = pneg %p1269_p6 }
   0xf   : > { %p1162_p9 = pnand %p1161_p8, %p1160_p7 }
  0x11   : > { %p1163_p10 = pneg %p1162_p9 }
  0x13   : > { %p1168_p12 = pnand %p1166_p11, %p1163_p10 }
  0x15   : > { %1171 = shalt.err (!%p1168_p12)
}
  0x16   : > { %s1172_s29 = scalar_lea.vmem %s146_s20, 16  ;;  %s1179_s30 = scalar_lea.vmem %s146_s20, 32 }
  0x17   : > { %p1173_p13 = scmp.ne.s32.totalorder %s146_s20, %s1172_s29  ;;  %p1180_p2 = scmp.lt.s32.totalorder %s146_s20, %s146_s20 }
  0x18   : > { %p1181_p5 = scmp.lt.s32.totalorder %s1179_s30, %s1172_s29 }
  0x19   : > { %p1175_p0 = pnand %p1173_p13, %p1161_p8 }
  0x1a   : > { %p1182_p4 = por %p1181_p5, %p1180_p2 }
  0x1b   : > { %p1176_p1 = pneg %p1175_p0 }
  0x1d   : > { %p1183_p3 = pnand %p1182_p4, %p1176_p1 }
  0x1f   : > { %1186 = shalt.err (!%p1183_p3)
}
  0x20   : > { %1107 = dma.hbm_to_vmem [thread:$0]  (!%p1269_p6), %s1463_s2, 16, %s146_s20, [#allocation3]  }
  0x21   : > { %p1471_p7 = scmp.ne.s32.totalorder %s1468_s17, 0 }
  0x22   : > { %p1472_p9 = scmp.ne.s32.totalorder (!%p1471_p7), %s1469_s18, 0 }
  0x23   : > { %171 = sbr.rel (%p1471_p7) target bundleno = 327 (0x147), region = 32 }
  0x2a   : > { %1200 = dma.done.wait (%p1472_p9), [#allocation3], 16  }
  0x2b   : > { %1202 = vsyncadd (%p1472_p9), [#allocation3], 4294967280  ;;  %p204_p8 = scmp.lt.s32.totalorder %s1205_s12, 1  ;;  %v1135_v0 = vld [vmem:[%s1462_s1] sm:$0xff]   ;;  %v1136_v1 = vld [vmem:[%s1462_s1 + $0x8] sm:$0xff]   ;;  %vm776_vm0 = vcmask 519168  }
  0x2c   : > { %1036 = vmatprep.subr.bf16.mxu0 %v1135_v0  ;;  %1084 = vmatprep.subr.bf16.mxu1 %v1135_v0  ;;  %v1137_v2 = vld [vmem:[%s1462_s1 + $0x10] sm:$0xff]   ;;  %v1138_v3 = vld [vmem:[%s1462_s1 + $0x18] sm:$0xff]   ;;  %v1139_v6 = vld [vmem:[%s1462_s1 + $0x20] sm:$0xff]  }
  0x2d   : > { %s1478_s12 = smov (!%p204_p8, %s1205_s12), 1  ;;  %1037 = vmatpush3.bf16.msra.mxu0 %v1135_v0  ;;  %1092 = vmatpush3.bf16.msra.mxu1 %v1135_v0  ;;  %v1140_v7 = vld [vmem:[%s1462_s1 + $0x28] sm:$0xff]   ;;  %v1141_v8 = vld [vmem:[%s1462_s1 + $0x30] sm:$0xff]   ;;  %v1142_v9 = vld [vmem:[%s1462_s1 + $0x38] sm:$0xff]  }
  0x2e   : > { %s978_s10 = sshll.u32 %s1478_s12, 7  ;;  %1038 = vmatprep.subr.bf16.mxu0 %v1136_v1  ;;  %1085 = vmatprep.subr.bf16.mxu1 %v1136_v1  ;;  %v1347_v24 = vld [vmem:[#allocation2] ss:$0 sm:$0xff] }
  0x2f   : > { %s1314_s19 = scalar_lea.vmem %s1461_s0, %s978_s10  ;;  %s1362_s5 = scalar_lea.vmem %s1464_s3, %s978_s10 }
  0x30   : > { %v1143_v4 = vld [vmem:[%s1314_s19] sm:$0xff]   ;;  %v1145_v10 = vld [vmem:[%s1314_s19 + $0x8] sm:$0xff]   ;;  %v1147_v12 = vld [vmem:[%s1314_s19 + $0x10] sm:$0xff]  }
  0x31   : > { %1039 = vmatpush3.bf16.msra.mxu0 %v1136_v1  ;;  %1093 = vmatpush3.bf16.msra.mxu1 %v1136_v1  ;;  %v1144_v5 = vld [vmem:[%s1314_s19 + $0x40] sm:$0xff]   ;;  %v1146_v11 = vld [vmem:[%s1314_s19 + $0x48] sm:$0xff]   ;;  %v1148_v13 = vld [vmem:[%s1314_s19 + $0x50] sm:$0xff]  }
  0x32   : > { %1040 = vmatprep.subr.bf16.mxu0 %v1137_v2  ;;  %1086 = vmatprep.subr.bf16.mxu1 %v1137_v2  ;;  %v1149_v14 = vld [vmem:[%s1314_s19 + $0x18] sm:$0xff]   ;;  %v1151_v16 = vld [vmem:[%s1314_s19 + $0x20] sm:$0xff]   ;;  %v1153_v18 = vld [vmem:[%s1314_s19 + $0x28] sm:$0xff]  }
  0x33   : > { %1052 = vmatprep.mubr.bf16.mxu0 %v1143_v4  ;;  %1068 = vmatprep.mubr.bf16.mxu1 %v1144_v5  ;;  %v1150_v15 = vld [vmem:[%s1314_s19 + $0x58] sm:$0xff]   ;;  %v1152_v17 = vld [vmem:[%s1314_s19 + $0x60] sm:$0xff]   ;;  %v1154_v19 = vld [vmem:[%s1314_s19 + $0x68] sm:$0xff]  }
  0x34   : > { %v1155_v20 = vld [vmem:[%s1314_s19 + $0x30] sm:$0xff]   ;;  %v1157_v22 = vld [vmem:[%s1314_s19 + $0x38] sm:$0xff]  }
  0x35   : > { %1041 = vmatpush3.bf16.msra.mxu0 %v1137_v2  ;;  %1094 = vmatpush3.bf16.msra.mxu1 %v1137_v2  ;;  %v1156_v21 = vld [vmem:[%s1314_s19 + $0x70] sm:$0xff]   ;;  %v1158_v23 = vld [vmem:[%s1314_s19 + $0x78] sm:$0xff]  }
  0x36   : > { %1042 = vmatprep.subr.bf16.mxu0 %v1138_v3  ;;  %1087 = vmatprep.subr.bf16.mxu1 %v1138_v3 }
  0x39   : > { %1043 = vmatpush3.bf16.msra.mxu0 %v1138_v3  ;;  %1095 = vmatpush3.bf16.msra.mxu1 %v1138_v3 }
  0x3a   : > { %1044 = vmatprep.subr.bf16.mxu0 %v1139_v6  ;;  %1088 = vmatprep.subr.bf16.mxu1 %v1139_v6 }
  0x3d   : > { %1045 = vmatpush3.bf16.msra.mxu0 %v1139_v6  ;;  %1096 = vmatpush3.bf16.msra.mxu1 %v1139_v6 }
  0x3e   : > { %1046 = vmatprep.subr.bf16.mxu0 %v1140_v7  ;;  %1089 = vmatprep.subr.bf16.mxu1 %v1140_v7 }
  0x41   : > { %1047 = vmatpush3.bf16.msra.mxu0 %v1140_v7  ;;  %1097 = vmatpush3.bf16.msra.mxu1 %v1140_v7 }
  0x42   : > { %1048 = vmatprep.subr.bf16.mxu0 %v1141_v8  ;;  %1090 = vmatprep.subr.bf16.mxu1 %v1141_v8 }
  0x45   : > { %1049 = vmatpush3.bf16.msra.mxu0 %v1141_v8  ;;  %1098 = vmatpush3.bf16.msra.mxu1 %v1141_v8 }
  0x46   : > { %1050 = vmatprep.subr.bf16.mxu0 %v1142_v9  ;;  %1091 = vmatprep.subr.bf16.mxu1 %v1142_v9 }
  0x49   : > { %1051 = vmatpush3.bf16.msra.mxu0 %v1142_v9  ;;  %1099 = vmatpush3.bf16.msra.mxu1 %v1142_v9 }
  0x4c   : > { %1053 = vmatmul.mubr.bf16.vlgmr.msra.gmra.mrb[0].mxu0 %v1145_v10  ;;  %1069 = vmatmul.mubr.bf16.vlgmr.msra.gmra.mrb[0].mxu1 %v1146_v11 }
  0x4d   : > { %1056 = vmatprep.mubr.bf16.mxu0 %v1147_v12  ;;  %1072 = vmatprep.mubr.bf16.mxu1 %v1148_v13 }
  0x54   : > { %1057 = vmatmul.mubr.bf16.gmra.mrb[4].mxu0 %v1149_v14  ;;  %1073 = vmatmul.mubr.bf16.gmra.mrb[4].mxu1 %v1150_v15 }
  0x55   : > { %1060 = vmatprep.mubr.bf16.mxu0 %v1151_v16  ;;  %1076 = vmatprep.mubr.bf16.mxu1 %v1152_v17 }
  0x5c   : > { %1061 = vmatmul.mubr.bf16.gmra.mrb[8].mxu0 %v1153_v18  ;;  %1077 = vmatmul.mubr.bf16.gmra.mrb[8].mxu1 %v1154_v19 }
  0x5d   : > { %1064 = vmatprep.mubr.bf16.mxu0 %v1155_v20  ;;  %1080 = vmatprep.mubr.bf16.mxu1 %v1156_v21 }
  0x64   : > { %1065 = vmatmul.mubr.bf16.gmra.mrb[12].mxu0 %v1157_v22  ;;  %1081 = vmatmul.mubr.bf16.gmra.mrb[12].mxu1 %v1158_v23 }
 0x11f   : > { %v1054_v25 = vpop.f32.mrb[0].mxu0  ;;  %v1070_v26 = vpop.f32.mrb[0].mxu1 }
 0x120   : > { %v466_v27 = vadd.f32 %v1054_v25, %v1347_v24  ;;  %v530_v28 = vadd.f32 %v1070_v26, %v1347_v24  ;;  %v457_v29 = vpop.f32.mrb[1].mxu0  ;;  %v521_v30 = vpop.f32.mrb[1].mxu1 }
 0x121   : > { %v458_v31 = vadd.f32 %v1347_v24, %v457_v29  ;;  %v522_v32 = vadd.f32 %v1347_v24, %v521_v30  ;;  %v1055_v33 = vpop.f32.mrb[2].mxu0  ;;  %v1071_v34 = vpop.f32.mrb[2].mxu1 }
 0x122   : > { %v586_v35 = vmul.f32 0.2, %v466_v27  ;;  %v602_v36 = vmul.f32 0.2, %v530_v28  ;;  %v469_v37 = vadd.f32 %v1055_v33, %v1347_v24  ;;  %v533_v38 = vadd.f32 %v1071_v34, %v1347_v24  ;;  %v460_v39 = vpop.f32.mrb[3].mxu0  ;;  %v524_v40 = vpop.f32.mrb[3].mxu1 }
 0x123   : > { %v584_v41 = vmul.f32 0.2, %v458_v31  ;;  %v600_v42 = vmul.f32 0.2, %v522_v32  ;;  %v461_v43 = vadd.f32 %v1347_v24, %v460_v39  ;;  %v525_v44 = vadd.f32 %v1347_v24, %v524_v40 }
 0x124   : > { %v618_v45 = vmax.f32 %v466_v27, %v586_v35  ;;  %v634_v46 = vmax.f32 %v530_v28, %v602_v36  ;;  %v587_v47 = vmul.f32 0.2, %v469_v37  ;;  %v603_v48 = vmul.f32 0.2, %v533_v38 }
 0x125   : > { %v616_v49 = vmax.f32 %v458_v31, %v584_v41  ;;  %v632_v50 = vmax.f32 %v522_v32, %v600_v42  ;;  %v585_v51 = vmul.f32 0.2, %v461_v43  ;;  %v601_v52 = vmul.f32 0.2, %v525_v44 }
 0x126   : > { %v982_v53 = vpack.c.bf16 %v618_v45, %v618_v45  ;;  %v998_v54 = vpack.c.bf16 %v634_v46, %v634_v46  ;;  %v619_v55 = vmax.f32 %v469_v37, %v587_v47  ;;  %v635_v56 = vmax.f32 %v533_v38, %v603_v48 }
 0x127   : > { %v980_v57 = vpack.c.bf16 %v616_v49, %v616_v49  ;;  %v996_v58 = vpack.c.bf16 %v632_v50, %v632_v50  ;;  %v617_v59 = vmax.f32 %v461_v43, %v585_v51  ;;  %v633_v60 = vmax.f32 %v525_v44, %v601_v52  ;;  %v1058_v61 = vpop.f32.mrb[4].mxu0  ;;  %v1074_v62 = vpop.f32.mrb[4].mxu1 }
 0x128   : > { %779 = vst.msk [vmem:[%s1362_s5 + $0x8] sm:$0xf] %vm776_vm0, %v982_v53  ;;  %795 = vst.msk [vmem:[%s1362_s5 + $0x48] sm:$0xf] %vm776_vm0, %v998_v54  ;;  %v983_v63 = vpack.c.bf16 %v619_v55, %v619_v55  ;;  %v999_v0 = vpack.c.bf16 %v635_v56, %v635_v56  ;;  %v482_v1 = vadd.f32 %v1058_v61, %v1347_v24  ;;  %v473_v3 = vpop.f32.mrb[5].mxu0  ;;  %v537_v4 = vpop.f32.mrb[5].mxu1 }
 0x129   : > { %v546_v2 = vadd.f32 %v1074_v62, %v1347_v24  ;;  %777 = vst.msk [vmem:[%s1362_s5] sm:$0xf] %vm776_vm0, %v980_v57  ;;  %793 = vst.msk [vmem:[%s1362_s5 + $0x40] sm:$0xf] %vm776_vm0, %v996_v58  ;;  %v981_v5 = vpack.c.bf16 %v617_v59, %v617_v59  ;;  %v997_v6 = vpack.c.bf16 %v633_v60, %v633_v60  ;;  %v1059_v9 = vpop.f32.mrb[6].mxu0  ;;  %v1075_v10 = vpop.f32.mrb[6].mxu1 }
 0x12a   : > { %v474_v7 = vadd.f32 %v1347_v24, %v473_v3  ;;  %v538_v8 = vadd.f32 %v1347_v24, %v537_v4  ;;  %780 = vst.msk [vmem:[%s1362_s5 + $0xc] sm:$0xf] %vm776_vm0, %v983_v63  ;;  %796 = vst.msk [vmem:[%s1362_s5 + $0x4c] sm:$0xf] %vm776_vm0, %v999_v0  ;;  %v590_v11 = vmul.f32 0.2, %v482_v1  ;;  %v485_v13 = vadd.f32 %v1059_v9, %v1347_v24 }
 0x12b   : > { %v606_v12 = vmul.f32 0.2, %v546_v2  ;;  %v549_v14 = vadd.f32 %v1075_v10, %v1347_v24  ;;  %v476_v15 = vpop.f32.mrb[7].mxu0  ;;  %v540_v16 = vpop.f32.mrb[7].mxu1  ;;  %778 = vst.msk [vmem:[%s1362_s5 + $0x4] sm:$0xf] %vm776_vm0, %v981_v5 }
 0x12c   : > { %794 = vst.msk [vmem:[%s1362_s5 + $0x44] sm:$0xf] %vm776_vm0, %v997_v6  ;;  %v588_v17 = vmul.f32 0.2, %v474_v7  ;;  %v604_v18 = vmul.f32 0.2, %v538_v8  ;;  %v477_v19 = vadd.f32 %v1347_v24, %v476_v15  ;;  %v541_v20 = vadd.f32 %v1347_v24, %v540_v16 }
 0x12d   : > { %v622_v21 = vmax.f32 %v482_v1, %v590_v11  ;;  %v638_v22 = vmax.f32 %v546_v2, %v606_v12  ;;  %v591_v23 = vmul.f32 0.2, %v485_v13  ;;  %v607_v25 = vmul.f32 0.2, %v549_v14 }
 0x12e   : > { %v620_v26 = vmax.f32 %v474_v7, %v588_v17  ;;  %v636_v27 = vmax.f32 %v538_v8, %v604_v18  ;;  %v589_v28 = vmul.f32 0.2, %v477_v19  ;;  %v605_v29 = vmul.f32 0.2, %v541_v20 }
 0x12f   : > { %v986_v30 = vpack.c.bf16 %v622_v21, %v622_v21  ;;  %v1002_v31 = vpack.c.bf16 %v638_v22, %v638_v22  ;;  %v623_v32 = vmax.f32 %v485_v13, %v591_v23  ;;  %v639_v33 = vmax.f32 %v549_v14, %v607_v25  ;;  %v1062_v38 = vpop.f32.mrb[8].mxu0  ;;  %v1078_v39 = vpop.f32.mrb[8].mxu1 }
 0x130   : > { %v984_v34 = vpack.c.bf16 %v620_v26, %v620_v26  ;;  %v1000_v35 = vpack.c.bf16 %v636_v27, %v636_v27  ;;  %v621_v36 = vmax.f32 %v477_v19, %v589_v28  ;;  %v637_v37 = vmax.f32 %v541_v20, %v605_v29  ;;  %v489_v44 = vpop.f32.mrb[9].mxu0  ;;  %v553_v45 = vpop.f32.mrb[9].mxu1 }
 0x131   : > { %783 = vst.msk [vmem:[%s1362_s5 + $0x18] sm:$0xf] %vm776_vm0, %v986_v30  ;;  %799 = vst.msk [vmem:[%s1362_s5 + $0x58] sm:$0xf] %vm776_vm0, %v1002_v31  ;;  %v987_v40 = vpack.c.bf16 %v623_v32, %v623_v32  ;;  %v1003_v41 = vpack.c.bf16 %v639_v33, %v639_v33  ;;  %v498_v42 = vadd.f32 %v1062_v38, %v1347_v24  ;;  %v1063_v50 = vpop.f32.mrb[10].mxu0  ;;  %v1079_v51 = vpop.f32.mrb[10].mxu1 }
 0x132   : > { %v562_v43 = vadd.f32 %v1078_v39, %v1347_v24  ;;  %781 = vst.msk [vmem:[%s1362_s5 + $0x10] sm:$0xf] %vm776_vm0, %v984_v34  ;;  %797 = vst.msk [vmem:[%s1362_s5 + $0x50] sm:$0xf] %vm776_vm0, %v1000_v35  ;;  %v985_v46 = vpack.c.bf16 %v621_v36, %v621_v36  ;;  %v1001_v47 = vpack.c.bf16 %v637_v37, %v637_v37  ;;  %v492_v56 = vpop.f32.mrb[11].mxu0  ;;  %v556_v57 = vpop.f32.mrb[11].mxu1 }
 0x133   : > { %v490_v48 = vadd.f32 %v1347_v24, %v489_v44  ;;  %v554_v49 = vadd.f32 %v1347_v24, %v553_v45  ;;  %784 = vst.msk [vmem:[%s1362_s5 + $0x1c] sm:$0xf] %vm776_vm0, %v987_v40  ;;  %800 = vst.msk [vmem:[%s1362_s5 + $0x5c] sm:$0xf] %vm776_vm0, %v1003_v41  ;;  %v594_v52 = vmul.f32 0.2, %v498_v42  ;;  %v501_v54 = vadd.f32 %v1063_v50, %v1347_v24 }
 0x134   : > { %v610_v53 = vmul.f32 0.2, %v562_v43  ;;  %v565_v55 = vadd.f32 %v1079_v51, %v1347_v24  ;;  %782 = vst.msk [vmem:[%s1362_s5 + $0x14] sm:$0xf] %vm776_vm0, %v985_v46  ;;  %798 = vst.msk [vmem:[%s1362_s5 + $0x54] sm:$0xf] %vm776_vm0, %v1001_v47  ;;  %v493_v60 = vadd.f32 %v1347_v24, %v492_v56  ;;  %v557_v61 = vadd.f32 %v1347_v24, %v556_v57 }
 0x135   : > { %v592_v58 = vmul.f32 0.2, %v490_v48  ;;  %v608_v59 = vmul.f32 0.2, %v554_v49  ;;  %v626_v62 = vmax.f32 %v498_v42, %v594_v52  ;;  %v595_v0 = vmul.f32 0.2, %v501_v54 }
 0x136   : > { %v642_v63 = vmax.f32 %v562_v43, %v610_v53  ;;  %v611_v1 = vmul.f32 0.2, %v565_v55  ;;  %v593_v4 = vmul.f32 0.2, %v493_v60  ;;  %v609_v5 = vmul.f32 0.2, %v557_v61 }
 0x137   : > { %v624_v2 = vmax.f32 %v490_v48, %v592_v58  ;;  %v640_v3 = vmax.f32 %v554_v49, %v608_v59  ;;  %v990_v6 = vpack.c.bf16 %v626_v62, %v626_v62  ;;  %v627_v8 = vmax.f32 %v501_v54, %v595_v0  ;;  %v1066_v14 = vpop.f32.mrb[12].mxu0  ;;  %v1082_v15 = vpop.f32.mrb[12].mxu1 }
 0x138   : > { %v1006_v7 = vpack.c.bf16 %v642_v63, %v642_v63  ;;  %v643_v9 = vmax.f32 %v565_v55, %v611_v1  ;;  %v625_v12 = vmax.f32 %v493_v60, %v593_v4  ;;  %v641_v13 = vmax.f32 %v557_v61, %v609_v5  ;;  %v505_v20 = vpop.f32.mrb[13].mxu0  ;;  %v569_v21 = vpop.f32.mrb[13].mxu1 }
 0x139   : > { %v988_v10 = vpack.c.bf16 %v624_v2, %v624_v2  ;;  %v1004_v11 = vpack.c.bf16 %v640_v3, %v640_v3  ;;  %787 = vst.msk [vmem:[%s1362_s5 + $0x28] sm:$0xf] %vm776_vm0, %v990_v6  ;;  %v991_v16 = vpack.c.bf16 %v627_v8, %v627_v8  ;;  %v514_v18 = vadd.f32 %v1066_v14, %v1347_v24  ;;  %v1067_v27 = vpop.f32.mrb[14].mxu0  ;;  %v1083_v28 = vpop.f32.mrb[14].mxu1 }
 0x13a   : > { %803 = vst.msk [vmem:[%s1362_s5 + $0x68] sm:$0xf] %vm776_vm0, %v1006_v7  ;;  %v1007_v17 = vpack.c.bf16 %v643_v9, %v643_v9  ;;  %v578_v19 = vadd.f32 %v1082_v15, %v1347_v24  ;;  %v989_v22 = vpack.c.bf16 %v625_v12, %v625_v12  ;;  %v1005_v23 = vpack.c.bf16 %v641_v13, %v641_v13  ;;  %v508_v33 = vpop.f32.mrb[15].mxu0  ;;  %v572_v34 = vpop.f32.mrb[15].mxu1 }
 0x13b   : > { %785 = vst.msk [vmem:[%s1362_s5 + $0x20] sm:$0xf] %vm776_vm0, %v988_v10  ;;  %801 = vst.msk [vmem:[%s1362_s5 + $0x60] sm:$0xf] %vm776_vm0, %v1004_v11  ;;  %v506_v25 = vadd.f32 %v1347_v24, %v505_v20  ;;  %v570_v26 = vadd.f32 %v1347_v24, %v569_v21  ;;  %v598_v29 = vmul.f32 0.2, %v514_v18  ;;  %v517_v31 = vadd.f32 %v1067_v27, %v1347_v24 }
 0x13c   : > { %788 = vst.msk [vmem:[%s1362_s5 + $0x2c] sm:$0xf] %vm776_vm0, %v991_v16  ;;  %804 = vst.msk [vmem:[%s1362_s5 + $0x6c] sm:$0xf] %vm776_vm0, %v1007_v17  ;;  %v614_v30 = vmul.f32 0.2, %v578_v19  ;;  %v581_v32 = vadd.f32 %v1083_v28, %v1347_v24  ;;  %v509_v37 = vadd.f32 %v1347_v24, %v508_v33  ;;  %v573_v38 = vadd.f32 %v1347_v24, %v572_v34 }
 0x13d   : > { %786 = vst.msk [vmem:[%s1362_s5 + $0x24] sm:$0xf] %vm776_vm0, %v989_v22  ;;  %802 = vst.msk [vmem:[%s1362_s5 + $0x64] sm:$0xf] %vm776_vm0, %v1005_v23  ;;  %v596_v35 = vmul.f32 0.2, %v506_v25  ;;  %v630_v39 = vmax.f32 %v514_v18, %v598_v29 }
 0x13e   : > { %v612_v36 = vmul.f32 0.2, %v570_v26  ;;  %v646_v40 = vmax.f32 %v578_v19, %v614_v30  ;;  %v599_v41 = vmul.f32 0.2, %v517_v31  ;;  %v615_v42 = vmul.f32 0.2, %v581_v32 }
 0x13f   : > { %v628_v43 = vmax.f32 %v506_v25, %v596_v35  ;;  %v597_v45 = vmul.f32 0.2, %v509_v37  ;;  %v613_v46 = vmul.f32 0.2, %v573_v38  ;;  %v994_v47 = vpack.c.bf16 %v630_v39, %v630_v39 }
 0x140   : > { %v644_v44 = vmax.f32 %v570_v26, %v612_v36  ;;  %v1010_v48 = vpack.c.bf16 %v646_v40, %v646_v40  ;;  %v631_v49 = vmax.f32 %v517_v31, %v599_v41  ;;  %v647_v50 = vmax.f32 %v581_v32, %v615_v42 }
 0x141   : > { %v992_v24 = vpack.c.bf16 %v628_v43, %v628_v43  ;;  %v629_v52 = vmax.f32 %v509_v37, %v597_v45  ;;  %v645_v53 = vmax.f32 %v573_v38, %v613_v46  ;;  %791 = vst.msk [vmem:[%s1362_s5 + $0x38] sm:$0xf] %vm776_vm0, %v994_v47 }
 0x142   : > { %v1008_v51 = vpack.c.bf16 %v644_v44, %v644_v44  ;;  %807 = vst.msk [vmem:[%s1362_s5 + $0x78] sm:$0xf] %vm776_vm0, %v1010_v48  ;;  %v995_v54 = vpack.c.bf16 %v631_v49, %v631_v49  ;;  %v1011_v55 = vpack.c.bf16 %v647_v50, %v647_v50 }
 0x143   : > { %789 = vst.msk [vmem:[%s1362_s5 + $0x30] sm:$0xf] %vm776_vm0, %v992_v24  ;;  %v993_v56 = vpack.c.bf16 %v629_v52, %v629_v52  ;;  %v1009_v57 = vpack.c.bf16 %v645_v53, %v645_v53 }
 0x144   : > { %805 = vst.msk [vmem:[%s1362_s5 + $0x70] sm:$0xf] %vm776_vm0, %v1008_v51  ;;  %792 = vst.msk [vmem:[%s1362_s5 + $0x3c] sm:$0xf] %vm776_vm0, %v995_v54 }
 0x145   : > { %808 = vst.msk [vmem:[%s1362_s5 + $0x7c] sm:$0xf] %vm776_vm0, %v1011_v55  ;;  %790 = vst.msk [vmem:[%s1362_s5 + $0x34] sm:$0xf] %vm776_vm0, %v993_v56 }
 0x146   : > { %806 = vst.msk [vmem:[%s1362_s5 + $0x74] sm:$0xf] %vm776_vm0, %v1009_v57 }
 0x147 PF: > { %s14_s14 = sadd.s32 1, %s1213_s14   ;;  %s1473_s12 = smov %s1209_s13 }
 0x148   : > { %p11_p3 = scmp.ge.s32.totalorder %s14_s14, 4   ;;  %s1474_s13 = smov %s1476_s16 }
 0x14a   :  { %13 = sbr.rel (!%p11_p3) target bundleno = 2 (0x2), region = 67 }
 0x151   :  { %839 = vsyncpa [#allocation3], 1 }
 0x152   :  { %841 = vsyncpa [#allocation3 + $0x1], 1 }

// kernel: discriminator_forward.10
= control target key start
LH: loop header
LB: loop body
LE: loop exit
PB: predicated region body
PF: predicated region fallthrough
CT: control target
= control target key end

     0   :  { %s566_s12 = smov 0   ;;  %s568_s13 = smov 0   ;;  %s611_s0 = inlined_call_operand.vmem [shape: f32[2,64,128], index: 0, kind: input, shape index: {}]   ;;  %s612_s1 = inlined_call_operand.vmem [shape: f32[2,1,128], index: 1, kind: input, shape index: {}]   ;;  %s613_s2 = inlined_call_operand.vmem [shape: f32[2,1,128], index: 2, kind: input, shape index: {}]   ;;  %s614_s3 = inlined_call_operand.vmem [shape: bf16[2,64,128], index: 3, kind: output, shape index: {}]  }
   0x1   :  { %s570_s14 = smov 0  }
   0x2 LB: > { %s25_s15 = sadd.s32 1, %s540_s13  ;;  %p448_p0 = scmp.ge.s32.totalorder %s544_s14, 1  ;;  %s544_s14 = sphi %s570_s14, %s13_s14   ;;  %s540_s13 = sphi %s568_s13, %s616_s13   ;;  %s536_s12 = sphi %s566_s12, %s615_s12  }
   0x3   : > { %p27_p1 = scmp.ge.s32.totalorder %s25_s15, 2  ;;  %p174_p2 = scmp.lt.s32.totalorder %s544_s14, 3 }
   0x5   : > { %s618_s15 = smov (%p27_p1, %s25_s15), 0  ;;  %p175_p3 = pnand %p448_p0, %p174_p2 }
   0x6   : > { %p213_p4 = scmp.lt.s32.totalorder (!%p175_p3), %s536_s12, 1  ;;  %v256_v5 = vlaneseq (!%p175_p3) }
   0x7   : > { %178 = sbr.rel (%p175_p3) target bundleno = 52 (0x34), region = 32 }
   0x8   : > { %v257_v8 = vshrl.u32 (!%p175_p3), %v256_v5, 7 }
   0xa   : > { %v258_v10 = vsub.s32 (!%p175_p3), 0, %v257_v8 }
   0xe   : > { %s620_s12 = smov (!%p213_p4, %s536_s12), 1 }
   0xf   : > { %s224_s18 = scalar_lea.vmem %s612_s1, %s620_s12  ;;  %s227_s21 = scalar_lea.vmem %s613_s2, %s620_s12 }
  0x10   : > { %v246_v0 = vld [vmem:[%s224_s18] sm:$0x1]  ;;  %s463_s22 = sshll.u32 %s620_s12, 6  ;;  %s464_s26 = sshll.u32 %s620_s12, 5 }
  0x11   : > { %v247_v1 = vmul.f32 0.015625, %v246_v0  ;;  %v248_v2 = vld [vmem:[%s227_s21] sm:$0x1]  ;;  %s220_s25 = scalar_lea.vmem %s611_s0, %s463_s22  ;;  %s236_s29 = scalar_lea.vmem %s614_s3, %s464_s26 }
  0x12   : > { %v249_v3 = vmul.f32 0.015625, %v248_v2  ;;  %v238_v11 = vld [vmem:[%s220_s25] sm:$0xff]  ;;  %v239_v12 = vld [vmem:[%s220_s25 + $0x8] sm:$0xff]  ;;  %v240_v14 = vld [vmem:[%s220_s25 + $0x10] sm:$0xff] }
  0x13   : > { %v250_v4 = vmul.f32 %v247_v1, %v247_v1  ;;  %v259_v13 = vrot.slane %v247_v1, %v258_v10  ;;  %v241_v15 = vld [vmem:[%s220_s25 + $0x18] sm:$0xff]  ;;  %v242_v16 = vld [vmem:[%s220_s25 + $0x20] sm:$0xff]  ;;  %v243_v17 = vld [vmem:[%s220_s25 + $0x28] sm:$0xff] }
  0x14   : > { %v244_v18 = vld [vmem:[%s220_s25 + $0x30] sm:$0xff]  ;;  %v245_v19 = vld [vmem:[%s220_s25 + $0x38] sm:$0xff] }
  0x15   : > { %v251_v6 = vsub.f32 %v249_v3, %v250_v4  ;;  %v261_v20 = vsub.f32 %v238_v11, %v259_v13  ;;  %v262_v21 = vsub.f32 %v239_v12, %v259_v13  ;;  %v263_v22 = vsub.f32 %v240_v14, %v259_v13 }
  0x16   : > { %v264_v23 = vsub.f32 %v241_v15, %v259_v13  ;;  %v265_v25 = vsub.f32 %v242_v16, %v259_v13  ;;  %v266_v26 = vsub.f32 %v243_v17, %v259_v13  ;;  %v267_v27 = vsub.f32 %v244_v18, %v259_v13 }
  0x17   : > { %v252_v7 = vmax.f32 %v251_v6, 0.0  ;;  %v268_v28 = vsub.f32 %v245_v19, %v259_v13 }
  0x19   : > { %v253_v9 = vadd.f32 1e-05, %v252_v7 }
  0x1b   : > { %520 = vrsqrt.f32 %v253_v9 }
  0x25   : > { %v521_v24 = vpop.eup %520 }
  0x26   : > { %v273_v29 = vrot.slane %v521_v24, %v258_v10 }
  0x28   : > { %v275_v30 = vmul.f32 %v273_v29, %v261_v20  ;;  %v276_v31 = vmul.f32 %v273_v29, %v262_v21  ;;  %v277_v32 = vmul.f32 %v273_v29, %v263_v22  ;;  %v278_v33 = vmul.f32 %v273_v29, %v264_v23 }
  0x29   : > { %v279_v34 = vmul.f32 %v273_v29, %v265_v25  ;;  %v280_v35 = vmul.f32 %v273_v29, %v266_v26  ;;  %v281_v36 = vmul.f32 %v273_v29, %v267_v27  ;;  %v282_v37 = vmul.f32 %v273_v29, %v268_v28 }
  0x2a   : > { %v283_v38 = vmul.f32 0.2, %v275_v30  ;;  %v284_v39 = vmul.f32 0.2, %v276_v31  ;;  %v285_v40 = vmul.f32 0.2, %v277_v32 }
  0x2b   : > { %v286_v41 = vmul.f32 0.2, %v278_v33  ;;  %v287_v42 = vmul.f32 0.2, %v279_v34  ;;  %v288_v43 = vmul.f32 0.2, %v280_v35 }
  0x2c   : > { %v291_v44 = vmax.f32 %v275_v30, %v283_v38  ;;  %v292_v45 = vmax.f32 %v276_v31, %v284_v39  ;;  %v293_v46 = vmax.f32 %v277_v32, %v285_v40  ;;  %v289_v47 = vmul.f32 0.2, %v281_v36 }
  0x2d   : > { %v294_v48 = vmax.f32 %v278_v33, %v286_v41  ;;  %v295_v49 = vmax.f32 %v279_v34, %v287_v42  ;;  %v296_v50 = vmax.f32 %v280_v35, %v288_v43  ;;  %v290_v51 = vmul.f32 0.2, %v282_v37 }
  0x2e   : > { %v476_v52 = vpack.c.bf16 %v292_v45, %v291_v44  ;;  %v297_v53 = vmax.f32 %v281_v36, %v289_v47 }
  0x2f   : > { %v481_v54 = vpack.c.bf16 %v294_v48, %v293_v46  ;;  %v486_v55 = vpack.c.bf16 %v296_v50, %v295_v49  ;;  %v298_v56 = vmax.f32 %v282_v37, %v290_v51 }
  0x30   : > { %477 = vst [vmem:[%s236_s29] sm:$0xff] %v476_v52  }
  0x31   : > { %493 = vst [vmem:[%s236_s29 + $0x8] sm:$0xff] %v481_v54   ;;  %494 = vst [vmem:[%s236_s29 + $0x10] sm:$0xff] %v486_v55   ;;  %v491_v57 = vpack.c.bf16 %v298_v56, %v297_v53 }
  0x33   : > { %495 = vst [vmem:[%s236_s29 + $0x18] sm:$0xff] %v491_v57  }
  0x34 PF: > { %s13_s14 = sadd.s32 1, %s544_s14   ;;  %s615_s12 = smov %s540_s13 }
  0x35   : > { %p10_p5 = scmp.ge.s32.totalorder %s13_s14, 4   ;;  %s616_s13 = smov %s618_s15 }
  0x37   :  { %12 = sbr.rel (!%p10_p5) target bundleno = 2 (0x2), region = 68 }

// kernel: discriminator_forward.9
= control target key start
LH: loop header
LB: loop body
LE: loop exit
PB: predicated region body
PF: predicated region fallthrough
CT: control target
= control target key end

     0   :  { %s1864_s18 = smov 0   ;;  %s1866_s19 = smov 0   ;;  %s2183_s0 = inlined_call_operand.vmem [shape: bf16[2,64,1024], index: 0, kind: input, shape index: {}]   ;;  %s2184_s1 = inlined_call_operand.vmem [shape: bf16[1024,128], index: 1, kind: input, shape index: {}]   ;;  %s2185_s2 = inlined_call_operand.vmem [shape: f32[1,128], index: 2, kind: input, shape index: {}]   ;;  %s2186_s3 = inlined_call_operand.vmem [shape: f32[2,64,128], index: 3, kind: output, shape index: {0}]   ;;  %s2187_s4 = inlined_call_operand.vmem [shape: f32[2,1,128], index: 4, kind: output, shape index: {1}]   ;;  %s2188_s5 = inlined_call_operand.vmem [shape: f32[2,1,128], index: 5, kind: output, shape index: {2}]  }
   0x1   :  { %s1868_s20 = smov 0  }
   0x2 LB: > { %s28_s21 = sadd.s32 1, %s1827_s19  ;;  %p1454_p0 = scmp.ge.s32.totalorder %s1831_s20, 1  ;;  %s1831_s20 = sphi %s1868_s20, %s16_s20   ;;  %s1827_s19 = sphi %s1866_s19, %s2190_s19   ;;  %s1823_s18 = sphi %s1864_s18, %s2189_s18  }
   0x3   : > { %p30_p1 = scmp.ge.s32.totalorder %s28_s21, 2  ;;  %p214_p2 = scmp.lt.s32.totalorder %s1831_s20, 3 }
   0x5   : > { %s2192_s21 = smov (%p30_p1, %s28_s21), 0  ;;  %p215_p3 = pnand %p1454_p0, %p214_p2 }
   0x6   : > { %v1745_v0 = vld [vmem:[%s2184_s1 + $0x40] sm:$0xff] (!%p215_p3)   ;;  %v1749_v4 = vld [vmem:[%s2184_s1 + $0x48] sm:$0xff] (!%p215_p3)   ;;  %v1753_v8 = vld [vmem:[%s2184_s1 + $0x50] sm:$0xff] (!%p215_p3)   ;;  %p258_p4 = scmp.lt.s32.totalorder (!%p215_p3), %s1823_s18, 1 }
   0x7   : > { %218 = sbr.rel (%p215_p3) target bundleno = 336 (0x150), region = 32  ;;  %v1746_v1 = vld [vmem:[%s2184_s1 + $0xc0] sm:$0xff] (!%p215_p3)   ;;  %1560 = vmatprep.subr.bf16.mxu0 (!%p215_p3), %v1745_v0  ;;  %v1750_v5 = vld [vmem:[%s2184_s1 + $0xc8] sm:$0xff] (!%p215_p3)   ;;  %v1754_v9 = vld [vmem:[%s2184_s1 + $0xd0] sm:$0xff] (!%p215_p3)  }
   0x8   : > { %v1747_v2 = vld [vmem:[%s2184_s1] sm:$0xff] (!%p215_p3)   ;;  %1600 = vmatprep.subr.bf16.mxu1 (!%p215_p3), %v1746_v1  ;;  %v1751_v6 = vld [vmem:[%s2184_s1 + $0x8] sm:$0xff] (!%p215_p3)   ;;  %v1755_v10 = vld [vmem:[%s2184_s1 + $0x10] sm:$0xff] (!%p215_p3)  }
   0x9   : > { %v1748_v3 = vld [vmem:[%s2184_s1 + $0x80] sm:$0xff] (!%p215_p3)   ;;  %1561 = vmatpush3.bf16.msra.mxu0 (!%p215_p3), %v1747_v2  ;;  %v1752_v7 = vld [vmem:[%s2184_s1 + $0x88] sm:$0xff] (!%p215_p3)   ;;  %v1756_v11 = vld [vmem:[%s2184_s1 + $0x90] sm:$0xff] (!%p215_p3)  }
   0xa   : > { %1601 = vmatpush3.bf16.msra.mxu1 (!%p215_p3), %v1748_v3  ;;  %1562 = vmatprep.subr.bf16.mxu0 (!%p215_p3), %v1749_v4  ;;  %v1757_v12 = vld [vmem:[%s2184_s1 + $0x58] sm:$0xff] (!%p215_p3)   ;;  %v1761_v16 = vld [vmem:[%s2184_s1 + $0x60] sm:$0xff] (!%p215_p3)   ;;  %v1765_v20 = vld [vmem:[%s2184_s1 + $0x68] sm:$0xff] (!%p215_p3)  }
   0xb   : > { %1602 = vmatprep.subr.bf16.mxu1 (!%p215_p3), %v1750_v5  ;;  %v1758_v13 = vld [vmem:[%s2184_s1 + $0xd8] sm:$0xff] (!%p215_p3)   ;;  %v1762_v17 = vld [vmem:[%s2184_s1 + $0xe0] sm:$0xff] (!%p215_p3)   ;;  %v1766_v21 = vld [vmem:[%s2184_s1 + $0xe8] sm:$0xff] (!%p215_p3)  }
   0xc   : > { %v1759_v14 = vld [vmem:[%s2184_s1 + $0x18] sm:$0xff] (!%p215_p3)   ;;  %v1763_v18 = vld [vmem:[%s2184_s1 + $0x20] sm:$0xff] (!%p215_p3)   ;;  %v1767_v22 = vld [vmem:[%s2184_s1 + $0x28] sm:$0xff] (!%p215_p3)  }
   0xd   : > { %1563 = vmatpush3.bf16.msra.mxu0 (!%p215_p3), %v1751_v6  ;;  %v1760_v15 = vld [vmem:[%s2184_s1 + $0x98] sm:$0xff] (!%p215_p3)   ;;  %v1764_v19 = vld [vmem:[%s2184_s1 + $0xa0] sm:$0xff] (!%p215_p3)   ;;  %v1768_v23 = vld [vmem:[%s2184_s1 + $0xa8] sm:$0xff] (!%p215_p3)  }
   0xe   : > { %1603 = vmatpush3.bf16.msra.mxu1 %v1752_v7  ;;  %1564 = vmatprep.subr.bf16.mxu0 %v1753_v8  ;;  %s2194_s18 = smov (!%p258_p4, %s1823_s18), 1  ;;  %v1769_v24 = vld [vmem:[%s2184_s1 + $0x70] sm:$0xff]   ;;  %v1773_v28 = vld [vmem:[%s2184_s1 + $0x78] sm:$0xff]   ;;  %v1777_v40 = vld [vmem:[%s2184_s1 + $0x140] sm:$0xff]  }
   0xf   : > { %1604 = vmatprep.subr.bf16.mxu1 %v1754_v9  ;;  %v1770_v25 = vld [vmem:[%s2184_s1 + $0xf0] sm:$0xff]   ;;  %s1558_s9 = sshll.u32 %s2194_s18, 8  ;;  %v1774_v29 = vld [vmem:[%s2184_s1 + $0xf8] sm:$0xff]   ;;  %v1778_v41 = vld [vmem:[%s2184_s1 + $0x1c0] sm:$0xff]   ;;  %s2122_s8 = scalar_lea.vmem %s2187_s4, %s2194_s18 }
  0x10   : > { %v1771_v26 = vld [vmem:[%s2184_s1 + $0x30] sm:$0xff]   ;;  %s1982_s22 = scalar_lea.vmem %s2183_s0, %s1558_s9  ;;  %v1775_v30 = vld [vmem:[%s2184_s1 + $0x38] sm:$0xff]   ;;  %v1779_v42 = vld [vmem:[%s2184_s1 + $0x100] sm:$0xff]   ;;  %s1559_s13 = sshll.u32 %s2194_s18, 6 }
  0x11   : > { %1565 = vmatpush3.bf16.msra.mxu0 %v1755_v10  ;;  %v1772_v27 = vld [vmem:[%s2184_s1 + $0xb0] sm:$0xff]   ;;  %v1776_v31 = vld [vmem:[%s2184_s1 + $0xb8] sm:$0xff]   ;;  %v285_v32 = vld [vmem:[%s1982_s22] sm:$0xff]  ;;  %s2153_s16 = scalar_lea.vmem %s2186_s3, %s1559_s13 }
  0x12   : > { %1605 = vmatpush3.bf16.msra.mxu1 %v1756_v11  ;;  %1566 = vmatprep.subr.bf16.mxu0 %v1757_v12  ;;  %v289_v33 = vld [vmem:[%s1982_s22 + $0x20] sm:$0xff]  ;;  %v286_v34 = vld [vmem:[%s1982_s22 + $0x8] sm:$0xff]  ;;  %v1785_v56 = vld [vmem:[%s2184_s1 + $0x150] sm:$0xff]  }
  0x13   : > { %1606 = vmatprep.subr.bf16.mxu1 %v1758_v13  ;;  %v1460_v35 = vcombine.low %v285_v32, %v289_v33  ;;  %v1461_v36 = vcombine.high %v285_v32, %v289_v33  ;;  %v290_v37 = vld [vmem:[%s1982_s22 + $0x28] sm:$0xff]  ;;  %v1780_v43 = vld [vmem:[%s2184_s1 + $0x180] sm:$0xff]   ;;  %v1786_v57 = vld [vmem:[%s2184_s1 + $0x1d0] sm:$0xff]  }
  0x14   : > { %v1462_v38 = vcombine.low %v286_v34, %v290_v37  ;;  %v1463_v39 = vcombine.high %v286_v34, %v290_v37  ;;  %v1781_v44 = vld [vmem:[%s2184_s1 + $0x148] sm:$0xff]   ;;  %v293_v48 = vld [vmem:[%s1982_s22 + $0x40] sm:$0xff]  ;;  %v1787_v58 = vld [vmem:[%s2184_s1 + $0x110] sm:$0xff]  }
  0x15   : > { %1567 = vmatpush3.bf16.msra.mxu0 %v1759_v14  ;;  %1028 = vmatprep.mubr.bf16.mxu0 %v1461_v36  ;;  %v1782_v45 = vld [vmem:[%s2184_s1 + $0x1c8] sm:$0xff]   ;;  %v297_v49 = vld [vmem:[%s1982_s22 + $0x60] sm:$0xff]  ;;  %v1788_v59 = vld [vmem:[%s2184_s1 + $0x190] sm:$0xff]  }
  0x16   : > { %1607 = vmatpush3.bf16.msra.mxu1 %v1760_v15  ;;  %1568 = vmatprep.subr.bf16.mxu0 %v1761_v16  ;;  %v1783_v46 = vld [vmem:[%s2184_s1 + $0x108] sm:$0xff]   ;;  %v1469_v50 = vcombine.high %v293_v48, %v297_v49  ;;  %v1468_v53 = vcombine.low %v293_v48, %v297_v49  ;;  %v1789_v60 = vld [vmem:[%s2184_s1 + $0x158] sm:$0xff]   ;;  %v301_v0 = vld [vmem:[%s1982_s22 + $0x80] sm:$0xff] }
  0x17   : > { %1608 = vmatprep.subr.bf16.mxu1 %v1762_v17  ;;  %1093 = vmatprep.mubr.bf16.mxu1 %v1463_v39  ;;  %v1784_v47 = vld [vmem:[%s2184_s1 + $0x188] sm:$0xff]   ;;  %v1790_v61 = vld [vmem:[%s2184_s1 + $0x1d8] sm:$0xff]   ;;  %v305_v1 = vld [vmem:[%s1982_s22 + $0xa0] sm:$0xff] }
  0x18   : > { %v294_v51 = vld [vmem:[%s1982_s22 + $0x48] sm:$0xff]  ;;  %v1791_v62 = vld [vmem:[%s2184_s1 + $0x118] sm:$0xff]   ;;  %v1477_v4 = vcombine.high %v301_v0, %v305_v1  ;;  %v1476_v6 = vcombine.low %v301_v0, %v305_v1  ;;  %v1793_v8 = vld [vmem:[%s2184_s1 + $0x160] sm:$0xff]   ;;  %v1833_v0 = vmov 0.0  }
  0x19   : > { %1569 = vmatpush3.bf16.msra.mxu0 %v1763_v18  ;;  %v298_v52 = vld [vmem:[%s1982_s22 + $0x68] sm:$0xff]  ;;  %v1792_v63 = vld [vmem:[%s2184_s1 + $0x198] sm:$0xff]   ;;  %v1794_v9 = vld [vmem:[%s2184_s1 + $0x1e0] sm:$0xff]   ;;  %1268 = vst [vmem:[%s2122_s8] sm:$0x1] %v1833_v0 }
  0x1a   : > { %1609 = vmatpush3.bf16.msra.mxu1 %v1764_v19  ;;  %1570 = vmatprep.subr.bf16.mxu0 %v1765_v20  ;;  %v1471_v54 = vcombine.high %v294_v51, %v298_v52  ;;  %v1470_v55 = vcombine.low %v294_v51, %v298_v52  ;;  %v302_v2 = vld [vmem:[%s1982_s22 + $0x88] sm:$0xff]  ;;  %v1795_v10 = vld [vmem:[%s2184_s1 + $0x120] sm:$0xff]   ;;  %v287_v32 = vld [vmem:[%s1982_s22 + $0x10] sm:$0xff] }
  0x1b   : > { %1610 = vmatprep.subr.bf16.mxu1 %v1766_v21  ;;  %v306_v3 = vld [vmem:[%s1982_s22 + $0xa8] sm:$0xff]  ;;  %v1796_v11 = vld [vmem:[%s2184_s1 + $0x1a0] sm:$0xff]   ;;  %v291_v33 = vld [vmem:[%s1982_s22 + $0x30] sm:$0xff] }
  0x1c   : > { %v1479_v5 = vcombine.high %v302_v2, %v306_v3  ;;  %v1478_v7 = vcombine.low %v302_v2, %v306_v3  ;;  %v1797_v12 = vld [vmem:[%s2184_s1 + $0x168] sm:$0xff]   ;;  %v309_v16 = vld [vmem:[%s1982_s22 + $0xc0] sm:$0xff]  ;;  %v1464_v34 = vcombine.low %v287_v32, %v291_v33  ;;  %v288_v36 = vld [vmem:[%s1982_s22 + $0x18] sm:$0xff] }
  0x1d   : > { %1571 = vmatpush3.bf16.msra.mxu0 %v1767_v22  ;;  %v1798_v13 = vld [vmem:[%s2184_s1 + $0x1e8] sm:$0xff]   ;;  %v313_v17 = vld [vmem:[%s1982_s22 + $0xe0] sm:$0xff]  ;;  %v292_v37 = vld [vmem:[%s1982_s22 + $0x38] sm:$0xff] }
  0x1e   : > { %1611 = vmatpush3.bf16.msra.mxu1 %v1768_v23  ;;  %1572 = vmatprep.subr.bf16.mxu0 %v1769_v24  ;;  %v1799_v14 = vld [vmem:[%s2184_s1 + $0x128] sm:$0xff]   ;;  %v1485_v19 = vcombine.high %v309_v16, %v313_v17  ;;  %v1484_v21 = vcombine.low %v309_v16, %v313_v17  ;;  %v1801_v24 = vld [vmem:[%s2184_s1 + $0x170] sm:$0xff]   ;;  %v1466_v39 = vcombine.low %v288_v36, %v292_v37  ;;  %v304_v48 = vld [vmem:[%s1982_s22 + $0x98] sm:$0xff] }
  0x1f   : > { %1612 = vmatprep.subr.bf16.mxu1 %v1770_v25  ;;  %v1800_v15 = vld [vmem:[%s2184_s1 + $0x1a8] sm:$0xff]   ;;  %v1802_v25 = vld [vmem:[%s2184_s1 + $0x1f0] sm:$0xff]   ;;  %v308_v49 = vld [vmem:[%s1982_s22 + $0xb8] sm:$0xff] }
  0x20   : > { %v310_v18 = vld [vmem:[%s1982_s22 + $0xc8] sm:$0xff]  ;;  %v1459_v3 = vld [vmem:[%s2185_s2] ss:$0 sm:$0xff] }
  0x21   : > { %1573 = vmatpush3.bf16.msra.mxu0 %v1771_v26  ;;  %v314_v20 = vld [vmem:[%s1982_s22 + $0xe8] sm:$0xff]  ;;  %v1803_v26 = vld [vmem:[%s2184_s1 + $0x130] sm:$0xff]  }
  0x22   : > { %1613 = vmatpush3.bf16.msra.mxu1 %v1772_v27  ;;  %1574 = vmatprep.subr.bf16.mxu0 %v1773_v28  ;;  %v1487_v22 = vcombine.high %v310_v18, %v314_v20  ;;  %v1486_v23 = vcombine.low %v310_v18, %v314_v20  ;;  %v1804_v27 = vld [vmem:[%s2184_s1 + $0x1b0] sm:$0xff]   ;;  %v1805_v28 = vld [vmem:[%s2184_s1 + $0x178] sm:$0xff]  }
  0x23   : > { %1614 = vmatprep.subr.bf16.mxu1 %v1774_v29  ;;  %v1806_v29 = vld [vmem:[%s2184_s1 + $0x1f8] sm:$0xff]  }
  0x25   : > { %1575 = vmatpush3.bf16.msra.mxu0 %v1775_v30  ;;  %v1807_v30 = vld [vmem:[%s2184_s1 + $0x138] sm:$0xff]  }
  0x26   : > { %1615 = vmatpush3.bf16.msra.mxu1 %v1776_v31  ;;  %1640 = vmatprep.subr.bf16.mxu0 %v1777_v40  ;;  %v1808_v31 = vld [vmem:[%s2184_s1 + $0x1b8] sm:$0xff]   ;;  %v1467_v40 = vcombine.high %v288_v36, %v292_v37 }
  0x27   : > { %1680 = vmatprep.subr.bf16.mxu1 %v1778_v41  ;;  %v299_v41 = vld [vmem:[%s1982_s22 + $0x70] sm:$0xff] }
  0x28   : > { %1029 = vmatmul.mubr.bf16.vlgmr.msra.gmra.mrb[0].mxu0 %v1460_v35  ;;  %v1465_v35 = vcombine.high %v287_v32, %v291_v33 }
  0x29   : > { %1094 = vmatmul.mubr.bf16.vlgmr.msra.gmra.mrb[0].mxu1 %v1462_v38  ;;  %1641 = vmatpush3.bf16.msra.mxu0 %v1779_v42  ;;  %v295_v38 = vld [vmem:[%s1982_s22 + $0x50] sm:$0xff]  ;;  %v296_v42 = vld [vmem:[%s1982_s22 + $0x58] sm:$0xff] }
  0x2a   : > { %1681 = vmatpush3.bf16.msra.mxu1 %v1780_v43  ;;  %1642 = vmatprep.subr.bf16.mxu0 %v1781_v44  ;;  %v300_v43 = vld [vmem:[%s1982_s22 + $0x78] sm:$0xff]  ;;  %v1473_v44 = vcombine.high %v295_v38, %v299_v41 }
  0x2b   : > { %1682 = vmatprep.subr.bf16.mxu1 %v1782_v45  ;;  %1036 = vmatprep.mubr.bf16.mxu0 %v1469_v50  ;;  %v1475_v45 = vcombine.high %v296_v42, %v300_v43  ;;  %v1472_v50 = vcombine.low %v295_v38, %v299_v41  ;;  %v1474_v51 = vcombine.low %v296_v42, %v300_v43 }
  0x2c   : > { %1101 = vmatprep.mubr.bf16.mxu1 %v1471_v54  ;;  %v311_v54 = vld [vmem:[%s1982_s22 + $0xd0] sm:$0xff] }
  0x2d   : > { %1643 = vmatpush3.bf16.msra.mxu0 %v1783_v46  ;;  %v303_v46 = vld [vmem:[%s1982_s22 + $0x90] sm:$0xff] }
  0x2e   : > { %1683 = vmatpush3.bf16.msra.mxu1 %v1784_v47  ;;  %1644 = vmatprep.subr.bf16.mxu0 %v1785_v56  ;;  %v307_v47 = vld [vmem:[%s1982_s22 + $0xb0] sm:$0xff]  ;;  %v312_v56 = vld [vmem:[%s1982_s22 + $0xd8] sm:$0xff] }
  0x2f   : > { %1684 = vmatprep.subr.bf16.mxu1 %v1786_v57  ;;  %v1481_v52 = vcombine.high %v303_v46, %v307_v47  ;;  %v316_v57 = vld [vmem:[%s1982_s22 + $0xf8] sm:$0xff] }
  0x30   : > { %1037 = vmatmul.mubr.bf16.gmra.mrb[4].mxu0 %v1468_v53  ;;  %v1483_v53 = vcombine.high %v304_v48, %v308_v49 }
  0x31   : > { %1102 = vmatmul.mubr.bf16.gmra.mrb[4].mxu1 %v1470_v55  ;;  %1645 = vmatpush3.bf16.msra.mxu0 %v1787_v58  ;;  %v315_v55 = vld [vmem:[%s1982_s22 + $0xf0] sm:$0xff]  ;;  %v1480_v58 = vcombine.low %v303_v46, %v307_v47  ;;  %s2128_s22 = scalar_lea.vmem %s2188_s5, %s2194_s18 }
  0x32   : > { %1685 = vmatpush3.bf16.msra.mxu1 %v1788_v59  ;;  %1646 = vmatprep.subr.bf16.mxu0 %v1789_v60  ;;  %v1482_v59 = vcombine.low %v304_v48, %v308_v49  ;;  %v1489_v60 = vcombine.high %v311_v54, %v315_v55  ;;  %1269 = vst [vmem:[%s2128_s22] sm:$0x1] %v1833_v0 }
  0x33   : > { %1686 = vmatprep.subr.bf16.mxu1 %v1790_v61  ;;  %1044 = vmatprep.mubr.bf16.mxu0 %v1477_v4  ;;  %v1491_v61 = vcombine.high %v312_v56, %v316_v57 }
  0x34   : > { %1109 = vmatprep.mubr.bf16.mxu1 %v1479_v5 }
  0x35   : > { %1647 = vmatpush3.bf16.msra.mxu0 %v1791_v62  ;;  %v1488_v62 = vcombine.low %v311_v54, %v315_v55 }
  0x36   : > { %1687 = vmatpush3.bf16.msra.mxu1 %v1792_v63  ;;  %1648 = vmatprep.subr.bf16.mxu0 %v1793_v8  ;;  %v1490_v63 = vcombine.low %v312_v56, %v316_v57 }
  0x37   : > { %1688 = vmatprep.subr.bf16.mxu1 %v1794_v9 }
  0x38   : > { %1045 = vmatmul.mubr.bf16.gmra.mrb[8].mxu0 %v1476_v6 }
  0x39   : > { %1110 = vmatmul.mubr.bf16.gmra.mrb[8].mxu1 %v1478_v7  ;;  %1649 = vmatpush3.bf16.msra.mxu0 %v1795_v10 }
  0x3a   : > { %1689 = vmatpush3.bf16.msra.mxu1 %v1796_v11  ;;  %1650 = vmatprep.subr.bf16.mxu0 %v1797_v12 }
  0x3b   : > { %1690 = vmatprep.subr.bf16.mxu1 %v1798_v13  ;;  %1052 = vmatprep.mubr.bf16.mxu0 %v1485_v19 }
  0x3c   : > { %1117 = vmatprep.mubr.bf16.mxu1 %v1487_v22 }
  0x3d   : > { %1651 = vmatpush3.bf16.msra.mxu0 %v1799_v14 }
  0x3e   : > { %1691 = vmatpush3.bf16.msra.mxu1 %v1800_v15  ;;  %1652 = vmatprep.subr.bf16.mxu0 %v1801_v24 }
  0x3f   : > { %1692 = vmatprep.subr.bf16.mxu1 %v1802_v25 }
  0x40   : > { %1053 = vmatmul.mubr.bf16.gmra.mrb[12].mxu0 %v1484_v21 }
  0x41   : > { %1118 = vmatmul.mubr.bf16.gmra.mrb[12].mxu1 %v1486_v23  ;;  %1653 = vmatpush3.bf16.msra.mxu0 %v1803_v26 }
  0x42   : > { %1693 = vmatpush3.bf16.msra.mxu1 %v1804_v27  ;;  %1654 = vmatprep.subr.bf16.mxu0 %v1805_v28 }
  0x43   : > { %1694 = vmatprep.subr.bf16.mxu1 %v1806_v29  ;;  %1158 = vmatprep.mubr.bf16.mxu0 %v1465_v35 }
  0x44   : > { %1223 = vmatprep.mubr.bf16.mxu1 %v1467_v40 }
  0x45   : > { %1655 = vmatpush3.bf16.msra.mxu0 %v1807_v30 }
  0x46   : > { %1695 = vmatpush3.bf16.msra.mxu1 %v1808_v31 }
  0x48   : > { %1159 = vmatmul.mubr.bf16.vlgmr.msra.gmra.mrb[16].mxu0 %v1464_v34 }
  0x49   : > { %1224 = vmatmul.mubr.bf16.vlgmr.msra.gmra.mrb[16].mxu1 %v1466_v39  ;;  %1166 = vmatprep.mubr.bf16.mxu0 %v1473_v44 }
  0x4a   : > { %1231 = vmatprep.mubr.bf16.mxu1 %v1475_v45 }
  0x50   : > { %1167 = vmatmul.mubr.bf16.gmra.mrb[20].mxu0 %v1472_v50 }
  0x51   : > { %1232 = vmatmul.mubr.bf16.gmra.mrb[20].mxu1 %v1474_v51  ;;  %1174 = vmatprep.mubr.bf16.mxu0 %v1481_v52 }
  0x52   : > { %1239 = vmatprep.mubr.bf16.mxu1 %v1483_v53 }
  0x58   : > { %1175 = vmatmul.mubr.bf16.gmra.mrb[24].mxu0 %v1480_v58 }
  0x59   : > { %1240 = vmatmul.mubr.bf16.gmra.mrb[24].mxu1 %v1482_v59  ;;  %1182 = vmatprep.mubr.bf16.mxu0 %v1489_v60 }
  0x5a   : > { %1247 = vmatprep.mubr.bf16.mxu1 %v1491_v61 }
  0x60   : > { %1183 = vmatmul.mubr.bf16.gmra.mrb[28].mxu0 %v1488_v62 }
  0x61   : > { %1248 = vmatmul.mubr.bf16.gmra.mrb[28].mxu1 %v1490_v63 }
  0xfb   : > { %v1576_v1 = vpop.f32.mrb[0].mxu0 }
  0xfc   : > { %v1616_v2 = vpop.f32.mrb[0].mxu1  ;;  %v1577_v4 = vpop.f32.mrb[1].mxu0 }
  0xfd   : > { %v1578_v5 = vadd.f32 %v1577_v4, %v1576_v1  ;;  %v1617_v6 = vpop.f32.mrb[1].mxu1  ;;  %v1579_v7 = vpop.f32.mrb[2].mxu0 }
  0xfe   : > { %v1618_v8 = vadd.f32 %v1617_v6, %v1616_v2  ;;  %v1619_v9 = vpop.f32.mrb[2].mxu1  ;;  %v1580_v10 = vpop.f32.mrb[3].mxu0 }
  0xff   : > { %v1031_v11 = vadd.f32 %v1578_v5, %v1459_v3  ;;  %v1581_v12 = vadd.f32 %v1580_v10, %v1579_v7  ;;  %v1620_v13 = vpop.f32.mrb[3].mxu1 }
 0x100   : > { %v1621_v14 = vadd.f32 %v1620_v13, %v1619_v9 }
 0x101   : > { %v1096_v15 = vadd.f32 %v1618_v8, %v1031_v11  ;;  %v1034_v16 = vadd.f32 %v1581_v12, %v1459_v3 }
 0x103   : > { %v2135_v17 = vadd.f32 %v1621_v14, %v1034_v16  ;;  %v1582_v18 = vpop.f32.mrb[4].mxu0 }
 0x104   : > { %v1622_v19 = vpop.f32.mrb[4].mxu1  ;;  %v1583_v20 = vpop.f32.mrb[5].mxu0 }
 0x105   : > { %v1584_v21 = vadd.f32 %v1583_v20, %v1582_v18  ;;  %v1623_v22 = vpop.f32.mrb[5].mxu1  ;;  %v1585_v23 = vpop.f32.mrb[6].mxu0 }
 0x106   : > { %v1624_v24 = vadd.f32 %v1623_v22, %v1622_v19  ;;  %v1625_v25 = vpop.f32.mrb[6].mxu1  ;;  %v1586_v26 = vpop.f32.mrb[7].mxu0 }
 0x107   : > { %v1039_v27 = vadd.f32 %v1584_v21, %v1459_v3  ;;  %v1587_v28 = vadd.f32 %v1586_v26, %v1585_v23  ;;  %v1626_v29 = vpop.f32.mrb[7].mxu1 }
 0x108   : > { %v1627_v30 = vadd.f32 %v1626_v29, %v1625_v25 }
 0x109   : > { %v2137_v31 = vadd.f32 %v1624_v24, %v1039_v27  ;;  %v1042_v32 = vadd.f32 %v1587_v28, %v1459_v3 }
 0x10b   : > { %v2139_v33 = vadd.f32 %v1627_v30, %v1042_v32  ;;  %v1588_v34 = vpop.f32.mrb[8].mxu0 }
 0x10c   : > { %v1628_v35 = vpop.f32.mrb[8].mxu1  ;;  %v1589_v36 = vpop.f32.mrb[9].mxu0 }
 0x10d   : > { %v1629_v37 = vpop.f32.mrb[9].mxu1  ;;  %v1590_v38 = vadd.f32 %v1589_v36, %v1588_v34  ;;  %v1591_v40 = vpop.f32.mrb[10].mxu0 }
 0x10e   : > { %v1630_v39 = vadd.f32 %v1629_v37, %v1628_v35  ;;  %v1631_v41 = vpop.f32.mrb[10].mxu1  ;;  %v1592_v42 = vpop.f32.mrb[11].mxu0 }
 0x10f   : > { %v1632_v43 = vpop.f32.mrb[11].mxu1  ;;  %v1047_v44 = vadd.f32 %v1590_v38, %v1459_v3  ;;  %v1593_v45 = vadd.f32 %v1592_v42, %v1591_v40 }
 0x110   : > { %v1633_v46 = vadd.f32 %v1632_v43, %v1631_v41 }
 0x111   : > { %v2141_v47 = vadd.f32 %v1630_v39, %v1047_v44  ;;  %v1050_v48 = vadd.f32 %v1593_v45, %v1459_v3 }
 0x113   : > { %v2143_v49 = vadd.f32 %v1633_v46, %v1050_v48  ;;  %v1594_v50 = vpop.f32.mrb[12].mxu0 }
 0x114   : > { %v1634_v51 = vpop.f32.mrb[12].mxu1  ;;  %v1595_v52 = vpop.f32.mrb[13].mxu0 }
 0x115   : > { %v1596_v53 = vadd.f32 %v1595_v52, %v1594_v50  ;;  %v1635_v54 = vpop.f32.mrb[13].mxu1  ;;  %v1597_v55 = vpop.f32.mrb[14].mxu0 }
 0x116   : > { %v1636_v56 = vadd.f32 %v1635_v54, %v1634_v51  ;;  %v1637_v57 = vpop.f32.mrb[14].mxu1  ;;  %v1598_v58 = vpop.f32.mrb[15].mxu0 }
 0x117   : > { %v1055_v59 = vadd.f32 %v1596_v53, %v1459_v3  ;;  %v1599_v60 = vadd.f32 %v1598_v58, %v1597_v55  ;;  %v1638_v61 = vpop.f32.mrb[15].mxu1 }
 0x118   : > { %v1639_v62 = vadd.f32 %v1638_v61, %v1637_v57 }
 0x119   : > { %v2145_v63 = vadd.f32 %v1636_v56, %v1055_v59  ;;  %v1058_v0 = vadd.f32 %v1599_v60, %v1459_v3 }
 0x11b   : > { %v2147_v1 = vadd.f32 %v1639_v62, %v1058_v0  ;;  %v1656_v2 = vpop.f32.mrb[16].mxu0 }
 0x11c   : > { %v1696_v4 = vpop.f32.mrb[16].mxu1  ;;  %v1657_v5 = vpop.f32.mrb[17].mxu0 }
 0x11d   : > { %v1658_v6 = vadd.f32 %v1657_v5, %v1656_v2  ;;  %v1697_v7 = vpop.f32.mrb[17].mxu1  ;;  %v1659_v8 = vpop.f32.mrb[18].mxu0 }
 0x11e   : > { %v1698_v9 = vadd.f32 %v1697_v7, %v1696_v4  ;;  %v1699_v10 = vpop.f32.mrb[18].mxu1  ;;  %v1660_v11 = vpop.f32.mrb[19].mxu0 }
 0x11f   : > { %v1161_v12 = vadd.f32 %v1658_v6, %v1096_v15  ;;  %v1661_v13 = vadd.f32 %v1660_v11, %v1659_v8  ;;  %v1700_v14 = vpop.f32.mrb[19].mxu1 }
 0x120   : > { %v1701_v3 = vadd.f32 %v1700_v14, %v1699_v10 }
 0x121   : > { %v1226_v16 = vadd.f32 %v1698_v9, %v1161_v12  ;;  %v1164_v18 = vadd.f32 %v1661_v13, %v2135_v17 }
 0x123   : > { %1256 = vst [vmem:[%s2153_s16] sm:$0xff] %v1226_v16  ;;  %v1229_v19 = vadd.f32 %v1701_v3, %v1164_v18  ;;  %v1662_v20 = vpop.f32.mrb[20].mxu0  ;;  %v1287_v23 = vmul.f32 %v1226_v16, %v1226_v16 }
 0x124   : > { %v1702_v21 = vpop.f32.mrb[20].mxu1  ;;  %v1663_v22 = vpop.f32.mrb[21].mxu0 }
 0x125   : > { %1257 = vst [vmem:[%s2153_s16 + $0x8] sm:$0xff] %v1229_v19  ;;  %v1271_v15 = vadd.f32 %v1229_v19, %v1226_v16  ;;  %v1288_v24 = vmul.f32 %v1229_v19, %v1229_v19  ;;  %v1664_v25 = vadd.f32 %v1663_v22, %v1662_v20  ;;  %v1703_v26 = vpop.f32.mrb[21].mxu1  ;;  %v1665_v27 = vpop.f32.mrb[22].mxu0 }
 0x126   : > { %v1704_v28 = vadd.f32 %v1703_v26, %v1702_v21  ;;  %v1705_v29 = vpop.f32.mrb[22].mxu1  ;;  %v1666_v30 = vpop.f32.mrb[23].mxu0 }
 0x127   : > { %v1295_v32 = vadd.f32 %v1288_v24, %v1287_v23  ;;  %v1169_v17 = vadd.f32 %v1664_v25, %v2137_v31  ;;  %v1667_v34 = vadd.f32 %v1666_v30, %v1665_v27  ;;  %v1706_v35 = vpop.f32.mrb[23].mxu1 }
 0x128   : > { %v1707_v36 = vadd.f32 %v1706_v35, %v1705_v29  ;;  %v1270_v35 = vld [vmem:[%s2122_s8] sm:$0x1] }
 0x129   : > { %v1234_v37 = vadd.f32 %v1704_v28, %v1169_v17  ;;  %v1172_v38 = vadd.f32 %v1667_v34, %v2139_v33 }
 0x12b   : > { %1258 = vst [vmem:[%s2153_s16 + $0x10] sm:$0xff] %v1234_v37  ;;  %v1272_v39 = vadd.f32 %v1271_v15, %v1234_v37  ;;  %v1289_v40 = vmul.f32 %v1234_v37, %v1234_v37  ;;  %v1237_v41 = vadd.f32 %v1707_v36, %v1172_v38  ;;  %v1668_v42 = vpop.f32.mrb[24].mxu0  ;;  %v1286_v38 = vld [vmem:[%s2128_s22] sm:$0x1] }
 0x12c   : > { %v1708_v43 = vpop.f32.mrb[24].mxu1  ;;  %v1669_v44 = vpop.f32.mrb[25].mxu0 }
 0x12d   : > { %v1296_v45 = vadd.f32 %v1295_v32, %v1289_v40  ;;  %1259 = vst [vmem:[%s2153_s16 + $0x18] sm:$0xff] %v1237_v41  ;;  %v1273_v46 = vadd.f32 %v1272_v39, %v1237_v41  ;;  %v1290_v48 = vmul.f32 %v1237_v41, %v1237_v41  ;;  %v1670_v50 = vadd.f32 %v1669_v44, %v1668_v42  ;;  %v1709_v31 = vpop.f32.mrb[25].mxu1  ;;  %v1671_v51 = vpop.f32.mrb[26].mxu0 }
 0x12e   : > { %v1710_v52 = vadd.f32 %v1709_v31, %v1708_v43  ;;  %v1711_v53 = vpop.f32.mrb[26].mxu1  ;;  %v1672_v54 = vpop.f32.mrb[27].mxu0 }
 0x12f   : > { %v1297_v33 = vadd.f32 %v1296_v45, %v1290_v48  ;;  %v1177_v55 = vadd.f32 %v1670_v50, %v2141_v47  ;;  %v1673_v56 = vadd.f32 %v1672_v54, %v1671_v51  ;;  %v1712_v57 = vpop.f32.mrb[27].mxu1 }
 0x130   : > { %v1713_v58 = vadd.f32 %v1712_v57, %v1711_v53 }
 0x131   : > { %v1242_v59 = vadd.f32 %v1710_v52, %v1177_v55  ;;  %v1180_v60 = vadd.f32 %v1673_v56, %v2143_v49 }
 0x133   : > { %1260 = vst [vmem:[%s2153_s16 + $0x20] sm:$0xff] %v1242_v59  ;;  %v1274_v61 = vadd.f32 %v1273_v46, %v1242_v59  ;;  %v1291_v62 = vmul.f32 %v1242_v59, %v1242_v59  ;;  %v1245_v0 = vadd.f32 %v1713_v58, %v1180_v60  ;;  %v1674_v2 = vpop.f32.mrb[28].mxu0 }
 0x134   : > { %v1714_v4 = vpop.f32.mrb[28].mxu1  ;;  %v1675_v5 = vpop.f32.mrb[29].mxu0 }
 0x135   : > { %v1298_v6 = vadd.f32 %v1297_v33, %v1291_v62  ;;  %1261 = vst [vmem:[%s2153_s16 + $0x28] sm:$0xff] %v1245_v0  ;;  %v1275_v7 = vadd.f32 %v1274_v61, %v1245_v0  ;;  %v1292_v8 = vmul.f32 %v1245_v0, %v1245_v0  ;;  %v1676_v9 = vadd.f32 %v1675_v5, %v1674_v2  ;;  %v1715_v47 = vpop.f32.mrb[29].mxu1  ;;  %v1677_v10 = vpop.f32.mrb[30].mxu0 }
 0x136   : > { %v1716_v11 = vadd.f32 %v1715_v47, %v1714_v4  ;;  %v1717_v12 = vpop.f32.mrb[30].mxu1  ;;  %v1678_v13 = vpop.f32.mrb[31].mxu0 }
 0x137   : > { %v1299_v49 = vadd.f32 %v1298_v6, %v1292_v8  ;;  %v1185_v14 = vadd.f32 %v1676_v9, %v2145_v63  ;;  %v1679_v3 = vadd.f32 %v1678_v13, %v1677_v10  ;;  %v1718_v16 = vpop.f32.mrb[31].mxu1 }
 0x138   : > { %v1719_v18 = vadd.f32 %v1718_v16, %v1717_v12 }
 0x139   : > { %v1250_v19 = vadd.f32 %v1716_v11, %v1185_v14  ;;  %v1188_v20 = vadd.f32 %v1679_v3, %v2147_v1 }
 0x13b   : > { %1262 = vst [vmem:[%s2153_s16 + $0x30] sm:$0xff] %v1250_v19  ;;  %v1276_v21 = vadd.f32 %v1275_v7, %v1250_v19  ;;  %v1293_v22 = vmul.f32 %v1250_v19, %v1250_v19  ;;  %v1253_v23 = vadd.f32 %v1719_v18, %v1188_v20 }
 0x13d   : > { %v1300_v15 = vadd.f32 %v1299_v49, %v1293_v22  ;;  %1263 = vst [vmem:[%s2153_s16 + $0x38] sm:$0xff] %v1253_v23  ;;  %v1277_v24 = vadd.f32 %v1276_v21, %v1253_v23  ;;  %v1294_v25 = vmul.f32 %v1253_v23, %v1253_v23 }
 0x13f   : > { %v1278_v26 = vrot.slane %v1277_v24, 4  ;;  %v1301_v27 = vadd.f32 %v1300_v15, %v1294_v25 }
 0x141   : > { %v1279_v63 = vadd.f32 %v1278_v26, %v1277_v24  ;;  %v1302_v28 = vrot.slane %v1301_v27, 4 }
 0x143   : > { %v1280_v29 = vrot.slane %v1279_v63, 2  ;;  %v1303_v30 = vadd.f32 %v1302_v28, %v1301_v27 }
 0x145   : > { %v1281_v32 = vadd.f32 %v1280_v29, %v1279_v63  ;;  %v1304_v1 = vrot.slane %v1303_v30, 2 }
 0x147   : > { %v1282_v17 = vrot.slane %v1281_v32, 1  ;;  %v1305_v34 = vadd.f32 %v1304_v1, %v1303_v30 }
 0x149   : > { %v1283_v36 = vadd.f32 %v1282_v17, %v1281_v32  ;;  %v1306_v37 = vrot.slane %v1305_v34, 1 }
 0x14b   : > { %v1284_v39 = vadd.f32 %v1283_v36, %v1270_v35  ;;  %v1307_v40 = vadd.f32 %v1306_v37, %v1305_v34 }
 0x14d   : > { %1285 = vst [vmem:[%s2122_s8] sm:$0x1] %v1284_v39  ;;  %v1308_v41 = vadd.f32 %v1307_v40, %v1286_v38 }
 0x14f   : > { %1309 = vst [vmem:[%s2128_s22] sm:$0x1] %v1308_v41 }
 0x150 PF: > { %s16_s20 = sadd.s32 1, %s1831_s20   ;;  %s2189_s18 = smov %s1827_s19 }
 0x151   : > { %p13_p5 = scmp.ge.s32.totalorder %s16_s20, 4   ;;  %s2190_s19 = smov %s2192_s21 }
 0x153   :  { %15 = sbr.rel (!%p13_p5) target bundleno = 2 (0x2), region = 90 }

// kernel: discriminator_forward.11
= control target key start
LH: loop header
LB: loop body
LE: loop exit
PB: predicated region body
PF: predicated region fallthrough
CT: control target
= control target key end

     0   :  { %s3313_s18 = smov 0   ;;  %s3315_s19 = smov 0   ;;  %s4220_s0 = inlined_call_operand.vmem [shape: bf16[2,16,2048], index: 0, kind: input, shape index: {}]   ;;  %s4221_s1 = inlined_call_operand.vmem [shape: bf16[2048,256], index: 1, kind: input, shape index: {}]   ;;  %s4222_s2 = inlined_call_operand.vmem [shape: f32[1,256], index: 2, kind: input, shape index: {}]   ;;  %s4223_s3 = inlined_call_operand.vmem [shape: f32[2,16,256], index: 3, kind: output, shape index: {0}]   ;;  %s4224_s4 = inlined_call_operand.vmem [shape: f32[2,1,256], index: 4, kind: output, shape index: {1}]   ;;  %s4225_s5 = inlined_call_operand.vmem [shape: f32[2,1,256], index: 5, kind: output, shape index: {2}]  }
   0x1   :  { %s3317_s20 = smov 0  }
   0x2 LB: > { %s28_s21 = sadd.s32 1, %s3275_s19  ;;  %p2532_p0 = scmp.ge.s32.totalorder %s3279_s20, 1  ;;  %s3279_s20 = sphi %s3317_s20, %s16_s20   ;;  %s3275_s19 = sphi %s3315_s19, %s4229_s19   ;;  %s3271_s18 = sphi %s3313_s18, %s4228_s18  }
   0x3   : > { %p30_p1 = scmp.ge.s32.totalorder %s28_s21, 2  ;;  %p214_p2 = scmp.lt.s32.totalorder %s3279_s20, 3 }
   0x5   : > { %s4231_s21 = smov (%p30_p1, %s28_s21), 0  ;;  %p215_p3 = pnand %p2532_p0, %p214_p2 }
   0x6   : > { %v2873_v0 = vld [vmem:[%s4221_s1 + $0x4] ss:$8 sps:$4 sm:$0xff] (!%p215_p3)   ;;  %v2877_v2 = vld [vmem:[%s4221_s1] ss:$8 sps:$4 sm:$0xff] (!%p215_p3)   ;;  %v2879_v4 = vld [vmem:[%s4221_s1 + $0x14] ss:$8 sps:$4 sm:$0xff] (!%p215_p3)  }
   0x7   : > { %218 = sbr.rel (%p215_p3) target bundleno = 507 (0x1fb), region = 32  ;;  %v2875_v1 = vld [vmem:[%s4221_s1 + $0x404] ss:$8 sps:$4 sm:$0xff] (!%p215_p3)   ;;  %1934 = vmatprep.subr.bf16.mxu1 (!%p215_p3), %v2873_v0  ;;  %v2878_v3 = vld [vmem:[%s4221_s1 + $0x400] ss:$8 sps:$4 sm:$0xff] (!%p215_p3)   ;;  %p261_p4 = scmp.lt.s32.totalorder (!%p215_p3), %s3271_s18, 1 }
   0x8   : > { %2106 = vmatprep.subr.bf16.mxu0 (!%p215_p3), %v2875_v1  ;;  %1935 = vmatpush1.bf16.msra.mxu1 (!%p215_p3), %v2877_v2  ;;  %v2881_v5 = vld [vmem:[%s4221_s1 + $0x414] ss:$8 sps:$4 sm:$0xff] (!%p215_p3)   ;;  %v2883_v6 = vld [vmem:[%s4221_s1 + $0x10] ss:$8 sps:$4 sm:$0xff] (!%p215_p3)   ;;  %v2885_v8 = vld [vmem:[%s4221_s1 + $0x24] ss:$8 sps:$4 sm:$0xff] (!%p215_p3)  }
   0x9   : > { %2107 = vmatpush1.bf16.msra.mxu0 (!%p215_p3), %v2878_v3  ;;  %1936 = vmatprep.subr.bf16.mxu1 (!%p215_p3), %v2879_v4  ;;  %v2884_v7 = vld [vmem:[%s4221_s1 + $0x410] ss:$8 sps:$4 sm:$0xff] (!%p215_p3)   ;;  %v2887_v9 = vld [vmem:[%s4221_s1 + $0x424] ss:$8 sps:$4 sm:$0xff] (!%p215_p3)   ;;  %v2889_v10 = vld [vmem:[%s4221_s1 + $0x20] ss:$8 sps:$4 sm:$0xff] (!%p215_p3)  }
   0xa   : > { %2108 = vmatprep.subr.bf16.mxu0 (!%p215_p3), %v2881_v5  ;;  %v2890_v11 = vld [vmem:[%s4221_s1 + $0x420] ss:$8 sps:$4 sm:$0xff] (!%p215_p3)   ;;  %v2891_v12 = vld [vmem:[%s4221_s1 + $0x34] ss:$8 sps:$4 sm:$0xff] (!%p215_p3)   ;;  %v2895_v14 = vld [vmem:[%s4221_s1 + $0x30] ss:$8 sps:$4 sm:$0xff] (!%p215_p3)  }
   0xb   : > { %v2893_v13 = vld [vmem:[%s4221_s1 + $0x434] ss:$8 sps:$4 sm:$0xff] (!%p215_p3)   ;;  %v2896_v15 = vld [vmem:[%s4221_s1 + $0x430] ss:$8 sps:$4 sm:$0xff] (!%p215_p3)   ;;  %v2897_v16 = vld [vmem:[%s4221_s1 + $0x44] ss:$8 sps:$4 sm:$0xff] (!%p215_p3)  }
   0xc   : > { %1937 = vmatpush1.bf16.msra.mxu1 (!%p215_p3), %v2883_v6  ;;  %v2899_v17 = vld [vmem:[%s4221_s1 + $0x444] ss:$8 sps:$4 sm:$0xff] (!%p215_p3)   ;;  %v2901_v18 = vld [vmem:[%s4221_s1 + $0x40] ss:$8 sps:$4 sm:$0xff] (!%p215_p3)   ;;  %v2903_v20 = vld [vmem:[%s4221_s1 + $0x54] ss:$8 sps:$4 sm:$0xff] (!%p215_p3)  }
   0xd   : > { %2109 = vmatpush1.bf16.msra.mxu0 (!%p215_p3), %v2884_v7  ;;  %1938 = vmatprep.subr.bf16.mxu1 (!%p215_p3), %v2885_v8  ;;  %v2902_v19 = vld [vmem:[%s4221_s1 + $0x440] ss:$8 sps:$4 sm:$0xff] (!%p215_p3)   ;;  %v2905_v21 = vld [vmem:[%s4221_s1 + $0x454] ss:$8 sps:$4 sm:$0xff] (!%p215_p3)   ;;  %v2907_v22 = vld [vmem:[%s4221_s1 + $0x50] ss:$8 sps:$4 sm:$0xff] (!%p215_p3)  }
   0xe   : > { %2110 = vmatprep.subr.bf16.mxu0 %v2887_v9  ;;  %v2908_v23 = vld [vmem:[%s4221_s1 + $0x450] ss:$8 sps:$4 sm:$0xff]   ;;  %v2909_v24 = vld [vmem:[%s4221_s1 + $0x64] ss:$8 sps:$4 sm:$0xff]   ;;  %v2913_v26 = vld [vmem:[%s4221_s1 + $0x60] ss:$8 sps:$4 sm:$0xff]  }
   0xf   : > { %v2911_v25 = vld [vmem:[%s4221_s1 + $0x464] ss:$8 sps:$4 sm:$0xff]   ;;  %v2914_v27 = vld [vmem:[%s4221_s1 + $0x460] ss:$8 sps:$4 sm:$0xff]   ;;  %v2915_v28 = vld [vmem:[%s4221_s1 + $0x74] ss:$8 sps:$4 sm:$0xff]  }
  0x10   : > { %1939 = vmatpush1.bf16.msra.mxu1 %v2889_v10  ;;  %v2917_v29 = vld [vmem:[%s4221_s1 + $0x474] ss:$8 sps:$4 sm:$0xff]   ;;  %v2919_v30 = vld [vmem:[%s4221_s1 + $0x70] ss:$8 sps:$4 sm:$0xff]   ;;  %v2921_v32 = vld [vmem:[%s4221_s1 + $0x84] ss:$8 sps:$4 sm:$0xff]  }
  0x11   : > { %2111 = vmatpush1.bf16.msra.mxu0 %v2890_v11  ;;  %1940 = vmatprep.subr.bf16.mxu1 %v2891_v12  ;;  %v2920_v31 = vld [vmem:[%s4221_s1 + $0x470] ss:$8 sps:$4 sm:$0xff]   ;;  %v2923_v33 = vld [vmem:[%s4221_s1 + $0x484] ss:$8 sps:$4 sm:$0xff]   ;;  %v2925_v34 = vld [vmem:[%s4221_s1 + $0x80] ss:$8 sps:$4 sm:$0xff]  }
  0x12   : > { %2112 = vmatprep.subr.bf16.mxu0 %v2893_v13  ;;  %v2926_v35 = vld [vmem:[%s4221_s1 + $0x480] ss:$8 sps:$4 sm:$0xff]   ;;  %v2927_v36 = vld [vmem:[%s4221_s1 + $0x94] ss:$8 sps:$4 sm:$0xff]   ;;  %s4233_s18 = smov (!%p261_p4, %s3271_s18), 1 }
  0x13   : > { %v2929_v37 = vld [vmem:[%s4221_s1 + $0x494] ss:$8 sps:$4 sm:$0xff]   ;;  %v2931_v38 = vld [vmem:[%s4221_s1 + $0x90] ss:$8 sps:$4 sm:$0xff]   ;;  %v2933_v40 = vld [vmem:[%s4221_s1 + $0xa4] ss:$8 sps:$4 sm:$0xff]  }
  0x14   : > { %1941 = vmatpush1.bf16.msra.mxu1 %v2895_v14  ;;  %v2932_v39 = vld [vmem:[%s4221_s1 + $0x490] ss:$8 sps:$4 sm:$0xff]   ;;  %s2813_s16 = sshll.u32 %s4233_s18, 7  ;;  %v2935_v41 = vld [vmem:[%s4221_s1 + $0x4a4] ss:$8 sps:$4 sm:$0xff]   ;;  %s2537_s27 = sshll.u32 %s4233_s18, 1 }
  0x15   : > { %2113 = vmatpush1.bf16.msra.mxu0 %v2896_v15  ;;  %1942 = vmatprep.subr.bf16.mxu1 %v2897_v16  ;;  %v2937_v42 = vld [vmem:[%s4221_s1 + $0xa0] ss:$8 sps:$4 sm:$0xff]   ;;  %s3473_s29 = scalar_lea.vmem %s4220_s0, %s2813_s16  ;;  %v2939_v44 = vld [vmem:[%s4221_s1 + $0xb4] ss:$8 sps:$4 sm:$0xff]   ;;  %v2943_v46 = vld [vmem:[%s4221_s1 + $0xb0] ss:$8 sps:$4 sm:$0xff]   ;;  %s4179_s6 = scalar_lea.vmem %s4224_s4, %s2537_s27 }
  0x16   : > { %2114 = vmatprep.subr.bf16.mxu0 %v2899_v17  ;;  %v2938_v43 = vld [vmem:[%s4221_s1 + $0x4a0] ss:$8 sps:$4 sm:$0xff]   ;;  %v2941_v45 = vld [vmem:[%s4221_s1 + $0x4b4] ss:$8 sps:$4 sm:$0xff]   ;;  %v2944_v47 = vld [vmem:[%s4221_s1 + $0x4b0] ss:$8 sps:$4 sm:$0xff]   ;;  %s4184_s9 = scalar_lea.vmem %s4225_s5, %s2537_s27 }
  0x17   : > { %v290_v48 = vld [vmem:[%s3473_s29] sm:$0xff]  ;;  %v2951_v58 = vld [vmem:[%s4221_s1 + $0xd4] ss:$8 sps:$4 sm:$0xff]   ;;  %v2955_v60 = vld [vmem:[%s4221_s1 + $0xd0] ss:$8 sps:$4 sm:$0xff]   ;;  %s2814_s12 = sshll.u32 %s4233_s18, 5 }
  0x18   : > { %1943 = vmatpush1.bf16.msra.mxu1 %v2901_v18  ;;  %v298_v49 = vld [vmem:[%s3473_s29 + $0x40] sm:$0xff]  ;;  %v2953_v59 = vld [vmem:[%s4221_s1 + $0x4d4] ss:$8 sps:$4 sm:$0xff]   ;;  %v2956_v61 = vld [vmem:[%s4221_s1 + $0x4d0] ss:$8 sps:$4 sm:$0xff]   ;;  %s280_s14 = scalar_lea.vmem %s4223_s3, %s2814_s12 }
  0x19   : > { %2115 = vmatpush1.bf16.msra.mxu0 %v2902_v19  ;;  %1944 = vmatprep.subr.bf16.mxu1 %v2903_v20  ;;  %v2945_v50 = vld [vmem:[%s4221_s1 + $0xc4] ss:$8 sps:$4 sm:$0xff]   ;;  %v2540_v52 = vcombine.high %v290_v48, %v298_v49  ;;  %v2949_v56 = vld [vmem:[%s4221_s1 + $0xc0] ss:$8 sps:$4 sm:$0xff]   ;;  %v2963_v2 = vld [vmem:[%s4221_s1 + $0xf4] ss:$8 sps:$4 sm:$0xff]   ;;  %v2539_v8 = vcombine.low %v290_v48, %v298_v49 }
  0x1a   : > { %2116 = vmatprep.subr.bf16.mxu0 %v2905_v21  ;;  %v2947_v51 = vld [vmem:[%s4221_s1 + $0x4c4] ss:$8 sps:$4 sm:$0xff]   ;;  %v2950_v57 = vld [vmem:[%s4221_s1 + $0x4c0] ss:$8 sps:$4 sm:$0xff]   ;;  %v2965_v3 = vld [vmem:[%s4221_s1 + $0x4f4] ss:$8 sps:$4 sm:$0xff]  }
  0x1b   : > { %v294_v53 = vld [vmem:[%s3473_s29 + $0x20] sm:$0xff]  ;;  %1966 = vmatprep.mubr.bf16.mxu1 %v2540_v52  ;;  %v2967_v4 = vld [vmem:[%s4221_s1 + $0xf0] ss:$8 sps:$4 sm:$0xff]   ;;  %v2977_v12 = vld [vmem:[%s4221_s1 + $0x114] ss:$8 sps:$4 sm:$0xff]  }
  0x1c   : > { %1945 = vmatpush1.bf16.msra.mxu1 %v2907_v22  ;;  %v302_v54 = vld [vmem:[%s3473_s29 + $0x60] sm:$0xff]  ;;  %v2968_v5 = vld [vmem:[%s4221_s1 + $0x4f0] ss:$8 sps:$4 sm:$0xff]   ;;  %v2980_v13 = vld [vmem:[%s4221_s1 + $0x514] ss:$8 sps:$4 sm:$0xff]  }
  0x1d   : > { %2117 = vmatpush1.bf16.msra.mxu0 %v2908_v23  ;;  %1946 = vmatprep.subr.bf16.mxu1 %v2909_v24  ;;  %v2548_v55 = vcombine.high %v294_v53, %v302_v54  ;;  %v2957_v62 = vld [vmem:[%s4221_s1 + $0xe4] ss:$8 sps:$4 sm:$0xff]   ;;  %v2961_v0 = vld [vmem:[%s4221_s1 + $0xe0] ss:$8 sps:$4 sm:$0xff]   ;;  %v2547_v10 = vcombine.low %v294_v53, %v302_v54  ;;  %v2975_v14 = vld [vmem:[%s4221_s1 + $0x110] ss:$8 sps:$4 sm:$0xff]  }
  0x1e   : > { %2118 = vmatprep.subr.bf16.mxu0 %v2911_v25  ;;  %v2959_v63 = vld [vmem:[%s4221_s1 + $0x4e4] ss:$8 sps:$4 sm:$0xff]   ;;  %v2962_v1 = vld [vmem:[%s4221_s1 + $0x4e0] ss:$8 sps:$4 sm:$0xff]   ;;  %v2978_v15 = vld [vmem:[%s4221_s1 + $0x510] ss:$8 sps:$4 sm:$0xff]  }
  0x1f   : > { %2138 = vmatprep.mubr.bf16.mxu0 %v2548_v55  ;;  %v2971_v6 = vld [vmem:[%s4221_s1 + $0x104] ss:$8 sps:$4 sm:$0xff]   ;;  %v2969_v9 = vld [vmem:[%s4221_s1 + $0x100] ss:$8 sps:$4 sm:$0xff]   ;;  %v2989_v20 = vld [vmem:[%s4221_s1 + $0x134] ss:$8 sps:$4 sm:$0xff]  }
  0x20   : > { %1947 = vmatpush1.bf16.msra.mxu1 %v2913_v26  ;;  %v2974_v7 = vld [vmem:[%s4221_s1 + $0x504] ss:$8 sps:$4 sm:$0xff]   ;;  %v2972_v11 = vld [vmem:[%s4221_s1 + $0x500] ss:$8 sps:$4 sm:$0xff]   ;;  %v2992_v21 = vld [vmem:[%s4221_s1 + $0x534] ss:$8 sps:$4 sm:$0xff]  }
  0x21   : > { %2119 = vmatpush1.bf16.msra.mxu0 %v2914_v27  ;;  %1948 = vmatprep.subr.bf16.mxu1 %v2915_v28  ;;  %v2983_v16 = vld [vmem:[%s4221_s1 + $0x124] ss:$8 sps:$4 sm:$0xff]   ;;  %v2981_v18 = vld [vmem:[%s4221_s1 + $0x120] ss:$8 sps:$4 sm:$0xff]   ;;  %v2987_v22 = vld [vmem:[%s4221_s1 + $0x130] ss:$8 sps:$4 sm:$0xff]  }
  0x22   : > { %2120 = vmatprep.subr.bf16.mxu0 %v2917_v29  ;;  %v2986_v17 = vld [vmem:[%s4221_s1 + $0x524] ss:$8 sps:$4 sm:$0xff]   ;;  %v2984_v19 = vld [vmem:[%s4221_s1 + $0x520] ss:$8 sps:$4 sm:$0xff]   ;;  %v2990_v23 = vld [vmem:[%s4221_s1 + $0x530] ss:$8 sps:$4 sm:$0xff]  }
  0x23   : > { %v2995_v24 = vld [vmem:[%s4221_s1 + $0x144] ss:$8 sps:$4 sm:$0xff]   ;;  %v2993_v26 = vld [vmem:[%s4221_s1 + $0x140] ss:$8 sps:$4 sm:$0xff]   ;;  %v3001_v28 = vld [vmem:[%s4221_s1 + $0x154] ss:$8 sps:$4 sm:$0xff]  }
  0x24   : > { %1949 = vmatpush1.bf16.msra.mxu1 %v2919_v30  ;;  %v2998_v25 = vld [vmem:[%s4221_s1 + $0x544] ss:$8 sps:$4 sm:$0xff]   ;;  %v2996_v27 = vld [vmem:[%s4221_s1 + $0x540] ss:$8 sps:$4 sm:$0xff]   ;;  %v3004_v29 = vld [vmem:[%s4221_s1 + $0x554] ss:$8 sps:$4 sm:$0xff]  }
  0x25   : > { %2121 = vmatpush1.bf16.msra.mxu0 %v2920_v31  ;;  %1950 = vmatprep.subr.bf16.mxu1 %v2921_v32  ;;  %v2999_v30 = vld [vmem:[%s4221_s1 + $0x150] ss:$8 sps:$4 sm:$0xff]   ;;  %v3007_v32 = vld [vmem:[%s4221_s1 + $0x164] ss:$8 sps:$4 sm:$0xff]   ;;  %v3017_v48 = vld [vmem:[%s4221_s1 + $0x180] ss:$8 sps:$4 sm:$0xff]  }
  0x26   : > { %2122 = vmatprep.subr.bf16.mxu0 %v2923_v33  ;;  %v3002_v31 = vld [vmem:[%s4221_s1 + $0x550] ss:$8 sps:$4 sm:$0xff]   ;;  %v3010_v33 = vld [vmem:[%s4221_s1 + $0x564] ss:$8 sps:$4 sm:$0xff]   ;;  %v3020_v49 = vld [vmem:[%s4221_s1 + $0x580] ss:$8 sps:$4 sm:$0xff]  }
  0x27   : > { %v3023_v52 = vld [vmem:[%s4221_s1 + $0x190] ss:$8 sps:$4 sm:$0xff]   ;;  %v3031_v54 = vld [vmem:[%s4221_s1 + $0x1a4] ss:$8 sps:$4 sm:$0xff]  }
  0x28   : > { %1951 = vmatpush1.bf16.msra.mxu1 %v2925_v34  ;;  %v3005_v34 = vld [vmem:[%s4221_s1 + $0x160] ss:$8 sps:$4 sm:$0xff]   ;;  %v3026_v53 = vld [vmem:[%s4221_s1 + $0x590] ss:$8 sps:$4 sm:$0xff]   ;;  %v3034_v55 = vld [vmem:[%s4221_s1 + $0x5a4] ss:$8 sps:$4 sm:$0xff]  }
  0x29   : > { %2123 = vmatpush1.bf16.msra.mxu0 %v2926_v35  ;;  %1952 = vmatprep.subr.bf16.mxu1 %v2927_v36  ;;  %v3008_v35 = vld [vmem:[%s4221_s1 + $0x560] ss:$8 sps:$4 sm:$0xff]  }
  0x2a   : > { %2124 = vmatprep.subr.bf16.mxu0 %v2929_v37  ;;  %v3624_v36 = vld [vmem:[%s3473_s29 + $0x8] sm:$0xff] }
  0x2b   : > { %v3627_v37 = vld [vmem:[%s3473_s29 + $0x48] sm:$0xff] }
  0x2c   : > { %1953 = vmatpush1.bf16.msra.mxu1 %v2931_v38  ;;  %v3013_v38 = vld [vmem:[%s4221_s1 + $0x174] ss:$8 sps:$4 sm:$0xff]  }
  0x2d   : > { %2125 = vmatpush1.bf16.msra.mxu0 %v2932_v39  ;;  %1954 = vmatprep.subr.bf16.mxu1 %v2933_v40  ;;  %v3016_v39 = vld [vmem:[%s4221_s1 + $0x574] ss:$8 sps:$4 sm:$0xff]   ;;  %v2542_v40 = vcombine.high %v3624_v36, %v3627_v37 }
  0x2e   : > { %2126 = vmatprep.subr.bf16.mxu0 %v2935_v41  ;;  %v3638_v41 = vld [vmem:[%s3473_s29 + $0x28] sm:$0xff] }
  0x30   : > { %1955 = vmatpush1.bf16.msra.mxu1 %v2937_v42  ;;  %v3641_v42 = vld [vmem:[%s3473_s29 + $0x68] sm:$0xff] }
  0x31   : > { %2127 = vmatpush1.bf16.msra.mxu0 %v2938_v43  ;;  %1956 = vmatprep.subr.bf16.mxu1 %v2939_v44  ;;  %v2550_v43 = vcombine.high %v3638_v41, %v3641_v42  ;;  %v3011_v44 = vld [vmem:[%s4221_s1 + $0x170] ss:$8 sps:$4 sm:$0xff]  }
  0x32   : > { %2128 = vmatprep.subr.bf16.mxu0 %v2941_v45  ;;  %v3014_v45 = vld [vmem:[%s4221_s1 + $0x570] ss:$8 sps:$4 sm:$0xff]  }
  0x34   : > { %1957 = vmatpush1.bf16.msra.mxu1 %v2943_v46  ;;  %v3019_v46 = vld [vmem:[%s4221_s1 + $0x184] ss:$8 sps:$4 sm:$0xff]  }
  0x35   : > { %2129 = vmatpush1.bf16.msra.mxu0 %v2944_v47  ;;  %1958 = vmatprep.subr.bf16.mxu1 %v2945_v50  ;;  %v3022_v47 = vld [vmem:[%s4221_s1 + $0x584] ss:$8 sps:$4 sm:$0xff]   ;;  %v3025_v50 = vld [vmem:[%s4221_s1 + $0x194] ss:$8 sps:$4 sm:$0xff]  }
  0x36   : > { %2130 = vmatprep.subr.bf16.mxu0 %v2947_v51  ;;  %v3028_v51 = vld [vmem:[%s4221_s1 + $0x594] ss:$8 sps:$4 sm:$0xff]  }
  0x38   : > { %1959 = vmatpush1.bf16.msra.mxu1 %v2949_v56  ;;  %v3029_v56 = vld [vmem:[%s4221_s1 + $0x1a0] ss:$8 sps:$4 sm:$0xff]  }
  0x39   : > { %2131 = vmatpush1.bf16.msra.mxu0 %v2950_v57  ;;  %1960 = vmatprep.subr.bf16.mxu1 %v2951_v58  ;;  %v3032_v57 = vld [vmem:[%s4221_s1 + $0x5a0] ss:$8 sps:$4 sm:$0xff]   ;;  %v3037_v58 = vld [vmem:[%s4221_s1 + $0x1b4] ss:$8 sps:$4 sm:$0xff]  }
  0x3a   : > { %2132 = vmatprep.subr.bf16.mxu0 %v2953_v59  ;;  %v3040_v59 = vld [vmem:[%s4221_s1 + $0x5b4] ss:$8 sps:$4 sm:$0xff]  }
  0x3c   : > { %1961 = vmatpush1.bf16.msra.mxu1 %v2955_v60  ;;  %v3035_v60 = vld [vmem:[%s4221_s1 + $0x1b0] ss:$8 sps:$4 sm:$0xff]  }
  0x3d   : > { %2133 = vmatpush1.bf16.msra.mxu0 %v2956_v61  ;;  %1962 = vmatprep.subr.bf16.mxu1 %v2957_v62  ;;  %v3038_v61 = vld [vmem:[%s4221_s1 + $0x5b0] ss:$8 sps:$4 sm:$0xff]   ;;  %v3043_v62 = vld [vmem:[%s4221_s1 + $0x1c4] ss:$8 sps:$4 sm:$0xff]  }
  0x3e   : > { %2134 = vmatprep.subr.bf16.mxu0 %v2959_v63  ;;  %v3046_v63 = vld [vmem:[%s4221_s1 + $0x5c4] ss:$8 sps:$4 sm:$0xff]  }
  0x40   : > { %1963 = vmatpush1.bf16.msra.mxu1 %v2961_v0  ;;  %v3041_v0 = vld [vmem:[%s4221_s1 + $0x1c0] ss:$8 sps:$4 sm:$0xff]  }
  0x41   : > { %2135 = vmatpush1.bf16.msra.mxu0 %v2962_v1  ;;  %1964 = vmatprep.subr.bf16.mxu1 %v2963_v2  ;;  %v3044_v1 = vld [vmem:[%s4221_s1 + $0x5c0] ss:$8 sps:$4 sm:$0xff]   ;;  %v3049_v2 = vld [vmem:[%s4221_s1 + $0x1d4] ss:$8 sps:$4 sm:$0xff]  }
  0x42   : > { %2136 = vmatprep.subr.bf16.mxu0 %v2965_v3  ;;  %v3052_v3 = vld [vmem:[%s4221_s1 + $0x5d4] ss:$8 sps:$4 sm:$0xff]  }
  0x44   : > { %1965 = vmatpush1.bf16.msra.mxu1 %v2967_v4  ;;  %v3047_v4 = vld [vmem:[%s4221_s1 + $0x1d0] ss:$8 sps:$4 sm:$0xff]  }
  0x45   : > { %2137 = vmatpush1.bf16.msra.mxu0 %v2968_v5  ;;  %1977 = vmatprep.subr.bf16.mxu1 %v2971_v6  ;;  %v3050_v5 = vld [vmem:[%s4221_s1 + $0x5d0] ss:$8 sps:$4 sm:$0xff]   ;;  %v3055_v6 = vld [vmem:[%s4221_s1 + $0x1e4] ss:$8 sps:$4 sm:$0xff]  }
  0x46   : > { %2149 = vmatprep.subr.bf16.mxu0 %v2974_v7  ;;  %v3058_v7 = vld [vmem:[%s4221_s1 + $0x5e4] ss:$8 sps:$4 sm:$0xff]  }
  0x47   : > { %1967 = vmatmul.mubr.bf16.vlgmr.msra.gmra.mrb[0].mxu1 %v2539_v8  ;;  %v3053_v8 = vld [vmem:[%s4221_s1 + $0x1e0] ss:$8 sps:$4 sm:$0xff]  }
  0x48   : > { %2139 = vmatmul.mubr.bf16.vlgmr.msra.gmra.mrb[0].mxu0 %v2547_v10  ;;  %1978 = vmatpush1.bf16.msra.mxu1 %v2969_v9  ;;  %v3056_v9 = vld [vmem:[%s4221_s1 + $0x5e0] ss:$8 sps:$4 sm:$0xff]   ;;  %v3061_v10 = vld [vmem:[%s4221_s1 + $0x1f4] ss:$8 sps:$4 sm:$0xff]  }
  0x49   : > { %2150 = vmatpush1.bf16.msra.mxu0 %v2972_v11  ;;  %1979 = vmatprep.subr.bf16.mxu1 %v2977_v12  ;;  %v3064_v11 = vld [vmem:[%s4221_s1 + $0x5f4] ss:$8 sps:$4 sm:$0xff]   ;;  %v3059_v12 = vld [vmem:[%s4221_s1 + $0x1f0] ss:$8 sps:$4 sm:$0xff]  }
  0x4a   : > { %2151 = vmatprep.subr.bf16.mxu0 %v2980_v13  ;;  %2009 = vmatprep.mubr.bf16.mxu1 %v2542_v40  ;;  %v3062_v13 = vld [vmem:[%s4221_s1 + $0x5f0] ss:$8 sps:$4 sm:$0xff]   ;;  %v3089_v40 = vld [vmem:[%s4221_s1 + $0x240] ss:$8 sps:$4 sm:$0xff]  }
  0x4b   : > { %2181 = vmatprep.mubr.bf16.mxu0 %v2550_v43  ;;  %v3100_v43 = vld [vmem:[%s4221_s1 + $0x654] ss:$8 sps:$4 sm:$0xff]  }
  0x4c   : > { %1980 = vmatpush1.bf16.msra.mxu1 %v2975_v14  ;;  %v3067_v14 = vld [vmem:[%s4221_s1 + $0x204] ss:$8 sps:$4 sm:$0xff]  }
  0x4d   : > { %2152 = vmatpush1.bf16.msra.mxu0 %v2978_v15  ;;  %1981 = vmatprep.subr.bf16.mxu1 %v2983_v16  ;;  %v3070_v15 = vld [vmem:[%s4221_s1 + $0x604] ss:$8 sps:$4 sm:$0xff]   ;;  %v2541_v16 = vcombine.low %v3624_v36, %v3627_v37  ;;  %v3083_v36 = vld [vmem:[%s4221_s1 + $0x230] ss:$8 sps:$4 sm:$0xff]  }
  0x4e   : > { %2153 = vmatprep.subr.bf16.mxu0 %v2986_v17  ;;  %v3065_v17 = vld [vmem:[%s4221_s1 + $0x200] ss:$8 sps:$4 sm:$0xff]   ;;  %v3086_v37 = vld [vmem:[%s4221_s1 + $0x630] ss:$8 sps:$4 sm:$0xff]  }
  0x50   : > { %1982 = vmatpush1.bf16.msra.mxu1 %v2981_v18  ;;  %v2549_v18 = vcombine.low %v3638_v41, %v3641_v42  ;;  %v3092_v41 = vld [vmem:[%s4221_s1 + $0x640] ss:$8 sps:$4 sm:$0xff]   ;;  %v3097_v42 = vld [vmem:[%s4221_s1 + $0x254] ss:$8 sps:$4 sm:$0xff]  }
  0x51   : > { %2154 = vmatpush1.bf16.msra.mxu0 %v2984_v19  ;;  %1983 = vmatprep.subr.bf16.mxu1 %v2989_v20  ;;  %v3068_v19 = vld [vmem:[%s4221_s1 + $0x600] ss:$8 sps:$4 sm:$0xff]   ;;  %v3073_v20 = vld [vmem:[%s4221_s1 + $0x214] ss:$8 sps:$4 sm:$0xff]  }
  0x52   : > { %2155 = vmatprep.subr.bf16.mxu0 %v2992_v21  ;;  %v3076_v21 = vld [vmem:[%s4221_s1 + $0x614] ss:$8 sps:$4 sm:$0xff]  }
  0x54   : > { %1984 = vmatpush1.bf16.msra.mxu1 %v2987_v22  ;;  %v3071_v22 = vld [vmem:[%s4221_s1 + $0x210] ss:$8 sps:$4 sm:$0xff]  }
  0x55   : > { %2156 = vmatpush1.bf16.msra.mxu0 %v2990_v23  ;;  %1985 = vmatprep.subr.bf16.mxu1 %v2995_v24  ;;  %v3074_v23 = vld [vmem:[%s4221_s1 + $0x610] ss:$8 sps:$4 sm:$0xff]  }
  0x56   : > { %2157 = vmatprep.subr.bf16.mxu0 %v2998_v25  ;;  %v3776_v24 = vld [vmem:[%s3473_s29 + $0x10] sm:$0xff] }
  0x57   : > { %v3779_v25 = vld [vmem:[%s3473_s29 + $0x50] sm:$0xff] }
  0x58   : > { %1986 = vmatpush1.bf16.msra.mxu1 %v2993_v26  ;;  %v3079_v26 = vld [vmem:[%s4221_s1 + $0x224] ss:$8 sps:$4 sm:$0xff]  }
  0x59   : > { %2158 = vmatpush1.bf16.msra.mxu0 %v2996_v27  ;;  %1987 = vmatprep.subr.bf16.mxu1 %v3001_v28  ;;  %v3082_v27 = vld [vmem:[%s4221_s1 + $0x624] ss:$8 sps:$4 sm:$0xff]   ;;  %v2544_v28 = vcombine.high %v3776_v24, %v3779_v25 }
  0x5a   : > { %2159 = vmatprep.subr.bf16.mxu0 %v3004_v29  ;;  %v3790_v29 = vld [vmem:[%s3473_s29 + $0x30] sm:$0xff] }
  0x5c   : > { %1988 = vmatpush1.bf16.msra.mxu1 %v2999_v30  ;;  %v3793_v30 = vld [vmem:[%s3473_s29 + $0x70] sm:$0xff] }
  0x5d   : > { %2160 = vmatpush1.bf16.msra.mxu0 %v3002_v31  ;;  %1989 = vmatprep.subr.bf16.mxu1 %v3007_v32  ;;  %v2552_v31 = vcombine.high %v3790_v29, %v3793_v30  ;;  %v3077_v32 = vld [vmem:[%s4221_s1 + $0x220] ss:$8 sps:$4 sm:$0xff]  }
  0x5e   : > { %2161 = vmatprep.subr.bf16.mxu0 %v3010_v33  ;;  %v3080_v33 = vld [vmem:[%s4221_s1 + $0x620] ss:$8 sps:$4 sm:$0xff]  }
  0x60   : > { %1990 = vmatpush1.bf16.msra.mxu1 %v3005_v34  ;;  %v3085_v34 = vld [vmem:[%s4221_s1 + $0x234] ss:$8 sps:$4 sm:$0xff]  }
  0x61   : > { %2162 = vmatpush1.bf16.msra.mxu0 %v3008_v35  ;;  %1991 = vmatprep.subr.bf16.mxu1 %v3013_v38  ;;  %v3088_v35 = vld [vmem:[%s4221_s1 + $0x634] ss:$8 sps:$4 sm:$0xff]   ;;  %v3091_v38 = vld [vmem:[%s4221_s1 + $0x244] ss:$8 sps:$4 sm:$0xff]  }
  0x62   : > { %2163 = vmatprep.subr.bf16.mxu0 %v3016_v39  ;;  %v3094_v39 = vld [vmem:[%s4221_s1 + $0x644] ss:$8 sps:$4 sm:$0xff]  }
  0x64   : > { %1992 = vmatpush1.bf16.msra.mxu1 %v3011_v44  ;;  %v3095_v44 = vld [vmem:[%s4221_s1 + $0x250] ss:$8 sps:$4 sm:$0xff]  }
  0x65   : > { %2164 = vmatpush1.bf16.msra.mxu0 %v3014_v45  ;;  %1993 = vmatprep.subr.bf16.mxu1 %v3019_v46  ;;  %v3098_v45 = vld [vmem:[%s4221_s1 + $0x650] ss:$8 sps:$4 sm:$0xff]   ;;  %v3103_v46 = vld [vmem:[%s4221_s1 + $0x264] ss:$8 sps:$4 sm:$0xff]  }
  0x66   : > { %2165 = vmatprep.subr.bf16.mxu0 %v3022_v47  ;;  %v3106_v47 = vld [vmem:[%s4221_s1 + $0x664] ss:$8 sps:$4 sm:$0xff]  }
  0x68   : > { %1994 = vmatpush1.bf16.msra.mxu1 %v3017_v48  ;;  %v3101_v48 = vld [vmem:[%s4221_s1 + $0x260] ss:$8 sps:$4 sm:$0xff]  }
  0x69   : > { %2166 = vmatpush1.bf16.msra.mxu0 %v3020_v49  ;;  %1995 = vmatprep.subr.bf16.mxu1 %v3025_v50  ;;  %v3104_v49 = vld [vmem:[%s4221_s1 + $0x660] ss:$8 sps:$4 sm:$0xff]   ;;  %v3109_v50 = vld [vmem:[%s4221_s1 + $0x274] ss:$8 sps:$4 sm:$0xff]  }
  0x6a   : > { %2167 = vmatprep.subr.bf16.mxu0 %v3028_v51  ;;  %v3112_v51 = vld [vmem:[%s4221_s1 + $0x674] ss:$8 sps:$4 sm:$0xff]  }
  0x6c   : > { %1996 = vmatpush1.bf16.msra.mxu1 %v3023_v52  ;;  %v3107_v52 = vld [vmem:[%s4221_s1 + $0x270] ss:$8 sps:$4 sm:$0xff]  }
  0x6d   : > { %2168 = vmatpush1.bf16.msra.mxu0 %v3026_v53  ;;  %1997 = vmatprep.subr.bf16.mxu1 %v3031_v54  ;;  %v3110_v53 = vld [vmem:[%s4221_s1 + $0x670] ss:$8 sps:$4 sm:$0xff]   ;;  %v3115_v54 = vld [vmem:[%s4221_s1 + $0x284] ss:$8 sps:$4 sm:$0xff]  }
  0x6e   : > { %2169 = vmatprep.subr.bf16.mxu0 %v3034_v55  ;;  %v3118_v55 = vld [vmem:[%s4221_s1 + $0x684] ss:$8 sps:$4 sm:$0xff]  }
  0x70   : > { %1998 = vmatpush1.bf16.msra.mxu1 %v3029_v56  ;;  %v3113_v56 = vld [vmem:[%s4221_s1 + $0x280] ss:$8 sps:$4 sm:$0xff]  }
  0x71   : > { %2170 = vmatpush1.bf16.msra.mxu0 %v3032_v57  ;;  %1999 = vmatprep.subr.bf16.mxu1 %v3037_v58  ;;  %v3116_v57 = vld [vmem:[%s4221_s1 + $0x680] ss:$8 sps:$4 sm:$0xff]   ;;  %v3121_v58 = vld [vmem:[%s4221_s1 + $0x294] ss:$8 sps:$4 sm:$0xff]  }
  0x72   : > { %2171 = vmatprep.subr.bf16.mxu0 %v3040_v59  ;;  %v3124_v59 = vld [vmem:[%s4221_s1 + $0x694] ss:$8 sps:$4 sm:$0xff]  }
  0x74   : > { %2000 = vmatpush1.bf16.msra.mxu1 %v3035_v60  ;;  %v3119_v60 = vld [vmem:[%s4221_s1 + $0x290] ss:$8 sps:$4 sm:$0xff]  }
  0x75   : > { %2172 = vmatpush1.bf16.msra.mxu0 %v3038_v61  ;;  %2001 = vmatprep.subr.bf16.mxu1 %v3043_v62  ;;  %v3122_v61 = vld [vmem:[%s4221_s1 + $0x690] ss:$8 sps:$4 sm:$0xff]   ;;  %v3127_v62 = vld [vmem:[%s4221_s1 + $0x2a4] ss:$8 sps:$4 sm:$0xff]  }
  0x76   : > { %2173 = vmatprep.subr.bf16.mxu0 %v3046_v63  ;;  %v3130_v63 = vld [vmem:[%s4221_s1 + $0x6a4] ss:$8 sps:$4 sm:$0xff]  }
  0x78   : > { %2002 = vmatpush1.bf16.msra.mxu1 %v3041_v0  ;;  %v3125_v0 = vld [vmem:[%s4221_s1 + $0x2a0] ss:$8 sps:$4 sm:$0xff]  }
  0x79   : > { %2174 = vmatpush1.bf16.msra.mxu0 %v3044_v1  ;;  %2003 = vmatprep.subr.bf16.mxu1 %v3049_v2  ;;  %v3128_v1 = vld [vmem:[%s4221_s1 + $0x6a0] ss:$8 sps:$4 sm:$0xff]   ;;  %v3133_v2 = vld [vmem:[%s4221_s1 + $0x2b4] ss:$8 sps:$4 sm:$0xff]  }
  0x7a   : > { %2175 = vmatprep.subr.bf16.mxu0 %v3052_v3  ;;  %v3136_v3 = vld [vmem:[%s4221_s1 + $0x6b4] ss:$8 sps:$4 sm:$0xff]  }
  0x7c   : > { %2004 = vmatpush1.bf16.msra.mxu1 %v3047_v4  ;;  %v3131_v4 = vld [vmem:[%s4221_s1 + $0x2b0] ss:$8 sps:$4 sm:$0xff]  }
  0x7d   : > { %2176 = vmatpush1.bf16.msra.mxu0 %v3050_v5  ;;  %2005 = vmatprep.subr.bf16.mxu1 %v3055_v6  ;;  %v3134_v5 = vld [vmem:[%s4221_s1 + $0x6b0] ss:$8 sps:$4 sm:$0xff]   ;;  %v3139_v6 = vld [vmem:[%s4221_s1 + $0x2c4] ss:$8 sps:$4 sm:$0xff]  }
  0x7e   : > { %2177 = vmatprep.subr.bf16.mxu0 %v3058_v7  ;;  %v3142_v7 = vld [vmem:[%s4221_s1 + $0x6c4] ss:$8 sps:$4 sm:$0xff]  }
  0x80   : > { %2006 = vmatpush1.bf16.msra.mxu1 %v3053_v8  ;;  %v3137_v8 = vld [vmem:[%s4221_s1 + $0x2c0] ss:$8 sps:$4 sm:$0xff]  }
  0x81   : > { %2178 = vmatpush1.bf16.msra.mxu0 %v3056_v9  ;;  %2007 = vmatprep.subr.bf16.mxu1 %v3061_v10  ;;  %v3140_v9 = vld [vmem:[%s4221_s1 + $0x6c0] ss:$8 sps:$4 sm:$0xff]   ;;  %v3145_v10 = vld [vmem:[%s4221_s1 + $0x2d4] ss:$8 sps:$4 sm:$0xff]  }
  0x82   : > { %2179 = vmatprep.subr.bf16.mxu0 %v3064_v11  ;;  %v3148_v11 = vld [vmem:[%s4221_s1 + $0x6d4] ss:$8 sps:$4 sm:$0xff]  }
  0x84   : > { %2008 = vmatpush1.bf16.msra.mxu1 %v3059_v12  ;;  %v3143_v12 = vld [vmem:[%s4221_s1 + $0x2d0] ss:$8 sps:$4 sm:$0xff]  }
  0x85   : > { %2180 = vmatpush1.bf16.msra.mxu0 %v3062_v13  ;;  %2020 = vmatprep.subr.bf16.mxu1 %v3067_v14  ;;  %v3146_v13 = vld [vmem:[%s4221_s1 + $0x6d0] ss:$8 sps:$4 sm:$0xff]   ;;  %v3151_v14 = vld [vmem:[%s4221_s1 + $0x2e4] ss:$8 sps:$4 sm:$0xff]  }
  0x86   : > { %2192 = vmatprep.subr.bf16.mxu0 %v3070_v15  ;;  %v3154_v15 = vld [vmem:[%s4221_s1 + $0x6e4] ss:$8 sps:$4 sm:$0xff]  }
  0x87   : > { %2010 = vmatmul.mubr.bf16.vlgmr.msra.gmra.mrb[0].mxu1 %v2541_v16  ;;  %v3149_v16 = vld [vmem:[%s4221_s1 + $0x2e0] ss:$8 sps:$4 sm:$0xff]  }
  0x88   : > { %2182 = vmatmul.mubr.bf16.vlgmr.msra.gmra.mrb[0].mxu0 %v2549_v18  ;;  %2021 = vmatpush1.bf16.msra.mxu1 %v3065_v17  ;;  %v3152_v17 = vld [vmem:[%s4221_s1 + $0x6e0] ss:$8 sps:$4 sm:$0xff]   ;;  %v3157_v18 = vld [vmem:[%s4221_s1 + $0x2f4] ss:$8 sps:$4 sm:$0xff]  }
  0x89   : > { %2193 = vmatpush1.bf16.msra.mxu0 %v3068_v19  ;;  %2022 = vmatprep.subr.bf16.mxu1 %v3073_v20  ;;  %v3160_v19 = vld [vmem:[%s4221_s1 + $0x6f4] ss:$8 sps:$4 sm:$0xff]   ;;  %v3155_v20 = vld [vmem:[%s4221_s1 + $0x2f0] ss:$8 sps:$4 sm:$0xff]  }
  0x8a   : > { %2194 = vmatprep.subr.bf16.mxu0 %v3076_v21  ;;  %2052 = vmatprep.mubr.bf16.mxu1 %v2544_v28  ;;  %v3158_v21 = vld [vmem:[%s4221_s1 + $0x6f0] ss:$8 sps:$4 sm:$0xff]   ;;  %v2551_v28 = vcombine.low %v3790_v29, %v3793_v30 }
  0x8b   : > { %2224 = vmatprep.mubr.bf16.mxu0 %v2552_v31  ;;  %v3973_v31 = vld [vmem:[%s3473_s29 + $0x58] sm:$0xff] }
  0x8c   : > { %2023 = vmatpush1.bf16.msra.mxu1 %v3071_v22  ;;  %v3163_v22 = vld [vmem:[%s4221_s1 + $0x304] ss:$8 sps:$4 sm:$0xff]  }
  0x8d   : > { %2195 = vmatpush1.bf16.msra.mxu0 %v3074_v23  ;;  %2024 = vmatprep.subr.bf16.mxu1 %v3079_v26  ;;  %v3166_v23 = vld [vmem:[%s4221_s1 + $0x704] ss:$8 sps:$4 sm:$0xff]   ;;  %v3966_v26 = vld [vmem:[%s3473_s29 + $0x18] sm:$0xff] }
  0x8e   : > { %2196 = vmatprep.subr.bf16.mxu0 %v3082_v27  ;;  %v2543_v27 = vcombine.low %v3776_v24, %v3779_v25  ;;  %v3169_v24 = vld [vmem:[%s4221_s1 + $0x314] ss:$8 sps:$4 sm:$0xff]   ;;  %v2546_v29 = vcombine.high %v3966_v26, %v3973_v31 }
  0x8f   : > { %v3172_v25 = vld [vmem:[%s4221_s1 + $0x714] ss:$8 sps:$4 sm:$0xff]  }
  0x90   : > { %2025 = vmatpush1.bf16.msra.mxu1 %v3077_v32  ;;  %v3976_v32 = vld [vmem:[%s3473_s29 + $0x38] sm:$0xff] }
  0x91   : > { %2197 = vmatpush1.bf16.msra.mxu0 %v3080_v33  ;;  %2026 = vmatprep.subr.bf16.mxu1 %v3085_v34  ;;  %v3979_v33 = vld [vmem:[%s3473_s29 + $0x78] sm:$0xff]  ;;  %v3161_v34 = vld [vmem:[%s4221_s1 + $0x300] ss:$8 sps:$4 sm:$0xff]  }
  0x92   : > { %2198 = vmatprep.subr.bf16.mxu0 %v3088_v35  ;;  %v3164_v35 = vld [vmem:[%s4221_s1 + $0x700] ss:$8 sps:$4 sm:$0xff]   ;;  %v2554_v30 = vcombine.high %v3976_v32, %v3979_v33 }
  0x94   : > { %2027 = vmatpush1.bf16.msra.mxu1 %v3083_v36  ;;  %v3167_v36 = vld [vmem:[%s4221_s1 + $0x310] ss:$8 sps:$4 sm:$0xff]  }
  0x95   : > { %2199 = vmatpush1.bf16.msra.mxu0 %v3086_v37  ;;  %2028 = vmatprep.subr.bf16.mxu1 %v3091_v38  ;;  %v3170_v37 = vld [vmem:[%s4221_s1 + $0x710] ss:$8 sps:$4 sm:$0xff]   ;;  %v3175_v38 = vld [vmem:[%s4221_s1 + $0x324] ss:$8 sps:$4 sm:$0xff]  }
  0x96   : > { %2200 = vmatprep.subr.bf16.mxu0 %v3094_v39  ;;  %v3178_v39 = vld [vmem:[%s4221_s1 + $0x724] ss:$8 sps:$4 sm:$0xff]  }
  0x98   : > { %2029 = vmatpush1.bf16.msra.mxu1 %v3089_v40  ;;  %v3173_v40 = vld [vmem:[%s4221_s1 + $0x320] ss:$8 sps:$4 sm:$0xff]  }
  0x99   : > { %2201 = vmatpush1.bf16.msra.mxu0 %v3092_v41  ;;  %2030 = vmatprep.subr.bf16.mxu1 %v3097_v42  ;;  %v3176_v41 = vld [vmem:[%s4221_s1 + $0x720] ss:$8 sps:$4 sm:$0xff]   ;;  %v3181_v42 = vld [vmem:[%s4221_s1 + $0x334] ss:$8 sps:$4 sm:$0xff]  }
  0x9a   : > { %2202 = vmatprep.subr.bf16.mxu0 %v3100_v43  ;;  %v3184_v43 = vld [vmem:[%s4221_s1 + $0x734] ss:$8 sps:$4 sm:$0xff]  }
  0x9c   : > { %2031 = vmatpush1.bf16.msra.mxu1 %v3095_v44  ;;  %v3179_v44 = vld [vmem:[%s4221_s1 + $0x330] ss:$8 sps:$4 sm:$0xff]  }
  0x9d   : > { %2203 = vmatpush1.bf16.msra.mxu0 %v3098_v45  ;;  %2032 = vmatprep.subr.bf16.mxu1 %v3103_v46  ;;  %v3182_v45 = vld [vmem:[%s4221_s1 + $0x730] ss:$8 sps:$4 sm:$0xff]   ;;  %v3187_v46 = vld [vmem:[%s4221_s1 + $0x344] ss:$8 sps:$4 sm:$0xff]  }
  0x9e   : > { %2204 = vmatprep.subr.bf16.mxu0 %v3106_v47  ;;  %v3190_v47 = vld [vmem:[%s4221_s1 + $0x744] ss:$8 sps:$4 sm:$0xff]  }
  0xa0   : > { %2033 = vmatpush1.bf16.msra.mxu1 %v3101_v48  ;;  %v3185_v48 = vld [vmem:[%s4221_s1 + $0x340] ss:$8 sps:$4 sm:$0xff]  }
  0xa1   : > { %2205 = vmatpush1.bf16.msra.mxu0 %v3104_v49  ;;  %2034 = vmatprep.subr.bf16.mxu1 %v3109_v50  ;;  %v3188_v49 = vld [vmem:[%s4221_s1 + $0x740] ss:$8 sps:$4 sm:$0xff]   ;;  %v3193_v50 = vld [vmem:[%s4221_s1 + $0x354] ss:$8 sps:$4 sm:$0xff]  }
  0xa2   : > { %2206 = vmatprep.subr.bf16.mxu0 %v3112_v51  ;;  %v3196_v51 = vld [vmem:[%s4221_s1 + $0x754] ss:$8 sps:$4 sm:$0xff]  }
  0xa4   : > { %2035 = vmatpush1.bf16.msra.mxu1 %v3107_v52  ;;  %v3191_v52 = vld [vmem:[%s4221_s1 + $0x350] ss:$8 sps:$4 sm:$0xff]  }
  0xa5   : > { %2207 = vmatpush1.bf16.msra.mxu0 %v3110_v53  ;;  %2036 = vmatprep.subr.bf16.mxu1 %v3115_v54  ;;  %v3194_v53 = vld [vmem:[%s4221_s1 + $0x750] ss:$8 sps:$4 sm:$0xff]   ;;  %v3199_v54 = vld [vmem:[%s4221_s1 + $0x364] ss:$8 sps:$4 sm:$0xff]  }
  0xa6   : > { %2208 = vmatprep.subr.bf16.mxu0 %v3118_v55  ;;  %v3202_v55 = vld [vmem:[%s4221_s1 + $0x764] ss:$8 sps:$4 sm:$0xff]  }
  0xa8   : > { %2037 = vmatpush1.bf16.msra.mxu1 %v3113_v56  ;;  %v3197_v56 = vld [vmem:[%s4221_s1 + $0x360] ss:$8 sps:$4 sm:$0xff]  }
  0xa9   : > { %2209 = vmatpush1.bf16.msra.mxu0 %v3116_v57  ;;  %2038 = vmatprep.subr.bf16.mxu1 %v3121_v58  ;;  %v3200_v57 = vld [vmem:[%s4221_s1 + $0x760] ss:$8 sps:$4 sm:$0xff]   ;;  %v3205_v58 = vld [vmem:[%s4221_s1 + $0x374] ss:$8 sps:$4 sm:$0xff]  }
  0xaa   : > { %2210 = vmatprep.subr.bf16.mxu0 %v3124_v59  ;;  %v3208_v59 = vld [vmem:[%s4221_s1 + $0x774] ss:$8 sps:$4 sm:$0xff]  }
  0xac   : > { %2039 = vmatpush1.bf16.msra.mxu1 %v3119_v60  ;;  %v3203_v60 = vld [vmem:[%s4221_s1 + $0x370] ss:$8 sps:$4 sm:$0xff]  }
  0xad   : > { %2211 = vmatpush1.bf16.msra.mxu0 %v3122_v61  ;;  %2040 = vmatprep.subr.bf16.mxu1 %v3127_v62  ;;  %v3206_v61 = vld [vmem:[%s4221_s1 + $0x770] ss:$8 sps:$4 sm:$0xff]   ;;  %v3211_v62 = vld [vmem:[%s4221_s1 + $0x384] ss:$8 sps:$4 sm:$0xff]  }
  0xae   : > { %2212 = vmatprep.subr.bf16.mxu0 %v3130_v63  ;;  %v3214_v63 = vld [vmem:[%s4221_s1 + $0x784] ss:$8 sps:$4 sm:$0xff]  }
  0xb0   : > { %2041 = vmatpush1.bf16.msra.mxu1 %v3125_v0  ;;  %v3209_v0 = vld [vmem:[%s4221_s1 + $0x380] ss:$8 sps:$4 sm:$0xff]  }
  0xb1   : > { %2213 = vmatpush1.bf16.msra.mxu0 %v3128_v1  ;;  %2042 = vmatprep.subr.bf16.mxu1 %v3133_v2  ;;  %v3212_v1 = vld [vmem:[%s4221_s1 + $0x780] ss:$8 sps:$4 sm:$0xff]   ;;  %v3217_v2 = vld [vmem:[%s4221_s1 + $0x394] ss:$8 sps:$4 sm:$0xff]  }
  0xb2   : > { %2214 = vmatprep.subr.bf16.mxu0 %v3136_v3  ;;  %v3220_v3 = vld [vmem:[%s4221_s1 + $0x794] ss:$8 sps:$4 sm:$0xff]  }
  0xb4   : > { %2043 = vmatpush1.bf16.msra.mxu1 %v3131_v4  ;;  %v3215_v4 = vld [vmem:[%s4221_s1 + $0x390] ss:$8 sps:$4 sm:$0xff]  }
  0xb5   : > { %2215 = vmatpush1.bf16.msra.mxu0 %v3134_v5  ;;  %2044 = vmatprep.subr.bf16.mxu1 %v3139_v6  ;;  %v3218_v5 = vld [vmem:[%s4221_s1 + $0x790] ss:$8 sps:$4 sm:$0xff]   ;;  %v3223_v6 = vld [vmem:[%s4221_s1 + $0x3a4] ss:$8 sps:$4 sm:$0xff]  }
  0xb6   : > { %2216 = vmatprep.subr.bf16.mxu0 %v3142_v7  ;;  %v3226_v7 = vld [vmem:[%s4221_s1 + $0x7a4] ss:$8 sps:$4 sm:$0xff]  }
  0xb8   : > { %2045 = vmatpush1.bf16.msra.mxu1 %v3137_v8  ;;  %v3221_v8 = vld [vmem:[%s4221_s1 + $0x3a0] ss:$8 sps:$4 sm:$0xff]  }
  0xb9   : > { %2217 = vmatpush1.bf16.msra.mxu0 %v3140_v9  ;;  %2046 = vmatprep.subr.bf16.mxu1 %v3145_v10  ;;  %v3224_v9 = vld [vmem:[%s4221_s1 + $0x7a0] ss:$8 sps:$4 sm:$0xff]   ;;  %v3229_v10 = vld [vmem:[%s4221_s1 + $0x3b4] ss:$8 sps:$4 sm:$0xff]  }
  0xba   : > { %2218 = vmatprep.subr.bf16.mxu0 %v3148_v11  ;;  %v3232_v11 = vld [vmem:[%s4221_s1 + $0x7b4] ss:$8 sps:$4 sm:$0xff]  }
  0xbc   : > { %2047 = vmatpush1.bf16.msra.mxu1 %v3143_v12  ;;  %v3227_v12 = vld [vmem:[%s4221_s1 + $0x3b0] ss:$8 sps:$4 sm:$0xff]  }
  0xbd   : > { %2219 = vmatpush1.bf16.msra.mxu0 %v3146_v13  ;;  %2048 = vmatprep.subr.bf16.mxu1 %v3151_v14  ;;  %v3230_v13 = vld [vmem:[%s4221_s1 + $0x7b0] ss:$8 sps:$4 sm:$0xff]   ;;  %v3235_v14 = vld [vmem:[%s4221_s1 + $0x3c4] ss:$8 sps:$4 sm:$0xff]  }
  0xbe   : > { %2220 = vmatprep.subr.bf16.mxu0 %v3154_v15  ;;  %v3238_v15 = vld [vmem:[%s4221_s1 + $0x7c4] ss:$8 sps:$4 sm:$0xff]  }
  0xc0   : > { %2049 = vmatpush1.bf16.msra.mxu1 %v3149_v16  ;;  %v3233_v16 = vld [vmem:[%s4221_s1 + $0x3c0] ss:$8 sps:$4 sm:$0xff]  }
  0xc1   : > { %2221 = vmatpush1.bf16.msra.mxu0 %v3152_v17  ;;  %2050 = vmatprep.subr.bf16.mxu1 %v3157_v18  ;;  %v3236_v17 = vld [vmem:[%s4221_s1 + $0x7c0] ss:$8 sps:$4 sm:$0xff]   ;;  %v3241_v18 = vld [vmem:[%s4221_s1 + $0x3d4] ss:$8 sps:$4 sm:$0xff]  }
  0xc2   : > { %2222 = vmatprep.subr.bf16.mxu0 %v3160_v19  ;;  %v3244_v19 = vld [vmem:[%s4221_s1 + $0x7d4] ss:$8 sps:$4 sm:$0xff]  }
  0xc4   : > { %2051 = vmatpush1.bf16.msra.mxu1 %v3155_v20  ;;  %v3239_v20 = vld [vmem:[%s4221_s1 + $0x3d0] ss:$8 sps:$4 sm:$0xff]  }
  0xc5   : > { %2223 = vmatpush1.bf16.msra.mxu0 %v3158_v21  ;;  %2063 = vmatprep.subr.bf16.mxu1 %v3163_v22  ;;  %v3242_v21 = vld [vmem:[%s4221_s1 + $0x7d0] ss:$8 sps:$4 sm:$0xff]   ;;  %v3247_v22 = vld [vmem:[%s4221_s1 + $0x3e4] ss:$8 sps:$4 sm:$0xff]  }
  0xc6   : > { %2235 = vmatprep.subr.bf16.mxu0 %v3166_v23  ;;  %v3250_v23 = vld [vmem:[%s4221_s1 + $0x7e4] ss:$8 sps:$4 sm:$0xff]  }
  0xc7   : > { %2053 = vmatmul.mubr.bf16.vlgmr.msra.gmra.mrb[0].mxu1 %v2543_v27  ;;  %v3245_v27 = vld [vmem:[%s4221_s1 + $0x3e0] ss:$8 sps:$4 sm:$0xff]  }
  0xc8   : > { %2225 = vmatmul.mubr.bf16.vlgmr.msra.gmra.mrb[0].mxu0 %v2551_v28  ;;  %2064 = vmatpush1.bf16.msra.mxu1 %v3161_v34  ;;  %v3248_v28 = vld [vmem:[%s4221_s1 + $0x7e0] ss:$8 sps:$4 sm:$0xff]   ;;  %v3253_v34 = vld [vmem:[%s4221_s1 + $0x3f4] ss:$8 sps:$4 sm:$0xff]  }
  0xc9   : > { %2236 = vmatpush1.bf16.msra.mxu0 %v3164_v35  ;;  %2065 = vmatprep.subr.bf16.mxu1 %v3169_v24  ;;  %v3256_v35 = vld [vmem:[%s4221_s1 + $0x7f4] ss:$8 sps:$4 sm:$0xff]   ;;  %v3251_v24 = vld [vmem:[%s4221_s1 + $0x3f0] ss:$8 sps:$4 sm:$0xff]  }
  0xca   : > { %2237 = vmatprep.subr.bf16.mxu0 %v3172_v25  ;;  %2095 = vmatprep.mubr.bf16.mxu1 %v2546_v29  ;;  %v3254_v25 = vld [vmem:[%s4221_s1 + $0x7f0] ss:$8 sps:$4 sm:$0xff]   ;;  %v2545_v29 = vcombine.low %v3966_v26, %v3973_v31  ;;  %v564_v26 = vlaneseq }
  0xcb   : > { %2267 = vmatprep.mubr.bf16.mxu0 %v2554_v30  ;;  %v2553_v30 = vcombine.low %v3976_v32, %v3979_v33  ;;  %v3281_v32 = vmov 0.0  }
  0xcc   : > { %2066 = vmatpush1.bf16.msra.mxu1 %v3167_v36  ;;  %vm4186_vm0 = vcmp.lt.s32.totalorder %v564_v26, 256  ;;  %v565_v33 = vshrl.u32 %v564_v26, 7 }
  0xcd   : > { %2238 = vmatpush1.bf16.msra.mxu0 %v3170_v37  ;;  %2067 = vmatprep.subr.bf16.mxu1 %v3175_v38  ;;  %2290 = vst.msk [vmem:[%s4179_s6] sm:$0x3] %vm4186_vm0, %v3281_v32  ;;  %2291 = vst.msk [vmem:[%s4184_s9] sm:$0x3] %vm4186_vm0, %v3281_v32  ;;  %v562_v37 = vld [vmem:[%s4222_s2] sm:$0x3] }
  0xce   : > { %2239 = vmatprep.subr.bf16.mxu0 %v3178_v39  ;;  %v566_v36 = vsub.s32 0, %v565_v33  ;;  %v570_v38 = vsub.s32 1, %v565_v33 }
  0xd0   : > { %2068 = vmatpush1.bf16.msra.mxu1 %v3173_v40  ;;  %v567_v39 = vrot.slane %v562_v37, %v566_v36  ;;  %v571_v40 = vrot.slane %v562_v37, %v570_v38 }
  0xd1   : > { %2240 = vmatpush1.bf16.msra.mxu0 %v3176_v41  ;;  %2069 = vmatprep.subr.bf16.mxu1 %v3181_v42 }
  0xd2   : > { %2241 = vmatprep.subr.bf16.mxu0 %v3184_v43 }
  0xd4   : > { %2070 = vmatpush1.bf16.msra.mxu1 %v3179_v44  ;;  %v2292_v26 = vld [vmem:[%s4179_s6] sm:$0x3] }
  0xd5   : > { %2242 = vmatpush1.bf16.msra.mxu0 %v3182_v45  ;;  %2071 = vmatprep.subr.bf16.mxu1 %v3187_v46  ;;  %v2331_v37 = vld [vmem:[%s4184_s9] sm:$0x3] }
  0xd6   : > { %2243 = vmatprep.subr.bf16.mxu0 %v3190_v47 }
  0xd8   : > { %2072 = vmatpush1.bf16.msra.mxu1 %v3185_v48 }
  0xd9   : > { %2244 = vmatpush1.bf16.msra.mxu0 %v3188_v49  ;;  %2073 = vmatprep.subr.bf16.mxu1 %v3193_v50 }
  0xda   : > { %2245 = vmatprep.subr.bf16.mxu0 %v3196_v51 }
  0xdc   : > { %2074 = vmatpush1.bf16.msra.mxu1 %v3191_v52 }
  0xdd   : > { %2246 = vmatpush1.bf16.msra.mxu0 %v3194_v53  ;;  %2075 = vmatprep.subr.bf16.mxu1 %v3199_v54 }
  0xde   : > { %2247 = vmatprep.subr.bf16.mxu0 %v3202_v55 }
  0xe0   : > { %2076 = vmatpush1.bf16.msra.mxu1 %v3197_v56 }
  0xe1   : > { %2248 = vmatpush1.bf16.msra.mxu0 %v3200_v57  ;;  %2077 = vmatprep.subr.bf16.mxu1 %v3205_v58 }
  0xe2   : > { %2249 = vmatprep.subr.bf16.mxu0 %v3208_v59 }
  0xe4   : > { %2078 = vmatpush1.bf16.msra.mxu1 %v3203_v60 }
  0xe5   : > { %2250 = vmatpush1.bf16.msra.mxu0 %v3206_v61  ;;  %2079 = vmatprep.subr.bf16.mxu1 %v3211_v62 }
  0xe6   : > { %2251 = vmatprep.subr.bf16.mxu0 %v3214_v63 }
  0xe8   : > { %2080 = vmatpush1.bf16.msra.mxu1 %v3209_v0 }
  0xe9   : > { %2252 = vmatpush1.bf16.msra.mxu0 %v3212_v1  ;;  %2081 = vmatprep.subr.bf16.mxu1 %v3217_v2 }
  0xea   : > { %2253 = vmatprep.subr.bf16.mxu0 %v3220_v3 }
  0xec   : > { %2082 = vmatpush1.bf16.msra.mxu1 %v3215_v4 }
  0xed   : > { %2254 = vmatpush1.bf16.msra.mxu0 %v3218_v5  ;;  %2083 = vmatprep.subr.bf16.mxu1 %v3223_v6  ;;  %v3282_v5 = vmov 1966171168  }
  0xee   : > { %2255 = vmatprep.subr.bf16.mxu0 %v3226_v7  ;;  %v2311_v6 = vunpack.c.l.s4 %v3282_v5 }
  0xf0   : > { %2084 = vmatpush1.bf16.msra.mxu1 %v3221_v8 }
  0xf1   : > { %2256 = vmatpush1.bf16.msra.mxu0 %v3224_v9  ;;  %2085 = vmatprep.subr.bf16.mxu1 %v3229_v10 }
  0xf2   : > { %2257 = vmatprep.subr.bf16.mxu0 %v3232_v11 }
  0xf4   : > { %2086 = vmatpush1.bf16.msra.mxu1 %v3227_v12 }
  0xf5   : > { %2258 = vmatpush1.bf16.msra.mxu0 %v3230_v13  ;;  %2087 = vmatprep.subr.bf16.mxu1 %v3235_v14 }
  0xf6   : > { %2259 = vmatprep.subr.bf16.mxu0 %v3238_v15  ;;  %v2312_v15 = vunpack.c.0.s8 %v2311_v6 }
  0xf8   : > { %2088 = vmatpush1.bf16.msra.mxu1 %v3233_v16 }
  0xf9   : > { %2260 = vmatpush1.bf16.msra.mxu0 %v3236_v17  ;;  %2089 = vmatprep.subr.bf16.mxu1 %v3241_v18 }
  0xfa   : > { %2261 = vmatprep.subr.bf16.mxu0 %v3244_v19 }
  0xfc   : > { %2090 = vmatpush1.bf16.msra.mxu1 %v3239_v20 }
  0xfd   : > { %2262 = vmatpush1.bf16.msra.mxu0 %v3242_v21  ;;  %2091 = vmatprep.subr.bf16.mxu1 %v3247_v22 }
  0xfe   : > { %2263 = vmatprep.subr.bf16.mxu0 %v3250_v23 }
 0x100   : > { %2092 = vmatpush1.bf16.msra.mxu1 %v3245_v27  ;;  %v2315_v27 = vsub.s32 %v2312_v15, %v565_v33 }
 0x101   : > { %2264 = vmatpush1.bf16.msra.mxu0 %v3248_v28  ;;  %2093 = vmatprep.subr.bf16.mxu1 %v3253_v34 }
 0x102   : > { %2265 = vmatprep.subr.bf16.mxu0 %v3256_v35 }
 0x104   : > { %2094 = vmatpush1.bf16.msra.mxu1 %v3251_v24 }
 0x105   : > { %2266 = vmatpush1.bf16.msra.mxu0 %v3254_v25 }
 0x107   : > { %2096 = vmatmul.mubr.bf16.vlgmr.msra.gmra.mrb[0].mxu1 %v2545_v29 }
 0x108   : > { %2268 = vmatmul.mubr.bf16.vlgmr.msra.gmra.mrb[0].mxu0 %v2553_v30 }
 0x1da   : > { %v2097_v41 = vpop.f32.mrb[0].mxu1 }
 0x1db   : > { %v2269_v42 = vpop.f32.mrb[0].mxu0  ;;  %v2815_v43 = vadd.f32 %v2097_v41, %v567_v39  ;;  %v2099_v44 = vpop.f32.mrb[1].mxu1 }
 0x1dc   : > { %v2271_v45 = vpop.f32.mrb[1].mxu0  ;;  %v2817_v46 = vadd.f32 %v2099_v44, %v571_v40  ;;  %v2101_v47 = vpop.f32.mrb[2].mxu1 }
 0x1dd   : > { %v2273_v48 = vpop.f32.mrb[2].mxu0  ;;  %v2816_v49 = vadd.f32 %v2815_v43, %v2269_v42  ;;  %v2819_v50 = vadd.f32 %v2101_v47, %v567_v39  ;;  %v2103_v51 = vpop.f32.mrb[3].mxu1 }
 0x1de   : > { %v2275_v52 = vpop.f32.mrb[3].mxu0  ;;  %v2818_v53 = vadd.f32 %v2817_v46, %v2271_v45  ;;  %v2821_v54 = vadd.f32 %v2103_v51, %v571_v40 }
 0x1df   : > { %2278 = vst [vmem:[%s280_s14] sm:$0xff] %v2816_v49  ;;  %v2820_v55 = vadd.f32 %v2819_v50, %v2273_v48  ;;  %v2332_v57 = vmul.f32 %v2816_v49, %v2816_v49 }
 0x1e0   : > { %2279 = vst [vmem:[%s280_s14 + $0x8] sm:$0xff] %v2818_v53  ;;  %v2822_v56 = vadd.f32 %v2821_v54, %v2275_v52  ;;  %v2333_v60 = vmul.f32 %v2818_v53, %v2818_v53 }
 0x1e1   : > { %2280 = vst [vmem:[%s280_s14 + $0x10] sm:$0xff] %v2820_v55  ;;  %v2293_v58 = vadd.f32 %v2820_v55, %v2816_v49  ;;  %v2334_v59 = vmul.f32 %v2820_v55, %v2820_v55 }
 0x1e2   : > { %2281 = vst [vmem:[%s280_s14 + $0x18] sm:$0xff] %v2822_v56  ;;  %v2300_v61 = vadd.f32 %v2822_v56, %v2818_v53  ;;  %v2335_v62 = vmul.f32 %v2822_v56, %v2822_v56 }
 0x1e3   : > { %v2294_v63 = vrot.slane %v2293_v58, 4  ;;  %v2336_v0 = vadd.f32 %v2334_v59, %v2332_v57 }
 0x1e4   : > { %v2301_v1 = vrot.slane %v2300_v61, 4  ;;  %v2343_v2 = vadd.f32 %v2335_v62, %v2333_v60 }
 0x1e5   : > { %v2295_v3 = vadd.f32 %v2294_v63, %v2293_v58  ;;  %v2337_v4 = vrot.slane %v2336_v0, 4 }
 0x1e6   : > { %v2302_v7 = vadd.f32 %v2301_v1, %v2300_v61  ;;  %v2344_v8 = vrot.slane %v2343_v2, 4 }
 0x1e7   : > { %v2296_v9 = vrot.slane %v2295_v3, 2  ;;  %v2338_v10 = vadd.f32 %v2337_v4, %v2336_v0 }
 0x1e8   : > { %v2303_v11 = vrot.slane %v2302_v7, 2  ;;  %v2345_v12 = vadd.f32 %v2344_v8, %v2343_v2 }
 0x1e9   : > { %v2297_v13 = vadd.f32 %v2296_v9, %v2295_v3  ;;  %v2339_v14 = vrot.slane %v2338_v10, 2 }
 0x1ea   : > { %v2304_v16 = vadd.f32 %v2303_v11, %v2302_v7  ;;  %v2346_v17 = vrot.slane %v2345_v12, 2 }
 0x1eb   : > { %v2298_v18 = vrot.slane %v2297_v13, 1  ;;  %v2340_v19 = vadd.f32 %v2339_v14, %v2338_v10 }
 0x1ec   : > { %v2305_v20 = vrot.slane %v2304_v16, 1  ;;  %v2347_v21 = vadd.f32 %v2346_v17, %v2345_v12 }
 0x1ed   : > { %v2299_v22 = vadd.f32 %v2298_v18, %v2297_v13  ;;  %v2341_v23 = vrot.slane %v2340_v19, 1 }
 0x1ee   : > { %v2306_v28 = vadd.f32 %v2305_v20, %v2304_v16  ;;  %v2348_v34 = vrot.slane %v2347_v21, 1 }
 0x1ef   : > { %v2342_v35 = vadd.f32 %v2341_v23, %v2340_v19 }
 0x1f0   : > { %v2309_v24 = vcombine.low %v2299_v22, %v2306_v28  ;;  %v2349_v25 = vadd.f32 %v2348_v34, %v2347_v21 }
 0x1f2   : > { %v2316_v29 = vrot.slane %v2309_v24, %v2315_v27  ;;  %v2352_v30 = vcombine.low %v2342_v35, %v2349_v25 }
 0x1f4   : > { %v2323_v32 = vrot.slane %v2316_v29, %v2315_v27  ;;  %v2359_v36 = vrot.slane %v2352_v30, %v2315_v27 }
 0x1f6   : > { %v2325_v38 = vadd.f32 %v2323_v32, %v2292_v26  ;;  %v2366_v39 = vrot.slane %v2359_v36, %v2315_v27 }
 0x1f8   : > { %2330 = vst.msk [vmem:[%s4179_s6] sm:$0x3] %vm4186_vm0, %v2325_v38  ;;  %v2368_v40 = vadd.f32 %v2366_v39, %v2331_v37 }
 0x1fa   : > { %2369 = vst.msk [vmem:[%s4184_s9] sm:$0x3] %vm4186_vm0, %v2368_v40 }
 0x1fb PF: > { %s16_s20 = sadd.s32 1, %s3279_s20   ;;  %s4228_s18 = smov %s3275_s19 }
 0x1fc   : > { %p13_p5 = scmp.ge.s32.totalorder %s16_s20, 4   ;;  %s4229_s19 = smov %s4231_s21 }
 0x1fe   :  { %15 = sbr.rel (!%p13_p5) target bundleno = 2 (0x2), region = 90 }

// kernel: discriminator_forward.12
= control target key start
LH: loop header
LB: loop body
LE: loop exit
PB: predicated region body
PF: predicated region fallthrough
CT: control target
= control target key end

     0   :  { %s523_s12 = smov 0   ;;  %s525_s13 = smov 0   ;;  %s567_s0 = inlined_call_operand.vmem [shape: f32[2,16,256], index: 0, kind: input, shape index: {}]   ;;  %s568_s1 = inlined_call_operand.vmem [shape: f32[2,1,256], index: 1, kind: input, shape index: {}]   ;;  %s569_s2 = inlined_call_operand.vmem [shape: f32[2,1,256], index: 2, kind: input, shape index: {}]   ;;  %s570_s3 = inlined_call_operand.vmem [shape: bf16[2,16,256], index: 3, kind: output, shape index: {}]  }
   0x1   :  { %s527_s14 = smov 0  }
   0x2 LB: > { %s25_s15 = sadd.s32 1, %s497_s13  ;;  %p438_p0 = scmp.ge.s32.totalorder %s501_s14, 1  ;;  %s501_s14 = sphi %s527_s14, %s13_s14   ;;  %s497_s13 = sphi %s525_s13, %s572_s13   ;;  %s493_s12 = sphi %s523_s12, %s571_s12  }
   0x3   : > { %p27_p1 = scmp.ge.s32.totalorder %s25_s15, 2  ;;  %p177_p2 = scmp.lt.s32.totalorder %s501_s14, 3 }
   0x5   : > { %s574_s15 = smov (%p27_p1, %s25_s15), 0  ;;  %p178_p3 = pnand %p438_p0, %p177_p2 }
   0x6   : > { %p220_p4 = scmp.lt.s32.totalorder (!%p178_p3), %s493_s12, 1  ;;  %v263_v5 = vlaneseq (!%p178_p3) }
   0x7   : > { %181 = sbr.rel (%p178_p3) target bundleno = 51 (0x33), region = 32 }
   0x8   : > { %v264_v8 = vshrl.u32 (!%p178_p3), %v263_v5, 7 }
   0xa   : > { %v265_v10 = vsub.s32 (!%p178_p3), 0, %v264_v8  ;;  %v269_v11 = vsub.s32 (!%p178_p3), 1, %v264_v8 }
   0xe   : > { %s576_s12 = smov (!%p220_p4, %s493_s12), 1 }
   0xf   : > { %s441_s16 = sshll.u32 %s576_s12, 1  ;;  %s449_s23 = sshll.u32 %s576_s12, 5 }
  0x10   : > { %s233_s19 = scalar_lea.vmem %s568_s1, %s441_s16  ;;  %s237_s22 = scalar_lea.vmem %s569_s2, %s441_s16 }
  0x11   : > { %v253_v0 = vld [vmem:[%s233_s19] sm:$0x3]  ;;  %s228_s26 = scalar_lea.vmem %s567_s0, %s449_s23  ;;  %s450_s27 = sshll.u32 %s576_s12, 4 }
  0x12   : > { %v254_v1 = vmul.f32 0.0625, %v253_v0  ;;  %v255_v2 = vld [vmem:[%s237_s22] sm:$0x3]  ;;  %v250_v15 = vld [vmem:[%s228_s26 + $0x8] sm:$0xff]  ;;  %v251_v16 = vld [vmem:[%s228_s26 + $0x10] sm:$0xff]  ;;  %s247_s30 = scalar_lea.vmem %s570_s3, %s450_s27 }
  0x13   : > { %v256_v3 = vmul.f32 0.0625, %v255_v2  ;;  %v249_v12 = vld [vmem:[%s228_s26] sm:$0xff]  ;;  %v252_v17 = vld [vmem:[%s228_s26 + $0x18] sm:$0xff] }
  0x14   : > { %v257_v4 = vmul.f32 %v254_v1, %v254_v1  ;;  %v266_v13 = vrot.slane %v254_v1, %v265_v10  ;;  %v270_v14 = vrot.slane %v254_v1, %v269_v11 }
  0x16   : > { %v258_v6 = vsub.f32 %v256_v3, %v257_v4  ;;  %v273_v18 = vsub.f32 %v249_v12, %v266_v13  ;;  %v274_v19 = vsub.f32 %v250_v15, %v270_v14  ;;  %v275_v20 = vsub.f32 %v251_v16, %v266_v13 }
  0x17   : > { %v276_v21 = vsub.f32 %v252_v17, %v270_v14 }
  0x18   : > { %v259_v7 = vmax.f32 %v258_v6, 0.0 }
  0x1a   : > { %v260_v9 = vadd.f32 1e-05, %v259_v7 }
  0x1c   : > { %477 = vrsqrt.f32 %v260_v9 }
  0x26   : > { %v478_v22 = vpop.eup %477 }
  0x27   : > { %v281_v23 = vrot.slane %v478_v22, %v265_v10  ;;  %v285_v24 = vrot.slane %v478_v22, %v269_v11 }
  0x29   : > { %v288_v25 = vmul.f32 %v281_v23, %v273_v18  ;;  %v289_v26 = vmul.f32 %v285_v24, %v274_v19  ;;  %v290_v27 = vmul.f32 %v281_v23, %v275_v20  ;;  %v291_v28 = vmul.f32 %v285_v24, %v276_v21 }
  0x2b   : > { %v292_v29 = vmul.f32 0.2, %v288_v25  ;;  %v293_v30 = vmul.f32 0.2, %v289_v26  ;;  %v294_v31 = vmul.f32 0.2, %v290_v27 }
  0x2c   : > { %v295_v32 = vmul.f32 0.2, %v291_v28 }
  0x2d   : > { %v296_v33 = vmax.f32 %v288_v25, %v292_v29  ;;  %v297_v34 = vmax.f32 %v289_v26, %v293_v30  ;;  %v298_v35 = vmax.f32 %v290_v27, %v294_v31 }
  0x2e   : > { %v299_v36 = vmax.f32 %v291_v28, %v295_v32 }
  0x2f   : > { %v451_v37 = vpack.c.bf16 %v297_v34, %v296_v33 }
  0x30   : > { %v452_v38 = vpack.c.bf16 %v299_v36, %v298_v35 }
  0x31   : > { %312 = vst [vmem:[%s247_s30] sm:$0xff] %v451_v37 }
  0x32   : > { %313 = vst [vmem:[%s247_s30 + $0x8] sm:$0xff] %v452_v38 }
  0x33 PF: > { %s13_s14 = sadd.s32 1, %s501_s14   ;;  %s571_s12 = smov %s497_s13 }
  0x34   : > { %p10_p5 = scmp.ge.s32.totalorder %s13_s14, 4   ;;  %s572_s13 = smov %s574_s15 }
  0x36   :  { %12 = sbr.rel (!%p10_p5) target bundleno = 2 (0x2), region = 68 }

// kernel: discriminator_forward.14
= control target key start
LH: loop header
LB: loop body
LE: loop exit
PB: predicated region body
PF: predicated region fallthrough
CT: control target
= control target key end

     0   :  { %s535_s12 = smov 0   ;;  %s537_s13 = smov 0   ;;  %s579_s0 = inlined_call_operand.vmem [shape: f32[2,8,512], index: 0, kind: input, shape index: {}]   ;;  %s580_s1 = inlined_call_operand.vmem [shape: f32[2,1,512], index: 1, kind: input, shape index: {}]   ;;  %s581_s2 = inlined_call_operand.vmem [shape: f32[2,1,512], index: 2, kind: input, shape index: {}]   ;;  %s582_s3 = inlined_call_operand.vmem [shape: bf16[2,8,512], index: 3, kind: output, shape index: {}]  }
   0x1   :  { %s539_s14 = smov 0  }
   0x2 LB: > { %s25_s15 = sadd.s32 1, %s509_s13  ;;  %p450_p0 = scmp.ge.s32.totalorder %s513_s14, 1  ;;  %s513_s14 = sphi %s539_s14, %s13_s14   ;;  %s509_s13 = sphi %s537_s13, %s584_s13   ;;  %s505_s12 = sphi %s535_s12, %s583_s12  }
   0x3   : > { %p27_p1 = scmp.ge.s32.totalorder %s25_s15, 2  ;;  %p175_p2 = scmp.lt.s32.totalorder %s513_s14, 3 }
   0x5   : > { %s586_s15 = smov (%p27_p1, %s25_s15), 0  ;;  %p176_p3 = pnand %p450_p0, %p175_p2 }
   0x6   : > { %p215_p4 = scmp.lt.s32.totalorder (!%p176_p3), %s505_s12, 1  ;;  %v255_v5 = vlaneseq (!%p176_p3) }
   0x7   : > { %179 = sbr.rel (%p176_p3) target bundleno = 51 (0x33), region = 32 }
   0x8   : > { %v256_v8 = vshrl.u32 (!%p176_p3), %v255_v5, 7 }
   0xa   : > { %v257_v10 = vsub.s32 (!%p176_p3), 0, %v256_v8  ;;  %v261_v11 = vsub.s32 (!%p176_p3), 1, %v256_v8  ;;  %v265_v12 = vsub.s32 (!%p176_p3), 2, %v256_v8  ;;  %v269_v13 = vsub.s32 (!%p176_p3), 3, %v256_v8 }
   0xe   : > { %s588_s12 = smov (!%p215_p4, %s505_s12), 1 }
   0xf   : > { %s453_s16 = sshll.u32 %s588_s12, 2  ;;  %s461_s23 = sshll.u32 %s588_s12, 5 }
  0x10   : > { %s227_s19 = scalar_lea.vmem %s580_s1, %s453_s16  ;;  %s231_s22 = scalar_lea.vmem %s581_s2, %s453_s16 }
  0x11   : > { %v245_v0 = vld [vmem:[%s227_s19] sm:$0xf]  ;;  %s223_s26 = scalar_lea.vmem %s579_s0, %s461_s23  ;;  %s462_s27 = sshll.u32 %s588_s12, 4 }
  0x12   : > { %v246_v1 = vmul.f32 0.25, %v245_v0  ;;  %v247_v2 = vld [vmem:[%s231_s22] sm:$0xf]  ;;  %v242_v19 = vld [vmem:[%s223_s26 + $0x8] sm:$0xff]  ;;  %v243_v20 = vld [vmem:[%s223_s26 + $0x10] sm:$0xff]  ;;  %s240_s30 = scalar_lea.vmem %s582_s3, %s462_s27 }
  0x13   : > { %v248_v3 = vmul.f32 0.25, %v247_v2  ;;  %v241_v14 = vld [vmem:[%s223_s26] sm:$0xff]  ;;  %v244_v21 = vld [vmem:[%s223_s26 + $0x18] sm:$0xff] }
  0x14   : > { %v249_v4 = vmul.f32 %v246_v1, %v246_v1  ;;  %v258_v15 = vrot.slane %v246_v1, %v257_v10  ;;  %v262_v16 = vrot.slane %v246_v1, %v261_v11  ;;  %v266_v17 = vrot.slane %v246_v1, %v265_v12 }
  0x15   : > { %v270_v18 = vrot.slane %v246_v1, %v269_v13 }
  0x16   : > { %v250_v6 = vsub.f32 %v248_v3, %v249_v4  ;;  %v275_v22 = vsub.f32 %v241_v14, %v258_v15  ;;  %v276_v23 = vsub.f32 %v242_v19, %v262_v16  ;;  %v277_v24 = vsub.f32 %v243_v20, %v266_v17 }
  0x17   : > { %v278_v25 = vsub.f32 %v244_v21, %v270_v18 }
  0x18   : > { %v251_v7 = vmax.f32 %v250_v6, 0.0 }
  0x1a   : > { %v252_v9 = vadd.f32 1e-05, %v251_v7 }
  0x1c   : > { %489 = vrsqrt.f32 %v252_v9 }
  0x26   : > { %v490_v26 = vpop.eup %489 }
  0x27   : > { %v283_v27 = vrot.slane %v490_v26, %v257_v10  ;;  %v287_v28 = vrot.slane %v490_v26, %v261_v11  ;;  %v291_v29 = vrot.slane %v490_v26, %v265_v12  ;;  %v295_v30 = vrot.slane %v490_v26, %v269_v13 }
  0x29   : > { %v300_v31 = vmul.f32 %v283_v27, %v275_v22  ;;  %v301_v32 = vmul.f32 %v287_v28, %v276_v23  ;;  %v302_v33 = vmul.f32 %v291_v29, %v277_v24  ;;  %v303_v34 = vmul.f32 %v295_v30, %v278_v25 }
  0x2b   : > { %v304_v35 = vmul.f32 0.2, %v300_v31  ;;  %v305_v36 = vmul.f32 0.2, %v301_v32  ;;  %v306_v37 = vmul.f32 0.2, %v302_v33 }
  0x2c   : > { %v307_v38 = vmul.f32 0.2, %v303_v34 }
  0x2d   : > { %v308_v39 = vmax.f32 %v300_v31, %v304_v35  ;;  %v309_v40 = vmax.f32 %v301_v32, %v305_v36  ;;  %v310_v41 = vmax.f32 %v302_v33, %v306_v37 }
  0x2e   : > { %v311_v42 = vmax.f32 %v303_v34, %v307_v38 }
  0x2f   : > { %v463_v43 = vpack.c.bf16 %v309_v40, %v308_v39 }
  0x30   : > { %v464_v44 = vpack.c.bf16 %v311_v42, %v310_v41 }
  0x31   : > { %328 = vst [vmem:[%s240_s30] sm:$0xff] %v463_v43 }
  0x32   : > { %329 = vst [vmem:[%s240_s30 + $0x8] sm:$0xff] %v464_v44 }
  0x33 PF: > { %s13_s14 = sadd.s32 1, %s513_s14   ;;  %s583_s12 = smov %s509_s13 }
  0x34   : > { %p10_p5 = scmp.ge.s32.totalorder %s13_s14, 4   ;;  %s584_s13 = smov %s586_s15 }
  0x36   :  { %12 = sbr.rel (!%p10_p5) target bundleno = 2 (0x2), region = 68 }

// kernel: discriminator_forward.13
= control target key start
LH: loop header
LB: loop body
LE: loop exit
PB: predicated region body
PF: predicated region fallthrough
CT: control target
= control target key end

     0   :  { %s11031_s18 = smov 0   ;;  %s11033_s19 = smov 0   ;;  %s14303_s0 = inlined_call_operand.vmem [shape: bf16[2,8,4096], index: 0, kind: input, shape index: {}]   ;;  %s14304_s1 = inlined_call_operand.vmem [shape: bf16[4096,512], index: 1, kind: input, shape index: {}]   ;;  %s14305_s2 = inlined_call_operand.vmem [shape: f32[1,512], index: 2, kind: input, shape index: {}]   ;;  %s14306_s3 = inlined_call_operand.vmem [shape: f32[2,8,512], index: 3, kind: output, shape index: {0}]   ;;  %s14307_s4 = inlined_call_operand.vmem [shape: f32[2,1,512], index: 4, kind: output, shape index: {1}]   ;;  %s14308_s5 = inlined_call_operand.vmem [shape: f32[2,1,512], index: 5, kind: output, shape index: {2}]  }
   0x1   :  { %s11035_s20 = smov 0  }
   0x2 LB: > { %s28_s21 = sadd.s32 1, %s10993_s19  ;;  %p8190_p0 = scmp.ge.s32.totalorder %s10997_s20, 1  ;;  %s10997_s20 = sphi %s11035_s20, %s16_s20   ;;  %s10993_s19 = sphi %s11033_s19, %s14312_s19   ;;  %s10989_s18 = sphi %s11031_s18, %s14311_s18  }
   0x3   : > { %p30_p1 = scmp.ge.s32.totalorder %s28_s21, 2  ;;  %p212_p2 = scmp.lt.s32.totalorder %s10997_s20, 3 }
   0x5   : > { %s14314_s21 = smov (%p30_p1, %s28_s21), 0  ;;  %p213_p3 = pnand %p8190_p0, %p212_p2 }
   0x6   : > { %v9407_v0 = vld [vmem:[%s14304_s1 + $0x4] ss:$16 sps:$4 sm:$0xff] (!%p213_p3)   ;;  %v9409_v1 = vld [vmem:[%s14304_s1 + $0xc] ss:$16 sps:$4 sm:$0xff] (!%p213_p3)   ;;  %v9411_v2 = vld [vmem:[%s14304_s1] ss:$16 sps:$4 sm:$0xff] (!%p213_p3)  }
   0x7   : > { %216 = sbr.rel (%p213_p3) target bundleno = 1274 (0x4fa), region = 32  ;;  %6576 = vmatprep.subr.bf16.mxu0 (!%p213_p3), %v9407_v0  ;;  %v9412_v3 = vld [vmem:[%s14304_s1 + $0x8] ss:$16 sps:$4 sm:$0xff] (!%p213_p3)   ;;  %7232 = vmatprep.subr.bf16.mxu1 (!%p213_p3), %v9409_v1  ;;  %v9413_v4 = vld [vmem:[%s14304_s1 + $0x24] ss:$16 sps:$4 sm:$0xff] (!%p213_p3)   ;;  %p256_p4 = scmp.lt.s32.totalorder (!%p213_p3), %s10989_s18, 1 }
   0x8   : > { %6577 = vmatpush1.bf16.msra.mxu0 (!%p213_p3), %v9411_v2  ;;  %7233 = vmatpush1.bf16.msra.mxu1 (!%p213_p3), %v9412_v3  ;;  %v9415_v5 = vld [vmem:[%s14304_s1 + $0x2c] ss:$16 sps:$4 sm:$0xff] (!%p213_p3)   ;;  %v9417_v6 = vld [vmem:[%s14304_s1 + $0x20] ss:$16 sps:$4 sm:$0xff] (!%p213_p3)   ;;  %v9418_v7 = vld [vmem:[%s14304_s1 + $0x28] ss:$16 sps:$4 sm:$0xff] (!%p213_p3)  }
   0x9   : > { %6578 = vmatprep.subr.bf16.mxu0 (!%p213_p3), %v9413_v4  ;;  %7234 = vmatprep.subr.bf16.mxu1 (!%p213_p3), %v9415_v5  ;;  %v9419_v8 = vld [vmem:[%s14304_s1 + $0x44] ss:$16 sps:$4 sm:$0xff] (!%p213_p3)   ;;  %v9421_v9 = vld [vmem:[%s14304_s1 + $0x4c] ss:$16 sps:$4 sm:$0xff] (!%p213_p3)   ;;  %v9423_v10 = vld [vmem:[%s14304_s1 + $0x40] ss:$16 sps:$4 sm:$0xff] (!%p213_p3)  }
   0xa   : > { %v9424_v11 = vld [vmem:[%s14304_s1 + $0x48] ss:$16 sps:$4 sm:$0xff] (!%p213_p3)   ;;  %v9425_v12 = vld [vmem:[%s14304_s1 + $0x64] ss:$16 sps:$4 sm:$0xff] (!%p213_p3)   ;;  %v9427_v13 = vld [vmem:[%s14304_s1 + $0x6c] ss:$16 sps:$4 sm:$0xff] (!%p213_p3)  }
   0xb   : > { %v9429_v14 = vld [vmem:[%s14304_s1 + $0x60] ss:$16 sps:$4 sm:$0xff] (!%p213_p3)   ;;  %v9430_v15 = vld [vmem:[%s14304_s1 + $0x68] ss:$16 sps:$4 sm:$0xff] (!%p213_p3)   ;;  %v9431_v16 = vld [vmem:[%s14304_s1 + $0x84] ss:$16 sps:$4 sm:$0xff] (!%p213_p3)  }
   0xc   : > { %6579 = vmatpush1.bf16.msra.mxu0 (!%p213_p3), %v9417_v6  ;;  %7235 = vmatpush1.bf16.msra.mxu1 (!%p213_p3), %v9418_v7  ;;  %v9433_v17 = vld [vmem:[%s14304_s1 + $0x8c] ss:$16 sps:$4 sm:$0xff] (!%p213_p3)   ;;  %v9435_v18 = vld [vmem:[%s14304_s1 + $0x80] ss:$16 sps:$4 sm:$0xff] (!%p213_p3)   ;;  %v9436_v19 = vld [vmem:[%s14304_s1 + $0x88] ss:$16 sps:$4 sm:$0xff] (!%p213_p3)  }
   0xd   : > { %6580 = vmatprep.subr.bf16.mxu0 (!%p213_p3), %v9419_v8  ;;  %7236 = vmatprep.subr.bf16.mxu1 (!%p213_p3), %v9421_v9  ;;  %v9437_v20 = vld [vmem:[%s14304_s1 + $0xa4] ss:$16 sps:$4 sm:$0xff] (!%p213_p3)   ;;  %v9439_v21 = vld [vmem:[%s14304_s1 + $0xac] ss:$16 sps:$4 sm:$0xff] (!%p213_p3)   ;;  %v9441_v22 = vld [vmem:[%s14304_s1 + $0xa0] ss:$16 sps:$4 sm:$0xff] (!%p213_p3)  }
   0xe   : > { %v9442_v23 = vld [vmem:[%s14304_s1 + $0xa8] ss:$16 sps:$4 sm:$0xff]   ;;  %v9443_v24 = vld [vmem:[%s14304_s1 + $0xc4] ss:$16 sps:$4 sm:$0xff]   ;;  %v9445_v25 = vld [vmem:[%s14304_s1 + $0xcc] ss:$16 sps:$4 sm:$0xff]  }
   0xf   : > { %v9447_v26 = vld [vmem:[%s14304_s1 + $0xc0] ss:$16 sps:$4 sm:$0xff]   ;;  %v9448_v27 = vld [vmem:[%s14304_s1 + $0xc8] ss:$16 sps:$4 sm:$0xff]   ;;  %v9449_v28 = vld [vmem:[%s14304_s1 + $0xe4] ss:$16 sps:$4 sm:$0xff]  }
  0x10   : > { %6581 = vmatpush1.bf16.msra.mxu0 %v9423_v10  ;;  %7237 = vmatpush1.bf16.msra.mxu1 %v9424_v11  ;;  %v9451_v29 = vld [vmem:[%s14304_s1 + $0xec] ss:$16 sps:$4 sm:$0xff]   ;;  %v9453_v30 = vld [vmem:[%s14304_s1 + $0xe0] ss:$16 sps:$4 sm:$0xff]   ;;  %v9454_v31 = vld [vmem:[%s14304_s1 + $0xe8] ss:$16 sps:$4 sm:$0xff]  }
  0x11   : > { %6582 = vmatprep.subr.bf16.mxu0 %v9425_v12  ;;  %7238 = vmatprep.subr.bf16.mxu1 %v9427_v13  ;;  %v9455_v32 = vld [vmem:[%s14304_s1 + $0x104] ss:$16 sps:$4 sm:$0xff]   ;;  %v9457_v33 = vld [vmem:[%s14304_s1 + $0x10c] ss:$16 sps:$4 sm:$0xff]   ;;  %v9459_v34 = vld [vmem:[%s14304_s1 + $0x100] ss:$16 sps:$4 sm:$0xff]  }
  0x12   : > { %v9460_v35 = vld [vmem:[%s14304_s1 + $0x108] ss:$16 sps:$4 sm:$0xff]   ;;  %v9461_v36 = vld [vmem:[%s14304_s1 + $0x124] ss:$16 sps:$4 sm:$0xff]   ;;  %s14316_s18 = smov (!%p256_p4, %s10989_s18), 1 }
  0x13   : > { %v9463_v37 = vld [vmem:[%s14304_s1 + $0x12c] ss:$16 sps:$4 sm:$0xff]   ;;  %v9465_v38 = vld [vmem:[%s14304_s1 + $0x120] ss:$16 sps:$4 sm:$0xff]   ;;  %v9466_v39 = vld [vmem:[%s14304_s1 + $0x128] ss:$16 sps:$4 sm:$0xff]  }
  0x14   : > { %6583 = vmatpush1.bf16.msra.mxu0 %v9429_v14  ;;  %7239 = vmatpush1.bf16.msra.mxu1 %v9430_v15  ;;  %v9467_v40 = vld [vmem:[%s14304_s1 + $0x144] ss:$16 sps:$4 sm:$0xff]   ;;  %s9255_s16 = sshll.u32 %s14316_s18, 7  ;;  %v9469_v41 = vld [vmem:[%s14304_s1 + $0x14c] ss:$16 sps:$4 sm:$0xff]   ;;  %s8195_s23 = sshll.u32 %s14316_s18, 2 }
  0x15   : > { %6584 = vmatprep.subr.bf16.mxu0 %v9431_v16  ;;  %7240 = vmatprep.subr.bf16.mxu1 %v9433_v17  ;;  %v9471_v42 = vld [vmem:[%s14304_s1 + $0x140] ss:$16 sps:$4 sm:$0xff]   ;;  %v9472_v43 = vld [vmem:[%s14304_s1 + $0x148] ss:$16 sps:$4 sm:$0xff]   ;;  %s11191_s29 = scalar_lea.vmem %s14303_s0, %s9255_s16  ;;  %v9473_v44 = vld [vmem:[%s14304_s1 + $0x164] ss:$16 sps:$4 sm:$0xff]   ;;  %s14247_s26 = scalar_lea.vmem %s14307_s4, %s8195_s23 }
  0x16   : > { %v9475_v45 = vld [vmem:[%s14304_s1 + $0x16c] ss:$16 sps:$4 sm:$0xff]   ;;  %v282_v46 = vld [vmem:[%s11191_s29] sm:$0xff]  ;;  %v9478_v49 = vld [vmem:[%s14304_s1 + $0x168] ss:$16 sps:$4 sm:$0xff]   ;;  %s14255_s30 = scalar_lea.vmem %s14308_s5, %s8195_s23  ;;  %s9256_s8 = sshll.u32 %s14316_s18, 5 }
  0x17   : > { %v9477_v47 = vld [vmem:[%s14304_s1 + $0x160] ss:$16 sps:$4 sm:$0xff]   ;;  %v8198_v48 = vcombine.high %v282_v46, %v282_v46  ;;  %v9479_v50 = vld [vmem:[%s14304_s1 + $0x184] ss:$16 sps:$4 sm:$0xff]   ;;  %v9481_v51 = vld [vmem:[%s14304_s1 + $0x18c] ss:$16 sps:$4 sm:$0xff]   ;;  %v8197_v4 = vcombine.low %v282_v46, %v282_v46  ;;  %s273_s10 = scalar_lea.vmem %s14306_s3, %s9256_s8 }
  0x18   : > { %6585 = vmatpush1.bf16.msra.mxu0 %v9435_v18  ;;  %7241 = vmatpush1.bf16.msra.mxu1 %v9436_v19  ;;  %v9483_v52 = vld [vmem:[%s14304_s1 + $0x180] ss:$16 sps:$4 sm:$0xff]   ;;  %v9484_v53 = vld [vmem:[%s14304_s1 + $0x188] ss:$16 sps:$4 sm:$0xff]   ;;  %v9485_v54 = vld [vmem:[%s14304_s1 + $0x1a4] ss:$16 sps:$4 sm:$0xff]  }
  0x19   : > { %6586 = vmatprep.subr.bf16.mxu0 %v9437_v20  ;;  %7242 = vmatprep.subr.bf16.mxu1 %v9439_v21  ;;  %v9487_v55 = vld [vmem:[%s14304_s1 + $0x1ac] ss:$16 sps:$4 sm:$0xff]   ;;  %v9489_v56 = vld [vmem:[%s14304_s1 + $0x1a0] ss:$16 sps:$4 sm:$0xff]   ;;  %v9490_v57 = vld [vmem:[%s14304_s1 + $0x1a8] ss:$16 sps:$4 sm:$0xff]  }
  0x1a   : > { %6608 = vmatprep.mubr.bf16.mxu0 %v8198_v48  ;;  %7264 = vmatprep.mubr.bf16.mxu1 %v8198_v48  ;;  %v9491_v58 = vld [vmem:[%s14304_s1 + $0x1c4] ss:$16 sps:$4 sm:$0xff]   ;;  %v9493_v59 = vld [vmem:[%s14304_s1 + $0x1cc] ss:$16 sps:$4 sm:$0xff]   ;;  %v9495_v60 = vld [vmem:[%s14304_s1 + $0x1c0] ss:$16 sps:$4 sm:$0xff]  }
  0x1b   : > { %v9496_v61 = vld [vmem:[%s14304_s1 + $0x1c8] ss:$16 sps:$4 sm:$0xff]   ;;  %v9497_v62 = vld [vmem:[%s14304_s1 + $0x1e4] ss:$16 sps:$4 sm:$0xff]   ;;  %v9499_v63 = vld [vmem:[%s14304_s1 + $0x1ec] ss:$16 sps:$4 sm:$0xff]  }
  0x1c   : > { %6587 = vmatpush1.bf16.msra.mxu0 %v9441_v22  ;;  %7243 = vmatpush1.bf16.msra.mxu1 %v9442_v23  ;;  %v9501_v0 = vld [vmem:[%s14304_s1 + $0x1e0] ss:$16 sps:$4 sm:$0xff]   ;;  %v9502_v1 = vld [vmem:[%s14304_s1 + $0x1e8] ss:$16 sps:$4 sm:$0xff]   ;;  %v9507_v2 = vld [vmem:[%s14304_s1 + $0x204] ss:$16 sps:$4 sm:$0xff]  }
  0x1d   : > { %6588 = vmatprep.subr.bf16.mxu0 %v9443_v24  ;;  %7244 = vmatprep.subr.bf16.mxu1 %v9445_v25  ;;  %v9510_v3 = vld [vmem:[%s14304_s1 + $0x20c] ss:$16 sps:$4 sm:$0xff]   ;;  %v9505_v5 = vld [vmem:[%s14304_s1 + $0x200] ss:$16 sps:$4 sm:$0xff]   ;;  %v9508_v6 = vld [vmem:[%s14304_s1 + $0x208] ss:$16 sps:$4 sm:$0xff]  }
  0x1e   : > { %v9513_v7 = vld [vmem:[%s14304_s1 + $0x224] ss:$16 sps:$4 sm:$0xff]   ;;  %v9516_v8 = vld [vmem:[%s14304_s1 + $0x22c] ss:$16 sps:$4 sm:$0xff]   ;;  %v9511_v9 = vld [vmem:[%s14304_s1 + $0x220] ss:$16 sps:$4 sm:$0xff]  }
  0x1f   : > { %v9514_v10 = vld [vmem:[%s14304_s1 + $0x228] ss:$16 sps:$4 sm:$0xff]   ;;  %v9519_v11 = vld [vmem:[%s14304_s1 + $0x244] ss:$16 sps:$4 sm:$0xff]   ;;  %v9522_v12 = vld [vmem:[%s14304_s1 + $0x24c] ss:$16 sps:$4 sm:$0xff]  }
  0x20   : > { %6589 = vmatpush1.bf16.msra.mxu0 %v9447_v26  ;;  %7245 = vmatpush1.bf16.msra.mxu1 %v9448_v27  ;;  %v9517_v13 = vld [vmem:[%s14304_s1 + $0x240] ss:$16 sps:$4 sm:$0xff]   ;;  %v9520_v14 = vld [vmem:[%s14304_s1 + $0x248] ss:$16 sps:$4 sm:$0xff]   ;;  %v9525_v15 = vld [vmem:[%s14304_s1 + $0x264] ss:$16 sps:$4 sm:$0xff]  }
  0x21   : > { %6590 = vmatprep.subr.bf16.mxu0 %v9449_v28  ;;  %7246 = vmatprep.subr.bf16.mxu1 %v9451_v29  ;;  %v9528_v16 = vld [vmem:[%s14304_s1 + $0x26c] ss:$16 sps:$4 sm:$0xff]   ;;  %v9523_v17 = vld [vmem:[%s14304_s1 + $0x260] ss:$16 sps:$4 sm:$0xff]   ;;  %v9526_v18 = vld [vmem:[%s14304_s1 + $0x268] ss:$16 sps:$4 sm:$0xff]  }
  0x22   : > { %v9531_v19 = vld [vmem:[%s14304_s1 + $0x284] ss:$16 sps:$4 sm:$0xff]   ;;  %v9534_v20 = vld [vmem:[%s14304_s1 + $0x28c] ss:$16 sps:$4 sm:$0xff]   ;;  %v9529_v21 = vld [vmem:[%s14304_s1 + $0x280] ss:$16 sps:$4 sm:$0xff]  }
  0x23   : > { %v9532_v22 = vld [vmem:[%s14304_s1 + $0x288] ss:$16 sps:$4 sm:$0xff]   ;;  %v9537_v23 = vld [vmem:[%s14304_s1 + $0x2a4] ss:$16 sps:$4 sm:$0xff]   ;;  %v9540_v24 = vld [vmem:[%s14304_s1 + $0x2ac] ss:$16 sps:$4 sm:$0xff]  }
  0x24   : > { %6591 = vmatpush1.bf16.msra.mxu0 %v9453_v30  ;;  %7247 = vmatpush1.bf16.msra.mxu1 %v9454_v31  ;;  %v9535_v25 = vld [vmem:[%s14304_s1 + $0x2a0] ss:$16 sps:$4 sm:$0xff]   ;;  %v9538_v26 = vld [vmem:[%s14304_s1 + $0x2a8] ss:$16 sps:$4 sm:$0xff]   ;;  %v9543_v27 = vld [vmem:[%s14304_s1 + $0x2c4] ss:$16 sps:$4 sm:$0xff]  }
  0x25   : > { %6592 = vmatprep.subr.bf16.mxu0 %v9455_v32  ;;  %7248 = vmatprep.subr.bf16.mxu1 %v9457_v33  ;;  %v9546_v28 = vld [vmem:[%s14304_s1 + $0x2cc] ss:$16 sps:$4 sm:$0xff]   ;;  %v9541_v31 = vld [vmem:[%s14304_s1 + $0x2c0] ss:$16 sps:$4 sm:$0xff]   ;;  %v9544_v32 = vld [vmem:[%s14304_s1 + $0x2c8] ss:$16 sps:$4 sm:$0xff]  }
  0x26   : > { %v11333_v29 = vld [vmem:[%s11191_s29 + $0x8] sm:$0xff]  ;;  %v9549_v33 = vld [vmem:[%s14304_s1 + $0x2e4] ss:$16 sps:$4 sm:$0xff]  }
  0x27   : > { %v8200_v30 = vcombine.high %v11333_v29, %v11333_v29  ;;  %v9570_v46 = vld [vmem:[%s14304_s1 + $0x34c] ss:$16 sps:$4 sm:$0xff]   ;;  %v9568_v48 = vld [vmem:[%s14304_s1 + $0x348] ss:$16 sps:$4 sm:$0xff]  }
  0x28   : > { %6593 = vmatpush1.bf16.msra.mxu0 %v9459_v34  ;;  %7249 = vmatpush1.bf16.msra.mxu1 %v9460_v35  ;;  %v9552_v34 = vld [vmem:[%s14304_s1 + $0x2ec] ss:$16 sps:$4 sm:$0xff]   ;;  %v9547_v35 = vld [vmem:[%s14304_s1 + $0x2e0] ss:$16 sps:$4 sm:$0xff]  }
  0x29   : > { %6594 = vmatprep.subr.bf16.mxu0 %v9461_v36  ;;  %7250 = vmatprep.subr.bf16.mxu1 %v9463_v37  ;;  %v9550_v36 = vld [vmem:[%s14304_s1 + $0x2e8] ss:$16 sps:$4 sm:$0xff]   ;;  %v9555_v37 = vld [vmem:[%s14304_s1 + $0x304] ss:$16 sps:$4 sm:$0xff]  }
  0x2c   : > { %6595 = vmatpush1.bf16.msra.mxu0 %v9465_v38  ;;  %7251 = vmatpush1.bf16.msra.mxu1 %v9466_v39  ;;  %v9558_v38 = vld [vmem:[%s14304_s1 + $0x30c] ss:$16 sps:$4 sm:$0xff]   ;;  %v9553_v39 = vld [vmem:[%s14304_s1 + $0x300] ss:$16 sps:$4 sm:$0xff]  }
  0x2d   : > { %6596 = vmatprep.subr.bf16.mxu0 %v9467_v40  ;;  %7252 = vmatprep.subr.bf16.mxu1 %v9469_v41  ;;  %v9556_v40 = vld [vmem:[%s14304_s1 + $0x308] ss:$16 sps:$4 sm:$0xff]   ;;  %v9561_v41 = vld [vmem:[%s14304_s1 + $0x324] ss:$16 sps:$4 sm:$0xff]  }
  0x30   : > { %6597 = vmatpush1.bf16.msra.mxu0 %v9471_v42  ;;  %7253 = vmatpush1.bf16.msra.mxu1 %v9472_v43  ;;  %v9564_v42 = vld [vmem:[%s14304_s1 + $0x32c] ss:$16 sps:$4 sm:$0xff]   ;;  %v9559_v43 = vld [vmem:[%s14304_s1 + $0x320] ss:$16 sps:$4 sm:$0xff]  }
  0x31   : > { %6598 = vmatprep.subr.bf16.mxu0 %v9473_v44  ;;  %7254 = vmatprep.subr.bf16.mxu1 %v9475_v45  ;;  %v9562_v44 = vld [vmem:[%s14304_s1 + $0x328] ss:$16 sps:$4 sm:$0xff]   ;;  %v9567_v45 = vld [vmem:[%s14304_s1 + $0x344] ss:$16 sps:$4 sm:$0xff]  }
  0x34   : > { %6599 = vmatpush1.bf16.msra.mxu0 %v9477_v47  ;;  %7255 = vmatpush1.bf16.msra.mxu1 %v9478_v49  ;;  %v9565_v47 = vld [vmem:[%s14304_s1 + $0x340] ss:$16 sps:$4 sm:$0xff]   ;;  %v9573_v49 = vld [vmem:[%s14304_s1 + $0x364] ss:$16 sps:$4 sm:$0xff]  }
  0x35   : > { %6600 = vmatprep.subr.bf16.mxu0 %v9479_v50  ;;  %7256 = vmatprep.subr.bf16.mxu1 %v9481_v51  ;;  %v9576_v50 = vld [vmem:[%s14304_s1 + $0x36c] ss:$16 sps:$4 sm:$0xff]   ;;  %v9571_v51 = vld [vmem:[%s14304_s1 + $0x360] ss:$16 sps:$4 sm:$0xff]  }
  0x38   : > { %6601 = vmatpush1.bf16.msra.mxu0 %v9483_v52  ;;  %7257 = vmatpush1.bf16.msra.mxu1 %v9484_v53  ;;  %v9574_v52 = vld [vmem:[%s14304_s1 + $0x368] ss:$16 sps:$4 sm:$0xff]   ;;  %v9579_v53 = vld [vmem:[%s14304_s1 + $0x384] ss:$16 sps:$4 sm:$0xff]  }
  0x39   : > { %6602 = vmatprep.subr.bf16.mxu0 %v9485_v54  ;;  %7258 = vmatprep.subr.bf16.mxu1 %v9487_v55  ;;  %v9582_v54 = vld [vmem:[%s14304_s1 + $0x38c] ss:$16 sps:$4 sm:$0xff]   ;;  %v9577_v55 = vld [vmem:[%s14304_s1 + $0x380] ss:$16 sps:$4 sm:$0xff]  }
  0x3c   : > { %6603 = vmatpush1.bf16.msra.mxu0 %v9489_v56  ;;  %7259 = vmatpush1.bf16.msra.mxu1 %v9490_v57  ;;  %v9580_v56 = vld [vmem:[%s14304_s1 + $0x388] ss:$16 sps:$4 sm:$0xff]   ;;  %v9585_v57 = vld [vmem:[%s14304_s1 + $0x3a4] ss:$16 sps:$4 sm:$0xff]  }
  0x3d   : > { %6604 = vmatprep.subr.bf16.mxu0 %v9491_v58  ;;  %7260 = vmatprep.subr.bf16.mxu1 %v9493_v59  ;;  %v9588_v58 = vld [vmem:[%s14304_s1 + $0x3ac] ss:$16 sps:$4 sm:$0xff]   ;;  %v9583_v59 = vld [vmem:[%s14304_s1 + $0x3a0] ss:$16 sps:$4 sm:$0xff]  }
  0x40   : > { %6605 = vmatpush1.bf16.msra.mxu0 %v9495_v60  ;;  %7261 = vmatpush1.bf16.msra.mxu1 %v9496_v61  ;;  %v9586_v60 = vld [vmem:[%s14304_s1 + $0x3a8] ss:$16 sps:$4 sm:$0xff]   ;;  %v9591_v61 = vld [vmem:[%s14304_s1 + $0x3c4] ss:$16 sps:$4 sm:$0xff]  }
  0x41   : > { %6606 = vmatprep.subr.bf16.mxu0 %v9497_v62  ;;  %7262 = vmatprep.subr.bf16.mxu1 %v9499_v63  ;;  %v9594_v62 = vld [vmem:[%s14304_s1 + $0x3cc] ss:$16 sps:$4 sm:$0xff]   ;;  %v9589_v63 = vld [vmem:[%s14304_s1 + $0x3c0] ss:$16 sps:$4 sm:$0xff]  }
  0x44   : > { %6607 = vmatpush1.bf16.msra.mxu0 %v9501_v0  ;;  %7263 = vmatpush1.bf16.msra.mxu1 %v9502_v1  ;;  %v9592_v0 = vld [vmem:[%s14304_s1 + $0x3c8] ss:$16 sps:$4 sm:$0xff]   ;;  %v9597_v1 = vld [vmem:[%s14304_s1 + $0x3e4] ss:$16 sps:$4 sm:$0xff]  }
  0x45   : > { %6617 = vmatprep.subr.bf16.mxu0 %v9507_v2  ;;  %7273 = vmatprep.subr.bf16.mxu1 %v9510_v3  ;;  %v9600_v2 = vld [vmem:[%s14304_s1 + $0x3ec] ss:$16 sps:$4 sm:$0xff]   ;;  %v9595_v3 = vld [vmem:[%s14304_s1 + $0x3e0] ss:$16 sps:$4 sm:$0xff]  }
  0x47   : > { %6609 = vmatmul.mubr.bf16.vlgmr.msra.gmra.mrb[0].mxu0 %v8197_v4  ;;  %7265 = vmatmul.mubr.bf16.vlgmr.msra.gmra.mrb[0].mxu1 %v8197_v4  ;;  %v9598_v4 = vld [vmem:[%s14304_s1 + $0x3e8] ss:$16 sps:$4 sm:$0xff]  }
  0x48   : > { %6618 = vmatpush1.bf16.msra.mxu0 %v9505_v5  ;;  %7274 = vmatpush1.bf16.msra.mxu1 %v9508_v6  ;;  %v9605_v5 = vld [vmem:[%s14304_s1 + $0x404] ss:$16 sps:$4 sm:$0xff]   ;;  %v9608_v6 = vld [vmem:[%s14304_s1 + $0x40c] ss:$16 sps:$4 sm:$0xff]  }
  0x49   : > { %6619 = vmatprep.subr.bf16.mxu0 %v9513_v7  ;;  %7275 = vmatprep.subr.bf16.mxu1 %v9516_v8  ;;  %v8199_v7 = vcombine.low %v11333_v29, %v11333_v29  ;;  %v9603_v8 = vld [vmem:[%s14304_s1 + $0x400] ss:$16 sps:$4 sm:$0xff]   ;;  %v9638_v29 = vld [vmem:[%s14304_s1 + $0x4ac] ss:$16 sps:$4 sm:$0xff]  }
  0x4a   : > { %6649 = vmatprep.mubr.bf16.mxu0 %v8200_v30  ;;  %7305 = vmatprep.mubr.bf16.mxu1 %v8200_v30  ;;  %v9633_v30 = vld [vmem:[%s14304_s1 + $0x4a0] ss:$16 sps:$4 sm:$0xff]  }
  0x4c   : > { %6620 = vmatpush1.bf16.msra.mxu0 %v9511_v9  ;;  %7276 = vmatpush1.bf16.msra.mxu1 %v9514_v10  ;;  %v9606_v9 = vld [vmem:[%s14304_s1 + $0x408] ss:$16 sps:$4 sm:$0xff]   ;;  %v9611_v10 = vld [vmem:[%s14304_s1 + $0x424] ss:$16 sps:$4 sm:$0xff]  }
  0x4d   : > { %6621 = vmatprep.subr.bf16.mxu0 %v9519_v11  ;;  %7277 = vmatprep.subr.bf16.mxu1 %v9522_v12  ;;  %v11469_v11 = vld [vmem:[%s11191_s29 + $0x10] sm:$0xff]  ;;  %v9614_v12 = vld [vmem:[%s14304_s1 + $0x42c] ss:$16 sps:$4 sm:$0xff]  }
  0x50   : > { %6622 = vmatpush1.bf16.msra.mxu0 %v9517_v13  ;;  %7278 = vmatpush1.bf16.msra.mxu1 %v9520_v14  ;;  %v8202_v13 = vcombine.high %v11469_v11, %v11469_v11  ;;  %v9609_v14 = vld [vmem:[%s14304_s1 + $0x420] ss:$16 sps:$4 sm:$0xff]  }
  0x51   : > { %6623 = vmatprep.subr.bf16.mxu0 %v9525_v15  ;;  %7279 = vmatprep.subr.bf16.mxu1 %v9528_v16  ;;  %v9612_v15 = vld [vmem:[%s14304_s1 + $0x428] ss:$16 sps:$4 sm:$0xff]   ;;  %v9617_v16 = vld [vmem:[%s14304_s1 + $0x444] ss:$16 sps:$4 sm:$0xff]  }
  0x54   : > { %6624 = vmatpush1.bf16.msra.mxu0 %v9523_v17  ;;  %7280 = vmatpush1.bf16.msra.mxu1 %v9526_v18  ;;  %v9620_v17 = vld [vmem:[%s14304_s1 + $0x44c] ss:$16 sps:$4 sm:$0xff]   ;;  %v9615_v18 = vld [vmem:[%s14304_s1 + $0x440] ss:$16 sps:$4 sm:$0xff]  }
  0x55   : > { %6625 = vmatprep.subr.bf16.mxu0 %v9531_v19  ;;  %7281 = vmatprep.subr.bf16.mxu1 %v9534_v20  ;;  %v9618_v19 = vld [vmem:[%s14304_s1 + $0x448] ss:$16 sps:$4 sm:$0xff]   ;;  %v9623_v20 = vld [vmem:[%s14304_s1 + $0x464] ss:$16 sps:$4 sm:$0xff]  }
  0x58   : > { %6626 = vmatpush1.bf16.msra.mxu0 %v9529_v21  ;;  %7282 = vmatpush1.bf16.msra.mxu1 %v9532_v22  ;;  %v9626_v21 = vld [vmem:[%s14304_s1 + $0x46c] ss:$16 sps:$4 sm:$0xff]   ;;  %v9621_v22 = vld [vmem:[%s14304_s1 + $0x460] ss:$16 sps:$4 sm:$0xff]  }
  0x59   : > { %6627 = vmatprep.subr.bf16.mxu0 %v9537_v23  ;;  %7283 = vmatprep.subr.bf16.mxu1 %v9540_v24  ;;  %v9624_v23 = vld [vmem:[%s14304_s1 + $0x468] ss:$16 sps:$4 sm:$0xff]   ;;  %v9629_v24 = vld [vmem:[%s14304_s1 + $0x484] ss:$16 sps:$4 sm:$0xff]  }
  0x5c   : > { %6628 = vmatpush1.bf16.msra.mxu0 %v9535_v25  ;;  %7284 = vmatpush1.bf16.msra.mxu1 %v9538_v26  ;;  %v9632_v25 = vld [vmem:[%s14304_s1 + $0x48c] ss:$16 sps:$4 sm:$0xff]   ;;  %v9627_v26 = vld [vmem:[%s14304_s1 + $0x480] ss:$16 sps:$4 sm:$0xff]  }
  0x5d   : > { %6629 = vmatprep.subr.bf16.mxu0 %v9543_v27  ;;  %7285 = vmatprep.subr.bf16.mxu1 %v9546_v28  ;;  %v9630_v27 = vld [vmem:[%s14304_s1 + $0x488] ss:$16 sps:$4 sm:$0xff]   ;;  %v9635_v28 = vld [vmem:[%s14304_s1 + $0x4a4] ss:$16 sps:$4 sm:$0xff]  }
  0x60   : > { %6630 = vmatpush1.bf16.msra.mxu0 %v9541_v31  ;;  %7286 = vmatpush1.bf16.msra.mxu1 %v9544_v32  ;;  %v9636_v31 = vld [vmem:[%s14304_s1 + $0x4a8] ss:$16 sps:$4 sm:$0xff]   ;;  %v9641_v32 = vld [vmem:[%s14304_s1 + $0x4c4] ss:$16 sps:$4 sm:$0xff]  }
  0x61   : > { %6631 = vmatprep.subr.bf16.mxu0 %v9549_v33  ;;  %7287 = vmatprep.subr.bf16.mxu1 %v9552_v34  ;;  %v9644_v33 = vld [vmem:[%s14304_s1 + $0x4cc] ss:$16 sps:$4 sm:$0xff]   ;;  %v9639_v34 = vld [vmem:[%s14304_s1 + $0x4c0] ss:$16 sps:$4 sm:$0xff]  }
  0x64   : > { %6632 = vmatpush1.bf16.msra.mxu0 %v9547_v35  ;;  %7288 = vmatpush1.bf16.msra.mxu1 %v9550_v36  ;;  %v9642_v35 = vld [vmem:[%s14304_s1 + $0x4c8] ss:$16 sps:$4 sm:$0xff]   ;;  %v9647_v36 = vld [vmem:[%s14304_s1 + $0x4e4] ss:$16 sps:$4 sm:$0xff]  }
  0x65   : > { %6633 = vmatprep.subr.bf16.mxu0 %v9555_v37  ;;  %7289 = vmatprep.subr.bf16.mxu1 %v9558_v38  ;;  %v9650_v37 = vld [vmem:[%s14304_s1 + $0x4ec] ss:$16 sps:$4 sm:$0xff]   ;;  %v9645_v38 = vld [vmem:[%s14304_s1 + $0x4e0] ss:$16 sps:$4 sm:$0xff]  }
  0x68   : > { %6634 = vmatpush1.bf16.msra.mxu0 %v9553_v39  ;;  %7290 = vmatpush1.bf16.msra.mxu1 %v9556_v40  ;;  %v9648_v39 = vld [vmem:[%s14304_s1 + $0x4e8] ss:$16 sps:$4 sm:$0xff]   ;;  %v9653_v40 = vld [vmem:[%s14304_s1 + $0x504] ss:$16 sps:$4 sm:$0xff]  }
  0x69   : > { %6635 = vmatprep.subr.bf16.mxu0 %v9561_v41  ;;  %7291 = vmatprep.subr.bf16.mxu1 %v9564_v42  ;;  %v9656_v41 = vld [vmem:[%s14304_s1 + $0x50c] ss:$16 sps:$4 sm:$0xff]   ;;  %v9651_v42 = vld [vmem:[%s14304_s1 + $0x500] ss:$16 sps:$4 sm:$0xff]  }
  0x6c   : > { %6636 = vmatpush1.bf16.msra.mxu0 %v9559_v43  ;;  %7292 = vmatpush1.bf16.msra.mxu1 %v9562_v44  ;;  %v9654_v43 = vld [vmem:[%s14304_s1 + $0x508] ss:$16 sps:$4 sm:$0xff]   ;;  %v9659_v44 = vld [vmem:[%s14304_s1 + $0x524] ss:$16 sps:$4 sm:$0xff]  }
  0x6d   : > { %6637 = vmatprep.subr.bf16.mxu0 %v9567_v45  ;;  %7293 = vmatprep.subr.bf16.mxu1 %v9570_v46  ;;  %v9662_v45 = vld [vmem:[%s14304_s1 + $0x52c] ss:$16 sps:$4 sm:$0xff]   ;;  %v9657_v46 = vld [vmem:[%s14304_s1 + $0x520] ss:$16 sps:$4 sm:$0xff]  }
  0x70   : > { %6638 = vmatpush1.bf16.msra.mxu0 %v9565_v47  ;;  %7294 = vmatpush1.bf16.msra.mxu1 %v9568_v48  ;;  %v9660_v47 = vld [vmem:[%s14304_s1 + $0x528] ss:$16 sps:$4 sm:$0xff]   ;;  %v9665_v48 = vld [vmem:[%s14304_s1 + $0x544] ss:$16 sps:$4 sm:$0xff]  }
  0x71   : > { %6639 = vmatprep.subr.bf16.mxu0 %v9573_v49  ;;  %7295 = vmatprep.subr.bf16.mxu1 %v9576_v50  ;;  %v9668_v49 = vld [vmem:[%s14304_s1 + $0x54c] ss:$16 sps:$4 sm:$0xff]   ;;  %v9663_v50 = vld [vmem:[%s14304_s1 + $0x540] ss:$16 sps:$4 sm:$0xff]  }
  0x74   : > { %6640 = vmatpush1.bf16.msra.mxu0 %v9571_v51  ;;  %7296 = vmatpush1.bf16.msra.mxu1 %v9574_v52  ;;  %v9666_v51 = vld [vmem:[%s14304_s1 + $0x548] ss:$16 sps:$4 sm:$0xff]   ;;  %v9671_v52 = vld [vmem:[%s14304_s1 + $0x564] ss:$16 sps:$4 sm:$0xff]  }
  0x75   : > { %6641 = vmatprep.subr.bf16.mxu0 %v9579_v53  ;;  %7297 = vmatprep.subr.bf16.mxu1 %v9582_v54  ;;  %v9674_v53 = vld [vmem:[%s14304_s1 + $0x56c] ss:$16 sps:$4 sm:$0xff]   ;;  %v9669_v54 = vld [vmem:[%s14304_s1 + $0x560] ss:$16 sps:$4 sm:$0xff]  }
  0x78   : > { %6642 = vmatpush1.bf16.msra.mxu0 %v9577_v55  ;;  %7298 = vmatpush1.bf16.msra.mxu1 %v9580_v56  ;;  %v9672_v55 = vld [vmem:[%s14304_s1 + $0x568] ss:$16 sps:$4 sm:$0xff]   ;;  %v9677_v56 = vld [vmem:[%s14304_s1 + $0x584] ss:$16 sps:$4 sm:$0xff]  }
  0x79   : > { %6643 = vmatprep.subr.bf16.mxu0 %v9585_v57  ;;  %7299 = vmatprep.subr.bf16.mxu1 %v9588_v58  ;;  %v9680_v57 = vld [vmem:[%s14304_s1 + $0x58c] ss:$16 sps:$4 sm:$0xff]   ;;  %v9675_v58 = vld [vmem:[%s14304_s1 + $0x580] ss:$16 sps:$4 sm:$0xff]  }
  0x7c   : > { %6644 = vmatpush1.bf16.msra.mxu0 %v9583_v59  ;;  %7300 = vmatpush1.bf16.msra.mxu1 %v9586_v60  ;;  %v9678_v59 = vld [vmem:[%s14304_s1 + $0x588] ss:$16 sps:$4 sm:$0xff]   ;;  %v9683_v60 = vld [vmem:[%s14304_s1 + $0x5a4] ss:$16 sps:$4 sm:$0xff]  }
  0x7d   : > { %6645 = vmatprep.subr.bf16.mxu0 %v9591_v61  ;;  %7301 = vmatprep.subr.bf16.mxu1 %v9594_v62  ;;  %v9686_v61 = vld [vmem:[%s14304_s1 + $0x5ac] ss:$16 sps:$4 sm:$0xff]   ;;  %v9681_v62 = vld [vmem:[%s14304_s1 + $0x5a0] ss:$16 sps:$4 sm:$0xff]  }
  0x80   : > { %6646 = vmatpush1.bf16.msra.mxu0 %v9589_v63  ;;  %7302 = vmatpush1.bf16.msra.mxu1 %v9592_v0  ;;  %v9684_v63 = vld [vmem:[%s14304_s1 + $0x5a8] ss:$16 sps:$4 sm:$0xff]   ;;  %v9689_v0 = vld [vmem:[%s14304_s1 + $0x5c4] ss:$16 sps:$4 sm:$0xff]  }
  0x81   : > { %6647 = vmatprep.subr.bf16.mxu0 %v9597_v1  ;;  %7303 = vmatprep.subr.bf16.mxu1 %v9600_v2  ;;  %v9692_v1 = vld [vmem:[%s14304_s1 + $0x5cc] ss:$16 sps:$4 sm:$0xff]   ;;  %v9687_v2 = vld [vmem:[%s14304_s1 + $0x5c0] ss:$16 sps:$4 sm:$0xff]  }
  0x84   : > { %6648 = vmatpush1.bf16.msra.mxu0 %v9595_v3  ;;  %7304 = vmatpush1.bf16.msra.mxu1 %v9598_v4  ;;  %v9690_v3 = vld [vmem:[%s14304_s1 + $0x5c8] ss:$16 sps:$4 sm:$0xff]   ;;  %v9695_v4 = vld [vmem:[%s14304_s1 + $0x5e4] ss:$16 sps:$4 sm:$0xff]  }
  0x85   : > { %6658 = vmatprep.subr.bf16.mxu0 %v9605_v5  ;;  %7314 = vmatprep.subr.bf16.mxu1 %v9608_v6  ;;  %v9698_v5 = vld [vmem:[%s14304_s1 + $0x5ec] ss:$16 sps:$4 sm:$0xff]   ;;  %v9693_v6 = vld [vmem:[%s14304_s1 + $0x5e0] ss:$16 sps:$4 sm:$0xff]  }
  0x87   : > { %6650 = vmatmul.mubr.bf16.vlgmr.msra.gmra.mrb[0].mxu0 %v8199_v7  ;;  %7306 = vmatmul.mubr.bf16.vlgmr.msra.gmra.mrb[0].mxu1 %v8199_v7  ;;  %v9696_v7 = vld [vmem:[%s14304_s1 + $0x5e8] ss:$16 sps:$4 sm:$0xff]  }
  0x88   : > { %6659 = vmatpush1.bf16.msra.mxu0 %v9603_v8  ;;  %7315 = vmatpush1.bf16.msra.mxu1 %v9606_v9  ;;  %v9703_v8 = vld [vmem:[%s14304_s1 + $0x604] ss:$16 sps:$4 sm:$0xff]   ;;  %v9706_v9 = vld [vmem:[%s14304_s1 + $0x60c] ss:$16 sps:$4 sm:$0xff]  }
  0x89   : > { %6660 = vmatprep.subr.bf16.mxu0 %v9611_v10  ;;  %7316 = vmatprep.subr.bf16.mxu1 %v9614_v12  ;;  %v9701_v10 = vld [vmem:[%s14304_s1 + $0x600] ss:$16 sps:$4 sm:$0xff]   ;;  %v8201_v12 = vcombine.low %v11469_v11, %v11469_v11 }
  0x8a   : > { %6690 = vmatprep.mubr.bf16.mxu0 %v8202_v13  ;;  %7346 = vmatprep.mubr.bf16.mxu1 %v8202_v13  ;;  %v9704_v13 = vld [vmem:[%s14304_s1 + $0x608] ss:$16 sps:$4 sm:$0xff]  }
  0x8c   : > { %6661 = vmatpush1.bf16.msra.mxu0 %v9609_v14  ;;  %7317 = vmatpush1.bf16.msra.mxu1 %v9612_v15  ;;  %v11665_v14 = vld [vmem:[%s11191_s29 + $0x18] sm:$0xff]  ;;  %v9709_v15 = vld [vmem:[%s14304_s1 + $0x624] ss:$16 sps:$4 sm:$0xff]  }
  0x8d   : > { %6662 = vmatprep.subr.bf16.mxu0 %v9617_v16  ;;  %7318 = vmatprep.subr.bf16.mxu1 %v9620_v17  ;;  %v9712_v16 = vld [vmem:[%s14304_s1 + $0x62c] ss:$16 sps:$4 sm:$0xff]   ;;  %v8204_v11 = vcombine.high %v11665_v14, %v11665_v14  ;;  %v9707_v17 = vld [vmem:[%s14304_s1 + $0x620] ss:$16 sps:$4 sm:$0xff]  }
  0x90   : > { %6663 = vmatpush1.bf16.msra.mxu0 %v9615_v18  ;;  %7319 = vmatpush1.bf16.msra.mxu1 %v9618_v19  ;;  %v9710_v18 = vld [vmem:[%s14304_s1 + $0x628] ss:$16 sps:$4 sm:$0xff]   ;;  %v9715_v19 = vld [vmem:[%s14304_s1 + $0x644] ss:$16 sps:$4 sm:$0xff]  }
  0x91   : > { %6664 = vmatprep.subr.bf16.mxu0 %v9623_v20  ;;  %7320 = vmatprep.subr.bf16.mxu1 %v9626_v21  ;;  %v9718_v20 = vld [vmem:[%s14304_s1 + $0x64c] ss:$16 sps:$4 sm:$0xff]   ;;  %v9713_v21 = vld [vmem:[%s14304_s1 + $0x640] ss:$16 sps:$4 sm:$0xff]  }
  0x94   : > { %6665 = vmatpush1.bf16.msra.mxu0 %v9621_v22  ;;  %7321 = vmatpush1.bf16.msra.mxu1 %v9624_v23  ;;  %v9716_v22 = vld [vmem:[%s14304_s1 + $0x648] ss:$16 sps:$4 sm:$0xff]   ;;  %v9721_v23 = vld [vmem:[%s14304_s1 + $0x664] ss:$16 sps:$4 sm:$0xff]  }
  0x95   : > { %6666 = vmatprep.subr.bf16.mxu0 %v9629_v24  ;;  %7322 = vmatprep.subr.bf16.mxu1 %v9632_v25  ;;  %v9724_v24 = vld [vmem:[%s14304_s1 + $0x66c] ss:$16 sps:$4 sm:$0xff]   ;;  %v9719_v25 = vld [vmem:[%s14304_s1 + $0x660] ss:$16 sps:$4 sm:$0xff]  }
  0x98   : > { %6667 = vmatpush1.bf16.msra.mxu0 %v9627_v26  ;;  %7323 = vmatpush1.bf16.msra.mxu1 %v9630_v27  ;;  %v9722_v26 = vld [vmem:[%s14304_s1 + $0x668] ss:$16 sps:$4 sm:$0xff]   ;;  %v9727_v27 = vld [vmem:[%s14304_s1 + $0x684] ss:$16 sps:$4 sm:$0xff]  }
  0x99   : > { %6668 = vmatprep.subr.bf16.mxu0 %v9635_v28  ;;  %7324 = vmatprep.subr.bf16.mxu1 %v9638_v29  ;;  %v9730_v28 = vld [vmem:[%s14304_s1 + $0x68c] ss:$16 sps:$4 sm:$0xff]   ;;  %v9725_v29 = vld [vmem:[%s14304_s1 + $0x680] ss:$16 sps:$4 sm:$0xff]  }
  0x9c   : > { %6669 = vmatpush1.bf16.msra.mxu0 %v9633_v30  ;;  %7325 = vmatpush1.bf16.msra.mxu1 %v9636_v31  ;;  %v9728_v30 = vld [vmem:[%s14304_s1 + $0x688] ss:$16 sps:$4 sm:$0xff]   ;;  %v9733_v31 = vld [vmem:[%s14304_s1 + $0x6a4] ss:$16 sps:$4 sm:$0xff]  }
  0x9d   : > { %6670 = vmatprep.subr.bf16.mxu0 %v9641_v32  ;;  %7326 = vmatprep.subr.bf16.mxu1 %v9644_v33  ;;  %v9736_v32 = vld [vmem:[%s14304_s1 + $0x6ac] ss:$16 sps:$4 sm:$0xff]   ;;  %v9731_v33 = vld [vmem:[%s14304_s1 + $0x6a0] ss:$16 sps:$4 sm:$0xff]  }
  0xa0   : > { %6671 = vmatpush1.bf16.msra.mxu0 %v9639_v34  ;;  %7327 = vmatpush1.bf16.msra.mxu1 %v9642_v35  ;;  %v9734_v34 = vld [vmem:[%s14304_s1 + $0x6a8] ss:$16 sps:$4 sm:$0xff]   ;;  %v9739_v35 = vld [vmem:[%s14304_s1 + $0x6c4] ss:$16 sps:$4 sm:$0xff]  }
  0xa1   : > { %6672 = vmatprep.subr.bf16.mxu0 %v9647_v36  ;;  %7328 = vmatprep.subr.bf16.mxu1 %v9650_v37  ;;  %v9742_v36 = vld [vmem:[%s14304_s1 + $0x6cc] ss:$16 sps:$4 sm:$0xff]   ;;  %v9737_v37 = vld [vmem:[%s14304_s1 + $0x6c0] ss:$16 sps:$4 sm:$0xff]  }
  0xa4   : > { %6673 = vmatpush1.bf16.msra.mxu0 %v9645_v38  ;;  %7329 = vmatpush1.bf16.msra.mxu1 %v9648_v39  ;;  %v9740_v38 = vld [vmem:[%s14304_s1 + $0x6c8] ss:$16 sps:$4 sm:$0xff]   ;;  %v9745_v39 = vld [vmem:[%s14304_s1 + $0x6e4] ss:$16 sps:$4 sm:$0xff]  }
  0xa5   : > { %6674 = vmatprep.subr.bf16.mxu0 %v9653_v40  ;;  %7330 = vmatprep.subr.bf16.mxu1 %v9656_v41  ;;  %v9748_v40 = vld [vmem:[%s14304_s1 + $0x6ec] ss:$16 sps:$4 sm:$0xff]   ;;  %v9743_v41 = vld [vmem:[%s14304_s1 + $0x6e0] ss:$16 sps:$4 sm:$0xff]  }
  0xa8   : > { %6675 = vmatpush1.bf16.msra.mxu0 %v9651_v42  ;;  %7331 = vmatpush1.bf16.msra.mxu1 %v9654_v43  ;;  %v9746_v42 = vld [vmem:[%s14304_s1 + $0x6e8] ss:$16 sps:$4 sm:$0xff]   ;;  %v9751_v43 = vld [vmem:[%s14304_s1 + $0x704] ss:$16 sps:$4 sm:$0xff]  }
  0xa9   : > { %6676 = vmatprep.subr.bf16.mxu0 %v9659_v44  ;;  %7332 = vmatprep.subr.bf16.mxu1 %v9662_v45  ;;  %v9754_v44 = vld [vmem:[%s14304_s1 + $0x70c] ss:$16 sps:$4 sm:$0xff]   ;;  %v9749_v45 = vld [vmem:[%s14304_s1 + $0x700] ss:$16 sps:$4 sm:$0xff]  }
  0xac   : > { %6677 = vmatpush1.bf16.msra.mxu0 %v9657_v46  ;;  %7333 = vmatpush1.bf16.msra.mxu1 %v9660_v47  ;;  %v9752_v46 = vld [vmem:[%s14304_s1 + $0x708] ss:$16 sps:$4 sm:$0xff]   ;;  %v9757_v47 = vld [vmem:[%s14304_s1 + $0x724] ss:$16 sps:$4 sm:$0xff]  }
  0xad   : > { %6678 = vmatprep.subr.bf16.mxu0 %v9665_v48  ;;  %7334 = vmatprep.subr.bf16.mxu1 %v9668_v49  ;;  %v9760_v48 = vld [vmem:[%s14304_s1 + $0x72c] ss:$16 sps:$4 sm:$0xff]   ;;  %v9755_v49 = vld [vmem:[%s14304_s1 + $0x720] ss:$16 sps:$4 sm:$0xff]  }
  0xb0   : > { %6679 = vmatpush1.bf16.msra.mxu0 %v9663_v50  ;;  %7335 = vmatpush1.bf16.msra.mxu1 %v9666_v51  ;;  %v9758_v50 = vld [vmem:[%s14304_s1 + $0x728] ss:$16 sps:$4 sm:$0xff]   ;;  %v9763_v51 = vld [vmem:[%s14304_s1 + $0x744] ss:$16 sps:$4 sm:$0xff]  }
  0xb1   : > { %6680 = vmatprep.subr.bf16.mxu0 %v9671_v52  ;;  %7336 = vmatprep.subr.bf16.mxu1 %v9674_v53  ;;  %v9766_v52 = vld [vmem:[%s14304_s1 + $0x74c] ss:$16 sps:$4 sm:$0xff]   ;;  %v9761_v53 = vld [vmem:[%s14304_s1 + $0x740] ss:$16 sps:$4 sm:$0xff]  }
  0xb4   : > { %6681 = vmatpush1.bf16.msra.mxu0 %v9669_v54  ;;  %7337 = vmatpush1.bf16.msra.mxu1 %v9672_v55  ;;  %v9764_v54 = vld [vmem:[%s14304_s1 + $0x748] ss:$16 sps:$4 sm:$0xff]   ;;  %v9769_v55 = vld [vmem:[%s14304_s1 + $0x764] ss:$16 sps:$4 sm:$0xff]  }
  0xb5   : > { %6682 = vmatprep.subr.bf16.mxu0 %v9677_v56  ;;  %7338 = vmatprep.subr.bf16.mxu1 %v9680_v57  ;;  %v9772_v56 = vld [vmem:[%s14304_s1 + $0x76c] ss:$16 sps:$4 sm:$0xff]   ;;  %v9767_v57 = vld [vmem:[%s14304_s1 + $0x760] ss:$16 sps:$4 sm:$0xff]  }
  0xb8   : > { %6683 = vmatpush1.bf16.msra.mxu0 %v9675_v58  ;;  %7339 = vmatpush1.bf16.msra.mxu1 %v9678_v59  ;;  %v9770_v58 = vld [vmem:[%s14304_s1 + $0x768] ss:$16 sps:$4 sm:$0xff]   ;;  %v9775_v59 = vld [vmem:[%s14304_s1 + $0x784] ss:$16 sps:$4 sm:$0xff]  }
  0xb9   : > { %6684 = vmatprep.subr.bf16.mxu0 %v9683_v60  ;;  %7340 = vmatprep.subr.bf16.mxu1 %v9686_v61  ;;  %v9778_v60 = vld [vmem:[%s14304_s1 + $0x78c] ss:$16 sps:$4 sm:$0xff]   ;;  %v9773_v61 = vld [vmem:[%s14304_s1 + $0x780] ss:$16 sps:$4 sm:$0xff]  }
  0xbc   : > { %6685 = vmatpush1.bf16.msra.mxu0 %v9681_v62  ;;  %7341 = vmatpush1.bf16.msra.mxu1 %v9684_v63  ;;  %v9776_v62 = vld [vmem:[%s14304_s1 + $0x788] ss:$16 sps:$4 sm:$0xff]   ;;  %v9781_v63 = vld [vmem:[%s14304_s1 + $0x7a4] ss:$16 sps:$4 sm:$0xff]  }
  0xbd   : > { %6686 = vmatprep.subr.bf16.mxu0 %v9689_v0  ;;  %7342 = vmatprep.subr.bf16.mxu1 %v9692_v1  ;;  %v9784_v0 = vld [vmem:[%s14304_s1 + $0x7ac] ss:$16 sps:$4 sm:$0xff]   ;;  %v9779_v1 = vld [vmem:[%s14304_s1 + $0x7a0] ss:$16 sps:$4 sm:$0xff]  }
  0xc0   : > { %6687 = vmatpush1.bf16.msra.mxu0 %v9687_v2  ;;  %7343 = vmatpush1.bf16.msra.mxu1 %v9690_v3  ;;  %v9782_v2 = vld [vmem:[%s14304_s1 + $0x7a8] ss:$16 sps:$4 sm:$0xff]   ;;  %v9787_v3 = vld [vmem:[%s14304_s1 + $0x7c4] ss:$16 sps:$4 sm:$0xff]  }
  0xc1   : > { %6688 = vmatprep.subr.bf16.mxu0 %v9695_v4  ;;  %7344 = vmatprep.subr.bf16.mxu1 %v9698_v5  ;;  %v9790_v4 = vld [vmem:[%s14304_s1 + $0x7cc] ss:$16 sps:$4 sm:$0xff]   ;;  %v9785_v5 = vld [vmem:[%s14304_s1 + $0x7c0] ss:$16 sps:$4 sm:$0xff]  }
  0xc4   : > { %6689 = vmatpush1.bf16.msra.mxu0 %v9693_v6  ;;  %7345 = vmatpush1.bf16.msra.mxu1 %v9696_v7  ;;  %v9788_v6 = vld [vmem:[%s14304_s1 + $0x7c8] ss:$16 sps:$4 sm:$0xff]   ;;  %v9793_v7 = vld [vmem:[%s14304_s1 + $0x7e4] ss:$16 sps:$4 sm:$0xff]  }
  0xc5   : > { %6699 = vmatprep.subr.bf16.mxu0 %v9703_v8  ;;  %7355 = vmatprep.subr.bf16.mxu1 %v9706_v9  ;;  %v9796_v8 = vld [vmem:[%s14304_s1 + $0x7ec] ss:$16 sps:$4 sm:$0xff]   ;;  %v9791_v9 = vld [vmem:[%s14304_s1 + $0x7e0] ss:$16 sps:$4 sm:$0xff]  }
  0xc7   : > { %6691 = vmatmul.mubr.bf16.vlgmr.msra.gmra.mrb[0].mxu0 %v8201_v12  ;;  %7347 = vmatmul.mubr.bf16.vlgmr.msra.gmra.mrb[0].mxu1 %v8201_v12  ;;  %v9801_v12 = vld [vmem:[%s14304_s1 + $0x804] ss:$16 sps:$4 sm:$0xff]  }
  0xc8   : > { %6700 = vmatpush1.bf16.msra.mxu0 %v9701_v10  ;;  %7356 = vmatpush1.bf16.msra.mxu1 %v9704_v13  ;;  %v9794_v10 = vld [vmem:[%s14304_s1 + $0x7e8] ss:$16 sps:$4 sm:$0xff]   ;;  %v9804_v13 = vld [vmem:[%s14304_s1 + $0x80c] ss:$16 sps:$4 sm:$0xff]  }
  0xc9   : > { %6701 = vmatprep.subr.bf16.mxu0 %v9709_v15  ;;  %7357 = vmatprep.subr.bf16.mxu1 %v9712_v16  ;;  %v9799_v15 = vld [vmem:[%s14304_s1 + $0x800] ss:$16 sps:$4 sm:$0xff]   ;;  %v8203_v16 = vcombine.low %v11665_v14, %v11665_v14 }
  0xca   : > { %6731 = vmatprep.mubr.bf16.mxu0 %v8204_v11  ;;  %7387 = vmatprep.mubr.bf16.mxu1 %v8204_v11  ;;  %v11861_v11 = vld [vmem:[%s11191_s29 + $0x20] sm:$0xff] }
  0xcb   : > { %v8206_v14 = vcombine.high %v11861_v11, %v11861_v11 }
  0xcc   : > { %6702 = vmatpush1.bf16.msra.mxu0 %v9707_v17  ;;  %7358 = vmatpush1.bf16.msra.mxu1 %v9710_v18  ;;  %v9802_v17 = vld [vmem:[%s14304_s1 + $0x808] ss:$16 sps:$4 sm:$0xff]   ;;  %v9807_v18 = vld [vmem:[%s14304_s1 + $0x824] ss:$16 sps:$4 sm:$0xff]  }
  0xcd   : > { %6703 = vmatprep.subr.bf16.mxu0 %v9715_v19  ;;  %7359 = vmatprep.subr.bf16.mxu1 %v9718_v20  ;;  %v9810_v19 = vld [vmem:[%s14304_s1 + $0x82c] ss:$16 sps:$4 sm:$0xff]   ;;  %v9805_v20 = vld [vmem:[%s14304_s1 + $0x820] ss:$16 sps:$4 sm:$0xff]  }
  0xd0   : > { %6704 = vmatpush1.bf16.msra.mxu0 %v9713_v21  ;;  %7360 = vmatpush1.bf16.msra.mxu1 %v9716_v22  ;;  %v9808_v21 = vld [vmem:[%s14304_s1 + $0x828] ss:$16 sps:$4 sm:$0xff]   ;;  %v9813_v22 = vld [vmem:[%s14304_s1 + $0x844] ss:$16 sps:$4 sm:$0xff]  }
  0xd1   : > { %6705 = vmatprep.subr.bf16.mxu0 %v9721_v23  ;;  %7361 = vmatprep.subr.bf16.mxu1 %v9724_v24  ;;  %v9816_v23 = vld [vmem:[%s14304_s1 + $0x84c] ss:$16 sps:$4 sm:$0xff]   ;;  %v9811_v24 = vld [vmem:[%s14304_s1 + $0x840] ss:$16 sps:$4 sm:$0xff]  }
  0xd4   : > { %6706 = vmatpush1.bf16.msra.mxu0 %v9719_v25  ;;  %7362 = vmatpush1.bf16.msra.mxu1 %v9722_v26  ;;  %v9814_v25 = vld [vmem:[%s14304_s1 + $0x848] ss:$16 sps:$4 sm:$0xff]   ;;  %v9819_v26 = vld [vmem:[%s14304_s1 + $0x864] ss:$16 sps:$4 sm:$0xff]  }
  0xd5   : > { %6707 = vmatprep.subr.bf16.mxu0 %v9727_v27  ;;  %7363 = vmatprep.subr.bf16.mxu1 %v9730_v28  ;;  %v9822_v27 = vld [vmem:[%s14304_s1 + $0x86c] ss:$16 sps:$4 sm:$0xff]   ;;  %v9817_v28 = vld [vmem:[%s14304_s1 + $0x860] ss:$16 sps:$4 sm:$0xff]  }
  0xd8   : > { %6708 = vmatpush1.bf16.msra.mxu0 %v9725_v29  ;;  %7364 = vmatpush1.bf16.msra.mxu1 %v9728_v30  ;;  %v9820_v29 = vld [vmem:[%s14304_s1 + $0x868] ss:$16 sps:$4 sm:$0xff]   ;;  %v9825_v30 = vld [vmem:[%s14304_s1 + $0x884] ss:$16 sps:$4 sm:$0xff]  }
  0xd9   : > { %6709 = vmatprep.subr.bf16.mxu0 %v9733_v31  ;;  %7365 = vmatprep.subr.bf16.mxu1 %v9736_v32  ;;  %v9828_v31 = vld [vmem:[%s14304_s1 + $0x88c] ss:$16 sps:$4 sm:$0xff]   ;;  %v9823_v32 = vld [vmem:[%s14304_s1 + $0x880] ss:$16 sps:$4 sm:$0xff]  }
  0xdc   : > { %6710 = vmatpush1.bf16.msra.mxu0 %v9731_v33  ;;  %7366 = vmatpush1.bf16.msra.mxu1 %v9734_v34  ;;  %v9826_v33 = vld [vmem:[%s14304_s1 + $0x888] ss:$16 sps:$4 sm:$0xff]   ;;  %v9831_v34 = vld [vmem:[%s14304_s1 + $0x8a4] ss:$16 sps:$4 sm:$0xff]  }
  0xdd   : > { %6711 = vmatprep.subr.bf16.mxu0 %v9739_v35  ;;  %7367 = vmatprep.subr.bf16.mxu1 %v9742_v36  ;;  %v9834_v35 = vld [vmem:[%s14304_s1 + $0x8ac] ss:$16 sps:$4 sm:$0xff]   ;;  %v9829_v36 = vld [vmem:[%s14304_s1 + $0x8a0] ss:$16 sps:$4 sm:$0xff]  }
  0xe0   : > { %6712 = vmatpush1.bf16.msra.mxu0 %v9737_v37  ;;  %7368 = vmatpush1.bf16.msra.mxu1 %v9740_v38  ;;  %v9832_v37 = vld [vmem:[%s14304_s1 + $0x8a8] ss:$16 sps:$4 sm:$0xff]   ;;  %v9837_v38 = vld [vmem:[%s14304_s1 + $0x8c4] ss:$16 sps:$4 sm:$0xff]  }
  0xe1   : > { %6713 = vmatprep.subr.bf16.mxu0 %v9745_v39  ;;  %7369 = vmatprep.subr.bf16.mxu1 %v9748_v40  ;;  %v9840_v39 = vld [vmem:[%s14304_s1 + $0x8cc] ss:$16 sps:$4 sm:$0xff]   ;;  %v9835_v40 = vld [vmem:[%s14304_s1 + $0x8c0] ss:$16 sps:$4 sm:$0xff]  }
  0xe4   : > { %6714 = vmatpush1.bf16.msra.mxu0 %v9743_v41  ;;  %7370 = vmatpush1.bf16.msra.mxu1 %v9746_v42  ;;  %v9838_v41 = vld [vmem:[%s14304_s1 + $0x8c8] ss:$16 sps:$4 sm:$0xff]   ;;  %v9843_v42 = vld [vmem:[%s14304_s1 + $0x8e4] ss:$16 sps:$4 sm:$0xff]  }
  0xe5   : > { %6715 = vmatprep.subr.bf16.mxu0 %v9751_v43  ;;  %7371 = vmatprep.subr.bf16.mxu1 %v9754_v44  ;;  %v9846_v43 = vld [vmem:[%s14304_s1 + $0x8ec] ss:$16 sps:$4 sm:$0xff]   ;;  %v9841_v44 = vld [vmem:[%s14304_s1 + $0x8e0] ss:$16 sps:$4 sm:$0xff]  }
  0xe8   : > { %6716 = vmatpush1.bf16.msra.mxu0 %v9749_v45  ;;  %7372 = vmatpush1.bf16.msra.mxu1 %v9752_v46  ;;  %v9844_v45 = vld [vmem:[%s14304_s1 + $0x8e8] ss:$16 sps:$4 sm:$0xff]   ;;  %v9849_v46 = vld [vmem:[%s14304_s1 + $0x904] ss:$16 sps:$4 sm:$0xff]  }
  0xe9   : > { %6717 = vmatprep.subr.bf16.mxu0 %v9757_v47  ;;  %7373 = vmatprep.subr.bf16.mxu1 %v9760_v48  ;;  %v9852_v47 = vld [vmem:[%s14304_s1 + $0x90c] ss:$16 sps:$4 sm:$0xff]   ;;  %v9847_v48 = vld [vmem:[%s14304_s1 + $0x900] ss:$16 sps:$4 sm:$0xff]  }
  0xec   : > { %6718 = vmatpush1.bf16.msra.mxu0 %v9755_v49  ;;  %7374 = vmatpush1.bf16.msra.mxu1 %v9758_v50  ;;  %v9850_v49 = vld [vmem:[%s14304_s1 + $0x908] ss:$16 sps:$4 sm:$0xff]   ;;  %v9855_v50 = vld [vmem:[%s14304_s1 + $0x924] ss:$16 sps:$4 sm:$0xff]  }
  0xed   : > { %6719 = vmatprep.subr.bf16.mxu0 %v9763_v51  ;;  %7375 = vmatprep.subr.bf16.mxu1 %v9766_v52  ;;  %v9858_v51 = vld [vmem:[%s14304_s1 + $0x92c] ss:$16 sps:$4 sm:$0xff]   ;;  %v9853_v52 = vld [vmem:[%s14304_s1 + $0x920] ss:$16 sps:$4 sm:$0xff]  }
  0xf0   : > { %6720 = vmatpush1.bf16.msra.mxu0 %v9761_v53  ;;  %7376 = vmatpush1.bf16.msra.mxu1 %v9764_v54  ;;  %v9856_v53 = vld [vmem:[%s14304_s1 + $0x928] ss:$16 sps:$4 sm:$0xff]   ;;  %v9861_v54 = vld [vmem:[%s14304_s1 + $0x944] ss:$16 sps:$4 sm:$0xff]  }
  0xf1   : > { %6721 = vmatprep.subr.bf16.mxu0 %v9769_v55  ;;  %7377 = vmatprep.subr.bf16.mxu1 %v9772_v56  ;;  %v9864_v55 = vld [vmem:[%s14304_s1 + $0x94c] ss:$16 sps:$4 sm:$0xff]   ;;  %v9859_v56 = vld [vmem:[%s14304_s1 + $0x940] ss:$16 sps:$4 sm:$0xff]  }
  0xf4   : > { %6722 = vmatpush1.bf16.msra.mxu0 %v9767_v57  ;;  %7378 = vmatpush1.bf16.msra.mxu1 %v9770_v58  ;;  %v9862_v57 = vld [vmem:[%s14304_s1 + $0x948] ss:$16 sps:$4 sm:$0xff]   ;;  %v9867_v58 = vld [vmem:[%s14304_s1 + $0x964] ss:$16 sps:$4 sm:$0xff]  }
  0xf5   : > { %6723 = vmatprep.subr.bf16.mxu0 %v9775_v59  ;;  %7379 = vmatprep.subr.bf16.mxu1 %v9778_v60  ;;  %v9870_v59 = vld [vmem:[%s14304_s1 + $0x96c] ss:$16 sps:$4 sm:$0xff]   ;;  %v9865_v60 = vld [vmem:[%s14304_s1 + $0x960] ss:$16 sps:$4 sm:$0xff]  }
  0xf8   : > { %6724 = vmatpush1.bf16.msra.mxu0 %v9773_v61  ;;  %7380 = vmatpush1.bf16.msra.mxu1 %v9776_v62  ;;  %v9868_v61 = vld [vmem:[%s14304_s1 + $0x968] ss:$16 sps:$4 sm:$0xff]   ;;  %v9873_v62 = vld [vmem:[%s14304_s1 + $0x984] ss:$16 sps:$4 sm:$0xff]  }
  0xf9   : > { %6725 = vmatprep.subr.bf16.mxu0 %v9781_v63  ;;  %7381 = vmatprep.subr.bf16.mxu1 %v9784_v0  ;;  %v9876_v63 = vld [vmem:[%s14304_s1 + $0x98c] ss:$16 sps:$4 sm:$0xff]   ;;  %v9871_v0 = vld [vmem:[%s14304_s1 + $0x980] ss:$16 sps:$4 sm:$0xff]  }
  0xfc   : > { %6726 = vmatpush1.bf16.msra.mxu0 %v9779_v1  ;;  %7382 = vmatpush1.bf16.msra.mxu1 %v9782_v2  ;;  %v9874_v1 = vld [vmem:[%s14304_s1 + $0x988] ss:$16 sps:$4 sm:$0xff]   ;;  %v9879_v2 = vld [vmem:[%s14304_s1 + $0x9a4] ss:$16 sps:$4 sm:$0xff]  }
  0xfd   : > { %6727 = vmatprep.subr.bf16.mxu0 %v9787_v3  ;;  %7383 = vmatprep.subr.bf16.mxu1 %v9790_v4  ;;  %v9882_v3 = vld [vmem:[%s14304_s1 + $0x9ac] ss:$16 sps:$4 sm:$0xff]   ;;  %v9877_v4 = vld [vmem:[%s14304_s1 + $0x9a0] ss:$16 sps:$4 sm:$0xff]  }
 0x100   : > { %6728 = vmatpush1.bf16.msra.mxu0 %v9785_v5  ;;  %7384 = vmatpush1.bf16.msra.mxu1 %v9788_v6  ;;  %v9880_v5 = vld [vmem:[%s14304_s1 + $0x9a8] ss:$16 sps:$4 sm:$0xff]   ;;  %v9885_v6 = vld [vmem:[%s14304_s1 + $0x9c4] ss:$16 sps:$4 sm:$0xff]  }
 0x101   : > { %6729 = vmatprep.subr.bf16.mxu0 %v9793_v7  ;;  %7385 = vmatprep.subr.bf16.mxu1 %v9796_v8  ;;  %v9888_v7 = vld [vmem:[%s14304_s1 + $0x9cc] ss:$16 sps:$4 sm:$0xff]   ;;  %v9883_v8 = vld [vmem:[%s14304_s1 + $0x9c0] ss:$16 sps:$4 sm:$0xff]  }
 0x104   : > { %6730 = vmatpush1.bf16.msra.mxu0 %v9791_v9  ;;  %7386 = vmatpush1.bf16.msra.mxu1 %v9794_v10  ;;  %v9886_v9 = vld [vmem:[%s14304_s1 + $0x9c8] ss:$16 sps:$4 sm:$0xff]   ;;  %v9891_v10 = vld [vmem:[%s14304_s1 + $0x9e4] ss:$16 sps:$4 sm:$0xff]  }
 0x105   : > { %6740 = vmatprep.subr.bf16.mxu0 %v9801_v12  ;;  %7396 = vmatprep.subr.bf16.mxu1 %v9804_v13  ;;  %v9894_v12 = vld [vmem:[%s14304_s1 + $0x9ec] ss:$16 sps:$4 sm:$0xff]   ;;  %v9889_v13 = vld [vmem:[%s14304_s1 + $0x9e0] ss:$16 sps:$4 sm:$0xff]  }
 0x107   : > { %6732 = vmatmul.mubr.bf16.vlgmr.msra.gmra.mrb[0].mxu0 %v8203_v16  ;;  %7388 = vmatmul.mubr.bf16.vlgmr.msra.gmra.mrb[0].mxu1 %v8203_v16  ;;  %v9899_v16 = vld [vmem:[%s14304_s1 + $0xa04] ss:$16 sps:$4 sm:$0xff]  }
 0x108   : > { %6741 = vmatpush1.bf16.msra.mxu0 %v9799_v15  ;;  %7397 = vmatpush1.bf16.msra.mxu1 %v9802_v17  ;;  %v9892_v15 = vld [vmem:[%s14304_s1 + $0x9e8] ss:$16 sps:$4 sm:$0xff]   ;;  %v9902_v17 = vld [vmem:[%s14304_s1 + $0xa0c] ss:$16 sps:$4 sm:$0xff]  }
 0x109   : > { %6742 = vmatprep.subr.bf16.mxu0 %v9807_v18  ;;  %7398 = vmatprep.subr.bf16.mxu1 %v9810_v19  ;;  %v12055_v18 = vld [vmem:[%s11191_s29 + $0x28] sm:$0xff]  ;;  %v8205_v19 = vcombine.low %v11861_v11, %v11861_v11 }
 0x10a   : > { %6772 = vmatprep.mubr.bf16.mxu0 %v8206_v14  ;;  %7428 = vmatprep.mubr.bf16.mxu1 %v8206_v14  ;;  %v9897_v14 = vld [vmem:[%s14304_s1 + $0xa00] ss:$16 sps:$4 sm:$0xff]   ;;  %v9908_v11 = vld [vmem:[%s14304_s1 + $0xa2c] ss:$16 sps:$4 sm:$0xff]  }
 0x10c   : > { %6743 = vmatpush1.bf16.msra.mxu0 %v9805_v20  ;;  %7399 = vmatpush1.bf16.msra.mxu1 %v9808_v21  ;;  %v9900_v20 = vld [vmem:[%s14304_s1 + $0xa08] ss:$16 sps:$4 sm:$0xff]   ;;  %v9905_v21 = vld [vmem:[%s14304_s1 + $0xa24] ss:$16 sps:$4 sm:$0xff]  }
 0x10d   : > { %6744 = vmatprep.subr.bf16.mxu0 %v9813_v22  ;;  %7400 = vmatprep.subr.bf16.mxu1 %v9816_v23  ;;  %v8208_v22 = vcombine.high %v12055_v18, %v12055_v18  ;;  %v9903_v23 = vld [vmem:[%s14304_s1 + $0xa20] ss:$16 sps:$4 sm:$0xff]  }
 0x110   : > { %6745 = vmatpush1.bf16.msra.mxu0 %v9811_v24  ;;  %7401 = vmatpush1.bf16.msra.mxu1 %v9814_v25  ;;  %v9906_v24 = vld [vmem:[%s14304_s1 + $0xa28] ss:$16 sps:$4 sm:$0xff]   ;;  %v9911_v25 = vld [vmem:[%s14304_s1 + $0xa44] ss:$16 sps:$4 sm:$0xff]  }
 0x111   : > { %6746 = vmatprep.subr.bf16.mxu0 %v9819_v26  ;;  %7402 = vmatprep.subr.bf16.mxu1 %v9822_v27  ;;  %v9914_v26 = vld [vmem:[%s14304_s1 + $0xa4c] ss:$16 sps:$4 sm:$0xff]   ;;  %v9909_v27 = vld [vmem:[%s14304_s1 + $0xa40] ss:$16 sps:$4 sm:$0xff]  }
 0x114   : > { %6747 = vmatpush1.bf16.msra.mxu0 %v9817_v28  ;;  %7403 = vmatpush1.bf16.msra.mxu1 %v9820_v29  ;;  %v9912_v28 = vld [vmem:[%s14304_s1 + $0xa48] ss:$16 sps:$4 sm:$0xff]   ;;  %v9917_v29 = vld [vmem:[%s14304_s1 + $0xa64] ss:$16 sps:$4 sm:$0xff]  }
 0x115   : > { %6748 = vmatprep.subr.bf16.mxu0 %v9825_v30  ;;  %7404 = vmatprep.subr.bf16.mxu1 %v9828_v31  ;;  %v9920_v30 = vld [vmem:[%s14304_s1 + $0xa6c] ss:$16 sps:$4 sm:$0xff]   ;;  %v9915_v31 = vld [vmem:[%s14304_s1 + $0xa60] ss:$16 sps:$4 sm:$0xff]  }
 0x118   : > { %6749 = vmatpush1.bf16.msra.mxu0 %v9823_v32  ;;  %7405 = vmatpush1.bf16.msra.mxu1 %v9826_v33  ;;  %v9918_v32 = vld [vmem:[%s14304_s1 + $0xa68] ss:$16 sps:$4 sm:$0xff]   ;;  %v9923_v33 = vld [vmem:[%s14304_s1 + $0xa84] ss:$16 sps:$4 sm:$0xff]  }
 0x119   : > { %6750 = vmatprep.subr.bf16.mxu0 %v9831_v34  ;;  %7406 = vmatprep.subr.bf16.mxu1 %v9834_v35  ;;  %v9926_v34 = vld [vmem:[%s14304_s1 + $0xa8c] ss:$16 sps:$4 sm:$0xff]   ;;  %v9921_v35 = vld [vmem:[%s14304_s1 + $0xa80] ss:$16 sps:$4 sm:$0xff]  }
 0x11c   : > { %6751 = vmatpush1.bf16.msra.mxu0 %v9829_v36  ;;  %7407 = vmatpush1.bf16.msra.mxu1 %v9832_v37  ;;  %v9924_v36 = vld [vmem:[%s14304_s1 + $0xa88] ss:$16 sps:$4 sm:$0xff]   ;;  %v9929_v37 = vld [vmem:[%s14304_s1 + $0xaa4] ss:$16 sps:$4 sm:$0xff]  }
 0x11d   : > { %6752 = vmatprep.subr.bf16.mxu0 %v9837_v38  ;;  %7408 = vmatprep.subr.bf16.mxu1 %v9840_v39  ;;  %v9932_v38 = vld [vmem:[%s14304_s1 + $0xaac] ss:$16 sps:$4 sm:$0xff]   ;;  %v9927_v39 = vld [vmem:[%s14304_s1 + $0xaa0] ss:$16 sps:$4 sm:$0xff]  }
 0x120   : > { %6753 = vmatpush1.bf16.msra.mxu0 %v9835_v40  ;;  %7409 = vmatpush1.bf16.msra.mxu1 %v9838_v41  ;;  %v9930_v40 = vld [vmem:[%s14304_s1 + $0xaa8] ss:$16 sps:$4 sm:$0xff]   ;;  %v9935_v41 = vld [vmem:[%s14304_s1 + $0xac4] ss:$16 sps:$4 sm:$0xff]  }
 0x121   : > { %6754 = vmatprep.subr.bf16.mxu0 %v9843_v42  ;;  %7410 = vmatprep.subr.bf16.mxu1 %v9846_v43  ;;  %v9938_v42 = vld [vmem:[%s14304_s1 + $0xacc] ss:$16 sps:$4 sm:$0xff]   ;;  %v9933_v43 = vld [vmem:[%s14304_s1 + $0xac0] ss:$16 sps:$4 sm:$0xff]  }
 0x124   : > { %6755 = vmatpush1.bf16.msra.mxu0 %v9841_v44  ;;  %7411 = vmatpush1.bf16.msra.mxu1 %v9844_v45  ;;  %v9936_v44 = vld [vmem:[%s14304_s1 + $0xac8] ss:$16 sps:$4 sm:$0xff]   ;;  %v9941_v45 = vld [vmem:[%s14304_s1 + $0xae4] ss:$16 sps:$4 sm:$0xff]  }
 0x125   : > { %6756 = vmatprep.subr.bf16.mxu0 %v9849_v46  ;;  %7412 = vmatprep.subr.bf16.mxu1 %v9852_v47  ;;  %v9944_v46 = vld [vmem:[%s14304_s1 + $0xaec] ss:$16 sps:$4 sm:$0xff]   ;;  %v9939_v47 = vld [vmem:[%s14304_s1 + $0xae0] ss:$16 sps:$4 sm:$0xff]  }
 0x128   : > { %6757 = vmatpush1.bf16.msra.mxu0 %v9847_v48  ;;  %7413 = vmatpush1.bf16.msra.mxu1 %v9850_v49  ;;  %v9942_v48 = vld [vmem:[%s14304_s1 + $0xae8] ss:$16 sps:$4 sm:$0xff]   ;;  %v9947_v49 = vld [vmem:[%s14304_s1 + $0xb04] ss:$16 sps:$4 sm:$0xff]  }
 0x129   : > { %6758 = vmatprep.subr.bf16.mxu0 %v9855_v50  ;;  %7414 = vmatprep.subr.bf16.mxu1 %v9858_v51  ;;  %v9950_v50 = vld [vmem:[%s14304_s1 + $0xb0c] ss:$16 sps:$4 sm:$0xff]   ;;  %v9945_v51 = vld [vmem:[%s14304_s1 + $0xb00] ss:$16 sps:$4 sm:$0xff]  }
 0x12c   : > { %6759 = vmatpush1.bf16.msra.mxu0 %v9853_v52  ;;  %7415 = vmatpush1.bf16.msra.mxu1 %v9856_v53  ;;  %v9948_v52 = vld [vmem:[%s14304_s1 + $0xb08] ss:$16 sps:$4 sm:$0xff]   ;;  %v9953_v53 = vld [vmem:[%s14304_s1 + $0xb24] ss:$16 sps:$4 sm:$0xff]  }
 0x12d   : > { %6760 = vmatprep.subr.bf16.mxu0 %v9861_v54  ;;  %7416 = vmatprep.subr.bf16.mxu1 %v9864_v55  ;;  %v9956_v54 = vld [vmem:[%s14304_s1 + $0xb2c] ss:$16 sps:$4 sm:$0xff]   ;;  %v9951_v55 = vld [vmem:[%s14304_s1 + $0xb20] ss:$16 sps:$4 sm:$0xff]  }
 0x130   : > { %6761 = vmatpush1.bf16.msra.mxu0 %v9859_v56  ;;  %7417 = vmatpush1.bf16.msra.mxu1 %v9862_v57  ;;  %v9954_v56 = vld [vmem:[%s14304_s1 + $0xb28] ss:$16 sps:$4 sm:$0xff]   ;;  %v9959_v57 = vld [vmem:[%s14304_s1 + $0xb44] ss:$16 sps:$4 sm:$0xff]  }
 0x131   : > { %6762 = vmatprep.subr.bf16.mxu0 %v9867_v58  ;;  %7418 = vmatprep.subr.bf16.mxu1 %v9870_v59  ;;  %v9962_v58 = vld [vmem:[%s14304_s1 + $0xb4c] ss:$16 sps:$4 sm:$0xff]   ;;  %v9957_v59 = vld [vmem:[%s14304_s1 + $0xb40] ss:$16 sps:$4 sm:$0xff]  }
 0x134   : > { %6763 = vmatpush1.bf16.msra.mxu0 %v9865_v60  ;;  %7419 = vmatpush1.bf16.msra.mxu1 %v9868_v61  ;;  %v9960_v60 = vld [vmem:[%s14304_s1 + $0xb48] ss:$16 sps:$4 sm:$0xff]   ;;  %v9965_v61 = vld [vmem:[%s14304_s1 + $0xb64] ss:$16 sps:$4 sm:$0xff]  }
 0x135   : > { %6764 = vmatprep.subr.bf16.mxu0 %v9873_v62  ;;  %7420 = vmatprep.subr.bf16.mxu1 %v9876_v63  ;;  %v9968_v62 = vld [vmem:[%s14304_s1 + $0xb6c] ss:$16 sps:$4 sm:$0xff]   ;;  %v9963_v63 = vld [vmem:[%s14304_s1 + $0xb60] ss:$16 sps:$4 sm:$0xff]  }
 0x138   : > { %6765 = vmatpush1.bf16.msra.mxu0 %v9871_v0  ;;  %7421 = vmatpush1.bf16.msra.mxu1 %v9874_v1  ;;  %v9966_v0 = vld [vmem:[%s14304_s1 + $0xb68] ss:$16 sps:$4 sm:$0xff]   ;;  %v9971_v1 = vld [vmem:[%s14304_s1 + $0xb84] ss:$16 sps:$4 sm:$0xff]  }
 0x139   : > { %6766 = vmatprep.subr.bf16.mxu0 %v9879_v2  ;;  %7422 = vmatprep.subr.bf16.mxu1 %v9882_v3  ;;  %v9974_v2 = vld [vmem:[%s14304_s1 + $0xb8c] ss:$16 sps:$4 sm:$0xff]   ;;  %v9969_v3 = vld [vmem:[%s14304_s1 + $0xb80] ss:$16 sps:$4 sm:$0xff]  }
 0x13c   : > { %6767 = vmatpush1.bf16.msra.mxu0 %v9877_v4  ;;  %7423 = vmatpush1.bf16.msra.mxu1 %v9880_v5  ;;  %v9972_v4 = vld [vmem:[%s14304_s1 + $0xb88] ss:$16 sps:$4 sm:$0xff]   ;;  %v9977_v5 = vld [vmem:[%s14304_s1 + $0xba4] ss:$16 sps:$4 sm:$0xff]  }
 0x13d   : > { %6768 = vmatprep.subr.bf16.mxu0 %v9885_v6  ;;  %7424 = vmatprep.subr.bf16.mxu1 %v9888_v7  ;;  %v9980_v6 = vld [vmem:[%s14304_s1 + $0xbac] ss:$16 sps:$4 sm:$0xff]   ;;  %v9975_v7 = vld [vmem:[%s14304_s1 + $0xba0] ss:$16 sps:$4 sm:$0xff]  }
 0x140   : > { %6769 = vmatpush1.bf16.msra.mxu0 %v9883_v8  ;;  %7425 = vmatpush1.bf16.msra.mxu1 %v9886_v9  ;;  %v9978_v8 = vld [vmem:[%s14304_s1 + $0xba8] ss:$16 sps:$4 sm:$0xff]   ;;  %v9983_v9 = vld [vmem:[%s14304_s1 + $0xbc4] ss:$16 sps:$4 sm:$0xff]  }
 0x141   : > { %6770 = vmatprep.subr.bf16.mxu0 %v9891_v10  ;;  %7426 = vmatprep.subr.bf16.mxu1 %v9894_v12  ;;  %v9986_v10 = vld [vmem:[%s14304_s1 + $0xbcc] ss:$16 sps:$4 sm:$0xff]   ;;  %v9981_v12 = vld [vmem:[%s14304_s1 + $0xbc0] ss:$16 sps:$4 sm:$0xff]  }
 0x144   : > { %6771 = vmatpush1.bf16.msra.mxu0 %v9889_v13  ;;  %7427 = vmatpush1.bf16.msra.mxu1 %v9892_v15  ;;  %v9984_v13 = vld [vmem:[%s14304_s1 + $0xbc8] ss:$16 sps:$4 sm:$0xff]   ;;  %v9989_v15 = vld [vmem:[%s14304_s1 + $0xbe4] ss:$16 sps:$4 sm:$0xff]  }
 0x145   : > { %6781 = vmatprep.subr.bf16.mxu0 %v9899_v16  ;;  %7437 = vmatprep.subr.bf16.mxu1 %v9902_v17  ;;  %v9992_v16 = vld [vmem:[%s14304_s1 + $0xbec] ss:$16 sps:$4 sm:$0xff]   ;;  %v9987_v17 = vld [vmem:[%s14304_s1 + $0xbe0] ss:$16 sps:$4 sm:$0xff]  }
 0x147   : > { %6773 = vmatmul.mubr.bf16.vlgmr.msra.gmra.mrb[0].mxu0 %v8205_v19  ;;  %7429 = vmatmul.mubr.bf16.vlgmr.msra.gmra.mrb[0].mxu1 %v8205_v19  ;;  %v9990_v19 = vld [vmem:[%s14304_s1 + $0xbe8] ss:$16 sps:$4 sm:$0xff]  }
 0x148   : > { %6782 = vmatpush1.bf16.msra.mxu0 %v9897_v14  ;;  %7438 = vmatpush1.bf16.msra.mxu1 %v9900_v20  ;;  %v9997_v14 = vld [vmem:[%s14304_s1 + $0xc04] ss:$16 sps:$4 sm:$0xff]   ;;  %v10000_v20 = vld [vmem:[%s14304_s1 + $0xc0c] ss:$16 sps:$4 sm:$0xff]  }
 0x149   : > { %6783 = vmatprep.subr.bf16.mxu0 %v9905_v21  ;;  %7439 = vmatprep.subr.bf16.mxu1 %v9908_v11  ;;  %v12254_v21 = vld [vmem:[%s11191_s29 + $0x30] sm:$0xff]  ;;  %v8207_v11 = vcombine.low %v12055_v18, %v12055_v18  ;;  %v10006_v18 = vld [vmem:[%s14304_s1 + $0xc2c] ss:$16 sps:$4 sm:$0xff]  }
 0x14a   : > { %6813 = vmatprep.mubr.bf16.mxu0 %v8208_v22  ;;  %7469 = vmatprep.mubr.bf16.mxu1 %v8208_v22  ;;  %v9995_v22 = vld [vmem:[%s14304_s1 + $0xc00] ss:$16 sps:$4 sm:$0xff]  }
 0x14c   : > { %6784 = vmatpush1.bf16.msra.mxu0 %v9903_v23  ;;  %7440 = vmatpush1.bf16.msra.mxu1 %v9906_v24  ;;  %v9998_v23 = vld [vmem:[%s14304_s1 + $0xc08] ss:$16 sps:$4 sm:$0xff]   ;;  %v10003_v24 = vld [vmem:[%s14304_s1 + $0xc24] ss:$16 sps:$4 sm:$0xff]  }
 0x14d   : > { %6785 = vmatprep.subr.bf16.mxu0 %v9911_v25  ;;  %7441 = vmatprep.subr.bf16.mxu1 %v9914_v26  ;;  %v8210_v25 = vcombine.high %v12254_v21, %v12254_v21  ;;  %v10001_v26 = vld [vmem:[%s14304_s1 + $0xc20] ss:$16 sps:$4 sm:$0xff]  }
 0x150   : > { %6786 = vmatpush1.bf16.msra.mxu0 %v9909_v27  ;;  %7442 = vmatpush1.bf16.msra.mxu1 %v9912_v28  ;;  %v10004_v27 = vld [vmem:[%s14304_s1 + $0xc28] ss:$16 sps:$4 sm:$0xff]   ;;  %v10009_v28 = vld [vmem:[%s14304_s1 + $0xc44] ss:$16 sps:$4 sm:$0xff]  }
 0x151   : > { %6787 = vmatprep.subr.bf16.mxu0 %v9917_v29  ;;  %7443 = vmatprep.subr.bf16.mxu1 %v9920_v30  ;;  %v10012_v29 = vld [vmem:[%s14304_s1 + $0xc4c] ss:$16 sps:$4 sm:$0xff]   ;;  %v10007_v30 = vld [vmem:[%s14304_s1 + $0xc40] ss:$16 sps:$4 sm:$0xff]  }
 0x154   : > { %6788 = vmatpush1.bf16.msra.mxu0 %v9915_v31  ;;  %7444 = vmatpush1.bf16.msra.mxu1 %v9918_v32  ;;  %v10010_v31 = vld [vmem:[%s14304_s1 + $0xc48] ss:$16 sps:$4 sm:$0xff]   ;;  %v10015_v32 = vld [vmem:[%s14304_s1 + $0xc64] ss:$16 sps:$4 sm:$0xff]  }
 0x155   : > { %6789 = vmatprep.subr.bf16.mxu0 %v9923_v33  ;;  %7445 = vmatprep.subr.bf16.mxu1 %v9926_v34  ;;  %v10018_v33 = vld [vmem:[%s14304_s1 + $0xc6c] ss:$16 sps:$4 sm:$0xff]   ;;  %v10013_v34 = vld [vmem:[%s14304_s1 + $0xc60] ss:$16 sps:$4 sm:$0xff]  }
 0x158   : > { %6790 = vmatpush1.bf16.msra.mxu0 %v9921_v35  ;;  %7446 = vmatpush1.bf16.msra.mxu1 %v9924_v36  ;;  %v10016_v35 = vld [vmem:[%s14304_s1 + $0xc68] ss:$16 sps:$4 sm:$0xff]   ;;  %v10021_v36 = vld [vmem:[%s14304_s1 + $0xc84] ss:$16 sps:$4 sm:$0xff]  }
 0x159   : > { %6791 = vmatprep.subr.bf16.mxu0 %v9929_v37  ;;  %7447 = vmatprep.subr.bf16.mxu1 %v9932_v38  ;;  %v10024_v37 = vld [vmem:[%s14304_s1 + $0xc8c] ss:$16 sps:$4 sm:$0xff]   ;;  %v10019_v38 = vld [vmem:[%s14304_s1 + $0xc80] ss:$16 sps:$4 sm:$0xff]  }
 0x15c   : > { %6792 = vmatpush1.bf16.msra.mxu0 %v9927_v39  ;;  %7448 = vmatpush1.bf16.msra.mxu1 %v9930_v40  ;;  %v10022_v39 = vld [vmem:[%s14304_s1 + $0xc88] ss:$16 sps:$4 sm:$0xff]   ;;  %v10027_v40 = vld [vmem:[%s14304_s1 + $0xca4] ss:$16 sps:$4 sm:$0xff]  }
 0x15d   : > { %6793 = vmatprep.subr.bf16.mxu0 %v9935_v41  ;;  %7449 = vmatprep.subr.bf16.mxu1 %v9938_v42  ;;  %v10030_v41 = vld [vmem:[%s14304_s1 + $0xcac] ss:$16 sps:$4 sm:$0xff]   ;;  %v10025_v42 = vld [vmem:[%s14304_s1 + $0xca0] ss:$16 sps:$4 sm:$0xff]  }
 0x160   : > { %6794 = vmatpush1.bf16.msra.mxu0 %v9933_v43  ;;  %7450 = vmatpush1.bf16.msra.mxu1 %v9936_v44  ;;  %v10028_v43 = vld [vmem:[%s14304_s1 + $0xca8] ss:$16 sps:$4 sm:$0xff]   ;;  %v10033_v44 = vld [vmem:[%s14304_s1 + $0xcc4] ss:$16 sps:$4 sm:$0xff]  }
 0x161   : > { %6795 = vmatprep.subr.bf16.mxu0 %v9941_v45  ;;  %7451 = vmatprep.subr.bf16.mxu1 %v9944_v46  ;;  %v10036_v45 = vld [vmem:[%s14304_s1 + $0xccc] ss:$16 sps:$4 sm:$0xff]   ;;  %v10031_v46 = vld [vmem:[%s14304_s1 + $0xcc0] ss:$16 sps:$4 sm:$0xff]  }
 0x164   : > { %6796 = vmatpush1.bf16.msra.mxu0 %v9939_v47  ;;  %7452 = vmatpush1.bf16.msra.mxu1 %v9942_v48  ;;  %v10034_v47 = vld [vmem:[%s14304_s1 + $0xcc8] ss:$16 sps:$4 sm:$0xff]   ;;  %v10039_v48 = vld [vmem:[%s14304_s1 + $0xce4] ss:$16 sps:$4 sm:$0xff]  }
 0x165   : > { %6797 = vmatprep.subr.bf16.mxu0 %v9947_v49  ;;  %7453 = vmatprep.subr.bf16.mxu1 %v9950_v50  ;;  %v10042_v49 = vld [vmem:[%s14304_s1 + $0xcec] ss:$16 sps:$4 sm:$0xff]   ;;  %v10037_v50 = vld [vmem:[%s14304_s1 + $0xce0] ss:$16 sps:$4 sm:$0xff]  }
 0x168   : > { %6798 = vmatpush1.bf16.msra.mxu0 %v9945_v51  ;;  %7454 = vmatpush1.bf16.msra.mxu1 %v9948_v52  ;;  %v10040_v51 = vld [vmem:[%s14304_s1 + $0xce8] ss:$16 sps:$4 sm:$0xff]   ;;  %v10045_v52 = vld [vmem:[%s14304_s1 + $0xd04] ss:$16 sps:$4 sm:$0xff]  }
 0x169   : > { %6799 = vmatprep.subr.bf16.mxu0 %v9953_v53  ;;  %7455 = vmatprep.subr.bf16.mxu1 %v9956_v54  ;;  %v10048_v53 = vld [vmem:[%s14304_s1 + $0xd0c] ss:$16 sps:$4 sm:$0xff]   ;;  %v10043_v54 = vld [vmem:[%s14304_s1 + $0xd00] ss:$16 sps:$4 sm:$0xff]  }
 0x16c   : > { %6800 = vmatpush1.bf16.msra.mxu0 %v9951_v55  ;;  %7456 = vmatpush1.bf16.msra.mxu1 %v9954_v56  ;;  %v10046_v55 = vld [vmem:[%s14304_s1 + $0xd08] ss:$16 sps:$4 sm:$0xff]   ;;  %v10051_v56 = vld [vmem:[%s14304_s1 + $0xd24] ss:$16 sps:$4 sm:$0xff]  }
 0x16d   : > { %6801 = vmatprep.subr.bf16.mxu0 %v9959_v57  ;;  %7457 = vmatprep.subr.bf16.mxu1 %v9962_v58  ;;  %v10054_v57 = vld [vmem:[%s14304_s1 + $0xd2c] ss:$16 sps:$4 sm:$0xff]   ;;  %v10049_v58 = vld [vmem:[%s14304_s1 + $0xd20] ss:$16 sps:$4 sm:$0xff]  }
 0x170   : > { %6802 = vmatpush1.bf16.msra.mxu0 %v9957_v59  ;;  %7458 = vmatpush1.bf16.msra.mxu1 %v9960_v60  ;;  %v10052_v59 = vld [vmem:[%s14304_s1 + $0xd28] ss:$16 sps:$4 sm:$0xff]   ;;  %v10057_v60 = vld [vmem:[%s14304_s1 + $0xd44] ss:$16 sps:$4 sm:$0xff]  }
 0x171   : > { %6803 = vmatprep.subr.bf16.mxu0 %v9965_v61  ;;  %7459 = vmatprep.subr.bf16.mxu1 %v9968_v62  ;;  %v10060_v61 = vld [vmem:[%s14304_s1 + $0xd4c] ss:$16 sps:$4 sm:$0xff]   ;;  %v10055_v62 = vld [vmem:[%s14304_s1 + $0xd40] ss:$16 sps:$4 sm:$0xff]  }
 0x174   : > { %6804 = vmatpush1.bf16.msra.mxu0 %v9963_v63  ;;  %7460 = vmatpush1.bf16.msra.mxu1 %v9966_v0  ;;  %v10058_v63 = vld [vmem:[%s14304_s1 + $0xd48] ss:$16 sps:$4 sm:$0xff]   ;;  %v10063_v0 = vld [vmem:[%s14304_s1 + $0xd64] ss:$16 sps:$4 sm:$0xff]  }
 0x175   : > { %6805 = vmatprep.subr.bf16.mxu0 %v9971_v1  ;;  %7461 = vmatprep.subr.bf16.mxu1 %v9974_v2  ;;  %v10066_v1 = vld [vmem:[%s14304_s1 + $0xd6c] ss:$16 sps:$4 sm:$0xff]   ;;  %v10061_v2 = vld [vmem:[%s14304_s1 + $0xd60] ss:$16 sps:$4 sm:$0xff]  }
 0x178   : > { %6806 = vmatpush1.bf16.msra.mxu0 %v9969_v3  ;;  %7462 = vmatpush1.bf16.msra.mxu1 %v9972_v4  ;;  %v10064_v3 = vld [vmem:[%s14304_s1 + $0xd68] ss:$16 sps:$4 sm:$0xff]   ;;  %v10069_v4 = vld [vmem:[%s14304_s1 + $0xd84] ss:$16 sps:$4 sm:$0xff]  }
 0x179   : > { %6807 = vmatprep.subr.bf16.mxu0 %v9977_v5  ;;  %7463 = vmatprep.subr.bf16.mxu1 %v9980_v6  ;;  %v10072_v5 = vld [vmem:[%s14304_s1 + $0xd8c] ss:$16 sps:$4 sm:$0xff]   ;;  %v10067_v6 = vld [vmem:[%s14304_s1 + $0xd80] ss:$16 sps:$4 sm:$0xff]  }
 0x17c   : > { %6808 = vmatpush1.bf16.msra.mxu0 %v9975_v7  ;;  %7464 = vmatpush1.bf16.msra.mxu1 %v9978_v8  ;;  %v10070_v7 = vld [vmem:[%s14304_s1 + $0xd88] ss:$16 sps:$4 sm:$0xff]   ;;  %v10075_v8 = vld [vmem:[%s14304_s1 + $0xda4] ss:$16 sps:$4 sm:$0xff]  }
 0x17d   : > { %6809 = vmatprep.subr.bf16.mxu0 %v9983_v9  ;;  %7465 = vmatprep.subr.bf16.mxu1 %v9986_v10  ;;  %v10078_v9 = vld [vmem:[%s14304_s1 + $0xdac] ss:$16 sps:$4 sm:$0xff]   ;;  %v10073_v10 = vld [vmem:[%s14304_s1 + $0xda0] ss:$16 sps:$4 sm:$0xff]  }
 0x180   : > { %6810 = vmatpush1.bf16.msra.mxu0 %v9981_v12  ;;  %7466 = vmatpush1.bf16.msra.mxu1 %v9984_v13  ;;  %v10076_v12 = vld [vmem:[%s14304_s1 + $0xda8] ss:$16 sps:$4 sm:$0xff]   ;;  %v10081_v13 = vld [vmem:[%s14304_s1 + $0xdc4] ss:$16 sps:$4 sm:$0xff]  }
 0x181   : > { %6811 = vmatprep.subr.bf16.mxu0 %v9989_v15  ;;  %7467 = vmatprep.subr.bf16.mxu1 %v9992_v16  ;;  %v10084_v15 = vld [vmem:[%s14304_s1 + $0xdcc] ss:$16 sps:$4 sm:$0xff]   ;;  %v10079_v16 = vld [vmem:[%s14304_s1 + $0xdc0] ss:$16 sps:$4 sm:$0xff]  }
 0x184   : > { %6812 = vmatpush1.bf16.msra.mxu0 %v9987_v17  ;;  %7468 = vmatpush1.bf16.msra.mxu1 %v9990_v19  ;;  %v10082_v17 = vld [vmem:[%s14304_s1 + $0xdc8] ss:$16 sps:$4 sm:$0xff]   ;;  %v10087_v19 = vld [vmem:[%s14304_s1 + $0xde4] ss:$16 sps:$4 sm:$0xff]  }
 0x185   : > { %6822 = vmatprep.subr.bf16.mxu0 %v9997_v14  ;;  %7478 = vmatprep.subr.bf16.mxu1 %v10000_v20  ;;  %v10090_v14 = vld [vmem:[%s14304_s1 + $0xdec] ss:$16 sps:$4 sm:$0xff]   ;;  %v10085_v20 = vld [vmem:[%s14304_s1 + $0xde0] ss:$16 sps:$4 sm:$0xff]  }
 0x187   : > { %6814 = vmatmul.mubr.bf16.vlgmr.msra.gmra.mrb[0].mxu0 %v8207_v11  ;;  %7470 = vmatmul.mubr.bf16.vlgmr.msra.gmra.mrb[0].mxu1 %v8207_v11  ;;  %v10088_v11 = vld [vmem:[%s14304_s1 + $0xde8] ss:$16 sps:$4 sm:$0xff]  }
 0x188   : > { %6823 = vmatpush1.bf16.msra.mxu0 %v9995_v22  ;;  %7479 = vmatpush1.bf16.msra.mxu1 %v9998_v23  ;;  %v10095_v22 = vld [vmem:[%s14304_s1 + $0xe04] ss:$16 sps:$4 sm:$0xff]   ;;  %v10098_v23 = vld [vmem:[%s14304_s1 + $0xe0c] ss:$16 sps:$4 sm:$0xff]  }
 0x189   : > { %6824 = vmatprep.subr.bf16.mxu0 %v10003_v24  ;;  %7480 = vmatprep.subr.bf16.mxu1 %v10006_v18  ;;  %v12453_v24 = vld [vmem:[%s11191_s29 + $0x38] sm:$0xff]  ;;  %v8209_v18 = vcombine.low %v12254_v21, %v12254_v21 }
 0x18a   : > { %6854 = vmatprep.mubr.bf16.mxu0 %v8210_v25  ;;  %7510 = vmatprep.mubr.bf16.mxu1 %v8210_v25  ;;  %v10093_v25 = vld [vmem:[%s14304_s1 + $0xe00] ss:$16 sps:$4 sm:$0xff]   ;;  %v10104_v21 = vld [vmem:[%s14304_s1 + $0xe2c] ss:$16 sps:$4 sm:$0xff]  }
 0x18c   : > { %6825 = vmatpush1.bf16.msra.mxu0 %v10001_v26  ;;  %7481 = vmatpush1.bf16.msra.mxu1 %v10004_v27  ;;  %v10096_v26 = vld [vmem:[%s14304_s1 + $0xe08] ss:$16 sps:$4 sm:$0xff]   ;;  %v10101_v27 = vld [vmem:[%s14304_s1 + $0xe24] ss:$16 sps:$4 sm:$0xff]  }
 0x18d   : > { %6826 = vmatprep.subr.bf16.mxu0 %v10009_v28  ;;  %7482 = vmatprep.subr.bf16.mxu1 %v10012_v29  ;;  %v8212_v28 = vcombine.high %v12453_v24, %v12453_v24  ;;  %v10099_v29 = vld [vmem:[%s14304_s1 + $0xe20] ss:$16 sps:$4 sm:$0xff]  }
 0x190   : > { %6827 = vmatpush1.bf16.msra.mxu0 %v10007_v30  ;;  %7483 = vmatpush1.bf16.msra.mxu1 %v10010_v31  ;;  %v10102_v30 = vld [vmem:[%s14304_s1 + $0xe28] ss:$16 sps:$4 sm:$0xff]   ;;  %v10107_v31 = vld [vmem:[%s14304_s1 + $0xe44] ss:$16 sps:$4 sm:$0xff]  }
 0x191   : > { %6828 = vmatprep.subr.bf16.mxu0 %v10015_v32  ;;  %7484 = vmatprep.subr.bf16.mxu1 %v10018_v33  ;;  %v10110_v32 = vld [vmem:[%s14304_s1 + $0xe4c] ss:$16 sps:$4 sm:$0xff]   ;;  %v10105_v33 = vld [vmem:[%s14304_s1 + $0xe40] ss:$16 sps:$4 sm:$0xff]  }
 0x194   : > { %6829 = vmatpush1.bf16.msra.mxu0 %v10013_v34  ;;  %7485 = vmatpush1.bf16.msra.mxu1 %v10016_v35  ;;  %v10108_v34 = vld [vmem:[%s14304_s1 + $0xe48] ss:$16 sps:$4 sm:$0xff]   ;;  %v10113_v35 = vld [vmem:[%s14304_s1 + $0xe64] ss:$16 sps:$4 sm:$0xff]  }
 0x195   : > { %6830 = vmatprep.subr.bf16.mxu0 %v10021_v36  ;;  %7486 = vmatprep.subr.bf16.mxu1 %v10024_v37  ;;  %v10116_v36 = vld [vmem:[%s14304_s1 + $0xe6c] ss:$16 sps:$4 sm:$0xff]   ;;  %v10111_v37 = vld [vmem:[%s14304_s1 + $0xe60] ss:$16 sps:$4 sm:$0xff]  }
 0x198   : > { %6831 = vmatpush1.bf16.msra.mxu0 %v10019_v38  ;;  %7487 = vmatpush1.bf16.msra.mxu1 %v10022_v39  ;;  %v10114_v38 = vld [vmem:[%s14304_s1 + $0xe68] ss:$16 sps:$4 sm:$0xff]   ;;  %v10119_v39 = vld [vmem:[%s14304_s1 + $0xe84] ss:$16 sps:$4 sm:$0xff]  }
 0x199   : > { %6832 = vmatprep.subr.bf16.mxu0 %v10027_v40  ;;  %7488 = vmatprep.subr.bf16.mxu1 %v10030_v41  ;;  %v10122_v40 = vld [vmem:[%s14304_s1 + $0xe8c] ss:$16 sps:$4 sm:$0xff]   ;;  %v10117_v41 = vld [vmem:[%s14304_s1 + $0xe80] ss:$16 sps:$4 sm:$0xff]  }
 0x19c   : > { %6833 = vmatpush1.bf16.msra.mxu0 %v10025_v42  ;;  %7489 = vmatpush1.bf16.msra.mxu1 %v10028_v43  ;;  %v10120_v42 = vld [vmem:[%s14304_s1 + $0xe88] ss:$16 sps:$4 sm:$0xff]   ;;  %v10125_v43 = vld [vmem:[%s14304_s1 + $0xea4] ss:$16 sps:$4 sm:$0xff]  }
 0x19d   : > { %6834 = vmatprep.subr.bf16.mxu0 %v10033_v44  ;;  %7490 = vmatprep.subr.bf16.mxu1 %v10036_v45  ;;  %v10128_v44 = vld [vmem:[%s14304_s1 + $0xeac] ss:$16 sps:$4 sm:$0xff]   ;;  %v10123_v45 = vld [vmem:[%s14304_s1 + $0xea0] ss:$16 sps:$4 sm:$0xff]  }
 0x1a0   : > { %6835 = vmatpush1.bf16.msra.mxu0 %v10031_v46  ;;  %7491 = vmatpush1.bf16.msra.mxu1 %v10034_v47  ;;  %v10126_v46 = vld [vmem:[%s14304_s1 + $0xea8] ss:$16 sps:$4 sm:$0xff]   ;;  %v10131_v47 = vld [vmem:[%s14304_s1 + $0xec4] ss:$16 sps:$4 sm:$0xff]  }
 0x1a1   : > { %6836 = vmatprep.subr.bf16.mxu0 %v10039_v48  ;;  %7492 = vmatprep.subr.bf16.mxu1 %v10042_v49  ;;  %v10134_v48 = vld [vmem:[%s14304_s1 + $0xecc] ss:$16 sps:$4 sm:$0xff]   ;;  %v10129_v49 = vld [vmem:[%s14304_s1 + $0xec0] ss:$16 sps:$4 sm:$0xff]  }
 0x1a4   : > { %6837 = vmatpush1.bf16.msra.mxu0 %v10037_v50  ;;  %7493 = vmatpush1.bf16.msra.mxu1 %v10040_v51  ;;  %v10132_v50 = vld [vmem:[%s14304_s1 + $0xec8] ss:$16 sps:$4 sm:$0xff]   ;;  %v10137_v51 = vld [vmem:[%s14304_s1 + $0xee4] ss:$16 sps:$4 sm:$0xff]  }
 0x1a5   : > { %6838 = vmatprep.subr.bf16.mxu0 %v10045_v52  ;;  %7494 = vmatprep.subr.bf16.mxu1 %v10048_v53  ;;  %v10140_v52 = vld [vmem:[%s14304_s1 + $0xeec] ss:$16 sps:$4 sm:$0xff]   ;;  %v10135_v53 = vld [vmem:[%s14304_s1 + $0xee0] ss:$16 sps:$4 sm:$0xff]  }
 0x1a8   : > { %6839 = vmatpush1.bf16.msra.mxu0 %v10043_v54  ;;  %7495 = vmatpush1.bf16.msra.mxu1 %v10046_v55  ;;  %v10138_v54 = vld [vmem:[%s14304_s1 + $0xee8] ss:$16 sps:$4 sm:$0xff]   ;;  %v10143_v55 = vld [vmem:[%s14304_s1 + $0xf04] ss:$16 sps:$4 sm:$0xff]  }
 0x1a9   : > { %6840 = vmatprep.subr.bf16.mxu0 %v10051_v56  ;;  %7496 = vmatprep.subr.bf16.mxu1 %v10054_v57  ;;  %v10146_v56 = vld [vmem:[%s14304_s1 + $0xf0c] ss:$16 sps:$4 sm:$0xff]   ;;  %v10141_v57 = vld [vmem:[%s14304_s1 + $0xf00] ss:$16 sps:$4 sm:$0xff]  }
 0x1ac   : > { %6841 = vmatpush1.bf16.msra.mxu0 %v10049_v58  ;;  %7497 = vmatpush1.bf16.msra.mxu1 %v10052_v59  ;;  %v10144_v58 = vld [vmem:[%s14304_s1 + $0xf08] ss:$16 sps:$4 sm:$0xff]   ;;  %v10149_v59 = vld [vmem:[%s14304_s1 + $0xf24] ss:$16 sps:$4 sm:$0xff]  }
 0x1ad   : > { %6842 = vmatprep.subr.bf16.mxu0 %v10057_v60  ;;  %7498 = vmatprep.subr.bf16.mxu1 %v10060_v61  ;;  %v10152_v60 = vld [vmem:[%s14304_s1 + $0xf2c] ss:$16 sps:$4 sm:$0xff]   ;;  %v10147_v61 = vld [vmem:[%s14304_s1 + $0xf20] ss:$16 sps:$4 sm:$0xff]  }
 0x1b0   : > { %6843 = vmatpush1.bf16.msra.mxu0 %v10055_v62  ;;  %7499 = vmatpush1.bf16.msra.mxu1 %v10058_v63  ;;  %v10150_v62 = vld [vmem:[%s14304_s1 + $0xf28] ss:$16 sps:$4 sm:$0xff]   ;;  %v10155_v63 = vld [vmem:[%s14304_s1 + $0xf44] ss:$16 sps:$4 sm:$0xff]  }
 0x1b1   : > { %6844 = vmatprep.subr.bf16.mxu0 %v10063_v0  ;;  %7500 = vmatprep.subr.bf16.mxu1 %v10066_v1  ;;  %v10158_v0 = vld [vmem:[%s14304_s1 + $0xf4c] ss:$16 sps:$4 sm:$0xff]   ;;  %v10153_v1 = vld [vmem:[%s14304_s1 + $0xf40] ss:$16 sps:$4 sm:$0xff]  }
 0x1b4   : > { %6845 = vmatpush1.bf16.msra.mxu0 %v10061_v2  ;;  %7501 = vmatpush1.bf16.msra.mxu1 %v10064_v3  ;;  %v10156_v2 = vld [vmem:[%s14304_s1 + $0xf48] ss:$16 sps:$4 sm:$0xff]   ;;  %v10161_v3 = vld [vmem:[%s14304_s1 + $0xf64] ss:$16 sps:$4 sm:$0xff]  }
 0x1b5   : > { %6846 = vmatprep.subr.bf16.mxu0 %v10069_v4  ;;  %7502 = vmatprep.subr.bf16.mxu1 %v10072_v5  ;;  %v10164_v4 = vld [vmem:[%s14304_s1 + $0xf6c] ss:$16 sps:$4 sm:$0xff]   ;;  %v10159_v5 = vld [vmem:[%s14304_s1 + $0xf60] ss:$16 sps:$4 sm:$0xff]  }
 0x1b8   : > { %6847 = vmatpush1.bf16.msra.mxu0 %v10067_v6  ;;  %7503 = vmatpush1.bf16.msra.mxu1 %v10070_v7  ;;  %v10162_v6 = vld [vmem:[%s14304_s1 + $0xf68] ss:$16 sps:$4 sm:$0xff]   ;;  %v10167_v7 = vld [vmem:[%s14304_s1 + $0xf84] ss:$16 sps:$4 sm:$0xff]  }
 0x1b9   : > { %6848 = vmatprep.subr.bf16.mxu0 %v10075_v8  ;;  %7504 = vmatprep.subr.bf16.mxu1 %v10078_v9  ;;  %v10170_v8 = vld [vmem:[%s14304_s1 + $0xf8c] ss:$16 sps:$4 sm:$0xff]   ;;  %v10165_v9 = vld [vmem:[%s14304_s1 + $0xf80] ss:$16 sps:$4 sm:$0xff]  }
 0x1bc   : > { %6849 = vmatpush1.bf16.msra.mxu0 %v10073_v10  ;;  %7505 = vmatpush1.bf16.msra.mxu1 %v10076_v12  ;;  %v10168_v10 = vld [vmem:[%s14304_s1 + $0xf88] ss:$16 sps:$4 sm:$0xff]   ;;  %v10173_v12 = vld [vmem:[%s14304_s1 + $0xfa4] ss:$16 sps:$4 sm:$0xff]  }
 0x1bd   : > { %6850 = vmatprep.subr.bf16.mxu0 %v10081_v13  ;;  %7506 = vmatprep.subr.bf16.mxu1 %v10084_v15  ;;  %v10176_v13 = vld [vmem:[%s14304_s1 + $0xfac] ss:$16 sps:$4 sm:$0xff]   ;;  %v10171_v15 = vld [vmem:[%s14304_s1 + $0xfa0] ss:$16 sps:$4 sm:$0xff]  }
 0x1c0   : > { %6851 = vmatpush1.bf16.msra.mxu0 %v10079_v16  ;;  %7507 = vmatpush1.bf16.msra.mxu1 %v10082_v17  ;;  %v10174_v16 = vld [vmem:[%s14304_s1 + $0xfa8] ss:$16 sps:$4 sm:$0xff]   ;;  %v10179_v17 = vld [vmem:[%s14304_s1 + $0xfc4] ss:$16 sps:$4 sm:$0xff]  }
 0x1c1   : > { %6852 = vmatprep.subr.bf16.mxu0 %v10087_v19  ;;  %7508 = vmatprep.subr.bf16.mxu1 %v10090_v14  ;;  %v10182_v19 = vld [vmem:[%s14304_s1 + $0xfcc] ss:$16 sps:$4 sm:$0xff]   ;;  %v10177_v14 = vld [vmem:[%s14304_s1 + $0xfc0] ss:$16 sps:$4 sm:$0xff]  }
 0x1c4   : > { %6853 = vmatpush1.bf16.msra.mxu0 %v10085_v20  ;;  %7509 = vmatpush1.bf16.msra.mxu1 %v10088_v11  ;;  %v10180_v20 = vld [vmem:[%s14304_s1 + $0xfc8] ss:$16 sps:$4 sm:$0xff]   ;;  %v10185_v11 = vld [vmem:[%s14304_s1 + $0xfe4] ss:$16 sps:$4 sm:$0xff]  }
 0x1c5   : > { %6863 = vmatprep.subr.bf16.mxu0 %v10095_v22  ;;  %7519 = vmatprep.subr.bf16.mxu1 %v10098_v23  ;;  %v10188_v22 = vld [vmem:[%s14304_s1 + $0xfec] ss:$16 sps:$4 sm:$0xff]   ;;  %v10183_v23 = vld [vmem:[%s14304_s1 + $0xfe0] ss:$16 sps:$4 sm:$0xff]  }
 0x1c7   : > { %6855 = vmatmul.mubr.bf16.vlgmr.msra.gmra.mrb[0].mxu0 %v8209_v18  ;;  %7511 = vmatmul.mubr.bf16.vlgmr.msra.gmra.mrb[0].mxu1 %v8209_v18  ;;  %v10186_v18 = vld [vmem:[%s14304_s1 + $0xfe8] ss:$16 sps:$4 sm:$0xff]  }
 0x1c8   : > { %6864 = vmatpush1.bf16.msra.mxu0 %v10093_v25  ;;  %7520 = vmatpush1.bf16.msra.mxu1 %v10096_v26  ;;  %v10193_v25 = vld [vmem:[%s14304_s1 + $0x1004] ss:$16 sps:$4 sm:$0xff]   ;;  %v10196_v26 = vld [vmem:[%s14304_s1 + $0x100c] ss:$16 sps:$4 sm:$0xff]  }
 0x1c9   : > { %6865 = vmatprep.subr.bf16.mxu0 %v10101_v27  ;;  %7521 = vmatprep.subr.bf16.mxu1 %v10104_v21  ;;  %v12652_v27 = vld [vmem:[%s11191_s29 + $0x40] sm:$0xff]  ;;  %v8211_v21 = vcombine.low %v12453_v24, %v12453_v24  ;;  %v10202_v24 = vld [vmem:[%s14304_s1 + $0x102c] ss:$16 sps:$4 sm:$0xff]  }
 0x1ca   : > { %6895 = vmatprep.mubr.bf16.mxu0 %v8212_v28  ;;  %7551 = vmatprep.mubr.bf16.mxu1 %v8212_v28  ;;  %v10191_v28 = vld [vmem:[%s14304_s1 + $0x1000] ss:$16 sps:$4 sm:$0xff]  }
 0x1cc   : > { %6866 = vmatpush1.bf16.msra.mxu0 %v10099_v29  ;;  %7522 = vmatpush1.bf16.msra.mxu1 %v10102_v30  ;;  %v10194_v29 = vld [vmem:[%s14304_s1 + $0x1008] ss:$16 sps:$4 sm:$0xff]   ;;  %v10199_v30 = vld [vmem:[%s14304_s1 + $0x1024] ss:$16 sps:$4 sm:$0xff]  }
 0x1cd   : > { %6867 = vmatprep.subr.bf16.mxu0 %v10107_v31  ;;  %7523 = vmatprep.subr.bf16.mxu1 %v10110_v32  ;;  %v8214_v31 = vcombine.high %v12652_v27, %v12652_v27  ;;  %v10197_v32 = vld [vmem:[%s14304_s1 + $0x1020] ss:$16 sps:$4 sm:$0xff]  }
 0x1d0   : > { %6868 = vmatpush1.bf16.msra.mxu0 %v10105_v33  ;;  %7524 = vmatpush1.bf16.msra.mxu1 %v10108_v34  ;;  %v10200_v33 = vld [vmem:[%s14304_s1 + $0x1028] ss:$16 sps:$4 sm:$0xff]   ;;  %v10205_v34 = vld [vmem:[%s14304_s1 + $0x1044] ss:$16 sps:$4 sm:$0xff]  }
 0x1d1   : > { %6869 = vmatprep.subr.bf16.mxu0 %v10113_v35  ;;  %7525 = vmatprep.subr.bf16.mxu1 %v10116_v36  ;;  %v10208_v35 = vld [vmem:[%s14304_s1 + $0x104c] ss:$16 sps:$4 sm:$0xff]   ;;  %v10203_v36 = vld [vmem:[%s14304_s1 + $0x1040] ss:$16 sps:$4 sm:$0xff]  }
 0x1d4   : > { %6870 = vmatpush1.bf16.msra.mxu0 %v10111_v37  ;;  %7526 = vmatpush1.bf16.msra.mxu1 %v10114_v38  ;;  %v10206_v37 = vld [vmem:[%s14304_s1 + $0x1048] ss:$16 sps:$4 sm:$0xff]   ;;  %v10211_v38 = vld [vmem:[%s14304_s1 + $0x1064] ss:$16 sps:$4 sm:$0xff]  }
 0x1d5   : > { %6871 = vmatprep.subr.bf16.mxu0 %v10119_v39  ;;  %7527 = vmatprep.subr.bf16.mxu1 %v10122_v40  ;;  %v10214_v39 = vld [vmem:[%s14304_s1 + $0x106c] ss:$16 sps:$4 sm:$0xff]   ;;  %v10209_v40 = vld [vmem:[%s14304_s1 + $0x1060] ss:$16 sps:$4 sm:$0xff]  }
 0x1d8   : > { %6872 = vmatpush1.bf16.msra.mxu0 %v10117_v41  ;;  %7528 = vmatpush1.bf16.msra.mxu1 %v10120_v42  ;;  %v10212_v41 = vld [vmem:[%s14304_s1 + $0x1068] ss:$16 sps:$4 sm:$0xff]   ;;  %v10217_v42 = vld [vmem:[%s14304_s1 + $0x1084] ss:$16 sps:$4 sm:$0xff]  }
 0x1d9   : > { %6873 = vmatprep.subr.bf16.mxu0 %v10125_v43  ;;  %7529 = vmatprep.subr.bf16.mxu1 %v10128_v44  ;;  %v10220_v43 = vld [vmem:[%s14304_s1 + $0x108c] ss:$16 sps:$4 sm:$0xff]   ;;  %v10215_v44 = vld [vmem:[%s14304_s1 + $0x1080] ss:$16 sps:$4 sm:$0xff]  }
 0x1dc   : > { %6874 = vmatpush1.bf16.msra.mxu0 %v10123_v45  ;;  %7530 = vmatpush1.bf16.msra.mxu1 %v10126_v46  ;;  %v10218_v45 = vld [vmem:[%s14304_s1 + $0x1088] ss:$16 sps:$4 sm:$0xff]   ;;  %v10223_v46 = vld [vmem:[%s14304_s1 + $0x10a4] ss:$16 sps:$4 sm:$0xff]  }
 0x1dd   : > { %6875 = vmatprep.subr.bf16.mxu0 %v10131_v47  ;;  %7531 = vmatprep.subr.bf16.mxu1 %v10134_v48  ;;  %v10226_v47 = vld [vmem:[%s14304_s1 + $0x10ac] ss:$16 sps:$4 sm:$0xff]   ;;  %v10221_v48 = vld [vmem:[%s14304_s1 + $0x10a0] ss:$16 sps:$4 sm:$0xff]  }
 0x1e0   : > { %6876 = vmatpush1.bf16.msra.mxu0 %v10129_v49  ;;  %7532 = vmatpush1.bf16.msra.mxu1 %v10132_v50  ;;  %v10224_v49 = vld [vmem:[%s14304_s1 + $0x10a8] ss:$16 sps:$4 sm:$0xff]   ;;  %v10229_v50 = vld [vmem:[%s14304_s1 + $0x10c4] ss:$16 sps:$4 sm:$0xff]  }
 0x1e1   : > { %6877 = vmatprep.subr.bf16.mxu0 %v10137_v51  ;;  %7533 = vmatprep.subr.bf16.mxu1 %v10140_v52  ;;  %v10232_v51 = vld [vmem:[%s14304_s1 + $0x10cc] ss:$16 sps:$4 sm:$0xff]   ;;  %v10227_v52 = vld [vmem:[%s14304_s1 + $0x10c0] ss:$16 sps:$4 sm:$0xff]  }
 0x1e4   : > { %6878 = vmatpush1.bf16.msra.mxu0 %v10135_v53  ;;  %7534 = vmatpush1.bf16.msra.mxu1 %v10138_v54  ;;  %v10230_v53 = vld [vmem:[%s14304_s1 + $0x10c8] ss:$16 sps:$4 sm:$0xff]   ;;  %v10235_v54 = vld [vmem:[%s14304_s1 + $0x10e4] ss:$16 sps:$4 sm:$0xff]  }
 0x1e5   : > { %6879 = vmatprep.subr.bf16.mxu0 %v10143_v55  ;;  %7535 = vmatprep.subr.bf16.mxu1 %v10146_v56  ;;  %v10238_v55 = vld [vmem:[%s14304_s1 + $0x10ec] ss:$16 sps:$4 sm:$0xff]   ;;  %v10233_v56 = vld [vmem:[%s14304_s1 + $0x10e0] ss:$16 sps:$4 sm:$0xff]  }
 0x1e8   : > { %6880 = vmatpush1.bf16.msra.mxu0 %v10141_v57  ;;  %7536 = vmatpush1.bf16.msra.mxu1 %v10144_v58  ;;  %v10236_v57 = vld [vmem:[%s14304_s1 + $0x10e8] ss:$16 sps:$4 sm:$0xff]   ;;  %v10241_v58 = vld [vmem:[%s14304_s1 + $0x1104] ss:$16 sps:$4 sm:$0xff]  }
 0x1e9   : > { %6881 = vmatprep.subr.bf16.mxu0 %v10149_v59  ;;  %7537 = vmatprep.subr.bf16.mxu1 %v10152_v60  ;;  %v10244_v59 = vld [vmem:[%s14304_s1 + $0x110c] ss:$16 sps:$4 sm:$0xff]   ;;  %v10239_v60 = vld [vmem:[%s14304_s1 + $0x1100] ss:$16 sps:$4 sm:$0xff]  }
 0x1ec   : > { %6882 = vmatpush1.bf16.msra.mxu0 %v10147_v61  ;;  %7538 = vmatpush1.bf16.msra.mxu1 %v10150_v62  ;;  %v10242_v61 = vld [vmem:[%s14304_s1 + $0x1108] ss:$16 sps:$4 sm:$0xff]   ;;  %v10247_v62 = vld [vmem:[%s14304_s1 + $0x1124] ss:$16 sps:$4 sm:$0xff]  }
 0x1ed   : > { %6883 = vmatprep.subr.bf16.mxu0 %v10155_v63  ;;  %7539 = vmatprep.subr.bf16.mxu1 %v10158_v0  ;;  %v10250_v63 = vld [vmem:[%s14304_s1 + $0x112c] ss:$16 sps:$4 sm:$0xff]   ;;  %v10245_v0 = vld [vmem:[%s14304_s1 + $0x1120] ss:$16 sps:$4 sm:$0xff]  }
 0x1f0   : > { %6884 = vmatpush1.bf16.msra.mxu0 %v10153_v1  ;;  %7540 = vmatpush1.bf16.msra.mxu1 %v10156_v2  ;;  %v10248_v1 = vld [vmem:[%s14304_s1 + $0x1128] ss:$16 sps:$4 sm:$0xff]   ;;  %v10253_v2 = vld [vmem:[%s14304_s1 + $0x1144] ss:$16 sps:$4 sm:$0xff]  }
 0x1f1   : > { %6885 = vmatprep.subr.bf16.mxu0 %v10161_v3  ;;  %7541 = vmatprep.subr.bf16.mxu1 %v10164_v4  ;;  %v10256_v3 = vld [vmem:[%s14304_s1 + $0x114c] ss:$16 sps:$4 sm:$0xff]   ;;  %v10251_v4 = vld [vmem:[%s14304_s1 + $0x1140] ss:$16 sps:$4 sm:$0xff]  }
 0x1f4   : > { %6886 = vmatpush1.bf16.msra.mxu0 %v10159_v5  ;;  %7542 = vmatpush1.bf16.msra.mxu1 %v10162_v6  ;;  %v10254_v5 = vld [vmem:[%s14304_s1 + $0x1148] ss:$16 sps:$4 sm:$0xff]   ;;  %v10259_v6 = vld [vmem:[%s14304_s1 + $0x1164] ss:$16 sps:$4 sm:$0xff]  }
 0x1f5   : > { %6887 = vmatprep.subr.bf16.mxu0 %v10167_v7  ;;  %7543 = vmatprep.subr.bf16.mxu1 %v10170_v8  ;;  %v10262_v7 = vld [vmem:[%s14304_s1 + $0x116c] ss:$16 sps:$4 sm:$0xff]   ;;  %v10257_v8 = vld [vmem:[%s14304_s1 + $0x1160] ss:$16 sps:$4 sm:$0xff]  }
 0x1f8   : > { %6888 = vmatpush1.bf16.msra.mxu0 %v10165_v9  ;;  %7544 = vmatpush1.bf16.msra.mxu1 %v10168_v10  ;;  %v10260_v9 = vld [vmem:[%s14304_s1 + $0x1168] ss:$16 sps:$4 sm:$0xff]   ;;  %v10265_v10 = vld [vmem:[%s14304_s1 + $0x1184] ss:$16 sps:$4 sm:$0xff]  }
 0x1f9   : > { %6889 = vmatprep.subr.bf16.mxu0 %v10173_v12  ;;  %7545 = vmatprep.subr.bf16.mxu1 %v10176_v13  ;;  %v10268_v12 = vld [vmem:[%s14304_s1 + $0x118c] ss:$16 sps:$4 sm:$0xff]   ;;  %v10263_v13 = vld [vmem:[%s14304_s1 + $0x1180] ss:$16 sps:$4 sm:$0xff]  }
 0x1fc   : > { %6890 = vmatpush1.bf16.msra.mxu0 %v10171_v15  ;;  %7546 = vmatpush1.bf16.msra.mxu1 %v10174_v16  ;;  %v10266_v15 = vld [vmem:[%s14304_s1 + $0x1188] ss:$16 sps:$4 sm:$0xff]   ;;  %v10271_v16 = vld [vmem:[%s14304_s1 + $0x11a4] ss:$16 sps:$4 sm:$0xff]  }
 0x1fd   : > { %6891 = vmatprep.subr.bf16.mxu0 %v10179_v17  ;;  %7547 = vmatprep.subr.bf16.mxu1 %v10182_v19  ;;  %v10274_v17 = vld [vmem:[%s14304_s1 + $0x11ac] ss:$16 sps:$4 sm:$0xff]   ;;  %v10269_v19 = vld [vmem:[%s14304_s1 + $0x11a0] ss:$16 sps:$4 sm:$0xff]  }
 0x200   : > { %6892 = vmatpush1.bf16.msra.mxu0 %v10177_v14  ;;  %7548 = vmatpush1.bf16.msra.mxu1 %v10180_v20  ;;  %v10272_v14 = vld [vmem:[%s14304_s1 + $0x11a8] ss:$16 sps:$4 sm:$0xff]   ;;  %v10277_v20 = vld [vmem:[%s14304_s1 + $0x11c4] ss:$16 sps:$4 sm:$0xff]  }
 0x201   : > { %6893 = vmatprep.subr.bf16.mxu0 %v10185_v11  ;;  %7549 = vmatprep.subr.bf16.mxu1 %v10188_v22  ;;  %v10280_v11 = vld [vmem:[%s14304_s1 + $0x11cc] ss:$16 sps:$4 sm:$0xff]   ;;  %v10275_v22 = vld [vmem:[%s14304_s1 + $0x11c0] ss:$16 sps:$4 sm:$0xff]  }
 0x204   : > { %6894 = vmatpush1.bf16.msra.mxu0 %v10183_v23  ;;  %7550 = vmatpush1.bf16.msra.mxu1 %v10186_v18  ;;  %v10278_v23 = vld [vmem:[%s14304_s1 + $0x11c8] ss:$16 sps:$4 sm:$0xff]   ;;  %v10283_v18 = vld [vmem:[%s14304_s1 + $0x11e4] ss:$16 sps:$4 sm:$0xff]  }
 0x205   : > { %6904 = vmatprep.subr.bf16.mxu0 %v10193_v25  ;;  %7560 = vmatprep.subr.bf16.mxu1 %v10196_v26  ;;  %v10286_v25 = vld [vmem:[%s14304_s1 + $0x11ec] ss:$16 sps:$4 sm:$0xff]   ;;  %v10281_v26 = vld [vmem:[%s14304_s1 + $0x11e0] ss:$16 sps:$4 sm:$0xff]  }
 0x207   : > { %6896 = vmatmul.mubr.bf16.vlgmr.msra.gmra.mrb[0].mxu0 %v8211_v21  ;;  %7552 = vmatmul.mubr.bf16.vlgmr.msra.gmra.mrb[0].mxu1 %v8211_v21  ;;  %v10284_v21 = vld [vmem:[%s14304_s1 + $0x11e8] ss:$16 sps:$4 sm:$0xff]  }
 0x208   : > { %6905 = vmatpush1.bf16.msra.mxu0 %v10191_v28  ;;  %7561 = vmatpush1.bf16.msra.mxu1 %v10194_v29  ;;  %v10291_v28 = vld [vmem:[%s14304_s1 + $0x1204] ss:$16 sps:$4 sm:$0xff]   ;;  %v10294_v29 = vld [vmem:[%s14304_s1 + $0x120c] ss:$16 sps:$4 sm:$0xff]  }
 0x209   : > { %6906 = vmatprep.subr.bf16.mxu0 %v10199_v30  ;;  %7562 = vmatprep.subr.bf16.mxu1 %v10202_v24  ;;  %v12851_v30 = vld [vmem:[%s11191_s29 + $0x48] sm:$0xff]  ;;  %v8213_v24 = vcombine.low %v12652_v27, %v12652_v27 }
 0x20a   : > { %6936 = vmatprep.mubr.bf16.mxu0 %v8214_v31  ;;  %7592 = vmatprep.mubr.bf16.mxu1 %v8214_v31  ;;  %v10289_v31 = vld [vmem:[%s14304_s1 + $0x1200] ss:$16 sps:$4 sm:$0xff]   ;;  %v10300_v27 = vld [vmem:[%s14304_s1 + $0x122c] ss:$16 sps:$4 sm:$0xff]  }
 0x20c   : > { %6907 = vmatpush1.bf16.msra.mxu0 %v10197_v32  ;;  %7563 = vmatpush1.bf16.msra.mxu1 %v10200_v33  ;;  %v10292_v32 = vld [vmem:[%s14304_s1 + $0x1208] ss:$16 sps:$4 sm:$0xff]   ;;  %v10297_v33 = vld [vmem:[%s14304_s1 + $0x1224] ss:$16 sps:$4 sm:$0xff]  }
 0x20d   : > { %6908 = vmatprep.subr.bf16.mxu0 %v10205_v34  ;;  %7564 = vmatprep.subr.bf16.mxu1 %v10208_v35  ;;  %v8216_v34 = vcombine.high %v12851_v30, %v12851_v30  ;;  %v10295_v35 = vld [vmem:[%s14304_s1 + $0x1220] ss:$16 sps:$4 sm:$0xff]  }
 0x210   : > { %6909 = vmatpush1.bf16.msra.mxu0 %v10203_v36  ;;  %7565 = vmatpush1.bf16.msra.mxu1 %v10206_v37  ;;  %v10298_v36 = vld [vmem:[%s14304_s1 + $0x1228] ss:$16 sps:$4 sm:$0xff]   ;;  %v10303_v37 = vld [vmem:[%s14304_s1 + $0x1244] ss:$16 sps:$4 sm:$0xff]  }
 0x211   : > { %6910 = vmatprep.subr.bf16.mxu0 %v10211_v38  ;;  %7566 = vmatprep.subr.bf16.mxu1 %v10214_v39  ;;  %v10306_v38 = vld [vmem:[%s14304_s1 + $0x124c] ss:$16 sps:$4 sm:$0xff]   ;;  %v10301_v39 = vld [vmem:[%s14304_s1 + $0x1240] ss:$16 sps:$4 sm:$0xff]  }
 0x214   : > { %6911 = vmatpush1.bf16.msra.mxu0 %v10209_v40  ;;  %7567 = vmatpush1.bf16.msra.mxu1 %v10212_v41  ;;  %v10304_v40 = vld [vmem:[%s14304_s1 + $0x1248] ss:$16 sps:$4 sm:$0xff]   ;;  %v10309_v41 = vld [vmem:[%s14304_s1 + $0x1264] ss:$16 sps:$4 sm:$0xff]  }
 0x215   : > { %6912 = vmatprep.subr.bf16.mxu0 %v10217_v42  ;;  %7568 = vmatprep.subr.bf16.mxu1 %v10220_v43  ;;  %v10312_v42 = vld [vmem:[%s14304_s1 + $0x126c] ss:$16 sps:$4 sm:$0xff]   ;;  %v10307_v43 = vld [vmem:[%s14304_s1 + $0x1260] ss:$16 sps:$4 sm:$0xff]  }
 0x218   : > { %6913 = vmatpush1.bf16.msra.mxu0 %v10215_v44  ;;  %7569 = vmatpush1.bf16.msra.mxu1 %v10218_v45  ;;  %v10310_v44 = vld [vmem:[%s14304_s1 + $0x1268] ss:$16 sps:$4 sm:$0xff]   ;;  %v10315_v45 = vld [vmem:[%s14304_s1 + $0x1284] ss:$16 sps:$4 sm:$0xff]  }
 0x219   : > { %6914 = vmatprep.subr.bf16.mxu0 %v10223_v46  ;;  %7570 = vmatprep.subr.bf16.mxu1 %v10226_v47  ;;  %v10318_v46 = vld [vmem:[%s14304_s1 + $0x128c] ss:$16 sps:$4 sm:$0xff]   ;;  %v10313_v47 = vld [vmem:[%s14304_s1 + $0x1280] ss:$16 sps:$4 sm:$0xff]  }
 0x21c   : > { %6915 = vmatpush1.bf16.msra.mxu0 %v10221_v48  ;;  %7571 = vmatpush1.bf16.msra.mxu1 %v10224_v49  ;;  %v10316_v48 = vld [vmem:[%s14304_s1 + $0x1288] ss:$16 sps:$4 sm:$0xff]   ;;  %v10321_v49 = vld [vmem:[%s14304_s1 + $0x12a4] ss:$16 sps:$4 sm:$0xff]  }
 0x21d   : > { %6916 = vmatprep.subr.bf16.mxu0 %v10229_v50  ;;  %7572 = vmatprep.subr.bf16.mxu1 %v10232_v51  ;;  %v10324_v50 = vld [vmem:[%s14304_s1 + $0x12ac] ss:$16 sps:$4 sm:$0xff]   ;;  %v10319_v51 = vld [vmem:[%s14304_s1 + $0x12a0] ss:$16 sps:$4 sm:$0xff]  }
 0x220   : > { %6917 = vmatpush1.bf16.msra.mxu0 %v10227_v52  ;;  %7573 = vmatpush1.bf16.msra.mxu1 %v10230_v53  ;;  %v10322_v52 = vld [vmem:[%s14304_s1 + $0x12a8] ss:$16 sps:$4 sm:$0xff]   ;;  %v10327_v53 = vld [vmem:[%s14304_s1 + $0x12c4] ss:$16 sps:$4 sm:$0xff]  }
 0x221   : > { %6918 = vmatprep.subr.bf16.mxu0 %v10235_v54  ;;  %7574 = vmatprep.subr.bf16.mxu1 %v10238_v55  ;;  %v10330_v54 = vld [vmem:[%s14304_s1 + $0x12cc] ss:$16 sps:$4 sm:$0xff]   ;;  %v10325_v55 = vld [vmem:[%s14304_s1 + $0x12c0] ss:$16 sps:$4 sm:$0xff]  }
 0x224   : > { %6919 = vmatpush1.bf16.msra.mxu0 %v10233_v56  ;;  %7575 = vmatpush1.bf16.msra.mxu1 %v10236_v57  ;;  %v10328_v56 = vld [vmem:[%s14304_s1 + $0x12c8] ss:$16 sps:$4 sm:$0xff]   ;;  %v10333_v57 = vld [vmem:[%s14304_s1 + $0x12e4] ss:$16 sps:$4 sm:$0xff]  }
 0x225   : > { %6920 = vmatprep.subr.bf16.mxu0 %v10241_v58  ;;  %7576 = vmatprep.subr.bf16.mxu1 %v10244_v59  ;;  %v10336_v58 = vld [vmem:[%s14304_s1 + $0x12ec] ss:$16 sps:$4 sm:$0xff]   ;;  %v10331_v59 = vld [vmem:[%s14304_s1 + $0x12e0] ss:$16 sps:$4 sm:$0xff]  }
 0x228   : > { %6921 = vmatpush1.bf16.msra.mxu0 %v10239_v60  ;;  %7577 = vmatpush1.bf16.msra.mxu1 %v10242_v61  ;;  %v10334_v60 = vld [vmem:[%s14304_s1 + $0x12e8] ss:$16 sps:$4 sm:$0xff]   ;;  %v10339_v61 = vld [vmem:[%s14304_s1 + $0x1304] ss:$16 sps:$4 sm:$0xff]  }
 0x229   : > { %6922 = vmatprep.subr.bf16.mxu0 %v10247_v62  ;;  %7578 = vmatprep.subr.bf16.mxu1 %v10250_v63  ;;  %v10342_v62 = vld [vmem:[%s14304_s1 + $0x130c] ss:$16 sps:$4 sm:$0xff]   ;;  %v10337_v63 = vld [vmem:[%s14304_s1 + $0x1300] ss:$16 sps:$4 sm:$0xff]  }
 0x22c   : > { %6923 = vmatpush1.bf16.msra.mxu0 %v10245_v0  ;;  %7579 = vmatpush1.bf16.msra.mxu1 %v10248_v1  ;;  %v10340_v0 = vld [vmem:[%s14304_s1 + $0x1308] ss:$16 sps:$4 sm:$0xff]   ;;  %v10345_v1 = vld [vmem:[%s14304_s1 + $0x1324] ss:$16 sps:$4 sm:$0xff]  }
 0x22d   : > { %6924 = vmatprep.subr.bf16.mxu0 %v10253_v2  ;;  %7580 = vmatprep.subr.bf16.mxu1 %v10256_v3  ;;  %v10348_v2 = vld [vmem:[%s14304_s1 + $0x132c] ss:$16 sps:$4 sm:$0xff]   ;;  %v10343_v3 = vld [vmem:[%s14304_s1 + $0x1320] ss:$16 sps:$4 sm:$0xff]  }
 0x230   : > { %6925 = vmatpush1.bf16.msra.mxu0 %v10251_v4  ;;  %7581 = vmatpush1.bf16.msra.mxu1 %v10254_v5  ;;  %v10346_v4 = vld [vmem:[%s14304_s1 + $0x1328] ss:$16 sps:$4 sm:$0xff]   ;;  %v10351_v5 = vld [vmem:[%s14304_s1 + $0x1344] ss:$16 sps:$4 sm:$0xff]  }
 0x231   : > { %6926 = vmatprep.subr.bf16.mxu0 %v10259_v6  ;;  %7582 = vmatprep.subr.bf16.mxu1 %v10262_v7  ;;  %v10354_v6 = vld [vmem:[%s14304_s1 + $0x134c] ss:$16 sps:$4 sm:$0xff]   ;;  %v10349_v7 = vld [vmem:[%s14304_s1 + $0x1340] ss:$16 sps:$4 sm:$0xff]  }
 0x234   : > { %6927 = vmatpush1.bf16.msra.mxu0 %v10257_v8  ;;  %7583 = vmatpush1.bf16.msra.mxu1 %v10260_v9  ;;  %v10352_v8 = vld [vmem:[%s14304_s1 + $0x1348] ss:$16 sps:$4 sm:$0xff]   ;;  %v10357_v9 = vld [vmem:[%s14304_s1 + $0x1364] ss:$16 sps:$4 sm:$0xff]  }
 0x235   : > { %6928 = vmatprep.subr.bf16.mxu0 %v10265_v10  ;;  %7584 = vmatprep.subr.bf16.mxu1 %v10268_v12  ;;  %v10360_v10 = vld [vmem:[%s14304_s1 + $0x136c] ss:$16 sps:$4 sm:$0xff]   ;;  %v10355_v12 = vld [vmem:[%s14304_s1 + $0x1360] ss:$16 sps:$4 sm:$0xff]  }
 0x238   : > { %6929 = vmatpush1.bf16.msra.mxu0 %v10263_v13  ;;  %7585 = vmatpush1.bf16.msra.mxu1 %v10266_v15  ;;  %v10358_v13 = vld [vmem:[%s14304_s1 + $0x1368] ss:$16 sps:$4 sm:$0xff]   ;;  %v10363_v15 = vld [vmem:[%s14304_s1 + $0x1384] ss:$16 sps:$4 sm:$0xff]  }
 0x239   : > { %6930 = vmatprep.subr.bf16.mxu0 %v10271_v16  ;;  %7586 = vmatprep.subr.bf16.mxu1 %v10274_v17  ;;  %v10366_v16 = vld [vmem:[%s14304_s1 + $0x138c] ss:$16 sps:$4 sm:$0xff]   ;;  %v10361_v17 = vld [vmem:[%s14304_s1 + $0x1380] ss:$16 sps:$4 sm:$0xff]  }
 0x23c   : > { %6931 = vmatpush1.bf16.msra.mxu0 %v10269_v19  ;;  %7587 = vmatpush1.bf16.msra.mxu1 %v10272_v14  ;;  %v10364_v19 = vld [vmem:[%s14304_s1 + $0x1388] ss:$16 sps:$4 sm:$0xff]   ;;  %v10369_v14 = vld [vmem:[%s14304_s1 + $0x13a4] ss:$16 sps:$4 sm:$0xff]  }
 0x23d   : > { %6932 = vmatprep.subr.bf16.mxu0 %v10277_v20  ;;  %7588 = vmatprep.subr.bf16.mxu1 %v10280_v11  ;;  %v10372_v20 = vld [vmem:[%s14304_s1 + $0x13ac] ss:$16 sps:$4 sm:$0xff]   ;;  %v10367_v11 = vld [vmem:[%s14304_s1 + $0x13a0] ss:$16 sps:$4 sm:$0xff]  }
 0x240   : > { %6933 = vmatpush1.bf16.msra.mxu0 %v10275_v22  ;;  %7589 = vmatpush1.bf16.msra.mxu1 %v10278_v23  ;;  %v10370_v22 = vld [vmem:[%s14304_s1 + $0x13a8] ss:$16 sps:$4 sm:$0xff]   ;;  %v10375_v23 = vld [vmem:[%s14304_s1 + $0x13c4] ss:$16 sps:$4 sm:$0xff]  }
 0x241   : > { %6934 = vmatprep.subr.bf16.mxu0 %v10283_v18  ;;  %7590 = vmatprep.subr.bf16.mxu1 %v10286_v25  ;;  %v10378_v18 = vld [vmem:[%s14304_s1 + $0x13cc] ss:$16 sps:$4 sm:$0xff]   ;;  %v10373_v25 = vld [vmem:[%s14304_s1 + $0x13c0] ss:$16 sps:$4 sm:$0xff]  }
 0x244   : > { %6935 = vmatpush1.bf16.msra.mxu0 %v10281_v26  ;;  %7591 = vmatpush1.bf16.msra.mxu1 %v10284_v21  ;;  %v10376_v26 = vld [vmem:[%s14304_s1 + $0x13c8] ss:$16 sps:$4 sm:$0xff]   ;;  %v10381_v21 = vld [vmem:[%s14304_s1 + $0x13e4] ss:$16 sps:$4 sm:$0xff]  }
 0x245   : > { %6945 = vmatprep.subr.bf16.mxu0 %v10291_v28  ;;  %7601 = vmatprep.subr.bf16.mxu1 %v10294_v29  ;;  %v10384_v28 = vld [vmem:[%s14304_s1 + $0x13ec] ss:$16 sps:$4 sm:$0xff]   ;;  %v10379_v29 = vld [vmem:[%s14304_s1 + $0x13e0] ss:$16 sps:$4 sm:$0xff]  }
 0x247   : > { %6937 = vmatmul.mubr.bf16.vlgmr.msra.gmra.mrb[0].mxu0 %v8213_v24  ;;  %7593 = vmatmul.mubr.bf16.vlgmr.msra.gmra.mrb[0].mxu1 %v8213_v24  ;;  %v10382_v24 = vld [vmem:[%s14304_s1 + $0x13e8] ss:$16 sps:$4 sm:$0xff]  }
 0x248   : > { %6946 = vmatpush1.bf16.msra.mxu0 %v10289_v31  ;;  %7602 = vmatpush1.bf16.msra.mxu1 %v10292_v32  ;;  %v10389_v31 = vld [vmem:[%s14304_s1 + $0x1404] ss:$16 sps:$4 sm:$0xff]   ;;  %v10392_v32 = vld [vmem:[%s14304_s1 + $0x140c] ss:$16 sps:$4 sm:$0xff]  }
 0x249   : > { %6947 = vmatprep.subr.bf16.mxu0 %v10297_v33  ;;  %7603 = vmatprep.subr.bf16.mxu1 %v10300_v27  ;;  %v8215_v33 = vcombine.low %v12851_v30, %v12851_v30  ;;  %v13052_v27 = vld [vmem:[%s11191_s29 + $0x50] sm:$0xff]  ;;  %v10398_v30 = vld [vmem:[%s14304_s1 + $0x142c] ss:$16 sps:$4 sm:$0xff]  }
 0x24a   : > { %6977 = vmatprep.mubr.bf16.mxu0 %v8216_v34  ;;  %7633 = vmatprep.mubr.bf16.mxu1 %v8216_v34  ;;  %v10387_v34 = vld [vmem:[%s14304_s1 + $0x1400] ss:$16 sps:$4 sm:$0xff]  }
 0x24c   : > { %6948 = vmatpush1.bf16.msra.mxu0 %v10295_v35  ;;  %7604 = vmatpush1.bf16.msra.mxu1 %v10298_v36  ;;  %v10390_v35 = vld [vmem:[%s14304_s1 + $0x1408] ss:$16 sps:$4 sm:$0xff]   ;;  %v10395_v36 = vld [vmem:[%s14304_s1 + $0x1424] ss:$16 sps:$4 sm:$0xff]  }
 0x24d   : > { %6949 = vmatprep.subr.bf16.mxu0 %v10303_v37  ;;  %7605 = vmatprep.subr.bf16.mxu1 %v10306_v38  ;;  %v8218_v37 = vcombine.high %v13052_v27, %v13052_v27  ;;  %v10393_v38 = vld [vmem:[%s14304_s1 + $0x1420] ss:$16 sps:$4 sm:$0xff]  }
 0x250   : > { %6950 = vmatpush1.bf16.msra.mxu0 %v10301_v39  ;;  %7606 = vmatpush1.bf16.msra.mxu1 %v10304_v40  ;;  %v10396_v39 = vld [vmem:[%s14304_s1 + $0x1428] ss:$16 sps:$4 sm:$0xff]   ;;  %v10401_v40 = vld [vmem:[%s14304_s1 + $0x1444] ss:$16 sps:$4 sm:$0xff]  }
 0x251   : > { %6951 = vmatprep.subr.bf16.mxu0 %v10309_v41  ;;  %7607 = vmatprep.subr.bf16.mxu1 %v10312_v42  ;;  %v10404_v41 = vld [vmem:[%s14304_s1 + $0x144c] ss:$16 sps:$4 sm:$0xff]   ;;  %v10399_v42 = vld [vmem:[%s14304_s1 + $0x1440] ss:$16 sps:$4 sm:$0xff]  }
 0x254   : > { %6952 = vmatpush1.bf16.msra.mxu0 %v10307_v43  ;;  %7608 = vmatpush1.bf16.msra.mxu1 %v10310_v44  ;;  %v10402_v43 = vld [vmem:[%s14304_s1 + $0x1448] ss:$16 sps:$4 sm:$0xff]   ;;  %v10407_v44 = vld [vmem:[%s14304_s1 + $0x1464] ss:$16 sps:$4 sm:$0xff]  }
 0x255   : > { %6953 = vmatprep.subr.bf16.mxu0 %v10315_v45  ;;  %7609 = vmatprep.subr.bf16.mxu1 %v10318_v46  ;;  %v10410_v45 = vld [vmem:[%s14304_s1 + $0x146c] ss:$16 sps:$4 sm:$0xff]   ;;  %v10405_v46 = vld [vmem:[%s14304_s1 + $0x1460] ss:$16 sps:$4 sm:$0xff]  }
 0x258   : > { %6954 = vmatpush1.bf16.msra.mxu0 %v10313_v47  ;;  %7610 = vmatpush1.bf16.msra.mxu1 %v10316_v48  ;;  %v10408_v47 = vld [vmem:[%s14304_s1 + $0x1468] ss:$16 sps:$4 sm:$0xff]   ;;  %v10413_v48 = vld [vmem:[%s14304_s1 + $0x1484] ss:$16 sps:$4 sm:$0xff]  }
 0x259   : > { %6955 = vmatprep.subr.bf16.mxu0 %v10321_v49  ;;  %7611 = vmatprep.subr.bf16.mxu1 %v10324_v50  ;;  %v10416_v49 = vld [vmem:[%s14304_s1 + $0x148c] ss:$16 sps:$4 sm:$0xff]   ;;  %v10411_v50 = vld [vmem:[%s14304_s1 + $0x1480] ss:$16 sps:$4 sm:$0xff]  }
 0x25c   : > { %6956 = vmatpush1.bf16.msra.mxu0 %v10319_v51  ;;  %7612 = vmatpush1.bf16.msra.mxu1 %v10322_v52  ;;  %v10414_v51 = vld [vmem:[%s14304_s1 + $0x1488] ss:$16 sps:$4 sm:$0xff]   ;;  %v10419_v52 = vld [vmem:[%s14304_s1 + $0x14a4] ss:$16 sps:$4 sm:$0xff]  }
 0x25d   : > { %6957 = vmatprep.subr.bf16.mxu0 %v10327_v53  ;;  %7613 = vmatprep.subr.bf16.mxu1 %v10330_v54  ;;  %v10422_v53 = vld [vmem:[%s14304_s1 + $0x14ac] ss:$16 sps:$4 sm:$0xff]   ;;  %v10417_v54 = vld [vmem:[%s14304_s1 + $0x14a0] ss:$16 sps:$4 sm:$0xff]  }
 0x260   : > { %6958 = vmatpush1.bf16.msra.mxu0 %v10325_v55  ;;  %7614 = vmatpush1.bf16.msra.mxu1 %v10328_v56  ;;  %v10420_v55 = vld [vmem:[%s14304_s1 + $0x14a8] ss:$16 sps:$4 sm:$0xff]   ;;  %v10425_v56 = vld [vmem:[%s14304_s1 + $0x14c4] ss:$16 sps:$4 sm:$0xff]  }
 0x261   : > { %6959 = vmatprep.subr.bf16.mxu0 %v10333_v57  ;;  %7615 = vmatprep.subr.bf16.mxu1 %v10336_v58  ;;  %v10428_v57 = vld [vmem:[%s14304_s1 + $0x14cc] ss:$16 sps:$4 sm:$0xff]   ;;  %v10423_v58 = vld [vmem:[%s14304_s1 + $0x14c0] ss:$16 sps:$4 sm:$0xff]  }
 0x264   : > { %6960 = vmatpush1.bf16.msra.mxu0 %v10331_v59  ;;  %7616 = vmatpush1.bf16.msra.mxu1 %v10334_v60  ;;  %v10426_v59 = vld [vmem:[%s14304_s1 + $0x14c8] ss:$16 sps:$4 sm:$0xff]   ;;  %v10431_v60 = vld [vmem:[%s14304_s1 + $0x14e4] ss:$16 sps:$4 sm:$0xff]  }
 0x265   : > { %6961 = vmatprep.subr.bf16.mxu0 %v10339_v61  ;;  %7617 = vmatprep.subr.bf16.mxu1 %v10342_v62  ;;  %v10434_v61 = vld [vmem:[%s14304_s1 + $0x14ec] ss:$16 sps:$4 sm:$0xff]   ;;  %v10429_v62 = vld [vmem:[%s14304_s1 + $0x14e0] ss:$16 sps:$4 sm:$0xff]  }
 0x268   : > { %6962 = vmatpush1.bf16.msra.mxu0 %v10337_v63  ;;  %7618 = vmatpush1.bf16.msra.mxu1 %v10340_v0  ;;  %v10432_v63 = vld [vmem:[%s14304_s1 + $0x14e8] ss:$16 sps:$4 sm:$0xff]   ;;  %v10437_v0 = vld [vmem:[%s14304_s1 + $0x1504] ss:$16 sps:$4 sm:$0xff]  }
 0x269   : > { %6963 = vmatprep.subr.bf16.mxu0 %v10345_v1  ;;  %7619 = vmatprep.subr.bf16.mxu1 %v10348_v2  ;;  %v10440_v1 = vld [vmem:[%s14304_s1 + $0x150c] ss:$16 sps:$4 sm:$0xff]   ;;  %v10435_v2 = vld [vmem:[%s14304_s1 + $0x1500] ss:$16 sps:$4 sm:$0xff]  }
 0x26c   : > { %6964 = vmatpush1.bf16.msra.mxu0 %v10343_v3  ;;  %7620 = vmatpush1.bf16.msra.mxu1 %v10346_v4  ;;  %v10438_v3 = vld [vmem:[%s14304_s1 + $0x1508] ss:$16 sps:$4 sm:$0xff]   ;;  %v10443_v4 = vld [vmem:[%s14304_s1 + $0x1524] ss:$16 sps:$4 sm:$0xff]  }
 0x26d   : > { %6965 = vmatprep.subr.bf16.mxu0 %v10351_v5  ;;  %7621 = vmatprep.subr.bf16.mxu1 %v10354_v6  ;;  %v10446_v5 = vld [vmem:[%s14304_s1 + $0x152c] ss:$16 sps:$4 sm:$0xff]   ;;  %v10441_v6 = vld [vmem:[%s14304_s1 + $0x1520] ss:$16 sps:$4 sm:$0xff]  }
 0x270   : > { %6966 = vmatpush1.bf16.msra.mxu0 %v10349_v7  ;;  %7622 = vmatpush1.bf16.msra.mxu1 %v10352_v8  ;;  %v10444_v7 = vld [vmem:[%s14304_s1 + $0x1528] ss:$16 sps:$4 sm:$0xff]   ;;  %v10449_v8 = vld [vmem:[%s14304_s1 + $0x1544] ss:$16 sps:$4 sm:$0xff]  }
 0x271   : > { %6967 = vmatprep.subr.bf16.mxu0 %v10357_v9  ;;  %7623 = vmatprep.subr.bf16.mxu1 %v10360_v10  ;;  %v10452_v9 = vld [vmem:[%s14304_s1 + $0x154c] ss:$16 sps:$4 sm:$0xff]   ;;  %v10447_v10 = vld [vmem:[%s14304_s1 + $0x1540] ss:$16 sps:$4 sm:$0xff]  }
 0x274   : > { %6968 = vmatpush1.bf16.msra.mxu0 %v10355_v12  ;;  %7624 = vmatpush1.bf16.msra.mxu1 %v10358_v13  ;;  %v10450_v12 = vld [vmem:[%s14304_s1 + $0x1548] ss:$16 sps:$4 sm:$0xff]   ;;  %v10455_v13 = vld [vmem:[%s14304_s1 + $0x1564] ss:$16 sps:$4 sm:$0xff]  }
 0x275   : > { %6969 = vmatprep.subr.bf16.mxu0 %v10363_v15  ;;  %7625 = vmatprep.subr.bf16.mxu1 %v10366_v16  ;;  %v10458_v15 = vld [vmem:[%s14304_s1 + $0x156c] ss:$16 sps:$4 sm:$0xff]   ;;  %v10453_v16 = vld [vmem:[%s14304_s1 + $0x1560] ss:$16 sps:$4 sm:$0xff]  }
 0x278   : > { %6970 = vmatpush1.bf16.msra.mxu0 %v10361_v17  ;;  %7626 = vmatpush1.bf16.msra.mxu1 %v10364_v19  ;;  %v10456_v17 = vld [vmem:[%s14304_s1 + $0x1568] ss:$16 sps:$4 sm:$0xff]   ;;  %v10461_v19 = vld [vmem:[%s14304_s1 + $0x1584] ss:$16 sps:$4 sm:$0xff]  }
 0x279   : > { %6971 = vmatprep.subr.bf16.mxu0 %v10369_v14  ;;  %7627 = vmatprep.subr.bf16.mxu1 %v10372_v20  ;;  %v10464_v14 = vld [vmem:[%s14304_s1 + $0x158c] ss:$16 sps:$4 sm:$0xff]   ;;  %v10459_v20 = vld [vmem:[%s14304_s1 + $0x1580] ss:$16 sps:$4 sm:$0xff]  }
 0x27c   : > { %6972 = vmatpush1.bf16.msra.mxu0 %v10367_v11  ;;  %7628 = vmatpush1.bf16.msra.mxu1 %v10370_v22  ;;  %v10462_v11 = vld [vmem:[%s14304_s1 + $0x1588] ss:$16 sps:$4 sm:$0xff]   ;;  %v10467_v22 = vld [vmem:[%s14304_s1 + $0x15a4] ss:$16 sps:$4 sm:$0xff]  }
 0x27d   : > { %6973 = vmatprep.subr.bf16.mxu0 %v10375_v23  ;;  %7629 = vmatprep.subr.bf16.mxu1 %v10378_v18  ;;  %v10470_v23 = vld [vmem:[%s14304_s1 + $0x15ac] ss:$16 sps:$4 sm:$0xff]   ;;  %v10465_v18 = vld [vmem:[%s14304_s1 + $0x15a0] ss:$16 sps:$4 sm:$0xff]  }
 0x280   : > { %6974 = vmatpush1.bf16.msra.mxu0 %v10373_v25  ;;  %7630 = vmatpush1.bf16.msra.mxu1 %v10376_v26  ;;  %v10468_v25 = vld [vmem:[%s14304_s1 + $0x15a8] ss:$16 sps:$4 sm:$0xff]   ;;  %v10473_v26 = vld [vmem:[%s14304_s1 + $0x15c4] ss:$16 sps:$4 sm:$0xff]  }
 0x281   : > { %6975 = vmatprep.subr.bf16.mxu0 %v10381_v21  ;;  %7631 = vmatprep.subr.bf16.mxu1 %v10384_v28  ;;  %v10476_v21 = vld [vmem:[%s14304_s1 + $0x15cc] ss:$16 sps:$4 sm:$0xff]   ;;  %v10471_v28 = vld [vmem:[%s14304_s1 + $0x15c0] ss:$16 sps:$4 sm:$0xff]  }
 0x284   : > { %6976 = vmatpush1.bf16.msra.mxu0 %v10379_v29  ;;  %7632 = vmatpush1.bf16.msra.mxu1 %v10382_v24  ;;  %v10474_v29 = vld [vmem:[%s14304_s1 + $0x15c8] ss:$16 sps:$4 sm:$0xff]   ;;  %v10479_v24 = vld [vmem:[%s14304_s1 + $0x15e4] ss:$16 sps:$4 sm:$0xff]  }
 0x285   : > { %6986 = vmatprep.subr.bf16.mxu0 %v10389_v31  ;;  %7642 = vmatprep.subr.bf16.mxu1 %v10392_v32  ;;  %v10482_v31 = vld [vmem:[%s14304_s1 + $0x15ec] ss:$16 sps:$4 sm:$0xff]   ;;  %v10477_v32 = vld [vmem:[%s14304_s1 + $0x15e0] ss:$16 sps:$4 sm:$0xff]  }
 0x287   : > { %6978 = vmatmul.mubr.bf16.vlgmr.msra.gmra.mrb[0].mxu0 %v8215_v33  ;;  %7634 = vmatmul.mubr.bf16.vlgmr.msra.gmra.mrb[0].mxu1 %v8215_v33  ;;  %v10480_v33 = vld [vmem:[%s14304_s1 + $0x15e8] ss:$16 sps:$4 sm:$0xff]  }
 0x288   : > { %6987 = vmatpush1.bf16.msra.mxu0 %v10387_v34  ;;  %7643 = vmatpush1.bf16.msra.mxu1 %v10390_v35  ;;  %v10487_v34 = vld [vmem:[%s14304_s1 + $0x1604] ss:$16 sps:$4 sm:$0xff]   ;;  %v10490_v35 = vld [vmem:[%s14304_s1 + $0x160c] ss:$16 sps:$4 sm:$0xff]  }
 0x289   : > { %6988 = vmatprep.subr.bf16.mxu0 %v10395_v36  ;;  %7644 = vmatprep.subr.bf16.mxu1 %v10398_v30  ;;  %v8217_v36 = vcombine.low %v13052_v27, %v13052_v27  ;;  %v13251_v30 = vld [vmem:[%s11191_s29 + $0x58] sm:$0xff] }
 0x28a   : > { %7018 = vmatprep.mubr.bf16.mxu0 %v8218_v37  ;;  %7674 = vmatprep.mubr.bf16.mxu1 %v8218_v37  ;;  %v10485_v37 = vld [vmem:[%s14304_s1 + $0x1600] ss:$16 sps:$4 sm:$0xff]   ;;  %v10496_v27 = vld [vmem:[%s14304_s1 + $0x162c] ss:$16 sps:$4 sm:$0xff]  }
 0x28c   : > { %6989 = vmatpush1.bf16.msra.mxu0 %v10393_v38  ;;  %7645 = vmatpush1.bf16.msra.mxu1 %v10396_v39  ;;  %v10488_v38 = vld [vmem:[%s14304_s1 + $0x1608] ss:$16 sps:$4 sm:$0xff]   ;;  %v10493_v39 = vld [vmem:[%s14304_s1 + $0x1624] ss:$16 sps:$4 sm:$0xff]  }
 0x28d   : > { %6990 = vmatprep.subr.bf16.mxu0 %v10401_v40  ;;  %7646 = vmatprep.subr.bf16.mxu1 %v10404_v41  ;;  %v8220_v40 = vcombine.high %v13251_v30, %v13251_v30  ;;  %v10491_v41 = vld [vmem:[%s14304_s1 + $0x1620] ss:$16 sps:$4 sm:$0xff]  }
 0x290   : > { %6991 = vmatpush1.bf16.msra.mxu0 %v10399_v42  ;;  %7647 = vmatpush1.bf16.msra.mxu1 %v10402_v43  ;;  %v10494_v42 = vld [vmem:[%s14304_s1 + $0x1628] ss:$16 sps:$4 sm:$0xff]   ;;  %v10499_v43 = vld [vmem:[%s14304_s1 + $0x1644] ss:$16 sps:$4 sm:$0xff]  }
 0x291   : > { %6992 = vmatprep.subr.bf16.mxu0 %v10407_v44  ;;  %7648 = vmatprep.subr.bf16.mxu1 %v10410_v45  ;;  %v10502_v44 = vld [vmem:[%s14304_s1 + $0x164c] ss:$16 sps:$4 sm:$0xff]   ;;  %v10497_v45 = vld [vmem:[%s14304_s1 + $0x1640] ss:$16 sps:$4 sm:$0xff]  }
 0x294   : > { %6993 = vmatpush1.bf16.msra.mxu0 %v10405_v46  ;;  %7649 = vmatpush1.bf16.msra.mxu1 %v10408_v47  ;;  %v10500_v46 = vld [vmem:[%s14304_s1 + $0x1648] ss:$16 sps:$4 sm:$0xff]   ;;  %v10505_v47 = vld [vmem:[%s14304_s1 + $0x1664] ss:$16 sps:$4 sm:$0xff]  }
 0x295   : > { %6994 = vmatprep.subr.bf16.mxu0 %v10413_v48  ;;  %7650 = vmatprep.subr.bf16.mxu1 %v10416_v49  ;;  %v10508_v48 = vld [vmem:[%s14304_s1 + $0x166c] ss:$16 sps:$4 sm:$0xff]   ;;  %v10503_v49 = vld [vmem:[%s14304_s1 + $0x1660] ss:$16 sps:$4 sm:$0xff]  }
 0x298   : > { %6995 = vmatpush1.bf16.msra.mxu0 %v10411_v50  ;;  %7651 = vmatpush1.bf16.msra.mxu1 %v10414_v51  ;;  %v10506_v50 = vld [vmem:[%s14304_s1 + $0x1668] ss:$16 sps:$4 sm:$0xff]   ;;  %v10511_v51 = vld [vmem:[%s14304_s1 + $0x1684] ss:$16 sps:$4 sm:$0xff]  }
 0x299   : > { %6996 = vmatprep.subr.bf16.mxu0 %v10419_v52  ;;  %7652 = vmatprep.subr.bf16.mxu1 %v10422_v53  ;;  %v10514_v52 = vld [vmem:[%s14304_s1 + $0x168c] ss:$16 sps:$4 sm:$0xff]   ;;  %v10509_v53 = vld [vmem:[%s14304_s1 + $0x1680] ss:$16 sps:$4 sm:$0xff]  }
 0x29c   : > { %6997 = vmatpush1.bf16.msra.mxu0 %v10417_v54  ;;  %7653 = vmatpush1.bf16.msra.mxu1 %v10420_v55  ;;  %v10512_v54 = vld [vmem:[%s14304_s1 + $0x1688] ss:$16 sps:$4 sm:$0xff]   ;;  %v10517_v55 = vld [vmem:[%s14304_s1 + $0x16a4] ss:$16 sps:$4 sm:$0xff]  }
 0x29d   : > { %6998 = vmatprep.subr.bf16.mxu0 %v10425_v56  ;;  %7654 = vmatprep.subr.bf16.mxu1 %v10428_v57  ;;  %v10520_v56 = vld [vmem:[%s14304_s1 + $0x16ac] ss:$16 sps:$4 sm:$0xff]   ;;  %v10515_v57 = vld [vmem:[%s14304_s1 + $0x16a0] ss:$16 sps:$4 sm:$0xff]  }
 0x2a0   : > { %6999 = vmatpush1.bf16.msra.mxu0 %v10423_v58  ;;  %7655 = vmatpush1.bf16.msra.mxu1 %v10426_v59  ;;  %v10518_v58 = vld [vmem:[%s14304_s1 + $0x16a8] ss:$16 sps:$4 sm:$0xff]   ;;  %v10523_v59 = vld [vmem:[%s14304_s1 + $0x16c4] ss:$16 sps:$4 sm:$0xff]  }
 0x2a1   : > { %7000 = vmatprep.subr.bf16.mxu0 %v10431_v60  ;;  %7656 = vmatprep.subr.bf16.mxu1 %v10434_v61  ;;  %v10526_v60 = vld [vmem:[%s14304_s1 + $0x16cc] ss:$16 sps:$4 sm:$0xff]   ;;  %v10521_v61 = vld [vmem:[%s14304_s1 + $0x16c0] ss:$16 sps:$4 sm:$0xff]  }
 0x2a4   : > { %7001 = vmatpush1.bf16.msra.mxu0 %v10429_v62  ;;  %7657 = vmatpush1.bf16.msra.mxu1 %v10432_v63  ;;  %v10524_v62 = vld [vmem:[%s14304_s1 + $0x16c8] ss:$16 sps:$4 sm:$0xff]   ;;  %v10529_v63 = vld [vmem:[%s14304_s1 + $0x16e4] ss:$16 sps:$4 sm:$0xff]  }
 0x2a5   : > { %7002 = vmatprep.subr.bf16.mxu0 %v10437_v0  ;;  %7658 = vmatprep.subr.bf16.mxu1 %v10440_v1  ;;  %v10532_v0 = vld [vmem:[%s14304_s1 + $0x16ec] ss:$16 sps:$4 sm:$0xff]   ;;  %v10527_v1 = vld [vmem:[%s14304_s1 + $0x16e0] ss:$16 sps:$4 sm:$0xff]  }
 0x2a8   : > { %7003 = vmatpush1.bf16.msra.mxu0 %v10435_v2  ;;  %7659 = vmatpush1.bf16.msra.mxu1 %v10438_v3  ;;  %v10530_v2 = vld [vmem:[%s14304_s1 + $0x16e8] ss:$16 sps:$4 sm:$0xff]   ;;  %v10535_v3 = vld [vmem:[%s14304_s1 + $0x1704] ss:$16 sps:$4 sm:$0xff]  }
 0x2a9   : > { %7004 = vmatprep.subr.bf16.mxu0 %v10443_v4  ;;  %7660 = vmatprep.subr.bf16.mxu1 %v10446_v5  ;;  %v10538_v4 = vld [vmem:[%s14304_s1 + $0x170c] ss:$16 sps:$4 sm:$0xff]   ;;  %v10533_v5 = vld [vmem:[%s14304_s1 + $0x1700] ss:$16 sps:$4 sm:$0xff]  }
 0x2ac   : > { %7005 = vmatpush1.bf16.msra.mxu0 %v10441_v6  ;;  %7661 = vmatpush1.bf16.msra.mxu1 %v10444_v7  ;;  %v10536_v6 = vld [vmem:[%s14304_s1 + $0x1708] ss:$16 sps:$4 sm:$0xff]   ;;  %v10541_v7 = vld [vmem:[%s14304_s1 + $0x1724] ss:$16 sps:$4 sm:$0xff]  }
 0x2ad   : > { %7006 = vmatprep.subr.bf16.mxu0 %v10449_v8  ;;  %7662 = vmatprep.subr.bf16.mxu1 %v10452_v9  ;;  %v10544_v8 = vld [vmem:[%s14304_s1 + $0x172c] ss:$16 sps:$4 sm:$0xff]   ;;  %v10539_v9 = vld [vmem:[%s14304_s1 + $0x1720] ss:$16 sps:$4 sm:$0xff]  }
 0x2b0   : > { %7007 = vmatpush1.bf16.msra.mxu0 %v10447_v10  ;;  %7663 = vmatpush1.bf16.msra.mxu1 %v10450_v12  ;;  %v10542_v10 = vld [vmem:[%s14304_s1 + $0x1728] ss:$16 sps:$4 sm:$0xff]   ;;  %v10547_v12 = vld [vmem:[%s14304_s1 + $0x1744] ss:$16 sps:$4 sm:$0xff]  }
 0x2b1   : > { %7008 = vmatprep.subr.bf16.mxu0 %v10455_v13  ;;  %7664 = vmatprep.subr.bf16.mxu1 %v10458_v15  ;;  %v10550_v13 = vld [vmem:[%s14304_s1 + $0x174c] ss:$16 sps:$4 sm:$0xff]   ;;  %v10545_v15 = vld [vmem:[%s14304_s1 + $0x1740] ss:$16 sps:$4 sm:$0xff]  }
 0x2b4   : > { %7009 = vmatpush1.bf16.msra.mxu0 %v10453_v16  ;;  %7665 = vmatpush1.bf16.msra.mxu1 %v10456_v17  ;;  %v10548_v16 = vld [vmem:[%s14304_s1 + $0x1748] ss:$16 sps:$4 sm:$0xff]   ;;  %v10553_v17 = vld [vmem:[%s14304_s1 + $0x1764] ss:$16 sps:$4 sm:$0xff]  }
 0x2b5   : > { %7010 = vmatprep.subr.bf16.mxu0 %v10461_v19  ;;  %7666 = vmatprep.subr.bf16.mxu1 %v10464_v14  ;;  %v10556_v19 = vld [vmem:[%s14304_s1 + $0x176c] ss:$16 sps:$4 sm:$0xff]   ;;  %v10551_v14 = vld [vmem:[%s14304_s1 + $0x1760] ss:$16 sps:$4 sm:$0xff]  }
 0x2b8   : > { %7011 = vmatpush1.bf16.msra.mxu0 %v10459_v20  ;;  %7667 = vmatpush1.bf16.msra.mxu1 %v10462_v11  ;;  %v10554_v20 = vld [vmem:[%s14304_s1 + $0x1768] ss:$16 sps:$4 sm:$0xff]   ;;  %v10559_v11 = vld [vmem:[%s14304_s1 + $0x1784] ss:$16 sps:$4 sm:$0xff]  }
 0x2b9   : > { %7012 = vmatprep.subr.bf16.mxu0 %v10467_v22  ;;  %7668 = vmatprep.subr.bf16.mxu1 %v10470_v23  ;;  %v10562_v22 = vld [vmem:[%s14304_s1 + $0x178c] ss:$16 sps:$4 sm:$0xff]   ;;  %v10557_v23 = vld [vmem:[%s14304_s1 + $0x1780] ss:$16 sps:$4 sm:$0xff]  }
 0x2bc   : > { %7013 = vmatpush1.bf16.msra.mxu0 %v10465_v18  ;;  %7669 = vmatpush1.bf16.msra.mxu1 %v10468_v25  ;;  %v10560_v18 = vld [vmem:[%s14304_s1 + $0x1788] ss:$16 sps:$4 sm:$0xff]   ;;  %v10565_v25 = vld [vmem:[%s14304_s1 + $0x17a4] ss:$16 sps:$4 sm:$0xff]  }
 0x2bd   : > { %7014 = vmatprep.subr.bf16.mxu0 %v10473_v26  ;;  %7670 = vmatprep.subr.bf16.mxu1 %v10476_v21  ;;  %v10568_v26 = vld [vmem:[%s14304_s1 + $0x17ac] ss:$16 sps:$4 sm:$0xff]   ;;  %v10563_v21 = vld [vmem:[%s14304_s1 + $0x17a0] ss:$16 sps:$4 sm:$0xff]  }
 0x2c0   : > { %7015 = vmatpush1.bf16.msra.mxu0 %v10471_v28  ;;  %7671 = vmatpush1.bf16.msra.mxu1 %v10474_v29  ;;  %v10566_v28 = vld [vmem:[%s14304_s1 + $0x17a8] ss:$16 sps:$4 sm:$0xff]   ;;  %v10571_v29 = vld [vmem:[%s14304_s1 + $0x17c4] ss:$16 sps:$4 sm:$0xff]  }
 0x2c1   : > { %7016 = vmatprep.subr.bf16.mxu0 %v10479_v24  ;;  %7672 = vmatprep.subr.bf16.mxu1 %v10482_v31  ;;  %v10574_v24 = vld [vmem:[%s14304_s1 + $0x17cc] ss:$16 sps:$4 sm:$0xff]   ;;  %v10569_v31 = vld [vmem:[%s14304_s1 + $0x17c0] ss:$16 sps:$4 sm:$0xff]  }
 0x2c4   : > { %7017 = vmatpush1.bf16.msra.mxu0 %v10477_v32  ;;  %7673 = vmatpush1.bf16.msra.mxu1 %v10480_v33  ;;  %v10572_v32 = vld [vmem:[%s14304_s1 + $0x17c8] ss:$16 sps:$4 sm:$0xff]   ;;  %v10577_v33 = vld [vmem:[%s14304_s1 + $0x17e4] ss:$16 sps:$4 sm:$0xff]  }
 0x2c5   : > { %7027 = vmatprep.subr.bf16.mxu0 %v10487_v34  ;;  %7683 = vmatprep.subr.bf16.mxu1 %v10490_v35  ;;  %v10580_v34 = vld [vmem:[%s14304_s1 + $0x17ec] ss:$16 sps:$4 sm:$0xff]   ;;  %v10575_v35 = vld [vmem:[%s14304_s1 + $0x17e0] ss:$16 sps:$4 sm:$0xff]  }
 0x2c7   : > { %7019 = vmatmul.mubr.bf16.vlgmr.msra.gmra.mrb[0].mxu0 %v8217_v36  ;;  %7675 = vmatmul.mubr.bf16.vlgmr.msra.gmra.mrb[0].mxu1 %v8217_v36  ;;  %v10578_v36 = vld [vmem:[%s14304_s1 + $0x17e8] ss:$16 sps:$4 sm:$0xff]  }
 0x2c8   : > { %7028 = vmatpush1.bf16.msra.mxu0 %v10485_v37  ;;  %7684 = vmatpush1.bf16.msra.mxu1 %v10488_v38  ;;  %v10585_v37 = vld [vmem:[%s14304_s1 + $0x1804] ss:$16 sps:$4 sm:$0xff]   ;;  %v10588_v38 = vld [vmem:[%s14304_s1 + $0x180c] ss:$16 sps:$4 sm:$0xff]  }
 0x2c9   : > { %7029 = vmatprep.subr.bf16.mxu0 %v10493_v39  ;;  %7685 = vmatprep.subr.bf16.mxu1 %v10496_v27  ;;  %v8219_v39 = vcombine.low %v13251_v30, %v13251_v30  ;;  %v13450_v27 = vld [vmem:[%s11191_s29 + $0x60] sm:$0xff]  ;;  %v10594_v30 = vld [vmem:[%s14304_s1 + $0x182c] ss:$16 sps:$4 sm:$0xff]  }
 0x2ca   : > { %7059 = vmatprep.mubr.bf16.mxu0 %v8220_v40  ;;  %7715 = vmatprep.mubr.bf16.mxu1 %v8220_v40  ;;  %v10583_v40 = vld [vmem:[%s14304_s1 + $0x1800] ss:$16 sps:$4 sm:$0xff]  }
 0x2cc   : > { %7030 = vmatpush1.bf16.msra.mxu0 %v10491_v41  ;;  %7686 = vmatpush1.bf16.msra.mxu1 %v10494_v42  ;;  %v10586_v41 = vld [vmem:[%s14304_s1 + $0x1808] ss:$16 sps:$4 sm:$0xff]   ;;  %v10591_v42 = vld [vmem:[%s14304_s1 + $0x1824] ss:$16 sps:$4 sm:$0xff]  }
 0x2cd   : > { %7031 = vmatprep.subr.bf16.mxu0 %v10499_v43  ;;  %7687 = vmatprep.subr.bf16.mxu1 %v10502_v44  ;;  %v8222_v43 = vcombine.high %v13450_v27, %v13450_v27  ;;  %v10589_v44 = vld [vmem:[%s14304_s1 + $0x1820] ss:$16 sps:$4 sm:$0xff]  }
 0x2d0   : > { %7032 = vmatpush1.bf16.msra.mxu0 %v10497_v45  ;;  %7688 = vmatpush1.bf16.msra.mxu1 %v10500_v46  ;;  %v10592_v45 = vld [vmem:[%s14304_s1 + $0x1828] ss:$16 sps:$4 sm:$0xff]   ;;  %v10597_v46 = vld [vmem:[%s14304_s1 + $0x1844] ss:$16 sps:$4 sm:$0xff]  }
 0x2d1   : > { %7033 = vmatprep.subr.bf16.mxu0 %v10505_v47  ;;  %7689 = vmatprep.subr.bf16.mxu1 %v10508_v48  ;;  %v10600_v47 = vld [vmem:[%s14304_s1 + $0x184c] ss:$16 sps:$4 sm:$0xff]   ;;  %v10595_v48 = vld [vmem:[%s14304_s1 + $0x1840] ss:$16 sps:$4 sm:$0xff]  }
 0x2d4   : > { %7034 = vmatpush1.bf16.msra.mxu0 %v10503_v49  ;;  %7690 = vmatpush1.bf16.msra.mxu1 %v10506_v50  ;;  %v10598_v49 = vld [vmem:[%s14304_s1 + $0x1848] ss:$16 sps:$4 sm:$0xff]   ;;  %v10603_v50 = vld [vmem:[%s14304_s1 + $0x1864] ss:$16 sps:$4 sm:$0xff]  }
 0x2d5   : > { %7035 = vmatprep.subr.bf16.mxu0 %v10511_v51  ;;  %7691 = vmatprep.subr.bf16.mxu1 %v10514_v52  ;;  %v10606_v51 = vld [vmem:[%s14304_s1 + $0x186c] ss:$16 sps:$4 sm:$0xff]   ;;  %v10601_v52 = vld [vmem:[%s14304_s1 + $0x1860] ss:$16 sps:$4 sm:$0xff]  }
 0x2d8   : > { %7036 = vmatpush1.bf16.msra.mxu0 %v10509_v53  ;;  %7692 = vmatpush1.bf16.msra.mxu1 %v10512_v54  ;;  %v10604_v53 = vld [vmem:[%s14304_s1 + $0x1868] ss:$16 sps:$4 sm:$0xff]   ;;  %v10609_v54 = vld [vmem:[%s14304_s1 + $0x1884] ss:$16 sps:$4 sm:$0xff]  }
 0x2d9   : > { %7037 = vmatprep.subr.bf16.mxu0 %v10517_v55  ;;  %7693 = vmatprep.subr.bf16.mxu1 %v10520_v56  ;;  %v10612_v55 = vld [vmem:[%s14304_s1 + $0x188c] ss:$16 sps:$4 sm:$0xff]   ;;  %v10607_v56 = vld [vmem:[%s14304_s1 + $0x1880] ss:$16 sps:$4 sm:$0xff]  }
 0x2dc   : > { %7038 = vmatpush1.bf16.msra.mxu0 %v10515_v57  ;;  %7694 = vmatpush1.bf16.msra.mxu1 %v10518_v58  ;;  %v10610_v57 = vld [vmem:[%s14304_s1 + $0x1888] ss:$16 sps:$4 sm:$0xff]   ;;  %v10615_v58 = vld [vmem:[%s14304_s1 + $0x18a4] ss:$16 sps:$4 sm:$0xff]  }
 0x2dd   : > { %7039 = vmatprep.subr.bf16.mxu0 %v10523_v59  ;;  %7695 = vmatprep.subr.bf16.mxu1 %v10526_v60  ;;  %v10618_v59 = vld [vmem:[%s14304_s1 + $0x18ac] ss:$16 sps:$4 sm:$0xff]   ;;  %v10613_v60 = vld [vmem:[%s14304_s1 + $0x18a0] ss:$16 sps:$4 sm:$0xff]  }
 0x2e0   : > { %7040 = vmatpush1.bf16.msra.mxu0 %v10521_v61  ;;  %7696 = vmatpush1.bf16.msra.mxu1 %v10524_v62  ;;  %v10616_v61 = vld [vmem:[%s14304_s1 + $0x18a8] ss:$16 sps:$4 sm:$0xff]   ;;  %v10621_v62 = vld [vmem:[%s14304_s1 + $0x18c4] ss:$16 sps:$4 sm:$0xff]  }
 0x2e1   : > { %7041 = vmatprep.subr.bf16.mxu0 %v10529_v63  ;;  %7697 = vmatprep.subr.bf16.mxu1 %v10532_v0  ;;  %v10624_v63 = vld [vmem:[%s14304_s1 + $0x18cc] ss:$16 sps:$4 sm:$0xff]   ;;  %v10619_v0 = vld [vmem:[%s14304_s1 + $0x18c0] ss:$16 sps:$4 sm:$0xff]  }
 0x2e4   : > { %7042 = vmatpush1.bf16.msra.mxu0 %v10527_v1  ;;  %7698 = vmatpush1.bf16.msra.mxu1 %v10530_v2  ;;  %v10622_v1 = vld [vmem:[%s14304_s1 + $0x18c8] ss:$16 sps:$4 sm:$0xff]   ;;  %v10627_v2 = vld [vmem:[%s14304_s1 + $0x18e4] ss:$16 sps:$4 sm:$0xff]  }
 0x2e5   : > { %7043 = vmatprep.subr.bf16.mxu0 %v10535_v3  ;;  %7699 = vmatprep.subr.bf16.mxu1 %v10538_v4  ;;  %v10630_v3 = vld [vmem:[%s14304_s1 + $0x18ec] ss:$16 sps:$4 sm:$0xff]   ;;  %v10625_v4 = vld [vmem:[%s14304_s1 + $0x18e0] ss:$16 sps:$4 sm:$0xff]  }
 0x2e8   : > { %7044 = vmatpush1.bf16.msra.mxu0 %v10533_v5  ;;  %7700 = vmatpush1.bf16.msra.mxu1 %v10536_v6  ;;  %v10628_v5 = vld [vmem:[%s14304_s1 + $0x18e8] ss:$16 sps:$4 sm:$0xff]   ;;  %v10633_v6 = vld [vmem:[%s14304_s1 + $0x1904] ss:$16 sps:$4 sm:$0xff]  }
 0x2e9   : > { %7045 = vmatprep.subr.bf16.mxu0 %v10541_v7  ;;  %7701 = vmatprep.subr.bf16.mxu1 %v10544_v8  ;;  %v10636_v7 = vld [vmem:[%s14304_s1 + $0x190c] ss:$16 sps:$4 sm:$0xff]   ;;  %v10631_v8 = vld [vmem:[%s14304_s1 + $0x1900] ss:$16 sps:$4 sm:$0xff]  }
 0x2ec   : > { %7046 = vmatpush1.bf16.msra.mxu0 %v10539_v9  ;;  %7702 = vmatpush1.bf16.msra.mxu1 %v10542_v10  ;;  %v10634_v9 = vld [vmem:[%s14304_s1 + $0x1908] ss:$16 sps:$4 sm:$0xff]   ;;  %v10639_v10 = vld [vmem:[%s14304_s1 + $0x1924] ss:$16 sps:$4 sm:$0xff]  }
 0x2ed   : > { %7047 = vmatprep.subr.bf16.mxu0 %v10547_v12  ;;  %7703 = vmatprep.subr.bf16.mxu1 %v10550_v13  ;;  %v10642_v12 = vld [vmem:[%s14304_s1 + $0x192c] ss:$16 sps:$4 sm:$0xff]   ;;  %v10637_v13 = vld [vmem:[%s14304_s1 + $0x1920] ss:$16 sps:$4 sm:$0xff]  }
 0x2f0   : > { %7048 = vmatpush1.bf16.msra.mxu0 %v10545_v15  ;;  %7704 = vmatpush1.bf16.msra.mxu1 %v10548_v16  ;;  %v10640_v15 = vld [vmem:[%s14304_s1 + $0x1928] ss:$16 sps:$4 sm:$0xff]   ;;  %v10645_v16 = vld [vmem:[%s14304_s1 + $0x1944] ss:$16 sps:$4 sm:$0xff]  }
 0x2f1   : > { %7049 = vmatprep.subr.bf16.mxu0 %v10553_v17  ;;  %7705 = vmatprep.subr.bf16.mxu1 %v10556_v19  ;;  %v10648_v17 = vld [vmem:[%s14304_s1 + $0x194c] ss:$16 sps:$4 sm:$0xff]   ;;  %v10643_v19 = vld [vmem:[%s14304_s1 + $0x1940] ss:$16 sps:$4 sm:$0xff]  }
 0x2f4   : > { %7050 = vmatpush1.bf16.msra.mxu0 %v10551_v14  ;;  %7706 = vmatpush1.bf16.msra.mxu1 %v10554_v20  ;;  %v10646_v14 = vld [vmem:[%s14304_s1 + $0x1948] ss:$16 sps:$4 sm:$0xff]   ;;  %v10651_v20 = vld [vmem:[%s14304_s1 + $0x1964] ss:$16 sps:$4 sm:$0xff]  }
 0x2f5   : > { %7051 = vmatprep.subr.bf16.mxu0 %v10559_v11  ;;  %7707 = vmatprep.subr.bf16.mxu1 %v10562_v22  ;;  %v10654_v11 = vld [vmem:[%s14304_s1 + $0x196c] ss:$16 sps:$4 sm:$0xff]   ;;  %v10649_v22 = vld [vmem:[%s14304_s1 + $0x1960] ss:$16 sps:$4 sm:$0xff]  }
 0x2f8   : > { %7052 = vmatpush1.bf16.msra.mxu0 %v10557_v23  ;;  %7708 = vmatpush1.bf16.msra.mxu1 %v10560_v18  ;;  %v10652_v23 = vld [vmem:[%s14304_s1 + $0x1968] ss:$16 sps:$4 sm:$0xff]   ;;  %v10657_v18 = vld [vmem:[%s14304_s1 + $0x1984] ss:$16 sps:$4 sm:$0xff]  }
 0x2f9   : > { %7053 = vmatprep.subr.bf16.mxu0 %v10565_v25  ;;  %7709 = vmatprep.subr.bf16.mxu1 %v10568_v26  ;;  %v10660_v25 = vld [vmem:[%s14304_s1 + $0x198c] ss:$16 sps:$4 sm:$0xff]   ;;  %v10655_v26 = vld [vmem:[%s14304_s1 + $0x1980] ss:$16 sps:$4 sm:$0xff]  }
 0x2fc   : > { %7054 = vmatpush1.bf16.msra.mxu0 %v10563_v21  ;;  %7710 = vmatpush1.bf16.msra.mxu1 %v10566_v28  ;;  %v10658_v21 = vld [vmem:[%s14304_s1 + $0x1988] ss:$16 sps:$4 sm:$0xff]   ;;  %v10663_v28 = vld [vmem:[%s14304_s1 + $0x19a4] ss:$16 sps:$4 sm:$0xff]  }
 0x2fd   : > { %7055 = vmatprep.subr.bf16.mxu0 %v10571_v29  ;;  %7711 = vmatprep.subr.bf16.mxu1 %v10574_v24  ;;  %v10666_v29 = vld [vmem:[%s14304_s1 + $0x19ac] ss:$16 sps:$4 sm:$0xff]   ;;  %v10661_v24 = vld [vmem:[%s14304_s1 + $0x19a0] ss:$16 sps:$4 sm:$0xff]  }
 0x300   : > { %7056 = vmatpush1.bf16.msra.mxu0 %v10569_v31  ;;  %7712 = vmatpush1.bf16.msra.mxu1 %v10572_v32  ;;  %v10664_v31 = vld [vmem:[%s14304_s1 + $0x19a8] ss:$16 sps:$4 sm:$0xff]   ;;  %v10669_v32 = vld [vmem:[%s14304_s1 + $0x19c4] ss:$16 sps:$4 sm:$0xff]  }
 0x301   : > { %7057 = vmatprep.subr.bf16.mxu0 %v10577_v33  ;;  %7713 = vmatprep.subr.bf16.mxu1 %v10580_v34  ;;  %v10672_v33 = vld [vmem:[%s14304_s1 + $0x19cc] ss:$16 sps:$4 sm:$0xff]   ;;  %v10667_v34 = vld [vmem:[%s14304_s1 + $0x19c0] ss:$16 sps:$4 sm:$0xff]  }
 0x304   : > { %7058 = vmatpush1.bf16.msra.mxu0 %v10575_v35  ;;  %7714 = vmatpush1.bf16.msra.mxu1 %v10578_v36  ;;  %v10670_v35 = vld [vmem:[%s14304_s1 + $0x19c8] ss:$16 sps:$4 sm:$0xff]   ;;  %v10675_v36 = vld [vmem:[%s14304_s1 + $0x19e4] ss:$16 sps:$4 sm:$0xff]  }
 0x305   : > { %7068 = vmatprep.subr.bf16.mxu0 %v10585_v37  ;;  %7724 = vmatprep.subr.bf16.mxu1 %v10588_v38  ;;  %v10678_v37 = vld [vmem:[%s14304_s1 + $0x19ec] ss:$16 sps:$4 sm:$0xff]   ;;  %v10673_v38 = vld [vmem:[%s14304_s1 + $0x19e0] ss:$16 sps:$4 sm:$0xff]  }
 0x307   : > { %7060 = vmatmul.mubr.bf16.vlgmr.msra.gmra.mrb[0].mxu0 %v8219_v39  ;;  %7716 = vmatmul.mubr.bf16.vlgmr.msra.gmra.mrb[0].mxu1 %v8219_v39  ;;  %v10676_v39 = vld [vmem:[%s14304_s1 + $0x19e8] ss:$16 sps:$4 sm:$0xff]  }
 0x308   : > { %7069 = vmatpush1.bf16.msra.mxu0 %v10583_v40  ;;  %7725 = vmatpush1.bf16.msra.mxu1 %v10586_v41  ;;  %v10683_v40 = vld [vmem:[%s14304_s1 + $0x1a04] ss:$16 sps:$4 sm:$0xff]   ;;  %v10686_v41 = vld [vmem:[%s14304_s1 + $0x1a0c] ss:$16 sps:$4 sm:$0xff]  }
 0x309   : > { %7070 = vmatprep.subr.bf16.mxu0 %v10591_v42  ;;  %7726 = vmatprep.subr.bf16.mxu1 %v10594_v30  ;;  %v8221_v42 = vcombine.low %v13450_v27, %v13450_v27  ;;  %v13649_v30 = vld [vmem:[%s11191_s29 + $0x68] sm:$0xff] }
 0x30a   : > { %7100 = vmatprep.mubr.bf16.mxu0 %v8222_v43  ;;  %7756 = vmatprep.mubr.bf16.mxu1 %v8222_v43  ;;  %v10681_v43 = vld [vmem:[%s14304_s1 + $0x1a00] ss:$16 sps:$4 sm:$0xff]   ;;  %v10692_v27 = vld [vmem:[%s14304_s1 + $0x1a2c] ss:$16 sps:$4 sm:$0xff]  }
 0x30c   : > { %7071 = vmatpush1.bf16.msra.mxu0 %v10589_v44  ;;  %7727 = vmatpush1.bf16.msra.mxu1 %v10592_v45  ;;  %v10684_v44 = vld [vmem:[%s14304_s1 + $0x1a08] ss:$16 sps:$4 sm:$0xff]   ;;  %v10689_v45 = vld [vmem:[%s14304_s1 + $0x1a24] ss:$16 sps:$4 sm:$0xff]  }
 0x30d   : > { %7072 = vmatprep.subr.bf16.mxu0 %v10597_v46  ;;  %7728 = vmatprep.subr.bf16.mxu1 %v10600_v47  ;;  %v8224_v46 = vcombine.high %v13649_v30, %v13649_v30  ;;  %v10687_v47 = vld [vmem:[%s14304_s1 + $0x1a20] ss:$16 sps:$4 sm:$0xff]  }
 0x310   : > { %7073 = vmatpush1.bf16.msra.mxu0 %v10595_v48  ;;  %7729 = vmatpush1.bf16.msra.mxu1 %v10598_v49  ;;  %v10690_v48 = vld [vmem:[%s14304_s1 + $0x1a28] ss:$16 sps:$4 sm:$0xff]   ;;  %v10695_v49 = vld [vmem:[%s14304_s1 + $0x1a44] ss:$16 sps:$4 sm:$0xff]  }
 0x311   : > { %7074 = vmatprep.subr.bf16.mxu0 %v10603_v50  ;;  %7730 = vmatprep.subr.bf16.mxu1 %v10606_v51  ;;  %v10698_v50 = vld [vmem:[%s14304_s1 + $0x1a4c] ss:$16 sps:$4 sm:$0xff]   ;;  %v10693_v51 = vld [vmem:[%s14304_s1 + $0x1a40] ss:$16 sps:$4 sm:$0xff]  }
 0x314   : > { %7075 = vmatpush1.bf16.msra.mxu0 %v10601_v52  ;;  %7731 = vmatpush1.bf16.msra.mxu1 %v10604_v53  ;;  %v10696_v52 = vld [vmem:[%s14304_s1 + $0x1a48] ss:$16 sps:$4 sm:$0xff]   ;;  %v10701_v53 = vld [vmem:[%s14304_s1 + $0x1a64] ss:$16 sps:$4 sm:$0xff]  }
 0x315   : > { %7076 = vmatprep.subr.bf16.mxu0 %v10609_v54  ;;  %7732 = vmatprep.subr.bf16.mxu1 %v10612_v55  ;;  %v10704_v54 = vld [vmem:[%s14304_s1 + $0x1a6c] ss:$16 sps:$4 sm:$0xff]   ;;  %v10699_v55 = vld [vmem:[%s14304_s1 + $0x1a60] ss:$16 sps:$4 sm:$0xff]  }
 0x318   : > { %7077 = vmatpush1.bf16.msra.mxu0 %v10607_v56  ;;  %7733 = vmatpush1.bf16.msra.mxu1 %v10610_v57  ;;  %v10702_v56 = vld [vmem:[%s14304_s1 + $0x1a68] ss:$16 sps:$4 sm:$0xff]   ;;  %v10707_v57 = vld [vmem:[%s14304_s1 + $0x1a84] ss:$16 sps:$4 sm:$0xff]  }
 0x319   : > { %7078 = vmatprep.subr.bf16.mxu0 %v10615_v58  ;;  %7734 = vmatprep.subr.bf16.mxu1 %v10618_v59  ;;  %v10710_v58 = vld [vmem:[%s14304_s1 + $0x1a8c] ss:$16 sps:$4 sm:$0xff]   ;;  %v10705_v59 = vld [vmem:[%s14304_s1 + $0x1a80] ss:$16 sps:$4 sm:$0xff]  }
 0x31c   : > { %7079 = vmatpush1.bf16.msra.mxu0 %v10613_v60  ;;  %7735 = vmatpush1.bf16.msra.mxu1 %v10616_v61  ;;  %v10708_v60 = vld [vmem:[%s14304_s1 + $0x1a88] ss:$16 sps:$4 sm:$0xff]   ;;  %v10713_v61 = vld [vmem:[%s14304_s1 + $0x1aa4] ss:$16 sps:$4 sm:$0xff]  }
 0x31d   : > { %7080 = vmatprep.subr.bf16.mxu0 %v10621_v62  ;;  %7736 = vmatprep.subr.bf16.mxu1 %v10624_v63  ;;  %v10716_v62 = vld [vmem:[%s14304_s1 + $0x1aac] ss:$16 sps:$4 sm:$0xff]   ;;  %v10711_v63 = vld [vmem:[%s14304_s1 + $0x1aa0] ss:$16 sps:$4 sm:$0xff]  }
 0x320   : > { %7081 = vmatpush1.bf16.msra.mxu0 %v10619_v0  ;;  %7737 = vmatpush1.bf16.msra.mxu1 %v10622_v1  ;;  %v10714_v0 = vld [vmem:[%s14304_s1 + $0x1aa8] ss:$16 sps:$4 sm:$0xff]   ;;  %v10719_v1 = vld [vmem:[%s14304_s1 + $0x1ac4] ss:$16 sps:$4 sm:$0xff]  }
 0x321   : > { %7082 = vmatprep.subr.bf16.mxu0 %v10627_v2  ;;  %7738 = vmatprep.subr.bf16.mxu1 %v10630_v3  ;;  %v10722_v2 = vld [vmem:[%s14304_s1 + $0x1acc] ss:$16 sps:$4 sm:$0xff]   ;;  %v10717_v3 = vld [vmem:[%s14304_s1 + $0x1ac0] ss:$16 sps:$4 sm:$0xff]  }
 0x324   : > { %7083 = vmatpush1.bf16.msra.mxu0 %v10625_v4  ;;  %7739 = vmatpush1.bf16.msra.mxu1 %v10628_v5  ;;  %v10720_v4 = vld [vmem:[%s14304_s1 + $0x1ac8] ss:$16 sps:$4 sm:$0xff]   ;;  %v10725_v5 = vld [vmem:[%s14304_s1 + $0x1ae4] ss:$16 sps:$4 sm:$0xff]  }
 0x325   : > { %7084 = vmatprep.subr.bf16.mxu0 %v10633_v6  ;;  %7740 = vmatprep.subr.bf16.mxu1 %v10636_v7  ;;  %v10728_v6 = vld [vmem:[%s14304_s1 + $0x1aec] ss:$16 sps:$4 sm:$0xff]   ;;  %v10723_v7 = vld [vmem:[%s14304_s1 + $0x1ae0] ss:$16 sps:$4 sm:$0xff]  }
 0x328   : > { %7085 = vmatpush1.bf16.msra.mxu0 %v10631_v8  ;;  %7741 = vmatpush1.bf16.msra.mxu1 %v10634_v9  ;;  %v10726_v8 = vld [vmem:[%s14304_s1 + $0x1ae8] ss:$16 sps:$4 sm:$0xff]   ;;  %v10731_v9 = vld [vmem:[%s14304_s1 + $0x1b04] ss:$16 sps:$4 sm:$0xff]  }
 0x329   : > { %7086 = vmatprep.subr.bf16.mxu0 %v10639_v10  ;;  %7742 = vmatprep.subr.bf16.mxu1 %v10642_v12  ;;  %v10734_v10 = vld [vmem:[%s14304_s1 + $0x1b0c] ss:$16 sps:$4 sm:$0xff]   ;;  %v10729_v12 = vld [vmem:[%s14304_s1 + $0x1b00] ss:$16 sps:$4 sm:$0xff]  }
 0x32c   : > { %7087 = vmatpush1.bf16.msra.mxu0 %v10637_v13  ;;  %7743 = vmatpush1.bf16.msra.mxu1 %v10640_v15  ;;  %v10732_v13 = vld [vmem:[%s14304_s1 + $0x1b08] ss:$16 sps:$4 sm:$0xff]   ;;  %v10737_v15 = vld [vmem:[%s14304_s1 + $0x1b24] ss:$16 sps:$4 sm:$0xff]  }
 0x32d   : > { %7088 = vmatprep.subr.bf16.mxu0 %v10645_v16  ;;  %7744 = vmatprep.subr.bf16.mxu1 %v10648_v17  ;;  %v10740_v16 = vld [vmem:[%s14304_s1 + $0x1b2c] ss:$16 sps:$4 sm:$0xff]   ;;  %v10735_v17 = vld [vmem:[%s14304_s1 + $0x1b20] ss:$16 sps:$4 sm:$0xff]  }
 0x330   : > { %7089 = vmatpush1.bf16.msra.mxu0 %v10643_v19  ;;  %7745 = vmatpush1.bf16.msra.mxu1 %v10646_v14  ;;  %v10738_v19 = vld [vmem:[%s14304_s1 + $0x1b28] ss:$16 sps:$4 sm:$0xff]   ;;  %v10743_v14 = vld [vmem:[%s14304_s1 + $0x1b44] ss:$16 sps:$4 sm:$0xff]  }
 0x331   : > { %7090 = vmatprep.subr.bf16.mxu0 %v10651_v20  ;;  %7746 = vmatprep.subr.bf16.mxu1 %v10654_v11  ;;  %v10746_v20 = vld [vmem:[%s14304_s1 + $0x1b4c] ss:$16 sps:$4 sm:$0xff]   ;;  %v10741_v11 = vld [vmem:[%s14304_s1 + $0x1b40] ss:$16 sps:$4 sm:$0xff]  }
 0x334   : > { %7091 = vmatpush1.bf16.msra.mxu0 %v10649_v22  ;;  %7747 = vmatpush1.bf16.msra.mxu1 %v10652_v23  ;;  %v10744_v22 = vld [vmem:[%s14304_s1 + $0x1b48] ss:$16 sps:$4 sm:$0xff]   ;;  %v10749_v23 = vld [vmem:[%s14304_s1 + $0x1b64] ss:$16 sps:$4 sm:$0xff]  }
 0x335   : > { %7092 = vmatprep.subr.bf16.mxu0 %v10657_v18  ;;  %7748 = vmatprep.subr.bf16.mxu1 %v10660_v25  ;;  %v10752_v18 = vld [vmem:[%s14304_s1 + $0x1b6c] ss:$16 sps:$4 sm:$0xff]   ;;  %v10747_v25 = vld [vmem:[%s14304_s1 + $0x1b60] ss:$16 sps:$4 sm:$0xff]  }
 0x338   : > { %7093 = vmatpush1.bf16.msra.mxu0 %v10655_v26  ;;  %7749 = vmatpush1.bf16.msra.mxu1 %v10658_v21  ;;  %v10750_v26 = vld [vmem:[%s14304_s1 + $0x1b68] ss:$16 sps:$4 sm:$0xff]   ;;  %v10755_v21 = vld [vmem:[%s14304_s1 + $0x1b84] ss:$16 sps:$4 sm:$0xff]  }
 0x339   : > { %7094 = vmatprep.subr.bf16.mxu0 %v10663_v28  ;;  %7750 = vmatprep.subr.bf16.mxu1 %v10666_v29  ;;  %v10758_v28 = vld [vmem:[%s14304_s1 + $0x1b8c] ss:$16 sps:$4 sm:$0xff]   ;;  %v10753_v29 = vld [vmem:[%s14304_s1 + $0x1b80] ss:$16 sps:$4 sm:$0xff]  }
 0x33c   : > { %7095 = vmatpush1.bf16.msra.mxu0 %v10661_v24  ;;  %7751 = vmatpush1.bf16.msra.mxu1 %v10664_v31  ;;  %v10756_v24 = vld [vmem:[%s14304_s1 + $0x1b88] ss:$16 sps:$4 sm:$0xff]   ;;  %v10761_v31 = vld [vmem:[%s14304_s1 + $0x1ba4] ss:$16 sps:$4 sm:$0xff]  }
 0x33d   : > { %7096 = vmatprep.subr.bf16.mxu0 %v10669_v32  ;;  %7752 = vmatprep.subr.bf16.mxu1 %v10672_v33  ;;  %v10764_v32 = vld [vmem:[%s14304_s1 + $0x1bac] ss:$16 sps:$4 sm:$0xff]   ;;  %v10759_v33 = vld [vmem:[%s14304_s1 + $0x1ba0] ss:$16 sps:$4 sm:$0xff]  }
 0x340   : > { %7097 = vmatpush1.bf16.msra.mxu0 %v10667_v34  ;;  %7753 = vmatpush1.bf16.msra.mxu1 %v10670_v35  ;;  %v10762_v34 = vld [vmem:[%s14304_s1 + $0x1ba8] ss:$16 sps:$4 sm:$0xff]   ;;  %v10767_v35 = vld [vmem:[%s14304_s1 + $0x1bc4] ss:$16 sps:$4 sm:$0xff]  }
 0x341   : > { %7098 = vmatprep.subr.bf16.mxu0 %v10675_v36  ;;  %7754 = vmatprep.subr.bf16.mxu1 %v10678_v37  ;;  %v10770_v36 = vld [vmem:[%s14304_s1 + $0x1bcc] ss:$16 sps:$4 sm:$0xff]   ;;  %v10765_v37 = vld [vmem:[%s14304_s1 + $0x1bc0] ss:$16 sps:$4 sm:$0xff]  }
 0x344   : > { %7099 = vmatpush1.bf16.msra.mxu0 %v10673_v38  ;;  %7755 = vmatpush1.bf16.msra.mxu1 %v10676_v39  ;;  %v10768_v38 = vld [vmem:[%s14304_s1 + $0x1bc8] ss:$16 sps:$4 sm:$0xff]   ;;  %v10773_v39 = vld [vmem:[%s14304_s1 + $0x1be4] ss:$16 sps:$4 sm:$0xff]  }
 0x345   : > { %7109 = vmatprep.subr.bf16.mxu0 %v10683_v40  ;;  %7765 = vmatprep.subr.bf16.mxu1 %v10686_v41  ;;  %v10776_v40 = vld [vmem:[%s14304_s1 + $0x1bec] ss:$16 sps:$4 sm:$0xff]   ;;  %v10771_v41 = vld [vmem:[%s14304_s1 + $0x1be0] ss:$16 sps:$4 sm:$0xff]  }
 0x347   : > { %7101 = vmatmul.mubr.bf16.vlgmr.msra.gmra.mrb[0].mxu0 %v8221_v42  ;;  %7757 = vmatmul.mubr.bf16.vlgmr.msra.gmra.mrb[0].mxu1 %v8221_v42  ;;  %v10774_v42 = vld [vmem:[%s14304_s1 + $0x1be8] ss:$16 sps:$4 sm:$0xff]  }
 0x348   : > { %7110 = vmatpush1.bf16.msra.mxu0 %v10681_v43  ;;  %7766 = vmatpush1.bf16.msra.mxu1 %v10684_v44  ;;  %v10781_v43 = vld [vmem:[%s14304_s1 + $0x1c04] ss:$16 sps:$4 sm:$0xff]   ;;  %v10784_v44 = vld [vmem:[%s14304_s1 + $0x1c0c] ss:$16 sps:$4 sm:$0xff]  }
 0x349   : > { %7111 = vmatprep.subr.bf16.mxu0 %v10689_v45  ;;  %7767 = vmatprep.subr.bf16.mxu1 %v10692_v27  ;;  %v8223_v45 = vcombine.low %v13649_v30, %v13649_v30  ;;  %v13848_v27 = vld [vmem:[%s11191_s29 + $0x70] sm:$0xff]  ;;  %v10790_v30 = vld [vmem:[%s14304_s1 + $0x1c2c] ss:$16 sps:$4 sm:$0xff]  }
 0x34a   : > { %7141 = vmatprep.mubr.bf16.mxu0 %v8224_v46  ;;  %7797 = vmatprep.mubr.bf16.mxu1 %v8224_v46  ;;  %v10779_v46 = vld [vmem:[%s14304_s1 + $0x1c00] ss:$16 sps:$4 sm:$0xff]  }
 0x34c   : > { %7112 = vmatpush1.bf16.msra.mxu0 %v10687_v47  ;;  %7768 = vmatpush1.bf16.msra.mxu1 %v10690_v48  ;;  %v10782_v47 = vld [vmem:[%s14304_s1 + $0x1c08] ss:$16 sps:$4 sm:$0xff]   ;;  %v10787_v48 = vld [vmem:[%s14304_s1 + $0x1c24] ss:$16 sps:$4 sm:$0xff]  }
 0x34d   : > { %7113 = vmatprep.subr.bf16.mxu0 %v10695_v49  ;;  %7769 = vmatprep.subr.bf16.mxu1 %v10698_v50  ;;  %v8226_v49 = vcombine.high %v13848_v27, %v13848_v27  ;;  %v10785_v50 = vld [vmem:[%s14304_s1 + $0x1c20] ss:$16 sps:$4 sm:$0xff]  }
 0x350   : > { %7114 = vmatpush1.bf16.msra.mxu0 %v10693_v51  ;;  %7770 = vmatpush1.bf16.msra.mxu1 %v10696_v52  ;;  %v10788_v51 = vld [vmem:[%s14304_s1 + $0x1c28] ss:$16 sps:$4 sm:$0xff]   ;;  %v10793_v52 = vld [vmem:[%s14304_s1 + $0x1c44] ss:$16 sps:$4 sm:$0xff]  }
 0x351   : > { %7115 = vmatprep.subr.bf16.mxu0 %v10701_v53  ;;  %7771 = vmatprep.subr.bf16.mxu1 %v10704_v54  ;;  %v10796_v53 = vld [vmem:[%s14304_s1 + $0x1c4c] ss:$16 sps:$4 sm:$0xff]   ;;  %v10791_v54 = vld [vmem:[%s14304_s1 + $0x1c40] ss:$16 sps:$4 sm:$0xff]  }
 0x354   : > { %7116 = vmatpush1.bf16.msra.mxu0 %v10699_v55  ;;  %7772 = vmatpush1.bf16.msra.mxu1 %v10702_v56  ;;  %v10794_v55 = vld [vmem:[%s14304_s1 + $0x1c48] ss:$16 sps:$4 sm:$0xff]   ;;  %v10799_v56 = vld [vmem:[%s14304_s1 + $0x1c64] ss:$16 sps:$4 sm:$0xff]  }
 0x355   : > { %7117 = vmatprep.subr.bf16.mxu0 %v10707_v57  ;;  %7773 = vmatprep.subr.bf16.mxu1 %v10710_v58  ;;  %v10802_v57 = vld [vmem:[%s14304_s1 + $0x1c6c] ss:$16 sps:$4 sm:$0xff]   ;;  %v10797_v58 = vld [vmem:[%s14304_s1 + $0x1c60] ss:$16 sps:$4 sm:$0xff]  }
 0x358   : > { %7118 = vmatpush1.bf16.msra.mxu0 %v10705_v59  ;;  %7774 = vmatpush1.bf16.msra.mxu1 %v10708_v60  ;;  %v10800_v59 = vld [vmem:[%s14304_s1 + $0x1c68] ss:$16 sps:$4 sm:$0xff]   ;;  %v10805_v60 = vld [vmem:[%s14304_s1 + $0x1c84] ss:$16 sps:$4 sm:$0xff]  }
 0x359   : > { %7119 = vmatprep.subr.bf16.mxu0 %v10713_v61  ;;  %7775 = vmatprep.subr.bf16.mxu1 %v10716_v62  ;;  %v10808_v61 = vld [vmem:[%s14304_s1 + $0x1c8c] ss:$16 sps:$4 sm:$0xff]   ;;  %v10803_v62 = vld [vmem:[%s14304_s1 + $0x1c80] ss:$16 sps:$4 sm:$0xff]  }
 0x35c   : > { %7120 = vmatpush1.bf16.msra.mxu0 %v10711_v63  ;;  %7776 = vmatpush1.bf16.msra.mxu1 %v10714_v0  ;;  %v10806_v63 = vld [vmem:[%s14304_s1 + $0x1c88] ss:$16 sps:$4 sm:$0xff]   ;;  %v10811_v0 = vld [vmem:[%s14304_s1 + $0x1ca4] ss:$16 sps:$4 sm:$0xff]  }
 0x35d   : > { %7121 = vmatprep.subr.bf16.mxu0 %v10719_v1  ;;  %7777 = vmatprep.subr.bf16.mxu1 %v10722_v2  ;;  %v10814_v1 = vld [vmem:[%s14304_s1 + $0x1cac] ss:$16 sps:$4 sm:$0xff]   ;;  %v10809_v2 = vld [vmem:[%s14304_s1 + $0x1ca0] ss:$16 sps:$4 sm:$0xff]  }
 0x360   : > { %7122 = vmatpush1.bf16.msra.mxu0 %v10717_v3  ;;  %7778 = vmatpush1.bf16.msra.mxu1 %v10720_v4  ;;  %v10812_v3 = vld [vmem:[%s14304_s1 + $0x1ca8] ss:$16 sps:$4 sm:$0xff]   ;;  %v10817_v4 = vld [vmem:[%s14304_s1 + $0x1cc4] ss:$16 sps:$4 sm:$0xff]  }
 0x361   : > { %7123 = vmatprep.subr.bf16.mxu0 %v10725_v5  ;;  %7779 = vmatprep.subr.bf16.mxu1 %v10728_v6  ;;  %v10820_v5 = vld [vmem:[%s14304_s1 + $0x1ccc] ss:$16 sps:$4 sm:$0xff]   ;;  %v10815_v6 = vld [vmem:[%s14304_s1 + $0x1cc0] ss:$16 sps:$4 sm:$0xff]  }
 0x364   : > { %7124 = vmatpush1.bf16.msra.mxu0 %v10723_v7  ;;  %7780 = vmatpush1.bf16.msra.mxu1 %v10726_v8  ;;  %v10818_v7 = vld [vmem:[%s14304_s1 + $0x1cc8] ss:$16 sps:$4 sm:$0xff]   ;;  %v10823_v8 = vld [vmem:[%s14304_s1 + $0x1ce4] ss:$16 sps:$4 sm:$0xff]  }
 0x365   : > { %7125 = vmatprep.subr.bf16.mxu0 %v10731_v9  ;;  %7781 = vmatprep.subr.bf16.mxu1 %v10734_v10  ;;  %v10826_v9 = vld [vmem:[%s14304_s1 + $0x1cec] ss:$16 sps:$4 sm:$0xff]   ;;  %v10821_v10 = vld [vmem:[%s14304_s1 + $0x1ce0] ss:$16 sps:$4 sm:$0xff]  }
 0x368   : > { %7126 = vmatpush1.bf16.msra.mxu0 %v10729_v12  ;;  %7782 = vmatpush1.bf16.msra.mxu1 %v10732_v13  ;;  %v10824_v12 = vld [vmem:[%s14304_s1 + $0x1ce8] ss:$16 sps:$4 sm:$0xff]   ;;  %v10829_v13 = vld [vmem:[%s14304_s1 + $0x1d04] ss:$16 sps:$4 sm:$0xff]  }
 0x369   : > { %7127 = vmatprep.subr.bf16.mxu0 %v10737_v15  ;;  %7783 = vmatprep.subr.bf16.mxu1 %v10740_v16  ;;  %v10832_v15 = vld [vmem:[%s14304_s1 + $0x1d0c] ss:$16 sps:$4 sm:$0xff]   ;;  %v10827_v16 = vld [vmem:[%s14304_s1 + $0x1d00] ss:$16 sps:$4 sm:$0xff]  }
 0x36c   : > { %7128 = vmatpush1.bf16.msra.mxu0 %v10735_v17  ;;  %7784 = vmatpush1.bf16.msra.mxu1 %v10738_v19  ;;  %v10830_v17 = vld [vmem:[%s14304_s1 + $0x1d08] ss:$16 sps:$4 sm:$0xff]   ;;  %v10835_v19 = vld [vmem:[%s14304_s1 + $0x1d24] ss:$16 sps:$4 sm:$0xff]  }
 0x36d   : > { %7129 = vmatprep.subr.bf16.mxu0 %v10743_v14  ;;  %7785 = vmatprep.subr.bf16.mxu1 %v10746_v20  ;;  %v10838_v14 = vld [vmem:[%s14304_s1 + $0x1d2c] ss:$16 sps:$4 sm:$0xff]   ;;  %v10833_v20 = vld [vmem:[%s14304_s1 + $0x1d20] ss:$16 sps:$4 sm:$0xff]  }
 0x370   : > { %7130 = vmatpush1.bf16.msra.mxu0 %v10741_v11  ;;  %7786 = vmatpush1.bf16.msra.mxu1 %v10744_v22  ;;  %v10836_v11 = vld [vmem:[%s14304_s1 + $0x1d28] ss:$16 sps:$4 sm:$0xff]   ;;  %v10841_v22 = vld [vmem:[%s14304_s1 + $0x1d44] ss:$16 sps:$4 sm:$0xff]  }
 0x371   : > { %7131 = vmatprep.subr.bf16.mxu0 %v10749_v23  ;;  %7787 = vmatprep.subr.bf16.mxu1 %v10752_v18  ;;  %v10844_v23 = vld [vmem:[%s14304_s1 + $0x1d4c] ss:$16 sps:$4 sm:$0xff]   ;;  %v10839_v18 = vld [vmem:[%s14304_s1 + $0x1d40] ss:$16 sps:$4 sm:$0xff]  }
 0x374   : > { %7132 = vmatpush1.bf16.msra.mxu0 %v10747_v25  ;;  %7788 = vmatpush1.bf16.msra.mxu1 %v10750_v26  ;;  %v10842_v25 = vld [vmem:[%s14304_s1 + $0x1d48] ss:$16 sps:$4 sm:$0xff]   ;;  %v10847_v26 = vld [vmem:[%s14304_s1 + $0x1d64] ss:$16 sps:$4 sm:$0xff]  }
 0x375   : > { %7133 = vmatprep.subr.bf16.mxu0 %v10755_v21  ;;  %7789 = vmatprep.subr.bf16.mxu1 %v10758_v28  ;;  %v10850_v21 = vld [vmem:[%s14304_s1 + $0x1d6c] ss:$16 sps:$4 sm:$0xff]   ;;  %v10845_v28 = vld [vmem:[%s14304_s1 + $0x1d60] ss:$16 sps:$4 sm:$0xff]  }
 0x378   : > { %7134 = vmatpush1.bf16.msra.mxu0 %v10753_v29  ;;  %7790 = vmatpush1.bf16.msra.mxu1 %v10756_v24  ;;  %v10848_v29 = vld [vmem:[%s14304_s1 + $0x1d68] ss:$16 sps:$4 sm:$0xff]   ;;  %v10853_v24 = vld [vmem:[%s14304_s1 + $0x1d84] ss:$16 sps:$4 sm:$0xff]  }
 0x379   : > { %7135 = vmatprep.subr.bf16.mxu0 %v10761_v31  ;;  %7791 = vmatprep.subr.bf16.mxu1 %v10764_v32  ;;  %v10856_v31 = vld [vmem:[%s14304_s1 + $0x1d8c] ss:$16 sps:$4 sm:$0xff]   ;;  %v10851_v32 = vld [vmem:[%s14304_s1 + $0x1d80] ss:$16 sps:$4 sm:$0xff]  }
 0x37c   : > { %7136 = vmatpush1.bf16.msra.mxu0 %v10759_v33  ;;  %7792 = vmatpush1.bf16.msra.mxu1 %v10762_v34  ;;  %v10854_v33 = vld [vmem:[%s14304_s1 + $0x1d88] ss:$16 sps:$4 sm:$0xff]   ;;  %v10859_v34 = vld [vmem:[%s14304_s1 + $0x1da4] ss:$16 sps:$4 sm:$0xff]  }
 0x37d   : > { %7137 = vmatprep.subr.bf16.mxu0 %v10767_v35  ;;  %7793 = vmatprep.subr.bf16.mxu1 %v10770_v36  ;;  %v10862_v35 = vld [vmem:[%s14304_s1 + $0x1dac] ss:$16 sps:$4 sm:$0xff]   ;;  %v10857_v36 = vld [vmem:[%s14304_s1 + $0x1da0] ss:$16 sps:$4 sm:$0xff]  }
 0x380   : > { %7138 = vmatpush1.bf16.msra.mxu0 %v10765_v37  ;;  %7794 = vmatpush1.bf16.msra.mxu1 %v10768_v38  ;;  %v10860_v37 = vld [vmem:[%s14304_s1 + $0x1da8] ss:$16 sps:$4 sm:$0xff]   ;;  %v10865_v38 = vld [vmem:[%s14304_s1 + $0x1dc4] ss:$16 sps:$4 sm:$0xff]  }
 0x381   : > { %7139 = vmatprep.subr.bf16.mxu0 %v10773_v39  ;;  %7795 = vmatprep.subr.bf16.mxu1 %v10776_v40  ;;  %v10868_v39 = vld [vmem:[%s14304_s1 + $0x1dcc] ss:$16 sps:$4 sm:$0xff]   ;;  %v10863_v40 = vld [vmem:[%s14304_s1 + $0x1dc0] ss:$16 sps:$4 sm:$0xff]  }
 0x384   : > { %7140 = vmatpush1.bf16.msra.mxu0 %v10771_v41  ;;  %7796 = vmatpush1.bf16.msra.mxu1 %v10774_v42  ;;  %v10866_v41 = vld [vmem:[%s14304_s1 + $0x1dc8] ss:$16 sps:$4 sm:$0xff]   ;;  %v10871_v42 = vld [vmem:[%s14304_s1 + $0x1de4] ss:$16 sps:$4 sm:$0xff]  }
 0x385   : > { %7150 = vmatprep.subr.bf16.mxu0 %v10781_v43  ;;  %7806 = vmatprep.subr.bf16.mxu1 %v10784_v44  ;;  %v10874_v43 = vld [vmem:[%s14304_s1 + $0x1dec] ss:$16 sps:$4 sm:$0xff]   ;;  %v10869_v44 = vld [vmem:[%s14304_s1 + $0x1de0] ss:$16 sps:$4 sm:$0xff]  }
 0x387   : > { %7142 = vmatmul.mubr.bf16.vlgmr.msra.gmra.mrb[0].mxu0 %v8223_v45  ;;  %7798 = vmatmul.mubr.bf16.vlgmr.msra.gmra.mrb[0].mxu1 %v8223_v45  ;;  %v10872_v45 = vld [vmem:[%s14304_s1 + $0x1de8] ss:$16 sps:$4 sm:$0xff]  }
 0x388   : > { %7151 = vmatpush1.bf16.msra.mxu0 %v10779_v46  ;;  %7807 = vmatpush1.bf16.msra.mxu1 %v10782_v47  ;;  %v10879_v46 = vld [vmem:[%s14304_s1 + $0x1e04] ss:$16 sps:$4 sm:$0xff]   ;;  %v10882_v47 = vld [vmem:[%s14304_s1 + $0x1e0c] ss:$16 sps:$4 sm:$0xff]  }
 0x389   : > { %7152 = vmatprep.subr.bf16.mxu0 %v10787_v48  ;;  %7808 = vmatprep.subr.bf16.mxu1 %v10790_v30  ;;  %v8225_v48 = vcombine.low %v13848_v27, %v13848_v27  ;;  %v14047_v30 = vld [vmem:[%s11191_s29 + $0x78] sm:$0xff] }
 0x38a   : > { %7182 = vmatprep.mubr.bf16.mxu0 %v8226_v49  ;;  %7838 = vmatprep.mubr.bf16.mxu1 %v8226_v49  ;;  %v10877_v49 = vld [vmem:[%s14304_s1 + $0x1e00] ss:$16 sps:$4 sm:$0xff]   ;;  %v10888_v27 = vld [vmem:[%s14304_s1 + $0x1e2c] ss:$16 sps:$4 sm:$0xff]  }
 0x38c   : > { %7153 = vmatpush1.bf16.msra.mxu0 %v10785_v50  ;;  %7809 = vmatpush1.bf16.msra.mxu1 %v10788_v51  ;;  %v10880_v50 = vld [vmem:[%s14304_s1 + $0x1e08] ss:$16 sps:$4 sm:$0xff]   ;;  %v10885_v51 = vld [vmem:[%s14304_s1 + $0x1e24] ss:$16 sps:$4 sm:$0xff]  }
 0x38d   : > { %7154 = vmatprep.subr.bf16.mxu0 %v10793_v52  ;;  %7810 = vmatprep.subr.bf16.mxu1 %v10796_v53  ;;  %v8228_v52 = vcombine.high %v14047_v30, %v14047_v30  ;;  %v10883_v53 = vld [vmem:[%s14304_s1 + $0x1e20] ss:$16 sps:$4 sm:$0xff]  }
 0x390   : > { %7155 = vmatpush1.bf16.msra.mxu0 %v10791_v54  ;;  %7811 = vmatpush1.bf16.msra.mxu1 %v10794_v55  ;;  %v10886_v54 = vld [vmem:[%s14304_s1 + $0x1e28] ss:$16 sps:$4 sm:$0xff]   ;;  %v10891_v55 = vld [vmem:[%s14304_s1 + $0x1e44] ss:$16 sps:$4 sm:$0xff]  }
 0x391   : > { %7156 = vmatprep.subr.bf16.mxu0 %v10799_v56  ;;  %7812 = vmatprep.subr.bf16.mxu1 %v10802_v57  ;;  %v10894_v56 = vld [vmem:[%s14304_s1 + $0x1e4c] ss:$16 sps:$4 sm:$0xff]   ;;  %v10889_v57 = vld [vmem:[%s14304_s1 + $0x1e40] ss:$16 sps:$4 sm:$0xff]  }
 0x394   : > { %7157 = vmatpush1.bf16.msra.mxu0 %v10797_v58  ;;  %7813 = vmatpush1.bf16.msra.mxu1 %v10800_v59  ;;  %v10892_v58 = vld [vmem:[%s14304_s1 + $0x1e48] ss:$16 sps:$4 sm:$0xff]   ;;  %v10897_v59 = vld [vmem:[%s14304_s1 + $0x1e64] ss:$16 sps:$4 sm:$0xff]  }
 0x395   : > { %7158 = vmatprep.subr.bf16.mxu0 %v10805_v60  ;;  %7814 = vmatprep.subr.bf16.mxu1 %v10808_v61  ;;  %v10900_v60 = vld [vmem:[%s14304_s1 + $0x1e6c] ss:$16 sps:$4 sm:$0xff]   ;;  %v10895_v61 = vld [vmem:[%s14304_s1 + $0x1e60] ss:$16 sps:$4 sm:$0xff]  }
 0x398   : > { %7159 = vmatpush1.bf16.msra.mxu0 %v10803_v62  ;;  %7815 = vmatpush1.bf16.msra.mxu1 %v10806_v63  ;;  %v10898_v62 = vld [vmem:[%s14304_s1 + $0x1e68] ss:$16 sps:$4 sm:$0xff]   ;;  %v10903_v63 = vld [vmem:[%s14304_s1 + $0x1e84] ss:$16 sps:$4 sm:$0xff]  }
 0x399   : > { %7160 = vmatprep.subr.bf16.mxu0 %v10811_v0  ;;  %7816 = vmatprep.subr.bf16.mxu1 %v10814_v1  ;;  %v10906_v0 = vld [vmem:[%s14304_s1 + $0x1e8c] ss:$16 sps:$4 sm:$0xff]   ;;  %v10901_v1 = vld [vmem:[%s14304_s1 + $0x1e80] ss:$16 sps:$4 sm:$0xff]  }
 0x39c   : > { %7161 = vmatpush1.bf16.msra.mxu0 %v10809_v2  ;;  %7817 = vmatpush1.bf16.msra.mxu1 %v10812_v3  ;;  %v10904_v2 = vld [vmem:[%s14304_s1 + $0x1e88] ss:$16 sps:$4 sm:$0xff]   ;;  %v10909_v3 = vld [vmem:[%s14304_s1 + $0x1ea4] ss:$16 sps:$4 sm:$0xff]  }
 0x39d   : > { %7162 = vmatprep.subr.bf16.mxu0 %v10817_v4  ;;  %7818 = vmatprep.subr.bf16.mxu1 %v10820_v5  ;;  %v10912_v4 = vld [vmem:[%s14304_s1 + $0x1eac] ss:$16 sps:$4 sm:$0xff]   ;;  %v10907_v5 = vld [vmem:[%s14304_s1 + $0x1ea0] ss:$16 sps:$4 sm:$0xff]  }
 0x3a0   : > { %7163 = vmatpush1.bf16.msra.mxu0 %v10815_v6  ;;  %7819 = vmatpush1.bf16.msra.mxu1 %v10818_v7  ;;  %v10910_v6 = vld [vmem:[%s14304_s1 + $0x1ea8] ss:$16 sps:$4 sm:$0xff]   ;;  %v10915_v7 = vld [vmem:[%s14304_s1 + $0x1ec4] ss:$16 sps:$4 sm:$0xff]  }
 0x3a1   : > { %7164 = vmatprep.subr.bf16.mxu0 %v10823_v8  ;;  %7820 = vmatprep.subr.bf16.mxu1 %v10826_v9  ;;  %v10918_v8 = vld [vmem:[%s14304_s1 + $0x1ecc] ss:$16 sps:$4 sm:$0xff]   ;;  %v10913_v9 = vld [vmem:[%s14304_s1 + $0x1ec0] ss:$16 sps:$4 sm:$0xff]  }
 0x3a4   : > { %7165 = vmatpush1.bf16.msra.mxu0 %v10821_v10  ;;  %7821 = vmatpush1.bf16.msra.mxu1 %v10824_v12  ;;  %v10916_v10 = vld [vmem:[%s14304_s1 + $0x1ec8] ss:$16 sps:$4 sm:$0xff]   ;;  %v10921_v12 = vld [vmem:[%s14304_s1 + $0x1ee4] ss:$16 sps:$4 sm:$0xff]  }
 0x3a5   : > { %7166 = vmatprep.subr.bf16.mxu0 %v10829_v13  ;;  %7822 = vmatprep.subr.bf16.mxu1 %v10832_v15  ;;  %v10924_v13 = vld [vmem:[%s14304_s1 + $0x1eec] ss:$16 sps:$4 sm:$0xff]   ;;  %v10919_v15 = vld [vmem:[%s14304_s1 + $0x1ee0] ss:$16 sps:$4 sm:$0xff]  }
 0x3a8   : > { %7167 = vmatpush1.bf16.msra.mxu0 %v10827_v16  ;;  %7823 = vmatpush1.bf16.msra.mxu1 %v10830_v17  ;;  %v10922_v16 = vld [vmem:[%s14304_s1 + $0x1ee8] ss:$16 sps:$4 sm:$0xff]   ;;  %v10927_v17 = vld [vmem:[%s14304_s1 + $0x1f04] ss:$16 sps:$4 sm:$0xff]  }
 0x3a9   : > { %7168 = vmatprep.subr.bf16.mxu0 %v10835_v19  ;;  %7824 = vmatprep.subr.bf16.mxu1 %v10838_v14  ;;  %v10930_v19 = vld [vmem:[%s14304_s1 + $0x1f0c] ss:$16 sps:$4 sm:$0xff]   ;;  %v10925_v14 = vld [vmem:[%s14304_s1 + $0x1f00] ss:$16 sps:$4 sm:$0xff]  }
 0x3ac   : > { %7169 = vmatpush1.bf16.msra.mxu0 %v10833_v20  ;;  %7825 = vmatpush1.bf16.msra.mxu1 %v10836_v11  ;;  %v10928_v20 = vld [vmem:[%s14304_s1 + $0x1f08] ss:$16 sps:$4 sm:$0xff]   ;;  %v10933_v11 = vld [vmem:[%s14304_s1 + $0x1f24] ss:$16 sps:$4 sm:$0xff]  }
 0x3ad   : > { %7170 = vmatprep.subr.bf16.mxu0 %v10841_v22  ;;  %7826 = vmatprep.subr.bf16.mxu1 %v10844_v23  ;;  %v10936_v22 = vld [vmem:[%s14304_s1 + $0x1f2c] ss:$16 sps:$4 sm:$0xff]   ;;  %v10931_v23 = vld [vmem:[%s14304_s1 + $0x1f20] ss:$16 sps:$4 sm:$0xff]  }
 0x3b0   : > { %7171 = vmatpush1.bf16.msra.mxu0 %v10839_v18  ;;  %7827 = vmatpush1.bf16.msra.mxu1 %v10842_v25  ;;  %v10934_v18 = vld [vmem:[%s14304_s1 + $0x1f28] ss:$16 sps:$4 sm:$0xff]   ;;  %v10939_v25 = vld [vmem:[%s14304_s1 + $0x1f44] ss:$16 sps:$4 sm:$0xff]  }
 0x3b1   : > { %7172 = vmatprep.subr.bf16.mxu0 %v10847_v26  ;;  %7828 = vmatprep.subr.bf16.mxu1 %v10850_v21  ;;  %v10942_v26 = vld [vmem:[%s14304_s1 + $0x1f4c] ss:$16 sps:$4 sm:$0xff]   ;;  %v10937_v21 = vld [vmem:[%s14304_s1 + $0x1f40] ss:$16 sps:$4 sm:$0xff]  }
 0x3b4   : > { %7173 = vmatpush1.bf16.msra.mxu0 %v10845_v28  ;;  %7829 = vmatpush1.bf16.msra.mxu1 %v10848_v29  ;;  %v10940_v28 = vld [vmem:[%s14304_s1 + $0x1f48] ss:$16 sps:$4 sm:$0xff]   ;;  %v10945_v29 = vld [vmem:[%s14304_s1 + $0x1f64] ss:$16 sps:$4 sm:$0xff]  }
 0x3b5   : > { %7174 = vmatprep.subr.bf16.mxu0 %v10853_v24  ;;  %7830 = vmatprep.subr.bf16.mxu1 %v10856_v31  ;;  %v10948_v24 = vld [vmem:[%s14304_s1 + $0x1f6c] ss:$16 sps:$4 sm:$0xff]   ;;  %v10943_v31 = vld [vmem:[%s14304_s1 + $0x1f60] ss:$16 sps:$4 sm:$0xff]  }
 0x3b8   : > { %7175 = vmatpush1.bf16.msra.mxu0 %v10851_v32  ;;  %7831 = vmatpush1.bf16.msra.mxu1 %v10854_v33  ;;  %v10946_v32 = vld [vmem:[%s14304_s1 + $0x1f68] ss:$16 sps:$4 sm:$0xff]   ;;  %v10951_v33 = vld [vmem:[%s14304_s1 + $0x1f84] ss:$16 sps:$4 sm:$0xff]  }
 0x3b9   : > { %7176 = vmatprep.subr.bf16.mxu0 %v10859_v34  ;;  %7832 = vmatprep.subr.bf16.mxu1 %v10862_v35  ;;  %v10954_v34 = vld [vmem:[%s14304_s1 + $0x1f8c] ss:$16 sps:$4 sm:$0xff]   ;;  %v10949_v35 = vld [vmem:[%s14304_s1 + $0x1f80] ss:$16 sps:$4 sm:$0xff]  }
 0x3bc   : > { %7177 = vmatpush1.bf16.msra.mxu0 %v10857_v36  ;;  %7833 = vmatpush1.bf16.msra.mxu1 %v10860_v37  ;;  %v10952_v36 = vld [vmem:[%s14304_s1 + $0x1f88] ss:$16 sps:$4 sm:$0xff]   ;;  %v10957_v37 = vld [vmem:[%s14304_s1 + $0x1fa4] ss:$16 sps:$4 sm:$0xff]  }
 0x3bd   : > { %7178 = vmatprep.subr.bf16.mxu0 %v10865_v38  ;;  %7834 = vmatprep.subr.bf16.mxu1 %v10868_v39  ;;  %v10960_v38 = vld [vmem:[%s14304_s1 + $0x1fac] ss:$16 sps:$4 sm:$0xff]   ;;  %v10955_v39 = vld [vmem:[%s14304_s1 + $0x1fa0] ss:$16 sps:$4 sm:$0xff]  }
 0x3c0   : > { %7179 = vmatpush1.bf16.msra.mxu0 %v10863_v40  ;;  %7835 = vmatpush1.bf16.msra.mxu1 %v10866_v41  ;;  %v10958_v40 = vld [vmem:[%s14304_s1 + $0x1fa8] ss:$16 sps:$4 sm:$0xff]   ;;  %v10963_v41 = vld [vmem:[%s14304_s1 + $0x1fc4] ss:$16 sps:$4 sm:$0xff]  }
 0x3c1   : > { %7180 = vmatprep.subr.bf16.mxu0 %v10871_v42  ;;  %7836 = vmatprep.subr.bf16.mxu1 %v10874_v43  ;;  %v10966_v42 = vld [vmem:[%s14304_s1 + $0x1fcc] ss:$16 sps:$4 sm:$0xff]   ;;  %v10961_v43 = vld [vmem:[%s14304_s1 + $0x1fc0] ss:$16 sps:$4 sm:$0xff]  }
 0x3c4   : > { %7181 = vmatpush1.bf16.msra.mxu0 %v10869_v44  ;;  %7837 = vmatpush1.bf16.msra.mxu1 %v10872_v45  ;;  %v10964_v44 = vld [vmem:[%s14304_s1 + $0x1fc8] ss:$16 sps:$4 sm:$0xff]   ;;  %v10969_v45 = vld [vmem:[%s14304_s1 + $0x1fe4] ss:$16 sps:$4 sm:$0xff]  }
 0x3c5   : > { %7191 = vmatprep.subr.bf16.mxu0 %v10879_v46  ;;  %7847 = vmatprep.subr.bf16.mxu1 %v10882_v47  ;;  %v10972_v46 = vld [vmem:[%s14304_s1 + $0x1fec] ss:$16 sps:$4 sm:$0xff]   ;;  %v10967_v47 = vld [vmem:[%s14304_s1 + $0x1fe0] ss:$16 sps:$4 sm:$0xff]  }
 0x3c7   : > { %7183 = vmatmul.mubr.bf16.vlgmr.msra.gmra.mrb[0].mxu0 %v8225_v48  ;;  %7839 = vmatmul.mubr.bf16.vlgmr.msra.gmra.mrb[0].mxu1 %v8225_v48  ;;  %v10970_v48 = vld [vmem:[%s14304_s1 + $0x1fe8] ss:$16 sps:$4 sm:$0xff]  }
 0x3c8   : > { %7192 = vmatpush1.bf16.msra.mxu0 %v10877_v49  ;;  %7848 = vmatpush1.bf16.msra.mxu1 %v10880_v50  ;;  %v8227_v49 = vcombine.low %v14047_v30, %v14047_v30  ;;  %v1324_v50 = vlaneseq }
 0x3c9   : > { %7193 = vmatprep.subr.bf16.mxu0 %v10885_v51  ;;  %7849 = vmatprep.subr.bf16.mxu1 %v10888_v27  ;;  %v10999_v27 = vmov 0.0  }
 0x3ca   : > { %7223 = vmatprep.mubr.bf16.mxu0 %v8228_v52  ;;  %7879 = vmatprep.mubr.bf16.mxu1 %v8228_v52  ;;  %vm14239_vm0 = vcmp.lt.s32.totalorder %v1324_v50, 512  ;;  %v14260_v30 = vshrl.u32 %v1324_v50, 7 }
 0x3cb   : > { %7910 = vst.msk [vmem:[%s14247_s26] sm:$0xf] %vm14239_vm0, %v10999_v27  ;;  %7911 = vst.msk [vmem:[%s14255_s30] sm:$0xf] %vm14239_vm0, %v10999_v27 }
 0x3cc   : > { %7194 = vmatpush1.bf16.msra.mxu0 %v10883_v53  ;;  %7850 = vmatpush1.bf16.msra.mxu1 %v10886_v54  ;;  %v1326_v52 = vsub.s32 0, %v14260_v30  ;;  %v1334_v53 = vsub.s32 2, %v14260_v30  ;;  %v1322_v54 = vld [vmem:[%s14305_s2] sm:$0xf]  ;;  %vm7897_vm1 = vcmp.lt.s32.totalorder %v14260_v30, 4 }
 0x3cd   : > { %7195 = vmatprep.subr.bf16.mxu0 %v10891_v55  ;;  %7851 = vmatprep.subr.bf16.mxu1 %v10894_v56  ;;  %v1330_v55 = vsub.s32 1, %v14260_v30  ;;  %v1338_v56 = vsub.s32 3, %v14260_v30 }
 0x3d0   : > { %7196 = vmatpush1.bf16.msra.mxu0 %v10889_v57  ;;  %7852 = vmatpush1.bf16.msra.mxu1 %v10892_v58  ;;  %v1327_v57 = vrot.slane %v1322_v54, %v1326_v52  ;;  %v1335_v58 = vrot.slane %v1322_v54, %v1334_v53 }
 0x3d1   : > { %7197 = vmatprep.subr.bf16.mxu0 %v10897_v59  ;;  %7853 = vmatprep.subr.bf16.mxu1 %v10900_v60  ;;  %v1331_v59 = vrot.slane %v1322_v54, %v1330_v55  ;;  %v1339_v60 = vrot.slane %v1322_v54, %v1338_v56 }
 0x3d4   : > { %7198 = vmatpush1.bf16.msra.mxu0 %v10895_v61  ;;  %7854 = vmatpush1.bf16.msra.mxu1 %v10898_v62 }
 0x3d5   : > { %7199 = vmatprep.subr.bf16.mxu0 %v10903_v63  ;;  %7855 = vmatprep.subr.bf16.mxu1 %v10906_v0 }
 0x3d8   : > { %7200 = vmatpush1.bf16.msra.mxu0 %v10901_v1  ;;  %7856 = vmatpush1.bf16.msra.mxu1 %v10904_v2  ;;  %v11000_v2 = vmov 1966171168  }
 0x3d9   : > { %7201 = vmatprep.subr.bf16.mxu0 %v10909_v3  ;;  %7857 = vmatprep.subr.bf16.mxu1 %v10912_v4  ;;  %v14274_v3 = vunpack.c.l.s4 %v11000_v2 }
 0x3dc   : > { %7202 = vmatpush1.bf16.msra.mxu0 %v10907_v5  ;;  %7858 = vmatpush1.bf16.msra.mxu1 %v10910_v6 }
 0x3dd   : > { %7203 = vmatprep.subr.bf16.mxu0 %v10915_v7  ;;  %7859 = vmatprep.subr.bf16.mxu1 %v10918_v8 }
 0x3e0   : > { %7204 = vmatpush1.bf16.msra.mxu0 %v10913_v9  ;;  %7860 = vmatpush1.bf16.msra.mxu1 %v10916_v10 }
 0x3e1   : > { %7205 = vmatprep.subr.bf16.mxu0 %v10921_v12  ;;  %7861 = vmatprep.subr.bf16.mxu1 %v10924_v13 }
 0x3e4   : > { %7206 = vmatpush1.bf16.msra.mxu0 %v10919_v15  ;;  %7862 = vmatpush1.bf16.msra.mxu1 %v10922_v16 }
 0x3e5   : > { %7207 = vmatprep.subr.bf16.mxu0 %v10927_v17  ;;  %7863 = vmatprep.subr.bf16.mxu1 %v10930_v19 }
 0x3e8   : > { %7208 = vmatpush1.bf16.msra.mxu0 %v10925_v14  ;;  %7864 = vmatpush1.bf16.msra.mxu1 %v10928_v20  ;;  %v7945_v20 = vunpack.c.0.s8 %v14274_v3 }
 0x3e9   : > { %7209 = vmatprep.subr.bf16.mxu0 %v10933_v11  ;;  %7865 = vmatprep.subr.bf16.mxu1 %v10936_v22 }
 0x3ec   : > { %7210 = vmatpush1.bf16.msra.mxu0 %v10931_v23  ;;  %7866 = vmatpush1.bf16.msra.mxu1 %v10934_v18 }
 0x3ed   : > { %7211 = vmatprep.subr.bf16.mxu0 %v10939_v25  ;;  %7867 = vmatprep.subr.bf16.mxu1 %v10942_v26 }
 0x3f0   : > { %7212 = vmatpush1.bf16.msra.mxu0 %v10937_v21  ;;  %7868 = vmatpush1.bf16.msra.mxu1 %v10940_v28 }
 0x3f1   : > { %7213 = vmatprep.subr.bf16.mxu0 %v10945_v29  ;;  %7869 = vmatprep.subr.bf16.mxu1 %v10948_v24 }
 0x3f4   : > { %7214 = vmatpush1.bf16.msra.mxu0 %v10943_v31  ;;  %7870 = vmatpush1.bf16.msra.mxu1 %v10946_v32 }
 0x3f5   : > { %7215 = vmatprep.subr.bf16.mxu0 %v10951_v33  ;;  %7871 = vmatprep.subr.bf16.mxu1 %v10954_v34 }
 0x3f8   : > { %7216 = vmatpush1.bf16.msra.mxu0 %v10949_v35  ;;  %7872 = vmatpush1.bf16.msra.mxu1 %v10952_v36 }
 0x3f9   : > { %7217 = vmatprep.subr.bf16.mxu0 %v10957_v37  ;;  %7873 = vmatprep.subr.bf16.mxu1 %v10960_v38 }
 0x3fc   : > { %7218 = vmatpush1.bf16.msra.mxu0 %v10955_v39  ;;  %7874 = vmatpush1.bf16.msra.mxu1 %v10958_v40 }
 0x3fd   : > { %7219 = vmatprep.subr.bf16.mxu0 %v10963_v41  ;;  %7875 = vmatprep.subr.bf16.mxu1 %v10966_v42 }
 0x400   : > { %7220 = vmatpush1.bf16.msra.mxu0 %v10961_v43  ;;  %7876 = vmatpush1.bf16.msra.mxu1 %v10964_v44 }
 0x401   : > { %7221 = vmatprep.subr.bf16.mxu0 %v10969_v45  ;;  %7877 = vmatprep.subr.bf16.mxu1 %v10972_v46 }
 0x404   : > { %7222 = vmatpush1.bf16.msra.mxu0 %v10967_v47  ;;  %7878 = vmatpush1.bf16.msra.mxu1 %v10970_v48 }
 0x407   : > { %7224 = vmatmul.mubr.bf16.vlgmr.msra.gmra.mrb[0].mxu0 %v8227_v49  ;;  %7880 = vmatmul.mubr.bf16.vlgmr.msra.gmra.mrb[0].mxu1 %v8227_v49 }
 0x4da   : > { %v7225_v61 = vpop.f32.mrb[0].mxu0  ;;  %v7881_v62 = vpop.f32.mrb[0].mxu1 }
 0x4db   : > { %v9257_v63 = vadd.f32 %v7225_v61, %v1327_v57  ;;  %v9259_v0 = vadd.f32 %v7881_v62, %v1335_v58  ;;  %v7227_v1 = vpop.f32.mrb[1].mxu0  ;;  %v7883_v4 = vpop.f32.mrb[1].mxu1 }
 0x4dc   : > { %v9258_v5 = vadd.f32 %v7227_v1, %v1331_v59  ;;  %v9260_v6 = vadd.f32 %v7883_v4, %v1339_v60  ;;  %v7229_v7 = vpop.f32.mrb[2].mxu0  ;;  %v7885_v8 = vpop.f32.mrb[2].mxu1 }
 0x4dd   : > { %7888 = vst [vmem:[%s273_s10] sm:$0xff] %v9257_v63  ;;  %v7898_v9 = vsel %vm7897_vm1, %v9257_v63, 0.0  ;;  %7890 = vst [vmem:[%s273_s10 + $0x10] sm:$0xff] %v9259_v0  ;;  %v7900_v10 = vsel %vm7897_vm1, %v9259_v0, 0.0  ;;  %v7230_v12 = vpop.f32.mrb[3].mxu0  ;;  %v7886_v13 = vpop.f32.mrb[3].mxu1  ;;  %v7948_v0 = vsub.s32 %v7945_v20, %v14260_v30 }
 0x4de   : > { %v7913_v15 = vrot.slane %v7898_v9, 4  ;;  %v7973_v16 = vmul.f32 %v7898_v9, %v7898_v9  ;;  %v7925_v17 = vrot.slane %v7900_v10, 4  ;;  %v7975_v19 = vmul.f32 %v7900_v10, %v7900_v10  ;;  %7889 = vst [vmem:[%s273_s10 + $0x8] sm:$0xff] %v9258_v5  ;;  %7891 = vst [vmem:[%s273_s10 + $0x18] sm:$0xff] %v9260_v6  ;;  %v7912_v30 = vld [vmem:[%s14247_s26] sm:$0xf] }
 0x4df   : > { %v7899_v14 = vsel %vm7897_vm1, %v9258_v5, 0.0  ;;  %v7901_v11 = vsel %vm7897_vm1, %v9260_v6, 0.0  ;;  %v7972_v20 = vld [vmem:[%s14255_s30] sm:$0xf] }
 0x4e0   : > { %v7914_v22 = vadd.f32 %v7913_v15, %v7898_v9  ;;  %v7977_v23 = vrot.slane %v7973_v16, 4  ;;  %v7926_v18 = vadd.f32 %v7925_v17, %v7900_v10  ;;  %v7989_v25 = vrot.slane %v7975_v19, 4 }
 0x4e1   : > { %v7919_v26 = vrot.slane %v7899_v14, 4  ;;  %v7974_v21 = vmul.f32 %v7899_v14, %v7899_v14  ;;  %v7931_v28 = vrot.slane %v7901_v11, 4  ;;  %v7976_v29 = vmul.f32 %v7901_v11, %v7901_v11 }
 0x4e2   : > { %v7915_v24 = vrot.slane %v7914_v22, 2  ;;  %v7978_v31 = vadd.f32 %v7977_v23, %v7973_v16  ;;  %v7927_v32 = vrot.slane %v7926_v18, 2  ;;  %v7990_v33 = vadd.f32 %v7989_v25, %v7975_v19 }
 0x4e3   : > { %v7920_v34 = vadd.f32 %v7919_v26, %v7899_v14  ;;  %v7983_v35 = vrot.slane %v7974_v21, 4  ;;  %v7932_v36 = vadd.f32 %v7931_v28, %v7901_v11  ;;  %v7995_v37 = vrot.slane %v7976_v29, 4 }
 0x4e4   : > { %v7916_v38 = vadd.f32 %v7915_v24, %v7914_v22  ;;  %v7979_v39 = vrot.slane %v7978_v31, 2  ;;  %v7928_v40 = vadd.f32 %v7927_v32, %v7926_v18  ;;  %v7991_v41 = vrot.slane %v7990_v33, 2 }
 0x4e5   : > { %v7921_v42 = vrot.slane %v7920_v34, 2  ;;  %v7984_v43 = vadd.f32 %v7983_v35, %v7974_v21  ;;  %v7933_v44 = vrot.slane %v7932_v36, 2  ;;  %v7996_v45 = vadd.f32 %v7995_v37, %v7976_v29 }
 0x4e6   : > { %v7917_v46 = vrot.slane %v7916_v38, 1  ;;  %v7980_v47 = vadd.f32 %v7979_v39, %v7978_v31  ;;  %v7929_v48 = vrot.slane %v7928_v40, 1  ;;  %v7992_v49 = vadd.f32 %v7991_v41, %v7990_v33 }
 0x4e7   : > { %v7922_v50 = vadd.f32 %v7921_v42, %v7920_v34  ;;  %v7985_v27 = vrot.slane %v7984_v43, 2  ;;  %v7934_v52 = vadd.f32 %v7933_v44, %v7932_v36  ;;  %v7997_v53 = vrot.slane %v7996_v45, 2 }
 0x4e8   : > { %v7918_v54 = vadd.f32 %v7917_v46, %v7916_v38  ;;  %v7981_v55 = vrot.slane %v7980_v47, 1  ;;  %v7930_v56 = vadd.f32 %v7929_v48, %v7928_v40  ;;  %v7993_v57 = vrot.slane %v7992_v49, 1 }
 0x4e9   : > { %v7923_v58 = vrot.slane %v7922_v50, 1  ;;  %v7986_v59 = vadd.f32 %v7985_v27, %v7984_v43  ;;  %v7935_v60 = vrot.slane %v7934_v52, 1  ;;  %v7998_v61 = vadd.f32 %v7997_v53, %v7996_v45 }
 0x4ea   : > { %v7982_v62 = vadd.f32 %v7981_v55, %v7980_v47  ;;  %v7994_v63 = vadd.f32 %v7993_v57, %v7992_v49 }
 0x4eb   : > { %v7924_v1 = vadd.f32 %v7923_v58, %v7922_v50  ;;  %v7987_v2 = vrot.slane %v7986_v59, 1  ;;  %v7936_v3 = vadd.f32 %v7935_v60, %v7934_v52  ;;  %v7999_v4 = vrot.slane %v7998_v61, 1 }
 0x4ed   : > { %v7941_v5 = vcombine.low %v7918_v54, %v7924_v1  ;;  %v7988_v6 = vadd.f32 %v7987_v2, %v7986_v59  ;;  %v7942_v7 = vcombine.low %v7930_v56, %v7936_v3  ;;  %v8000_v8 = vadd.f32 %v7999_v4, %v7998_v61 }
 0x4ef   : > { %v7949_v9 = vrot.slane %v7941_v5, %v7948_v0  ;;  %v8005_v10 = vcombine.low %v7982_v62, %v7988_v6  ;;  %v7956_v12 = vrot.slane %v7942_v7, %v7948_v0  ;;  %v8006_v13 = vcombine.low %v7994_v63, %v8000_v8 }
 0x4f1   : > { %v8013_v15 = vrot.slane %v8005_v10, %v7948_v0  ;;  %v7957_v16 = vcombine.low %v7949_v9, %v7956_v12  ;;  %v8020_v17 = vrot.slane %v8006_v13, %v7948_v0 }
 0x4f3   : > { %v7964_v19 = vrot.slane %v7957_v16, %v7948_v0  ;;  %v8021_v14 = vcombine.low %v8013_v15, %v8020_v17 }
 0x4f5   : > { %v7966_v11 = vadd.f32 %v7964_v19, %v7912_v30  ;;  %v8028_v22 = vrot.slane %v8021_v14, %v7948_v0 }
 0x4f7   : > { %7971 = vst.msk [vmem:[%s14247_s26] sm:$0xf] %vm14239_vm0, %v7966_v11  ;;  %v8030_v23 = vadd.f32 %v8028_v22, %v7972_v20 }
 0x4f9   : > { %8031 = vst.msk [vmem:[%s14255_s30] sm:$0xf] %vm14239_vm0, %v8030_v23 }
 0x4fa PF: > { %s16_s20 = sadd.s32 1, %s10997_s20   ;;  %s14311_s18 = smov %s10993_s19 }
 0x4fb   : > { %p13_p5 = scmp.ge.s32.totalorder %s16_s20, 4   ;;  %s14312_s19 = smov %s14314_s21 }
 0x4fd   :  { %15 = sbr.rel (!%p13_p5) target bundleno = 2 (0x2), region = 90 }

// kernel: discriminator_forward.15
= control target key start
LH: loop header
LB: loop body
LE: loop exit
PB: predicated region body
PF: predicated region fallthrough
CT: control target
= control target key end

     0   :  { %s7860_s12 = smov 0   ;;  %s7862_s13 = smov 0   ;;  %s9498_s0 = inlined_call_operand.vmem [shape: bf16[2,8,8192], index: 0, kind: input, shape index: {}]   ;;  %s9499_s1 = inlined_call_operand.vmem [shape: bf16[8192,128], index: 1, kind: input, shape index: {}]   ;;  %s9500_s2 = inlined_call_operand.vmem [shape: f32[1,128], index: 2, kind: input, shape index: {}]   ;;  %s9501_s3 = inlined_call_operand.vmem [shape: f32[2,8,128], index: 3, kind: output, shape index: {}]  }
   0x1   :  { %s7864_s14 = smov 0  }
   0x2 LB: > { %s25_s15 = sadd.s32 1, %s7834_s13  ;;  %p5928_p0 = scmp.ge.s32.totalorder %s7838_s14, 1  ;;  %s7838_s14 = sphi %s7864_s14, %s13_s14   ;;  %s7834_s13 = sphi %s7862_s13, %s9503_s13   ;;  %s7830_s12 = sphi %s7860_s12, %s9502_s12  }
   0x3   : > { %p27_p1 = scmp.ge.s32.totalorder %s25_s15, 2  ;;  %p157_p2 = scmp.lt.s32.totalorder %s7838_s14, 3 }
   0x5   : > { %s9505_s15 = smov (%p27_p1, %s25_s15), 0  ;;  %p158_p3 = pnand %p5928_p0, %p157_p2 }
   0x6   : > { %v7240_v0 = vld [vmem:[%s9499_s1 + $0x40] sm:$0xff] (!%p158_p3)   ;;  %v7244_v4 = vld [vmem:[%s9499_s1 + $0x48] sm:$0xff] (!%p158_p3)   ;;  %v7248_v8 = vld [vmem:[%s9499_s1 + $0x50] sm:$0xff] (!%p158_p3)   ;;  %p187_p4 = scmp.lt.s32.totalorder (!%p158_p3), %s7830_s12, 1 }
   0x7   : > { %161 = sbr.rel (%p158_p3) target bundleno = 740 (0x2e4), region = 32  ;;  %v7241_v1 = vld [vmem:[%s9499_s1 + $0xc0] sm:$0xff] (!%p158_p3)   ;;  %6512 = vmatprep.subr.bf16.mxu0 (!%p158_p3), %v7240_v0  ;;  %v7245_v5 = vld [vmem:[%s9499_s1 + $0xc8] sm:$0xff] (!%p158_p3)   ;;  %v7249_v9 = vld [vmem:[%s9499_s1 + $0xd0] sm:$0xff] (!%p158_p3)  }
   0x8   : > { %v7242_v2 = vld [vmem:[%s9499_s1] sm:$0xff] (!%p158_p3)   ;;  %6534 = vmatprep.subr.bf16.mxu1 (!%p158_p3), %v7241_v1  ;;  %v7246_v6 = vld [vmem:[%s9499_s1 + $0x8] sm:$0xff] (!%p158_p3)   ;;  %v7250_v10 = vld [vmem:[%s9499_s1 + $0x10] sm:$0xff] (!%p158_p3)  }
   0x9   : > { %v7243_v3 = vld [vmem:[%s9499_s1 + $0x80] sm:$0xff] (!%p158_p3)   ;;  %6513 = vmatpush3.bf16.msra.mxu0 (!%p158_p3), %v7242_v2  ;;  %v7247_v7 = vld [vmem:[%s9499_s1 + $0x88] sm:$0xff] (!%p158_p3)   ;;  %v7251_v11 = vld [vmem:[%s9499_s1 + $0x90] sm:$0xff] (!%p158_p3)  }
   0xa   : > { %6535 = vmatpush3.bf16.msra.mxu1 (!%p158_p3), %v7243_v3  ;;  %6514 = vmatprep.subr.bf16.mxu0 (!%p158_p3), %v7244_v4  ;;  %v7252_v12 = vld [vmem:[%s9499_s1 + $0x58] sm:$0xff] (!%p158_p3)   ;;  %v7256_v16 = vld [vmem:[%s9499_s1 + $0x60] sm:$0xff] (!%p158_p3)   ;;  %v7260_v20 = vld [vmem:[%s9499_s1 + $0x68] sm:$0xff] (!%p158_p3)  }
   0xb   : > { %6536 = vmatprep.subr.bf16.mxu1 (!%p158_p3), %v7245_v5  ;;  %v7253_v13 = vld [vmem:[%s9499_s1 + $0xd8] sm:$0xff] (!%p158_p3)   ;;  %v7257_v17 = vld [vmem:[%s9499_s1 + $0xe0] sm:$0xff] (!%p158_p3)   ;;  %v7261_v21 = vld [vmem:[%s9499_s1 + $0xe8] sm:$0xff] (!%p158_p3)  }
   0xc   : > { %v7254_v14 = vld [vmem:[%s9499_s1 + $0x18] sm:$0xff] (!%p158_p3)   ;;  %v7258_v18 = vld [vmem:[%s9499_s1 + $0x20] sm:$0xff] (!%p158_p3)   ;;  %v7262_v22 = vld [vmem:[%s9499_s1 + $0x28] sm:$0xff] (!%p158_p3)  }
   0xd   : > { %6515 = vmatpush3.bf16.msra.mxu0 (!%p158_p3), %v7246_v6  ;;  %v7255_v15 = vld [vmem:[%s9499_s1 + $0x98] sm:$0xff] (!%p158_p3)   ;;  %v7259_v19 = vld [vmem:[%s9499_s1 + $0xa0] sm:$0xff] (!%p158_p3)   ;;  %v7263_v23 = vld [vmem:[%s9499_s1 + $0xa8] sm:$0xff] (!%p158_p3)  }
   0xe   : > { %6537 = vmatpush3.bf16.msra.mxu1 %v7247_v7  ;;  %6516 = vmatprep.subr.bf16.mxu0 %v7248_v8  ;;  %s9507_s12 = smov (!%p187_p4, %s7830_s12), 1  ;;  %v7264_v24 = vld [vmem:[%s9499_s1 + $0x70] sm:$0xff]   ;;  %v7268_v28 = vld [vmem:[%s9499_s1 + $0x78] sm:$0xff]   ;;  %v7276_v38 = vld [vmem:[%s9499_s1 + $0x140] sm:$0xff]  }
   0xf   : > { %6538 = vmatprep.subr.bf16.mxu1 %v7249_v9  ;;  %v7265_v25 = vld [vmem:[%s9499_s1 + $0xf0] sm:$0xff]   ;;  %s6511_s24 = sshll.u32 %s9507_s12, 8  ;;  %v7269_v29 = vld [vmem:[%s9499_s1 + $0xf8] sm:$0xff]   ;;  %v7277_v39 = vld [vmem:[%s9499_s1 + $0x1c0] sm:$0xff]  }
  0x10   : > { %v7266_v26 = vld [vmem:[%s9499_s1 + $0x30] sm:$0xff]   ;;  %s7978_s6 = scalar_lea.vmem %s9498_s0, %s6511_s24  ;;  %v7270_v30 = vld [vmem:[%s9499_s1 + $0x38] sm:$0xff]   ;;  %v7278_v40 = vld [vmem:[%s9499_s1 + $0x100] sm:$0xff]  }
  0x11   : > { %6517 = vmatpush3.bf16.msra.mxu0 %v7250_v10  ;;  %v7267_v27 = vld [vmem:[%s9499_s1 + $0xb0] sm:$0xff]   ;;  %v7271_v31 = vld [vmem:[%s9499_s1 + $0xb8] sm:$0xff]   ;;  %v204_v32 = vld [vmem:[%s7978_s6] sm:$0xff] }
  0x12   : > { %6539 = vmatpush3.bf16.msra.mxu1 %v7251_v11  ;;  %6518 = vmatprep.subr.bf16.mxu0 %v7252_v12  ;;  %v205_v33 = vld [vmem:[%s7978_s6 + $0x8] sm:$0xff]  ;;  %v5933_v34 = vcombine.low %v204_v32, %v204_v32  ;;  %v5934_v35 = vcombine.high %v204_v32, %v204_v32  ;;  %v7279_v41 = vld [vmem:[%s9499_s1 + $0x180] sm:$0xff]   ;;  %v7284_v46 = vld [vmem:[%s9499_s1 + $0x150] sm:$0xff]  }
  0x13   : > { %6540 = vmatprep.subr.bf16.mxu1 %v7253_v13  ;;  %v5935_v36 = vcombine.low %v205_v33, %v205_v33  ;;  %v5936_v37 = vcombine.high %v205_v33, %v205_v33  ;;  %v7280_v42 = vld [vmem:[%s9499_s1 + $0x148] sm:$0xff]   ;;  %v7285_v47 = vld [vmem:[%s9499_s1 + $0x1d0] sm:$0xff]   ;;  %v7288_v50 = vld [vmem:[%s9499_s1 + $0x158] sm:$0xff]  }
  0x14   : > { %4595 = vmatprep.mubr.bf16.mxu0 %v5934_v35  ;;  %v7281_v43 = vld [vmem:[%s9499_s1 + $0x1c8] sm:$0xff]   ;;  %v7286_v48 = vld [vmem:[%s9499_s1 + $0x110] sm:$0xff]   ;;  %v7289_v51 = vld [vmem:[%s9499_s1 + $0x1d8] sm:$0xff]  }
  0x15   : > { %6519 = vmatpush3.bf16.msra.mxu0 %v7254_v14  ;;  %4635 = vmatprep.mubr.bf16.mxu1 %v5936_v37  ;;  %v7282_v44 = vld [vmem:[%s9499_s1 + $0x108] sm:$0xff]   ;;  %v7287_v49 = vld [vmem:[%s9499_s1 + $0x190] sm:$0xff]   ;;  %v7290_v52 = vld [vmem:[%s9499_s1 + $0x118] sm:$0xff]  }
  0x16   : > { %6541 = vmatpush3.bf16.msra.mxu1 %v7255_v15  ;;  %6520 = vmatprep.subr.bf16.mxu0 %v7256_v16  ;;  %v7283_v45 = vld [vmem:[%s9499_s1 + $0x188] sm:$0xff]   ;;  %v7291_v53 = vld [vmem:[%s9499_s1 + $0x198] sm:$0xff]   ;;  %v7292_v54 = vld [vmem:[%s9499_s1 + $0x160] sm:$0xff]  }
  0x17   : > { %6542 = vmatprep.subr.bf16.mxu1 %v7257_v17  ;;  %v7293_v55 = vld [vmem:[%s9499_s1 + $0x1e0] sm:$0xff]   ;;  %v7296_v58 = vld [vmem:[%s9499_s1 + $0x168] sm:$0xff]   ;;  %v7300_v62 = vld [vmem:[%s9499_s1 + $0x170] sm:$0xff]  }
  0x18   : > { %v7294_v56 = vld [vmem:[%s9499_s1 + $0x120] sm:$0xff]   ;;  %v7297_v59 = vld [vmem:[%s9499_s1 + $0x1e8] sm:$0xff]   ;;  %v7301_v63 = vld [vmem:[%s9499_s1 + $0x1f0] sm:$0xff]  }
  0x19   : > { %6521 = vmatpush3.bf16.msra.mxu0 %v7258_v18  ;;  %v7295_v57 = vld [vmem:[%s9499_s1 + $0x1a0] sm:$0xff]   ;;  %v7298_v60 = vld [vmem:[%s9499_s1 + $0x128] sm:$0xff]   ;;  %v7302_v0 = vld [vmem:[%s9499_s1 + $0x130] sm:$0xff]  }
  0x1a   : > { %6543 = vmatpush3.bf16.msra.mxu1 %v7259_v19  ;;  %6522 = vmatprep.subr.bf16.mxu0 %v7260_v20  ;;  %v7299_v61 = vld [vmem:[%s9499_s1 + $0x1a8] sm:$0xff]   ;;  %v7303_v1 = vld [vmem:[%s9499_s1 + $0x1b0] sm:$0xff]   ;;  %v7304_v2 = vld [vmem:[%s9499_s1 + $0x178] sm:$0xff]  }
  0x1b   : > { %6544 = vmatprep.subr.bf16.mxu1 %v7261_v21  ;;  %v7305_v3 = vld [vmem:[%s9499_s1 + $0x1f8] sm:$0xff]   ;;  %v206_v6 = vld [vmem:[%s7978_s6 + $0x10] sm:$0xff]  ;;  %v7312_v12 = vld [vmem:[%s9499_s1 + $0x240] sm:$0xff]  }
  0x1c   : > { %v7306_v4 = vld [vmem:[%s9499_s1 + $0x138] sm:$0xff]   ;;  %v5937_v7 = vcombine.low %v206_v6, %v206_v6  ;;  %v5938_v8 = vcombine.high %v206_v6, %v206_v6  ;;  %v7313_v13 = vld [vmem:[%s9499_s1 + $0x2c0] sm:$0xff]   ;;  %v7316_v16 = vld [vmem:[%s9499_s1 + $0x248] sm:$0xff]  }
  0x1d   : > { %6523 = vmatpush3.bf16.msra.mxu0 %v7262_v22  ;;  %v7307_v5 = vld [vmem:[%s9499_s1 + $0x1b8] sm:$0xff]   ;;  %v7314_v14 = vld [vmem:[%s9499_s1 + $0x200] sm:$0xff]   ;;  %v7317_v17 = vld [vmem:[%s9499_s1 + $0x2c8] sm:$0xff]  }
  0x1e   : > { %6545 = vmatpush3.bf16.msra.mxu1 %v7263_v23  ;;  %6524 = vmatprep.subr.bf16.mxu0 %v7264_v24  ;;  %v207_v9 = vld [vmem:[%s7978_s6 + $0x18] sm:$0xff]  ;;  %v7315_v15 = vld [vmem:[%s9499_s1 + $0x280] sm:$0xff]   ;;  %v7318_v18 = vld [vmem:[%s9499_s1 + $0x208] sm:$0xff]  }
  0x1f   : > { %6546 = vmatprep.subr.bf16.mxu1 %v7265_v25  ;;  %v5939_v10 = vcombine.low %v207_v9, %v207_v9  ;;  %v5940_v11 = vcombine.high %v207_v9, %v207_v9  ;;  %v7319_v19 = vld [vmem:[%s9499_s1 + $0x288] sm:$0xff]   ;;  %v7320_v20 = vld [vmem:[%s9499_s1 + $0x250] sm:$0xff]   ;;  %v7324_v24 = vld [vmem:[%s9499_s1 + $0x258] sm:$0xff]  }
  0x20   : > { %v7321_v21 = vld [vmem:[%s9499_s1 + $0x2d0] sm:$0xff]   ;;  %v7325_v25 = vld [vmem:[%s9499_s1 + $0x2d8] sm:$0xff]   ;;  %v7332_v32 = vld [vmem:[%s9499_s1 + $0x268] sm:$0xff]  }
  0x21   : > { %6525 = vmatpush3.bf16.msra.mxu0 %v7266_v26  ;;  %v7322_v22 = vld [vmem:[%s9499_s1 + $0x210] sm:$0xff]   ;;  %v7326_v26 = vld [vmem:[%s9499_s1 + $0x218] sm:$0xff]   ;;  %v7333_v33 = vld [vmem:[%s9499_s1 + $0x2e8] sm:$0xff]  }
  0x22   : > { %6547 = vmatpush3.bf16.msra.mxu1 %v7267_v27  ;;  %6526 = vmatprep.subr.bf16.mxu0 %v7268_v28  ;;  %v7323_v23 = vld [vmem:[%s9499_s1 + $0x290] sm:$0xff]   ;;  %v7327_v27 = vld [vmem:[%s9499_s1 + $0x298] sm:$0xff]   ;;  %v7328_v28 = vld [vmem:[%s9499_s1 + $0x260] sm:$0xff]  }
  0x23   : > { %6548 = vmatprep.subr.bf16.mxu1 %v7269_v29  ;;  %v7329_v29 = vld [vmem:[%s9499_s1 + $0x2e0] sm:$0xff]   ;;  %v7335_v35 = vld [vmem:[%s9499_s1 + $0x2a8] sm:$0xff]   ;;  %v7337_v37 = vld [vmem:[%s9499_s1 + $0x2f0] sm:$0xff]  }
  0x24   : > { %v7368_v6 = vld [vmem:[%s9499_s1 + $0x368] sm:$0xff]  }
  0x25   : > { %6527 = vmatpush3.bf16.msra.mxu0 %v7270_v30  ;;  %v7330_v30 = vld [vmem:[%s9499_s1 + $0x220] sm:$0xff]   ;;  %v7371_v9 = vld [vmem:[%s9499_s1 + $0x3a8] sm:$0xff]  }
  0x26   : > { %6549 = vmatpush3.bf16.msra.mxu1 %v7271_v31  ;;  %6556 = vmatprep.subr.bf16.mxu0 %v7276_v38  ;;  %v7331_v31 = vld [vmem:[%s9499_s1 + $0x2a0] sm:$0xff]   ;;  %v7338_v38 = vld [vmem:[%s9499_s1 + $0x230] sm:$0xff]  }
  0x27   : > { %6578 = vmatprep.subr.bf16.mxu1 %v7277_v39  ;;  %v7339_v39 = vld [vmem:[%s9499_s1 + $0x2b0] sm:$0xff]  }
  0x28   : > { %4596 = vmatmul.mubr.bf16.vlgmr.msra.gmra.mrb[0].mxu0 %v5933_v34  ;;  %v7334_v34 = vld [vmem:[%s9499_s1 + $0x228] sm:$0xff]  }
  0x29   : > { %4636 = vmatmul.mubr.bf16.vlgmr.msra.gmra.mrb[0].mxu1 %v5935_v36  ;;  %6557 = vmatpush3.bf16.msra.mxu0 %v7278_v40  ;;  %v7336_v36 = vld [vmem:[%s9499_s1 + $0x270] sm:$0xff]   ;;  %v7340_v40 = vld [vmem:[%s9499_s1 + $0x278] sm:$0xff]  }
  0x2a   : > { %6579 = vmatpush3.bf16.msra.mxu1 %v7279_v41  ;;  %6558 = vmatprep.subr.bf16.mxu0 %v7280_v42  ;;  %v7341_v41 = vld [vmem:[%s9499_s1 + $0x2f8] sm:$0xff]  }
  0x2b   : > { %6580 = vmatprep.subr.bf16.mxu1 %v7281_v43  ;;  %4675 = vmatprep.mubr.bf16.mxu0 %v5938_v8  ;;  %v7342_v42 = vld [vmem:[%s9499_s1 + $0x238] sm:$0xff]   ;;  %v7370_v8 = vld [vmem:[%s9499_s1 + $0x328] sm:$0xff]  }
  0x2c   : > { %4715 = vmatprep.mubr.bf16.mxu1 %v5940_v11  ;;  %v7343_v43 = vld [vmem:[%s9499_s1 + $0x2b8] sm:$0xff]   ;;  %v7373_v11 = vld [vmem:[%s9499_s1 + $0x3f0] sm:$0xff]  }
  0x2d   : > { %6559 = vmatpush3.bf16.msra.mxu0 %v7282_v44  ;;  %v208_v44 = vld [vmem:[%s7978_s6 + $0x20] sm:$0xff] }
  0x2e   : > { %6581 = vmatpush3.bf16.msra.mxu1 %v7283_v45  ;;  %6560 = vmatprep.subr.bf16.mxu0 %v7284_v46  ;;  %v209_v45 = vld [vmem:[%s7978_s6 + $0x28] sm:$0xff]  ;;  %v5941_v46 = vcombine.low %v208_v44, %v208_v44 }
  0x2f   : > { %6582 = vmatprep.subr.bf16.mxu1 %v7285_v47  ;;  %v5942_v47 = vcombine.high %v208_v44, %v208_v44  ;;  %v7404_v44 = vld [vmem:[%s9499_s1 + $0x468] sm:$0xff]  }
  0x31   : > { %6561 = vmatpush3.bf16.msra.mxu0 %v7286_v48  ;;  %v5943_v48 = vcombine.low %v209_v45, %v209_v45 }
  0x32   : > { %6583 = vmatpush3.bf16.msra.mxu1 %v7287_v49  ;;  %6562 = vmatprep.subr.bf16.mxu0 %v7288_v50  ;;  %v5944_v49 = vcombine.high %v209_v45, %v209_v45  ;;  %v7348_v50 = vld [vmem:[%s9499_s1 + $0x340] sm:$0xff]   ;;  %v7405_v45 = vld [vmem:[%s9499_s1 + $0x4e8] sm:$0xff]  }
  0x33   : > { %6584 = vmatprep.subr.bf16.mxu1 %v7289_v51  ;;  %v7349_v51 = vld [vmem:[%s9499_s1 + $0x3c0] sm:$0xff]  }
  0x35   : > { %6563 = vmatpush3.bf16.msra.mxu0 %v7290_v52  ;;  %v7350_v52 = vld [vmem:[%s9499_s1 + $0x300] sm:$0xff]  }
  0x36   : > { %6585 = vmatpush3.bf16.msra.mxu1 %v7291_v53  ;;  %6564 = vmatprep.subr.bf16.mxu0 %v7292_v54  ;;  %v7351_v53 = vld [vmem:[%s9499_s1 + $0x380] sm:$0xff]   ;;  %v7352_v54 = vld [vmem:[%s9499_s1 + $0x348] sm:$0xff]  }
  0x37   : > { %6586 = vmatprep.subr.bf16.mxu1 %v7293_v55  ;;  %v7353_v55 = vld [vmem:[%s9499_s1 + $0x3c8] sm:$0xff]  }
  0x39   : > { %6565 = vmatpush3.bf16.msra.mxu0 %v7294_v56  ;;  %v7354_v56 = vld [vmem:[%s9499_s1 + $0x308] sm:$0xff]  }
  0x3a   : > { %6587 = vmatpush3.bf16.msra.mxu1 %v7295_v57  ;;  %6566 = vmatprep.subr.bf16.mxu0 %v7296_v58  ;;  %v7355_v57 = vld [vmem:[%s9499_s1 + $0x388] sm:$0xff]   ;;  %v7356_v58 = vld [vmem:[%s9499_s1 + $0x350] sm:$0xff]  }
  0x3b   : > { %6588 = vmatprep.subr.bf16.mxu1 %v7297_v59  ;;  %v7357_v59 = vld [vmem:[%s9499_s1 + $0x3d0] sm:$0xff]  }
  0x3d   : > { %6567 = vmatpush3.bf16.msra.mxu0 %v7298_v60  ;;  %v7358_v60 = vld [vmem:[%s9499_s1 + $0x310] sm:$0xff]  }
  0x3e   : > { %6589 = vmatpush3.bf16.msra.mxu1 %v7299_v61  ;;  %6568 = vmatprep.subr.bf16.mxu0 %v7300_v62  ;;  %v7359_v61 = vld [vmem:[%s9499_s1 + $0x390] sm:$0xff]   ;;  %v7360_v62 = vld [vmem:[%s9499_s1 + $0x358] sm:$0xff]  }
  0x3f   : > { %6590 = vmatprep.subr.bf16.mxu1 %v7301_v63  ;;  %v7361_v63 = vld [vmem:[%s9499_s1 + $0x3d8] sm:$0xff]  }
  0x41   : > { %6569 = vmatpush3.bf16.msra.mxu0 %v7302_v0  ;;  %v7362_v0 = vld [vmem:[%s9499_s1 + $0x318] sm:$0xff]  }
  0x42   : > { %6591 = vmatpush3.bf16.msra.mxu1 %v7303_v1  ;;  %6570 = vmatprep.subr.bf16.mxu0 %v7304_v2  ;;  %v7363_v1 = vld [vmem:[%s9499_s1 + $0x398] sm:$0xff]   ;;  %v7364_v2 = vld [vmem:[%s9499_s1 + $0x360] sm:$0xff]  }
  0x43   : > { %6592 = vmatprep.subr.bf16.mxu1 %v7305_v3  ;;  %v7365_v3 = vld [vmem:[%s9499_s1 + $0x3e0] sm:$0xff]  }
  0x45   : > { %6571 = vmatpush3.bf16.msra.mxu0 %v7306_v4  ;;  %v7366_v4 = vld [vmem:[%s9499_s1 + $0x320] sm:$0xff]  }
  0x46   : > { %6593 = vmatpush3.bf16.msra.mxu1 %v7307_v5  ;;  %6600 = vmatprep.subr.bf16.mxu0 %v7312_v12  ;;  %v7367_v5 = vld [vmem:[%s9499_s1 + $0x3a0] sm:$0xff]   ;;  %v7374_v12 = vld [vmem:[%s9499_s1 + $0x330] sm:$0xff]  }
  0x47   : > { %6622 = vmatprep.subr.bf16.mxu1 %v7313_v13  ;;  %v7375_v13 = vld [vmem:[%s9499_s1 + $0x3b0] sm:$0xff]  }
  0x48   : > { %4676 = vmatmul.mubr.bf16.vlgmr.msra.gmra.mrb[4].mxu0 %v5937_v7  ;;  %v7369_v7 = vld [vmem:[%s9499_s1 + $0x3e8] sm:$0xff]  }
  0x49   : > { %4716 = vmatmul.mubr.bf16.vlgmr.msra.gmra.mrb[4].mxu1 %v5939_v10  ;;  %6601 = vmatpush3.bf16.msra.mxu0 %v7314_v14  ;;  %v7372_v10 = vld [vmem:[%s9499_s1 + $0x370] sm:$0xff]   ;;  %v7376_v14 = vld [vmem:[%s9499_s1 + $0x378] sm:$0xff]  }
  0x4a   : > { %6623 = vmatpush3.bf16.msra.mxu1 %v7315_v15  ;;  %6602 = vmatprep.subr.bf16.mxu0 %v7316_v16  ;;  %v7377_v15 = vld [vmem:[%s9499_s1 + $0x3f8] sm:$0xff]  }
  0x4b   : > { %6624 = vmatprep.subr.bf16.mxu1 %v7317_v17  ;;  %4755 = vmatprep.mubr.bf16.mxu0 %v5942_v47  ;;  %v7378_v16 = vld [vmem:[%s9499_s1 + $0x338] sm:$0xff]   ;;  %v7407_v47 = vld [vmem:[%s9499_s1 + $0x4a8] sm:$0xff]  }
  0x4c   : > { %4795 = vmatprep.mubr.bf16.mxu1 %v5944_v49  ;;  %v7379_v17 = vld [vmem:[%s9499_s1 + $0x3b8] sm:$0xff]   ;;  %v7409_v49 = vld [vmem:[%s9499_s1 + $0x4f0] sm:$0xff]  }
  0x4d   : > { %6603 = vmatpush3.bf16.msra.mxu0 %v7318_v18  ;;  %v210_v18 = vld [vmem:[%s7978_s6 + $0x30] sm:$0xff] }
  0x4e   : > { %6625 = vmatpush3.bf16.msra.mxu1 %v7319_v19  ;;  %6604 = vmatprep.subr.bf16.mxu0 %v7320_v20  ;;  %v211_v19 = vld [vmem:[%s7978_s6 + $0x38] sm:$0xff]  ;;  %v5945_v20 = vcombine.low %v210_v18, %v210_v18 }
  0x4f   : > { %6626 = vmatprep.subr.bf16.mxu1 %v7321_v21  ;;  %v5946_v21 = vcombine.high %v210_v18, %v210_v18  ;;  %v7440_v18 = vld [vmem:[%s9499_s1 + $0x568] sm:$0xff]  }
  0x51   : > { %6605 = vmatpush3.bf16.msra.mxu0 %v7322_v22  ;;  %v5947_v22 = vcombine.low %v211_v19, %v211_v19 }
  0x52   : > { %6627 = vmatpush3.bf16.msra.mxu1 %v7323_v23  ;;  %6606 = vmatprep.subr.bf16.mxu0 %v7324_v24  ;;  %v7384_v23 = vld [vmem:[%s9499_s1 + $0x440] sm:$0xff]   ;;  %v5948_v24 = vcombine.high %v211_v19, %v211_v19  ;;  %v7441_v19 = vld [vmem:[%s9499_s1 + $0x5e8] sm:$0xff]  }
  0x53   : > { %6628 = vmatprep.subr.bf16.mxu1 %v7325_v25  ;;  %v7385_v25 = vld [vmem:[%s9499_s1 + $0x4c0] sm:$0xff]  }
  0x55   : > { %6607 = vmatpush3.bf16.msra.mxu0 %v7326_v26  ;;  %v7386_v26 = vld [vmem:[%s9499_s1 + $0x400] sm:$0xff]  }
  0x56   : > { %6629 = vmatpush3.bf16.msra.mxu1 %v7327_v27  ;;  %6608 = vmatprep.subr.bf16.mxu0 %v7328_v28  ;;  %v7387_v27 = vld [vmem:[%s9499_s1 + $0x480] sm:$0xff]   ;;  %v7388_v28 = vld [vmem:[%s9499_s1 + $0x448] sm:$0xff]  }
  0x57   : > { %6630 = vmatprep.subr.bf16.mxu1 %v7329_v29  ;;  %v7389_v29 = vld [vmem:[%s9499_s1 + $0x4c8] sm:$0xff]  }
  0x59   : > { %6609 = vmatpush3.bf16.msra.mxu0 %v7330_v30  ;;  %v7390_v30 = vld [vmem:[%s9499_s1 + $0x408] sm:$0xff]  }
  0x5a   : > { %6631 = vmatpush3.bf16.msra.mxu1 %v7331_v31  ;;  %6610 = vmatprep.subr.bf16.mxu0 %v7332_v32  ;;  %v7391_v31 = vld [vmem:[%s9499_s1 + $0x488] sm:$0xff]   ;;  %v7392_v32 = vld [vmem:[%s9499_s1 + $0x450] sm:$0xff]  }
  0x5b   : > { %6632 = vmatprep.subr.bf16.mxu1 %v7333_v33  ;;  %v7393_v33 = vld [vmem:[%s9499_s1 + $0x4d0] sm:$0xff]  }
  0x5d   : > { %6611 = vmatpush3.bf16.msra.mxu0 %v7334_v34  ;;  %v7394_v34 = vld [vmem:[%s9499_s1 + $0x410] sm:$0xff]  }
  0x5e   : > { %6633 = vmatpush3.bf16.msra.mxu1 %v7335_v35  ;;  %6612 = vmatprep.subr.bf16.mxu0 %v7336_v36  ;;  %v7395_v35 = vld [vmem:[%s9499_s1 + $0x490] sm:$0xff]   ;;  %v7396_v36 = vld [vmem:[%s9499_s1 + $0x458] sm:$0xff]  }
  0x5f   : > { %6634 = vmatprep.subr.bf16.mxu1 %v7337_v37  ;;  %v7397_v37 = vld [vmem:[%s9499_s1 + $0x4d8] sm:$0xff]  }
  0x61   : > { %6613 = vmatpush3.bf16.msra.mxu0 %v7338_v38  ;;  %v7398_v38 = vld [vmem:[%s9499_s1 + $0x418] sm:$0xff]  }
  0x62   : > { %6635 = vmatpush3.bf16.msra.mxu1 %v7339_v39  ;;  %6614 = vmatprep.subr.bf16.mxu0 %v7340_v40  ;;  %v7399_v39 = vld [vmem:[%s9499_s1 + $0x498] sm:$0xff]   ;;  %v7400_v40 = vld [vmem:[%s9499_s1 + $0x460] sm:$0xff]  }
  0x63   : > { %6636 = vmatprep.subr.bf16.mxu1 %v7341_v41  ;;  %v7401_v41 = vld [vmem:[%s9499_s1 + $0x4e0] sm:$0xff]  }
  0x65   : > { %6615 = vmatpush3.bf16.msra.mxu0 %v7342_v42  ;;  %v7402_v42 = vld [vmem:[%s9499_s1 + $0x420] sm:$0xff]  }
  0x66   : > { %6637 = vmatpush3.bf16.msra.mxu1 %v7343_v43  ;;  %6644 = vmatprep.subr.bf16.mxu0 %v7348_v50  ;;  %v7403_v43 = vld [vmem:[%s9499_s1 + $0x4a0] sm:$0xff]   ;;  %v7410_v50 = vld [vmem:[%s9499_s1 + $0x430] sm:$0xff]  }
  0x67   : > { %6666 = vmatprep.subr.bf16.mxu1 %v7349_v51  ;;  %v7411_v51 = vld [vmem:[%s9499_s1 + $0x4b0] sm:$0xff]  }
  0x68   : > { %4756 = vmatmul.mubr.bf16.vlgmr.msra.gmra.mrb[8].mxu0 %v5941_v46  ;;  %v7406_v46 = vld [vmem:[%s9499_s1 + $0x428] sm:$0xff]  }
  0x69   : > { %4796 = vmatmul.mubr.bf16.vlgmr.msra.gmra.mrb[8].mxu1 %v5943_v48  ;;  %6645 = vmatpush3.bf16.msra.mxu0 %v7350_v52  ;;  %v7408_v48 = vld [vmem:[%s9499_s1 + $0x470] sm:$0xff]   ;;  %v7412_v52 = vld [vmem:[%s9499_s1 + $0x478] sm:$0xff]  }
  0x6a   : > { %6667 = vmatpush3.bf16.msra.mxu1 %v7351_v53  ;;  %6646 = vmatprep.subr.bf16.mxu0 %v7352_v54  ;;  %v7413_v53 = vld [vmem:[%s9499_s1 + $0x4f8] sm:$0xff]  }
  0x6b   : > { %6668 = vmatprep.subr.bf16.mxu1 %v7353_v55  ;;  %4835 = vmatprep.mubr.bf16.mxu0 %v5946_v21  ;;  %v7414_v54 = vld [vmem:[%s9499_s1 + $0x438] sm:$0xff]   ;;  %v7443_v21 = vld [vmem:[%s9499_s1 + $0x5a8] sm:$0xff]  }
  0x6c   : > { %4875 = vmatprep.mubr.bf16.mxu1 %v5948_v24  ;;  %v7415_v55 = vld [vmem:[%s9499_s1 + $0x4b8] sm:$0xff]   ;;  %v7446_v24 = vld [vmem:[%s9499_s1 + $0x530] sm:$0xff]  }
  0x6d   : > { %6647 = vmatpush3.bf16.msra.mxu0 %v7354_v56  ;;  %v212_v56 = vld [vmem:[%s7978_s6 + $0x40] sm:$0xff] }
  0x6e   : > { %6669 = vmatpush3.bf16.msra.mxu1 %v7355_v57  ;;  %6648 = vmatprep.subr.bf16.mxu0 %v7356_v58  ;;  %v5949_v57 = vcombine.low %v212_v56, %v212_v56  ;;  %v5950_v58 = vcombine.high %v212_v56, %v212_v56  ;;  %v7476_v56 = vld [vmem:[%s9499_s1 + $0x668] sm:$0xff]  }
  0x6f   : > { %6670 = vmatprep.subr.bf16.mxu1 %v7357_v59  ;;  %v213_v59 = vld [vmem:[%s7978_s6 + $0x48] sm:$0xff] }
  0x71   : > { %6649 = vmatpush3.bf16.msra.mxu0 %v7358_v60  ;;  %v5951_v60 = vcombine.low %v213_v59, %v213_v59 }
  0x72   : > { %6671 = vmatpush3.bf16.msra.mxu1 %v7359_v61  ;;  %6650 = vmatprep.subr.bf16.mxu0 %v7360_v62  ;;  %v5952_v61 = vcombine.high %v213_v59, %v213_v59  ;;  %v7420_v62 = vld [vmem:[%s9499_s1 + $0x540] sm:$0xff]   ;;  %v7479_v59 = vld [vmem:[%s9499_s1 + $0x6a8] sm:$0xff]  }
  0x73   : > { %6672 = vmatprep.subr.bf16.mxu1 %v7361_v63  ;;  %v7421_v63 = vld [vmem:[%s9499_s1 + $0x5c0] sm:$0xff]  }
  0x75   : > { %6651 = vmatpush3.bf16.msra.mxu0 %v7362_v0  ;;  %v7422_v0 = vld [vmem:[%s9499_s1 + $0x500] sm:$0xff]  }
  0x76   : > { %6673 = vmatpush3.bf16.msra.mxu1 %v7363_v1  ;;  %6652 = vmatprep.subr.bf16.mxu0 %v7364_v2  ;;  %v7423_v1 = vld [vmem:[%s9499_s1 + $0x580] sm:$0xff]   ;;  %v7424_v2 = vld [vmem:[%s9499_s1 + $0x548] sm:$0xff]  }
  0x77   : > { %6674 = vmatprep.subr.bf16.mxu1 %v7365_v3  ;;  %v7425_v3 = vld [vmem:[%s9499_s1 + $0x5c8] sm:$0xff]  }
  0x79   : > { %6653 = vmatpush3.bf16.msra.mxu0 %v7366_v4  ;;  %v7426_v4 = vld [vmem:[%s9499_s1 + $0x508] sm:$0xff]  }
  0x7a   : > { %6675 = vmatpush3.bf16.msra.mxu1 %v7367_v5  ;;  %6654 = vmatprep.subr.bf16.mxu0 %v7368_v6  ;;  %v7427_v5 = vld [vmem:[%s9499_s1 + $0x588] sm:$0xff]   ;;  %v7428_v6 = vld [vmem:[%s9499_s1 + $0x550] sm:$0xff]  }
  0x7b   : > { %6676 = vmatprep.subr.bf16.mxu1 %v7369_v7  ;;  %v7429_v7 = vld [vmem:[%s9499_s1 + $0x5d0] sm:$0xff]  }
  0x7d   : > { %6655 = vmatpush3.bf16.msra.mxu0 %v7370_v8  ;;  %v7430_v8 = vld [vmem:[%s9499_s1 + $0x510] sm:$0xff]  }
  0x7e   : > { %6677 = vmatpush3.bf16.msra.mxu1 %v7371_v9  ;;  %6656 = vmatprep.subr.bf16.mxu0 %v7372_v10  ;;  %v7431_v9 = vld [vmem:[%s9499_s1 + $0x590] sm:$0xff]   ;;  %v7432_v10 = vld [vmem:[%s9499_s1 + $0x558] sm:$0xff]  }
  0x7f   : > { %6678 = vmatprep.subr.bf16.mxu1 %v7373_v11  ;;  %v7433_v11 = vld [vmem:[%s9499_s1 + $0x5d8] sm:$0xff]  }
  0x81   : > { %6657 = vmatpush3.bf16.msra.mxu0 %v7374_v12  ;;  %v7434_v12 = vld [vmem:[%s9499_s1 + $0x518] sm:$0xff]  }
  0x82   : > { %6679 = vmatpush3.bf16.msra.mxu1 %v7375_v13  ;;  %6658 = vmatprep.subr.bf16.mxu0 %v7376_v14  ;;  %v7435_v13 = vld [vmem:[%s9499_s1 + $0x598] sm:$0xff]   ;;  %v7436_v14 = vld [vmem:[%s9499_s1 + $0x560] sm:$0xff]  }
  0x83   : > { %6680 = vmatprep.subr.bf16.mxu1 %v7377_v15  ;;  %v7437_v15 = vld [vmem:[%s9499_s1 + $0x5e0] sm:$0xff]  }
  0x85   : > { %6659 = vmatpush3.bf16.msra.mxu0 %v7378_v16  ;;  %v7438_v16 = vld [vmem:[%s9499_s1 + $0x520] sm:$0xff]  }
  0x86   : > { %6681 = vmatpush3.bf16.msra.mxu1 %v7379_v17  ;;  %6688 = vmatprep.subr.bf16.mxu0 %v7384_v23  ;;  %v7439_v17 = vld [vmem:[%s9499_s1 + $0x5a0] sm:$0xff]   ;;  %v7445_v23 = vld [vmem:[%s9499_s1 + $0x5f0] sm:$0xff]  }
  0x87   : > { %6710 = vmatprep.subr.bf16.mxu1 %v7385_v25  ;;  %v7447_v25 = vld [vmem:[%s9499_s1 + $0x5b0] sm:$0xff]  }
  0x88   : > { %4836 = vmatmul.mubr.bf16.vlgmr.msra.gmra.mrb[12].mxu0 %v5945_v20  ;;  %v7442_v20 = vld [vmem:[%s9499_s1 + $0x528] sm:$0xff]  }
  0x89   : > { %4876 = vmatmul.mubr.bf16.vlgmr.msra.gmra.mrb[12].mxu1 %v5947_v22  ;;  %6689 = vmatpush3.bf16.msra.mxu0 %v7386_v26  ;;  %v7444_v22 = vld [vmem:[%s9499_s1 + $0x570] sm:$0xff]   ;;  %v7448_v26 = vld [vmem:[%s9499_s1 + $0x578] sm:$0xff]  }
  0x8a   : > { %6711 = vmatpush3.bf16.msra.mxu1 %v7387_v27  ;;  %6690 = vmatprep.subr.bf16.mxu0 %v7388_v28  ;;  %v7449_v27 = vld [vmem:[%s9499_s1 + $0x5f8] sm:$0xff]  }
  0x8b   : > { %6712 = vmatprep.subr.bf16.mxu1 %v7389_v29  ;;  %4915 = vmatprep.mubr.bf16.mxu0 %v5950_v58  ;;  %v7450_v28 = vld [vmem:[%s9499_s1 + $0x538] sm:$0xff]   ;;  %v7478_v58 = vld [vmem:[%s9499_s1 + $0x628] sm:$0xff]  }
  0x8c   : > { %4955 = vmatprep.mubr.bf16.mxu1 %v5952_v61  ;;  %v7451_v29 = vld [vmem:[%s9499_s1 + $0x5b8] sm:$0xff]   ;;  %v7481_v61 = vld [vmem:[%s9499_s1 + $0x6f0] sm:$0xff]  }
  0x8d   : > { %6691 = vmatpush3.bf16.msra.mxu0 %v7390_v30  ;;  %v214_v30 = vld [vmem:[%s7978_s6 + $0x50] sm:$0xff] }
  0x8e   : > { %6713 = vmatpush3.bf16.msra.mxu1 %v7391_v31  ;;  %6692 = vmatprep.subr.bf16.mxu0 %v7392_v32  ;;  %v215_v31 = vld [vmem:[%s7978_s6 + $0x58] sm:$0xff]  ;;  %v5953_v32 = vcombine.low %v214_v30, %v214_v30 }
  0x8f   : > { %6714 = vmatprep.subr.bf16.mxu1 %v7393_v33  ;;  %v5954_v33 = vcombine.high %v214_v30, %v214_v30  ;;  %v7511_v30 = vld [vmem:[%s9499_s1 + $0x7a0] sm:$0xff]  }
  0x91   : > { %6693 = vmatpush3.bf16.msra.mxu0 %v7394_v34  ;;  %v5955_v34 = vcombine.low %v215_v31, %v215_v31 }
  0x92   : > { %6715 = vmatpush3.bf16.msra.mxu1 %v7395_v35  ;;  %6694 = vmatprep.subr.bf16.mxu0 %v7396_v36  ;;  %v5956_v35 = vcombine.high %v215_v31, %v215_v31  ;;  %v7456_v36 = vld [vmem:[%s9499_s1 + $0x640] sm:$0xff]  }
  0x93   : > { %6716 = vmatprep.subr.bf16.mxu1 %v7397_v37  ;;  %v7457_v37 = vld [vmem:[%s9499_s1 + $0x6c0] sm:$0xff]  }
  0x95   : > { %6695 = vmatpush3.bf16.msra.mxu0 %v7398_v38  ;;  %v7458_v38 = vld [vmem:[%s9499_s1 + $0x600] sm:$0xff]  }
  0x96   : > { %6717 = vmatpush3.bf16.msra.mxu1 %v7399_v39  ;;  %6696 = vmatprep.subr.bf16.mxu0 %v7400_v40  ;;  %v7459_v39 = vld [vmem:[%s9499_s1 + $0x680] sm:$0xff]   ;;  %v7460_v40 = vld [vmem:[%s9499_s1 + $0x648] sm:$0xff]  }
  0x97   : > { %6718 = vmatprep.subr.bf16.mxu1 %v7401_v41  ;;  %v7461_v41 = vld [vmem:[%s9499_s1 + $0x6c8] sm:$0xff]  }
  0x99   : > { %6697 = vmatpush3.bf16.msra.mxu0 %v7402_v42  ;;  %v7462_v42 = vld [vmem:[%s9499_s1 + $0x608] sm:$0xff]  }
  0x9a   : > { %6719 = vmatpush3.bf16.msra.mxu1 %v7403_v43  ;;  %6698 = vmatprep.subr.bf16.mxu0 %v7404_v44  ;;  %v7463_v43 = vld [vmem:[%s9499_s1 + $0x688] sm:$0xff]   ;;  %v7464_v44 = vld [vmem:[%s9499_s1 + $0x650] sm:$0xff]  }
  0x9b   : > { %6720 = vmatprep.subr.bf16.mxu1 %v7405_v45  ;;  %v7465_v45 = vld [vmem:[%s9499_s1 + $0x6d0] sm:$0xff]  }
  0x9d   : > { %6699 = vmatpush3.bf16.msra.mxu0 %v7406_v46  ;;  %v7466_v46 = vld [vmem:[%s9499_s1 + $0x610] sm:$0xff]  }
  0x9e   : > { %6721 = vmatpush3.bf16.msra.mxu1 %v7407_v47  ;;  %6700 = vmatprep.subr.bf16.mxu0 %v7408_v48  ;;  %v7467_v47 = vld [vmem:[%s9499_s1 + $0x690] sm:$0xff]   ;;  %v7468_v48 = vld [vmem:[%s9499_s1 + $0x658] sm:$0xff]  }
  0x9f   : > { %6722 = vmatprep.subr.bf16.mxu1 %v7409_v49  ;;  %v7469_v49 = vld [vmem:[%s9499_s1 + $0x6d8] sm:$0xff]  }
  0xa1   : > { %6701 = vmatpush3.bf16.msra.mxu0 %v7410_v50  ;;  %v7470_v50 = vld [vmem:[%s9499_s1 + $0x618] sm:$0xff]  }
  0xa2   : > { %6723 = vmatpush3.bf16.msra.mxu1 %v7411_v51  ;;  %6702 = vmatprep.subr.bf16.mxu0 %v7412_v52  ;;  %v7471_v51 = vld [vmem:[%s9499_s1 + $0x698] sm:$0xff]   ;;  %v7472_v52 = vld [vmem:[%s9499_s1 + $0x660] sm:$0xff]  }
  0xa3   : > { %6724 = vmatprep.subr.bf16.mxu1 %v7413_v53  ;;  %v7473_v53 = vld [vmem:[%s9499_s1 + $0x6e0] sm:$0xff]  }
  0xa5   : > { %6703 = vmatpush3.bf16.msra.mxu0 %v7414_v54  ;;  %v7474_v54 = vld [vmem:[%s9499_s1 + $0x620] sm:$0xff]  }
  0xa6   : > { %6725 = vmatpush3.bf16.msra.mxu1 %v7415_v55  ;;  %6732 = vmatprep.subr.bf16.mxu0 %v7420_v62  ;;  %v7475_v55 = vld [vmem:[%s9499_s1 + $0x6a0] sm:$0xff]   ;;  %v7482_v62 = vld [vmem:[%s9499_s1 + $0x630] sm:$0xff]  }
  0xa7   : > { %6754 = vmatprep.subr.bf16.mxu1 %v7421_v63  ;;  %v7483_v63 = vld [vmem:[%s9499_s1 + $0x6b0] sm:$0xff]  }
  0xa8   : > { %4916 = vmatmul.mubr.bf16.vlgmr.msra.gmra.mrb[16].mxu0 %v5949_v57  ;;  %v7477_v57 = vld [vmem:[%s9499_s1 + $0x6e8] sm:$0xff]  }
  0xa9   : > { %4956 = vmatmul.mubr.bf16.vlgmr.msra.gmra.mrb[16].mxu1 %v5951_v60  ;;  %6733 = vmatpush3.bf16.msra.mxu0 %v7422_v0  ;;  %v7480_v60 = vld [vmem:[%s9499_s1 + $0x670] sm:$0xff]   ;;  %v7484_v0 = vld [vmem:[%s9499_s1 + $0x678] sm:$0xff]  }
  0xaa   : > { %6755 = vmatpush3.bf16.msra.mxu1 %v7423_v1  ;;  %6734 = vmatprep.subr.bf16.mxu0 %v7424_v2  ;;  %v7485_v1 = vld [vmem:[%s9499_s1 + $0x6f8] sm:$0xff]  }
  0xab   : > { %6756 = vmatprep.subr.bf16.mxu1 %v7425_v3  ;;  %4995 = vmatprep.mubr.bf16.mxu0 %v5954_v33  ;;  %v7486_v2 = vld [vmem:[%s9499_s1 + $0x638] sm:$0xff]  }
  0xac   : > { %5035 = vmatprep.mubr.bf16.mxu1 %v5956_v35  ;;  %v7487_v3 = vld [vmem:[%s9499_s1 + $0x6b8] sm:$0xff]  }
  0xad   : > { %6735 = vmatpush3.bf16.msra.mxu0 %v7426_v4  ;;  %v216_v4 = vld [vmem:[%s7978_s6 + $0x60] sm:$0xff] }
  0xae   : > { %6757 = vmatpush3.bf16.msra.mxu1 %v7427_v5  ;;  %6736 = vmatprep.subr.bf16.mxu0 %v7428_v6  ;;  %v217_v5 = vld [vmem:[%s7978_s6 + $0x68] sm:$0xff]  ;;  %v5957_v6 = vcombine.low %v216_v4, %v216_v4 }
  0xaf   : > { %6758 = vmatprep.subr.bf16.mxu1 %v7429_v7  ;;  %v5958_v7 = vcombine.high %v216_v4, %v216_v4  ;;  %v7535_v4 = vld [vmem:[%s9499_s1 + $0x888] sm:$0xff]  }
  0xb1   : > { %6737 = vmatpush3.bf16.msra.mxu0 %v7430_v8  ;;  %v5959_v8 = vcombine.low %v217_v5, %v217_v5 }
  0xb2   : > { %6759 = vmatpush3.bf16.msra.mxu1 %v7431_v9  ;;  %6738 = vmatprep.subr.bf16.mxu0 %v7432_v10  ;;  %v7492_v9 = vld [vmem:[%s9499_s1 + $0x740] sm:$0xff]   ;;  %v5960_v10 = vcombine.high %v217_v5, %v217_v5  ;;  %v7536_v5 = vld [vmem:[%s9499_s1 + $0x850] sm:$0xff]  }
  0xb3   : > { %6760 = vmatprep.subr.bf16.mxu1 %v7433_v11  ;;  %v7493_v11 = vld [vmem:[%s9499_s1 + $0x7c0] sm:$0xff]  }
  0xb5   : > { %6739 = vmatpush3.bf16.msra.mxu0 %v7434_v12  ;;  %v7494_v12 = vld [vmem:[%s9499_s1 + $0x700] sm:$0xff]  }
  0xb6   : > { %6761 = vmatpush3.bf16.msra.mxu1 %v7435_v13  ;;  %6740 = vmatprep.subr.bf16.mxu0 %v7436_v14  ;;  %v7495_v13 = vld [vmem:[%s9499_s1 + $0x780] sm:$0xff]   ;;  %v7496_v14 = vld [vmem:[%s9499_s1 + $0x748] sm:$0xff]  }
  0xb7   : > { %6762 = vmatprep.subr.bf16.mxu1 %v7437_v15  ;;  %v7497_v15 = vld [vmem:[%s9499_s1 + $0x7c8] sm:$0xff]  }
  0xb9   : > { %6741 = vmatpush3.bf16.msra.mxu0 %v7438_v16  ;;  %v7498_v16 = vld [vmem:[%s9499_s1 + $0x708] sm:$0xff]  }
  0xba   : > { %6763 = vmatpush3.bf16.msra.mxu1 %v7439_v17  ;;  %6742 = vmatprep.subr.bf16.mxu0 %v7440_v18  ;;  %v7499_v17 = vld [vmem:[%s9499_s1 + $0x788] sm:$0xff]   ;;  %v7500_v18 = vld [vmem:[%s9499_s1 + $0x750] sm:$0xff]  }
  0xbb   : > { %6764 = vmatprep.subr.bf16.mxu1 %v7441_v19  ;;  %v7501_v19 = vld [vmem:[%s9499_s1 + $0x7d0] sm:$0xff]  }
  0xbd   : > { %6743 = vmatpush3.bf16.msra.mxu0 %v7442_v20  ;;  %v7502_v20 = vld [vmem:[%s9499_s1 + $0x710] sm:$0xff]  }
  0xbe   : > { %6765 = vmatpush3.bf16.msra.mxu1 %v7443_v21  ;;  %6744 = vmatprep.subr.bf16.mxu0 %v7444_v22  ;;  %v7503_v21 = vld [vmem:[%s9499_s1 + $0x790] sm:$0xff]   ;;  %v7504_v22 = vld [vmem:[%s9499_s1 + $0x758] sm:$0xff]  }
  0xbf   : > { %6766 = vmatprep.subr.bf16.mxu1 %v7445_v23  ;;  %v7505_v23 = vld [vmem:[%s9499_s1 + $0x7d8] sm:$0xff]  }
  0xc1   : > { %6745 = vmatpush3.bf16.msra.mxu0 %v7446_v24  ;;  %v7506_v24 = vld [vmem:[%s9499_s1 + $0x718] sm:$0xff]  }
  0xc2   : > { %6767 = vmatpush3.bf16.msra.mxu1 %v7447_v25  ;;  %6746 = vmatprep.subr.bf16.mxu0 %v7448_v26  ;;  %v7507_v25 = vld [vmem:[%s9499_s1 + $0x798] sm:$0xff]   ;;  %v7508_v26 = vld [vmem:[%s9499_s1 + $0x760] sm:$0xff]  }
  0xc3   : > { %6768 = vmatprep.subr.bf16.mxu1 %v7449_v27  ;;  %v7509_v27 = vld [vmem:[%s9499_s1 + $0x7e0] sm:$0xff]  }
  0xc5   : > { %6747 = vmatpush3.bf16.msra.mxu0 %v7450_v28  ;;  %v7510_v28 = vld [vmem:[%s9499_s1 + $0x720] sm:$0xff]  }
  0xc6   : > { %6769 = vmatpush3.bf16.msra.mxu1 %v7451_v29  ;;  %6776 = vmatprep.subr.bf16.mxu0 %v7456_v36 }
  0xc7   : > { %6798 = vmatprep.subr.bf16.mxu1 %v7457_v37  ;;  %v7512_v37 = vld [vmem:[%s9499_s1 + $0x768] sm:$0xff]  }
  0xc8   : > { %4996 = vmatmul.mubr.bf16.vlgmr.msra.gmra.mrb[20].mxu0 %v5953_v32  ;;  %v5932_v32 = vld [vmem:[%s9500_s2] ss:$0 sm:$0xff] }
  0xc9   : > { %5036 = vmatmul.mubr.bf16.vlgmr.msra.gmra.mrb[20].mxu1 %v5955_v34  ;;  %6777 = vmatpush3.bf16.msra.mxu0 %v7458_v38 }
  0xca   : > { %6799 = vmatpush3.bf16.msra.mxu1 %v7459_v39  ;;  %6778 = vmatprep.subr.bf16.mxu0 %v7460_v40  ;;  %v7513_v39 = vld [vmem:[%s9499_s1 + $0x7e8] sm:$0xff]  }
  0xcb   : > { %6800 = vmatprep.subr.bf16.mxu1 %v7461_v41  ;;  %5075 = vmatprep.mubr.bf16.mxu0 %v5958_v7  ;;  %v7538_v7 = vld [vmem:[%s9499_s1 + $0x810] sm:$0xff]  }
  0xcc   : > { %5115 = vmatprep.mubr.bf16.mxu1 %v5960_v10  ;;  %v7541_v10 = vld [vmem:[%s9499_s1 + $0x8d8] sm:$0xff]  }
  0xcd   : > { %6779 = vmatpush3.bf16.msra.mxu0 %v7462_v42  ;;  %v7514_v42 = vld [vmem:[%s9499_s1 + $0x728] sm:$0xff]  }
  0xce   : > { %6801 = vmatpush3.bf16.msra.mxu1 %v7463_v43  ;;  %6780 = vmatprep.subr.bf16.mxu0 %v7464_v44  ;;  %v7515_v44 = vld [vmem:[%s9499_s1 + $0x7a8] sm:$0xff]  }
  0xcf   : > { %6802 = vmatprep.subr.bf16.mxu1 %v7465_v45 }
  0xd1   : > { %6781 = vmatpush3.bf16.msra.mxu0 %v7466_v46 }
  0xd2   : > { %6803 = vmatpush3.bf16.msra.mxu1 %v7467_v47  ;;  %6782 = vmatprep.subr.bf16.mxu0 %v7468_v48  ;;  %v7516_v47 = vld [vmem:[%s9499_s1 + $0x770] sm:$0xff]  }
  0xd3   : > { %6804 = vmatprep.subr.bf16.mxu1 %v7469_v49  ;;  %v7517_v48 = vld [vmem:[%s9499_s1 + $0x7f0] sm:$0xff]  }
  0xd4   : > { %v7518_v49 = vld [vmem:[%s9499_s1 + $0x730] sm:$0xff]  }
  0xd5   : > { %6783 = vmatpush3.bf16.msra.mxu0 %v7470_v50  ;;  %v7519_v50 = vld [vmem:[%s9499_s1 + $0x7b0] sm:$0xff]  }
  0xd6   : > { %6805 = vmatpush3.bf16.msra.mxu1 %v7471_v51  ;;  %6784 = vmatprep.subr.bf16.mxu0 %v7472_v52  ;;  %v7520_v51 = vld [vmem:[%s9499_s1 + $0x778] sm:$0xff]  }
  0xd7   : > { %6806 = vmatprep.subr.bf16.mxu1 %v7473_v53  ;;  %v7521_v52 = vld [vmem:[%s9499_s1 + $0x7f8] sm:$0xff]  }
  0xd8   : > { %v7522_v53 = vld [vmem:[%s9499_s1 + $0x738] sm:$0xff]  }
  0xd9   : > { %6785 = vmatpush3.bf16.msra.mxu0 %v7474_v54  ;;  %v7523_v54 = vld [vmem:[%s9499_s1 + $0x7b8] sm:$0xff]  }
  0xda   : > { %6807 = vmatpush3.bf16.msra.mxu1 %v7475_v55  ;;  %6786 = vmatprep.subr.bf16.mxu0 %v7476_v56  ;;  %v218_v55 = vld [vmem:[%s7978_s6 + $0x70] sm:$0xff]  ;;  %v219_v56 = vld [vmem:[%s7978_s6 + $0x78] sm:$0xff] }
  0xdb   : > { %6808 = vmatprep.subr.bf16.mxu1 %v7477_v57  ;;  %v5961_v57 = vcombine.low %v218_v55, %v218_v55 }
  0xdd   : > { %6787 = vmatpush3.bf16.msra.mxu0 %v7478_v58  ;;  %v5962_v58 = vcombine.high %v218_v55, %v218_v55  ;;  %v7572_v55 = vld [vmem:[%s9499_s1 + $0x950] sm:$0xff]  }
  0xde   : > { %6809 = vmatpush3.bf16.msra.mxu1 %v7479_v59  ;;  %6788 = vmatprep.subr.bf16.mxu0 %v7480_v60  ;;  %v5963_v59 = vcombine.low %v219_v56, %v219_v56  ;;  %v5964_v60 = vcombine.high %v219_v56, %v219_v56  ;;  %v7573_v56 = vld [vmem:[%s9499_s1 + $0x9d0] sm:$0xff]  }
  0xdf   : > { %6810 = vmatprep.subr.bf16.mxu1 %v7481_v61  ;;  %v7528_v61 = vld [vmem:[%s9499_s1 + $0x840] sm:$0xff]  }
  0xe1   : > { %6789 = vmatpush3.bf16.msra.mxu0 %v7482_v62  ;;  %v7529_v62 = vld [vmem:[%s9499_s1 + $0x8c0] sm:$0xff]  }
  0xe2   : > { %6811 = vmatpush3.bf16.msra.mxu1 %v7483_v63  ;;  %6790 = vmatprep.subr.bf16.mxu0 %v7484_v0  ;;  %v7530_v63 = vld [vmem:[%s9499_s1 + $0x800] sm:$0xff]  }
  0xe3   : > { %6812 = vmatprep.subr.bf16.mxu1 %v7485_v1  ;;  %v7531_v0 = vld [vmem:[%s9499_s1 + $0x880] sm:$0xff]   ;;  %v7532_v1 = vld [vmem:[%s9499_s1 + $0x848] sm:$0xff]  }
  0xe5   : > { %6791 = vmatpush3.bf16.msra.mxu0 %v7486_v2  ;;  %v7533_v2 = vld [vmem:[%s9499_s1 + $0x8c8] sm:$0xff]  }
  0xe6   : > { %6813 = vmatpush3.bf16.msra.mxu1 %v7487_v3  ;;  %6820 = vmatprep.subr.bf16.mxu0 %v7492_v9  ;;  %v7534_v3 = vld [vmem:[%s9499_s1 + $0x808] sm:$0xff]   ;;  %v7540_v9 = vld [vmem:[%s9499_s1 + $0x858] sm:$0xff]  }
  0xe7   : > { %6842 = vmatprep.subr.bf16.mxu1 %v7493_v11  ;;  %v7542_v11 = vld [vmem:[%s9499_s1 + $0x818] sm:$0xff]  }
  0xe8   : > { %5076 = vmatmul.mubr.bf16.vlgmr.msra.gmra.mrb[24].mxu0 %v5957_v6  ;;  %v7537_v6 = vld [vmem:[%s9499_s1 + $0x8d0] sm:$0xff]  }
  0xe9   : > { %5116 = vmatmul.mubr.bf16.vlgmr.msra.gmra.mrb[24].mxu1 %v5959_v8  ;;  %6821 = vmatpush3.bf16.msra.mxu0 %v7494_v12  ;;  %v7539_v8 = vld [vmem:[%s9499_s1 + $0x890] sm:$0xff]   ;;  %v7543_v12 = vld [vmem:[%s9499_s1 + $0x898] sm:$0xff]  }
  0xea   : > { %6843 = vmatpush3.bf16.msra.mxu1 %v7495_v13  ;;  %6822 = vmatprep.subr.bf16.mxu0 %v7496_v14  ;;  %v7544_v13 = vld [vmem:[%s9499_s1 + $0x860] sm:$0xff]  }
  0xeb   : > { %6844 = vmatprep.subr.bf16.mxu1 %v7497_v15  ;;  %5155 = vmatprep.mubr.bf16.mxu0 %v5962_v58  ;;  %v7545_v14 = vld [vmem:[%s9499_s1 + $0x8e0] sm:$0xff]   ;;  %v7575_v58 = vld [vmem:[%s9499_s1 + $0x990] sm:$0xff]  }
  0xec   : > { %5195 = vmatprep.mubr.bf16.mxu1 %v5964_v60  ;;  %v7546_v15 = vld [vmem:[%s9499_s1 + $0x820] sm:$0xff]   ;;  %v7577_v60 = vld [vmem:[%s9499_s1 + $0x9d8] sm:$0xff]  }
  0xed   : > { %6823 = vmatpush3.bf16.msra.mxu0 %v7498_v16 }
  0xee   : > { %6845 = vmatpush3.bf16.msra.mxu1 %v7499_v17  ;;  %6824 = vmatprep.subr.bf16.mxu0 %v7500_v18  ;;  %v7547_v17 = vld [vmem:[%s9499_s1 + $0x8a0] sm:$0xff]  }
  0xef   : > { %6846 = vmatprep.subr.bf16.mxu1 %v7501_v19 }
  0xf1   : > { %6825 = vmatpush3.bf16.msra.mxu0 %v7502_v20 }
  0xf2   : > { %6847 = vmatpush3.bf16.msra.mxu1 %v7503_v21  ;;  %6826 = vmatprep.subr.bf16.mxu0 %v7504_v22 }
  0xf3   : > { %6848 = vmatprep.subr.bf16.mxu1 %v7505_v23  ;;  %v7548_v23 = vld [vmem:[%s9499_s1 + $0x868] sm:$0xff]  }
  0xf5   : > { %6827 = vmatpush3.bf16.msra.mxu0 %v7506_v24 }
  0xf6   : > { %6849 = vmatpush3.bf16.msra.mxu1 %v7507_v25  ;;  %6828 = vmatprep.subr.bf16.mxu0 %v7508_v26  ;;  %v7549_v25 = vld [vmem:[%s9499_s1 + $0x8e8] sm:$0xff]  }
  0xf7   : > { %6850 = vmatprep.subr.bf16.mxu1 %v7509_v27 }
  0xf9   : > { %6829 = vmatpush3.bf16.msra.mxu0 %v7510_v28  ;;  %v7550_v28 = vld [vmem:[%s9499_s1 + $0x828] sm:$0xff]  }
  0xfa   : > { %6851 = vmatpush3.bf16.msra.mxu1 %v7511_v30  ;;  %6830 = vmatprep.subr.bf16.mxu0 %v7512_v37  ;;  %v7551_v30 = vld [vmem:[%s9499_s1 + $0x8a8] sm:$0xff]   ;;  %v7556_v37 = vld [vmem:[%s9499_s1 + $0x878] sm:$0xff]  }
  0xfb   : > { %v6528_v29 = vpop.f32.mrb[0].mxu0  ;;  %6852 = vmatprep.subr.bf16.mxu1 %v7513_v39  ;;  %v7558_v39 = vld [vmem:[%s9499_s1 + $0x838] sm:$0xff]  }
  0xfc   : > { %v6550_v31 = vpop.f32.mrb[0].mxu1  ;;  %v6529_v33 = vpop.f32.mrb[1].mxu0 }
  0xfd   : > { %v6551_v34 = vpop.f32.mrb[1].mxu1  ;;  %v6530_v35 = vadd.f32 %v6529_v33, %v6528_v29  ;;  %v6531_v38 = vpop.f32.mrb[2].mxu0  ;;  %6831 = vmatpush3.bf16.msra.mxu0 %v7514_v42  ;;  %v7552_v33 = vld [vmem:[%s9499_s1 + $0x870] sm:$0xff]   ;;  %v221_v42 = vld [vmem:[%s7978_s6 + $0x88] sm:$0xff] }
  0xfe   : > { %v6552_v36 = vadd.f32 %v6551_v34, %v6550_v31  ;;  %v6553_v40 = vpop.f32.mrb[2].mxu1  ;;  %v6532_v43 = vpop.f32.mrb[3].mxu0  ;;  %6853 = vmatpush3.bf16.msra.mxu1 %v7515_v44  ;;  %6832 = vmatprep.subr.bf16.mxu0 %v7516_v47  ;;  %v7553_v34 = vld [vmem:[%s9499_s1 + $0x8f0] sm:$0xff]   ;;  %v7557_v38 = vld [vmem:[%s9499_s1 + $0x8f8] sm:$0xff]   ;;  %v7564_v47 = vld [vmem:[%s9499_s1 + $0x940] sm:$0xff]  }
  0xff   : > { %v4598_v41 = vadd.f32 %v6530_v35, %v5932_v32  ;;  %v6554_v45 = vpop.f32.mrb[3].mxu1  ;;  %6854 = vmatprep.subr.bf16.mxu1 %v7517_v48  ;;  %v7554_v35 = vld [vmem:[%s9499_s1 + $0x830] sm:$0xff]   ;;  %v7559_v40 = vld [vmem:[%s9499_s1 + $0x8b8] sm:$0xff]   ;;  %v7565_v48 = vld [vmem:[%s9499_s1 + $0x9c0] sm:$0xff]  }
 0x100   : > { %v5967_v45 = vcombine.low %v221_v42, %v221_v42 }
 0x101   : > { %v8651_v46 = vadd.f32 %v6552_v36, %v4598_v41  ;;  %6833 = vmatpush3.bf16.msra.mxu0 %v7518_v49  ;;  %v7555_v36 = vld [vmem:[%s9499_s1 + $0x8b0] sm:$0xff]   ;;  %v220_v41 = vld [vmem:[%s7978_s6 + $0x80] sm:$0xff] }
 0x102   : > { %6855 = vmatpush3.bf16.msra.mxu1 %v7519_v50  ;;  %6834 = vmatprep.subr.bf16.mxu0 %v7520_v51  ;;  %v5965_v43 = vcombine.low %v220_v41, %v220_v41  ;;  %v5966_v44 = vcombine.high %v220_v41, %v220_v41  ;;  %v7566_v49 = vld [vmem:[%s9499_s1 + $0x900] sm:$0xff]   ;;  %v7568_v51 = vld [vmem:[%s9499_s1 + $0x948] sm:$0xff]   ;;  %v7608_v41 = vld [vmem:[%s9499_s1 + $0xa50] sm:$0xff]  }
 0x103   : > { %6856 = vmatprep.subr.bf16.mxu1 %v7521_v52  ;;  %v7567_v50 = vld [vmem:[%s9499_s1 + $0x980] sm:$0xff]   ;;  %v7569_v52 = vld [vmem:[%s9499_s1 + $0x9c8] sm:$0xff]  }
 0x105   : > { %6835 = vmatpush3.bf16.msra.mxu0 %v7522_v53  ;;  %v7570_v53 = vld [vmem:[%s9499_s1 + $0x908] sm:$0xff]  }
 0x106   : > { %6857 = vmatpush3.bf16.msra.mxu1 %v7523_v54  ;;  %6864 = vmatprep.subr.bf16.mxu0 %v7528_v61  ;;  %v7571_v54 = vld [vmem:[%s9499_s1 + $0x988] sm:$0xff]   ;;  %v7578_v61 = vld [vmem:[%s9499_s1 + $0x918] sm:$0xff]  }
 0x107   : > { %6886 = vmatprep.subr.bf16.mxu1 %v7529_v62  ;;  %v7579_v62 = vld [vmem:[%s9499_s1 + $0x998] sm:$0xff]  }
 0x108   : > { %5156 = vmatmul.mubr.bf16.vlgmr.msra.gmra.mrb[28].mxu0 %v5961_v57  ;;  %v7574_v57 = vld [vmem:[%s9499_s1 + $0x910] sm:$0xff]  }
 0x109   : > { %5196 = vmatmul.mubr.bf16.vlgmr.msra.gmra.mrb[28].mxu1 %v5963_v59  ;;  %6865 = vmatpush3.bf16.msra.mxu0 %v7530_v63  ;;  %v7576_v59 = vld [vmem:[%s9499_s1 + $0x958] sm:$0xff]   ;;  %v7580_v63 = vld [vmem:[%s9499_s1 + $0x960] sm:$0xff]  }
 0x10a   : > { %6887 = vmatpush3.bf16.msra.mxu1 %v7531_v0  ;;  %6866 = vmatprep.subr.bf16.mxu0 %v7532_v1  ;;  %v7581_v0 = vld [vmem:[%s9499_s1 + $0x9e0] sm:$0xff]  }
 0x10b   : > { %6888 = vmatprep.subr.bf16.mxu1 %v7533_v2  ;;  %5235 = vmatprep.mubr.bf16.mxu0 %v5966_v44  ;;  %v7582_v2 = vld [vmem:[%s9499_s1 + $0x920] sm:$0xff]   ;;  %v7611_v44 = vld [vmem:[%s9499_s1 + $0xa90] sm:$0xff]  }
 0x10d   : > { %6867 = vmatpush3.bf16.msra.mxu0 %v7534_v3 }
 0x10e   : > { %6889 = vmatpush3.bf16.msra.mxu1 %v7535_v4  ;;  %6868 = vmatprep.subr.bf16.mxu0 %v7536_v5  ;;  %v7583_v4 = vld [vmem:[%s9499_s1 + $0x9a0] sm:$0xff]  }
 0x10f   : > { %6890 = vmatprep.subr.bf16.mxu1 %v7537_v6 }
 0x111   : > { %6869 = vmatpush3.bf16.msra.mxu0 %v7538_v7 }
 0x112   : > { %6891 = vmatpush3.bf16.msra.mxu1 %v7539_v8  ;;  %6870 = vmatprep.subr.bf16.mxu0 %v7540_v9  ;;  %v7584_v8 = vld [vmem:[%s9499_s1 + $0x968] sm:$0xff]  }
 0x113   : > { %6892 = vmatprep.subr.bf16.mxu1 %v7541_v10  ;;  %v7585_v10 = vld [vmem:[%s9499_s1 + $0x9e8] sm:$0xff]  }
 0x115   : > { %6871 = vmatpush3.bf16.msra.mxu0 %v7542_v11 }
 0x116   : > { %6893 = vmatpush3.bf16.msra.mxu1 %v7543_v12  ;;  %6872 = vmatprep.subr.bf16.mxu0 %v7544_v13 }
 0x117   : > { %6894 = vmatprep.subr.bf16.mxu1 %v7545_v14  ;;  %v7586_v14 = vld [vmem:[%s9499_s1 + $0x928] sm:$0xff]  }
 0x119   : > { %6873 = vmatpush3.bf16.msra.mxu0 %v7546_v15  ;;  %v7587_v15 = vld [vmem:[%s9499_s1 + $0x9a8] sm:$0xff]  }
 0x11a   : > { %6895 = vmatpush3.bf16.msra.mxu1 %v7547_v17  ;;  %6874 = vmatprep.subr.bf16.mxu0 %v7548_v23  ;;  %v7592_v23 = vld [vmem:[%s9499_s1 + $0x978] sm:$0xff]  }
 0x11b   : > { %v6572_v16 = vpop.f32.mrb[4].mxu0  ;;  %6896 = vmatprep.subr.bf16.mxu1 %v7549_v25  ;;  %v7594_v25 = vld [vmem:[%s9499_s1 + $0x938] sm:$0xff]  }
 0x11c   : > { %v6594_v18 = vpop.f32.mrb[4].mxu1  ;;  %v6573_v19 = vpop.f32.mrb[5].mxu0 }
 0x11d   : > { %v6595_v20 = vpop.f32.mrb[5].mxu1  ;;  %v6574_v21 = vadd.f32 %v6573_v19, %v6572_v16  ;;  %v6575_v24 = vpop.f32.mrb[6].mxu0  ;;  %6875 = vmatpush3.bf16.msra.mxu0 %v7550_v28  ;;  %v7588_v19 = vld [vmem:[%s9499_s1 + $0x970] sm:$0xff]   ;;  %v223_v28 = vld [vmem:[%s7978_s6 + $0x98] sm:$0xff] }
 0x11e   : > { %v6596_v22 = vadd.f32 %v6595_v20, %v6594_v18  ;;  %v6597_v26 = vpop.f32.mrb[6].mxu1  ;;  %v6576_v29 = vpop.f32.mrb[7].mxu0  ;;  %6897 = vmatpush3.bf16.msra.mxu1 %v7551_v30  ;;  %6876 = vmatprep.subr.bf16.mxu0 %v7552_v33  ;;  %v7589_v20 = vld [vmem:[%s9499_s1 + $0x9f0] sm:$0xff]   ;;  %v7593_v24 = vld [vmem:[%s9499_s1 + $0x9f8] sm:$0xff]   ;;  %v5972_v33 = vcombine.high %v223_v28, %v223_v28 }
 0x11f   : > { %v4678_v27 = vadd.f32 %v6574_v21, %v8651_v46  ;;  %v6598_v31 = vpop.f32.mrb[7].mxu1  ;;  %6898 = vmatprep.subr.bf16.mxu1 %v7553_v34  ;;  %v5968_v46 = vcombine.high %v221_v42, %v221_v42  ;;  %v7590_v21 = vld [vmem:[%s9499_s1 + $0x930] sm:$0xff]   ;;  %v7595_v26 = vld [vmem:[%s9499_s1 + $0x9b8] sm:$0xff]   ;;  %v7601_v34 = vld [vmem:[%s9499_s1 + $0xac0] sm:$0xff]  }
 0x120   : > { %v5971_v31 = vcombine.low %v223_v28, %v223_v28  ;;  %v7609_v42 = vld [vmem:[%s9499_s1 + $0xad0] sm:$0xff]  }
 0x121   : > { %v8752_v32 = vadd.f32 %v6596_v22, %v4678_v27  ;;  %6877 = vmatpush3.bf16.msra.mxu0 %v7554_v35  ;;  %5275 = vmatprep.mubr.bf16.mxu1 %v5968_v46  ;;  %v7591_v22 = vld [vmem:[%s9499_s1 + $0x9b0] sm:$0xff]   ;;  %v7602_v35 = vld [vmem:[%s9499_s1 + $0xa00] sm:$0xff]   ;;  %v7613_v46 = vld [vmem:[%s9499_s1 + $0xad8] sm:$0xff]  }
 0x122   : > { %6899 = vmatpush3.bf16.msra.mxu1 %v7555_v36  ;;  %6878 = vmatprep.subr.bf16.mxu0 %v7556_v37  ;;  %v222_v27 = vld [vmem:[%s7978_s6 + $0x90] sm:$0xff]  ;;  %v7603_v36 = vld [vmem:[%s9499_s1 + $0xa80] sm:$0xff]   ;;  %v7604_v37 = vld [vmem:[%s9499_s1 + $0xa48] sm:$0xff]  }
 0x123   : > { %6900 = vmatprep.subr.bf16.mxu1 %v7557_v38  ;;  %v5969_v29 = vcombine.low %v222_v27, %v222_v27  ;;  %v5970_v30 = vcombine.high %v222_v27, %v222_v27  ;;  %v7605_v38 = vld [vmem:[%s9499_s1 + $0xac8] sm:$0xff]   ;;  %v7644_v27 = vld [vmem:[%s9499_s1 + $0xb50] sm:$0xff]  }
 0x124   : > { %v7645_v28 = vld [vmem:[%s9499_s1 + $0xbd0] sm:$0xff]  }
 0x125   : > { %6879 = vmatpush3.bf16.msra.mxu0 %v7558_v39  ;;  %v7606_v39 = vld [vmem:[%s9499_s1 + $0xa08] sm:$0xff]  }
 0x126   : > { %6901 = vmatpush3.bf16.msra.mxu1 %v7559_v40  ;;  %6908 = vmatprep.subr.bf16.mxu0 %v7564_v47  ;;  %v7607_v40 = vld [vmem:[%s9499_s1 + $0xa88] sm:$0xff]   ;;  %v7614_v47 = vld [vmem:[%s9499_s1 + $0xa18] sm:$0xff]  }
 0x127   : > { %6930 = vmatprep.subr.bf16.mxu1 %v7565_v48  ;;  %v7615_v48 = vld [vmem:[%s9499_s1 + $0xa98] sm:$0xff]  }
 0x128   : > { %5236 = vmatmul.mubr.bf16.vlgmr.msra.gmra.mrb[32].mxu0 %v5965_v43  ;;  %v7610_v43 = vld [vmem:[%s9499_s1 + $0xa10] sm:$0xff]  }
 0x129   : > { %5276 = vmatmul.mubr.bf16.vlgmr.msra.gmra.mrb[32].mxu1 %v5967_v45  ;;  %6909 = vmatpush3.bf16.msra.mxu0 %v7566_v49  ;;  %v7612_v45 = vld [vmem:[%s9499_s1 + $0xa58] sm:$0xff]   ;;  %v7616_v49 = vld [vmem:[%s9499_s1 + $0xa60] sm:$0xff]  }
 0x12a   : > { %6931 = vmatpush3.bf16.msra.mxu1 %v7567_v50  ;;  %6910 = vmatprep.subr.bf16.mxu0 %v7568_v51  ;;  %v7617_v50 = vld [vmem:[%s9499_s1 + $0xae0] sm:$0xff]  }
 0x12b   : > { %6932 = vmatprep.subr.bf16.mxu1 %v7569_v52  ;;  %5315 = vmatprep.mubr.bf16.mxu0 %v5970_v30  ;;  %v7618_v52 = vld [vmem:[%s9499_s1 + $0xa20] sm:$0xff]   ;;  %v7647_v30 = vld [vmem:[%s9499_s1 + $0xb90] sm:$0xff]  }
 0x12c   : > { %5355 = vmatprep.mubr.bf16.mxu1 %v5972_v33  ;;  %v7650_v33 = vld [vmem:[%s9499_s1 + $0xb18] sm:$0xff]  }
 0x12d   : > { %6911 = vmatpush3.bf16.msra.mxu0 %v7570_v53 }
 0x12e   : > { %6933 = vmatpush3.bf16.msra.mxu1 %v7571_v54  ;;  %6912 = vmatprep.subr.bf16.mxu0 %v7572_v55  ;;  %v7619_v54 = vld [vmem:[%s9499_s1 + $0xaa0] sm:$0xff]  }
 0x12f   : > { %6934 = vmatprep.subr.bf16.mxu1 %v7573_v56 }
 0x131   : > { %6913 = vmatpush3.bf16.msra.mxu0 %v7574_v57  ;;  %v7620_v57 = vld [vmem:[%s9499_s1 + $0xa68] sm:$0xff]  }
 0x132   : > { %6935 = vmatpush3.bf16.msra.mxu1 %v7575_v58  ;;  %6914 = vmatprep.subr.bf16.mxu0 %v7576_v59 }
 0x133   : > { %6936 = vmatprep.subr.bf16.mxu1 %v7577_v60  ;;  %v7621_v60 = vld [vmem:[%s9499_s1 + $0xae8] sm:$0xff]  }
 0x135   : > { %6915 = vmatpush3.bf16.msra.mxu0 %v7578_v61 }
 0x136   : > { %6937 = vmatpush3.bf16.msra.mxu1 %v7579_v62  ;;  %6916 = vmatprep.subr.bf16.mxu0 %v7580_v63  ;;  %v7622_v63 = vld [vmem:[%s9499_s1 + $0xa28] sm:$0xff]  }
 0x137   : > { %6938 = vmatprep.subr.bf16.mxu1 %v7581_v0 }
 0x139   : > { %6917 = vmatpush3.bf16.msra.mxu0 %v7582_v2 }
 0x13a   : > { %6939 = vmatpush3.bf16.msra.mxu1 %v7583_v4  ;;  %6918 = vmatprep.subr.bf16.mxu0 %v7584_v8  ;;  %v7624_v4 = vld [vmem:[%s9499_s1 + $0xa70] sm:$0xff]  }
 0x13b   : > { %v6616_v1 = vpop.f32.mrb[8].mxu0  ;;  %6940 = vmatprep.subr.bf16.mxu1 %v7585_v10  ;;  %v7627_v8 = vld [vmem:[%s9499_s1 + $0xab0] sm:$0xff]   ;;  %v7629_v10 = vld [vmem:[%s9499_s1 + $0xaf8] sm:$0xff]  }
 0x13c   : > { %v6638_v3 = vpop.f32.mrb[8].mxu1  ;;  %v6617_v5 = vpop.f32.mrb[9].mxu0 }
 0x13d   : > { %v6618_v6 = vadd.f32 %v6617_v5, %v6616_v1  ;;  %v6639_v7 = vpop.f32.mrb[9].mxu1  ;;  %v6619_v11 = vpop.f32.mrb[10].mxu0  ;;  %6919 = vmatpush3.bf16.msra.mxu0 %v7586_v14  ;;  %v7623_v1 = vld [vmem:[%s9499_s1 + $0xaa8] sm:$0xff]  }
 0x13e   : > { %v6640_v9 = vadd.f32 %v6639_v7, %v6638_v3  ;;  %v6641_v13 = vpop.f32.mrb[10].mxu1  ;;  %v6620_v16 = vpop.f32.mrb[11].mxu0  ;;  %6941 = vmatpush3.bf16.msra.mxu1 %v7587_v15  ;;  %6920 = vmatprep.subr.bf16.mxu0 %v7588_v19  ;;  %v7626_v7 = vld [vmem:[%s9499_s1 + $0xa30] sm:$0xff]   ;;  %v7630_v11 = vld [vmem:[%s9499_s1 + $0xa38] sm:$0xff]   ;;  %v7636_v19 = vld [vmem:[%s9499_s1 + $0xb40] sm:$0xff]  }
 0x13f   : > { %v4758_v12 = vadd.f32 %v6618_v6, %v8752_v32  ;;  %v6642_v18 = vpop.f32.mrb[11].mxu1  ;;  %6942 = vmatprep.subr.bf16.mxu1 %v7589_v20  ;;  %v7600_v32 = vld [vmem:[%s9499_s1 + $0xa40] sm:$0xff]   ;;  %v7625_v6 = vld [vmem:[%s9499_s1 + $0xaf0] sm:$0xff]   ;;  %v225_v16 = vld [vmem:[%s7978_s6 + $0xa8] sm:$0xff] }
 0x140   : > { %v224_v13 = vld [vmem:[%s7978_s6 + $0xa0] sm:$0xff]  ;;  %v5976_v18 = vcombine.high %v225_v16, %v225_v16 }
 0x141   : > { %v8853_v17 = vadd.f32 %v6640_v9, %v4758_v12  ;;  %6921 = vmatpush3.bf16.msra.mxu0 %v7590_v21  ;;  %v7628_v9 = vld [vmem:[%s9499_s1 + $0xa78] sm:$0xff]   ;;  %v5973_v14 = vcombine.low %v224_v13, %v224_v13  ;;  %v5974_v15 = vcombine.high %v224_v13, %v224_v13  ;;  %v7637_v20 = vld [vmem:[%s9499_s1 + $0xbc0] sm:$0xff]   ;;  %v7680_v13 = vld [vmem:[%s9499_s1 + $0xc50] sm:$0xff]  }
 0x142   : > { %6943 = vmatpush3.bf16.msra.mxu1 %v7591_v22  ;;  %6922 = vmatprep.subr.bf16.mxu0 %v7592_v23  ;;  %v7631_v12 = vld [vmem:[%s9499_s1 + $0xab8] sm:$0xff]   ;;  %v7638_v21 = vld [vmem:[%s9499_s1 + $0xb00] sm:$0xff]   ;;  %v7640_v23 = vld [vmem:[%s9499_s1 + $0xb48] sm:$0xff]  }
 0x143   : > { %6944 = vmatprep.subr.bf16.mxu1 %v7593_v24  ;;  %v7639_v22 = vld [vmem:[%s9499_s1 + $0xb80] sm:$0xff]   ;;  %v7641_v24 = vld [vmem:[%s9499_s1 + $0xbc8] sm:$0xff]  }
 0x145   : > { %6923 = vmatpush3.bf16.msra.mxu0 %v7594_v25  ;;  %v7642_v25 = vld [vmem:[%s9499_s1 + $0xb08] sm:$0xff]  }
 0x146   : > { %6945 = vmatpush3.bf16.msra.mxu1 %v7595_v26  ;;  %6952 = vmatprep.subr.bf16.mxu0 %v7600_v32  ;;  %v7643_v26 = vld [vmem:[%s9499_s1 + $0xb88] sm:$0xff]   ;;  %v7649_v32 = vld [vmem:[%s9499_s1 + $0xbd8] sm:$0xff]  }
 0x147   : > { %6974 = vmatprep.subr.bf16.mxu1 %v7601_v34  ;;  %v7651_v34 = vld [vmem:[%s9499_s1 + $0xb98] sm:$0xff]  }
 0x148   : > { %5316 = vmatmul.mubr.bf16.vlgmr.msra.gmra.mrb[36].mxu0 %v5969_v29  ;;  %v7646_v29 = vld [vmem:[%s9499_s1 + $0xb10] sm:$0xff]  }
 0x149   : > { %5356 = vmatmul.mubr.bf16.vlgmr.msra.gmra.mrb[36].mxu1 %v5971_v31  ;;  %6953 = vmatpush3.bf16.msra.mxu0 %v7602_v35  ;;  %v7648_v31 = vld [vmem:[%s9499_s1 + $0xb58] sm:$0xff]   ;;  %v7652_v35 = vld [vmem:[%s9499_s1 + $0xb60] sm:$0xff]  }
 0x14a   : > { %6975 = vmatpush3.bf16.msra.mxu1 %v7603_v36  ;;  %6954 = vmatprep.subr.bf16.mxu0 %v7604_v37  ;;  %v7653_v36 = vld [vmem:[%s9499_s1 + $0xbe0] sm:$0xff]  }
 0x14b   : > { %6976 = vmatprep.subr.bf16.mxu1 %v7605_v38  ;;  %5395 = vmatprep.mubr.bf16.mxu0 %v5974_v15  ;;  %v7654_v38 = vld [vmem:[%s9499_s1 + $0xb20] sm:$0xff]   ;;  %v7682_v15 = vld [vmem:[%s9499_s1 + $0xc10] sm:$0xff]  }
 0x14c   : > { %5435 = vmatprep.mubr.bf16.mxu1 %v5976_v18  ;;  %v7685_v18 = vld [vmem:[%s9499_s1 + $0xcd8] sm:$0xff]  }
 0x14d   : > { %6955 = vmatpush3.bf16.msra.mxu0 %v7606_v39 }
 0x14e   : > { %6977 = vmatpush3.bf16.msra.mxu1 %v7607_v40  ;;  %6956 = vmatprep.subr.bf16.mxu0 %v7608_v41  ;;  %v7655_v40 = vld [vmem:[%s9499_s1 + $0xba0] sm:$0xff]  }
 0x14f   : > { %6978 = vmatprep.subr.bf16.mxu1 %v7609_v42 }
 0x151   : > { %6957 = vmatpush3.bf16.msra.mxu0 %v7610_v43  ;;  %v7656_v43 = vld [vmem:[%s9499_s1 + $0xb68] sm:$0xff]  }
 0x152   : > { %6979 = vmatpush3.bf16.msra.mxu1 %v7611_v44  ;;  %6958 = vmatprep.subr.bf16.mxu0 %v7612_v45 }
 0x153   : > { %6980 = vmatprep.subr.bf16.mxu1 %v7613_v46  ;;  %v7657_v46 = vld [vmem:[%s9499_s1 + $0xbe8] sm:$0xff]  }
 0x155   : > { %6959 = vmatpush3.bf16.msra.mxu0 %v7614_v47 }
 0x156   : > { %6981 = vmatpush3.bf16.msra.mxu1 %v7615_v48  ;;  %6960 = vmatprep.subr.bf16.mxu0 %v7616_v49  ;;  %v7658_v49 = vld [vmem:[%s9499_s1 + $0xb28] sm:$0xff]  }
 0x157   : > { %6982 = vmatprep.subr.bf16.mxu1 %v7617_v50 }
 0x159   : > { %6961 = vmatpush3.bf16.msra.mxu0 %v7618_v52 }
 0x15a   : > { %6983 = vmatpush3.bf16.msra.mxu1 %v7619_v54  ;;  %6962 = vmatprep.subr.bf16.mxu0 %v7620_v57  ;;  %v7660_v54 = vld [vmem:[%s9499_s1 + $0xb70] sm:$0xff]  }
 0x15b   : > { %v6660_v51 = vpop.f32.mrb[12].mxu0  ;;  %6984 = vmatprep.subr.bf16.mxu1 %v7621_v60  ;;  %v7662_v57 = vld [vmem:[%s9499_s1 + $0xb30] sm:$0xff]   ;;  %v7665_v60 = vld [vmem:[%s9499_s1 + $0xbf8] sm:$0xff]  }
 0x15c   : > { %v6682_v53 = vpop.f32.mrb[12].mxu1  ;;  %v6661_v55 = vpop.f32.mrb[13].mxu0 }
 0x15d   : > { %v6683_v56 = vpop.f32.mrb[13].mxu1  ;;  %v6662_v58 = vadd.f32 %v6661_v55, %v6660_v51  ;;  %v6663_v61 = vpop.f32.mrb[14].mxu0  ;;  %6963 = vmatpush3.bf16.msra.mxu0 %v7622_v63  ;;  %v7659_v51 = vld [vmem:[%s9499_s1 + $0xba8] sm:$0xff]   ;;  %v226_v63 = vld [vmem:[%s7978_s6 + $0xb0] sm:$0xff] }
 0x15e   : > { %v6684_v59 = vadd.f32 %v6683_v56, %v6682_v53  ;;  %v6685_v62 = vpop.f32.mrb[14].mxu1  ;;  %v6664_v2 = vpop.f32.mrb[15].mxu0  ;;  %6985 = vmatpush3.bf16.msra.mxu1 %v7623_v1  ;;  %6964 = vmatprep.subr.bf16.mxu0 %v7624_v4  ;;  %v7661_v56 = vld [vmem:[%s9499_s1 + $0xbf0] sm:$0xff]   ;;  %v7666_v61 = vld [vmem:[%s9499_s1 + $0xb38] sm:$0xff]   ;;  %v5977_v1 = vcombine.low %v226_v63, %v226_v63 }
 0x15f   : > { %v4838_v0 = vadd.f32 %v6662_v58, %v8853_v17  ;;  %v6686_v3 = vpop.f32.mrb[15].mxu1  ;;  %6986 = vmatprep.subr.bf16.mxu1 %v7625_v6  ;;  %v5975_v17 = vcombine.low %v225_v16, %v225_v16  ;;  %v7663_v58 = vld [vmem:[%s9499_s1 + $0xbb0] sm:$0xff]   ;;  %v7667_v62 = vld [vmem:[%s9499_s1 + $0xbb8] sm:$0xff]   ;;  %v5978_v2 = vcombine.high %v226_v63, %v226_v63  ;;  %v7673_v6 = vld [vmem:[%s9499_s1 + $0xcc0] sm:$0xff]  }
 0x160   : > { %v7683_v16 = vld [vmem:[%s9499_s1 + $0xc90] sm:$0xff]  }
 0x161   : > { %v8957_v5 = vadd.f32 %v6684_v59, %v4838_v0  ;;  %6965 = vmatpush3.bf16.msra.mxu0 %v7626_v7  ;;  %v7664_v59 = vld [vmem:[%s9499_s1 + $0xb78] sm:$0xff]   ;;  %v7674_v7 = vld [vmem:[%s9499_s1 + $0xc00] sm:$0xff]   ;;  %v7716_v63 = vld [vmem:[%s9499_s1 + $0xd50] sm:$0xff]  }
 0x162   : > { %6987 = vmatpush3.bf16.msra.mxu1 %v7627_v8  ;;  %6966 = vmatprep.subr.bf16.mxu0 %v7628_v9  ;;  %v227_v0 = vld [vmem:[%s7978_s6 + $0xb8] sm:$0xff]  ;;  %v7675_v8 = vld [vmem:[%s9499_s1 + $0xc80] sm:$0xff]   ;;  %v7676_v9 = vld [vmem:[%s9499_s1 + $0xc48] sm:$0xff]  }
 0x163   : > { %6988 = vmatprep.subr.bf16.mxu1 %v7629_v10  ;;  %v5979_v3 = vcombine.low %v227_v0, %v227_v0  ;;  %v5980_v4 = vcombine.high %v227_v0, %v227_v0  ;;  %v7677_v10 = vld [vmem:[%s9499_s1 + $0xcc8] sm:$0xff]   ;;  %v7717_v0 = vld [vmem:[%s9499_s1 + $0xdd0] sm:$0xff]  }
 0x165   : > { %6967 = vmatpush3.bf16.msra.mxu0 %v7630_v11  ;;  %v7678_v11 = vld [vmem:[%s9499_s1 + $0xc08] sm:$0xff]  }
 0x166   : > { %6989 = vmatpush3.bf16.msra.mxu1 %v7631_v12  ;;  %6996 = vmatprep.subr.bf16.mxu0 %v7636_v19  ;;  %v7679_v12 = vld [vmem:[%s9499_s1 + $0xc88] sm:$0xff]   ;;  %v7686_v19 = vld [vmem:[%s9499_s1 + $0xc18] sm:$0xff]  }
 0x167   : > { %7018 = vmatprep.subr.bf16.mxu1 %v7637_v20  ;;  %v7687_v20 = vld [vmem:[%s9499_s1 + $0xc98] sm:$0xff]  }
 0x168   : > { %5396 = vmatmul.mubr.bf16.vlgmr.msra.gmra.mrb[40].mxu0 %v5973_v14  ;;  %v7681_v14 = vld [vmem:[%s9499_s1 + $0xcd0] sm:$0xff]  }
 0x169   : > { %5436 = vmatmul.mubr.bf16.vlgmr.msra.gmra.mrb[40].mxu1 %v5975_v17  ;;  %6997 = vmatpush3.bf16.msra.mxu0 %v7638_v21  ;;  %v7684_v17 = vld [vmem:[%s9499_s1 + $0xc58] sm:$0xff]   ;;  %v7688_v21 = vld [vmem:[%s9499_s1 + $0xc60] sm:$0xff]  }
 0x16a   : > { %7019 = vmatpush3.bf16.msra.mxu1 %v7639_v22  ;;  %6998 = vmatprep.subr.bf16.mxu0 %v7640_v23  ;;  %v7689_v22 = vld [vmem:[%s9499_s1 + $0xce0] sm:$0xff]  }
 0x16b   : > { %7020 = vmatprep.subr.bf16.mxu1 %v7641_v24  ;;  %5475 = vmatprep.mubr.bf16.mxu0 %v5978_v2  ;;  %v7690_v24 = vld [vmem:[%s9499_s1 + $0xc20] sm:$0xff]   ;;  %v7719_v2 = vld [vmem:[%s9499_s1 + $0xd90] sm:$0xff]  }
 0x16c   : > { %5515 = vmatprep.mubr.bf16.mxu1 %v5980_v4  ;;  %v7721_v4 = vld [vmem:[%s9499_s1 + $0xdd8] sm:$0xff]  }
 0x16d   : > { %6999 = vmatpush3.bf16.msra.mxu0 %v7642_v25 }
 0x16e   : > { %7021 = vmatpush3.bf16.msra.mxu1 %v7643_v26  ;;  %7000 = vmatprep.subr.bf16.mxu0 %v7644_v27  ;;  %v7691_v26 = vld [vmem:[%s9499_s1 + $0xca0] sm:$0xff]  }
 0x16f   : > { %7022 = vmatprep.subr.bf16.mxu1 %v7645_v28 }
 0x171   : > { %7001 = vmatpush3.bf16.msra.mxu0 %v7646_v29 }
 0x172   : > { %7023 = vmatpush3.bf16.msra.mxu1 %v7647_v30  ;;  %7002 = vmatprep.subr.bf16.mxu0 %v7648_v31  ;;  %v7692_v30 = vld [vmem:[%s9499_s1 + $0xc68] sm:$0xff]  }
 0x173   : > { %7024 = vmatprep.subr.bf16.mxu1 %v7649_v32  ;;  %v7693_v32 = vld [vmem:[%s9499_s1 + $0xce8] sm:$0xff]  }
 0x175   : > { %7003 = vmatpush3.bf16.msra.mxu0 %v7650_v33 }
 0x176   : > { %7025 = vmatpush3.bf16.msra.mxu1 %v7651_v34  ;;  %7004 = vmatprep.subr.bf16.mxu0 %v7652_v35 }
 0x177   : > { %7026 = vmatprep.subr.bf16.mxu1 %v7653_v36  ;;  %v7694_v36 = vld [vmem:[%s9499_s1 + $0xc28] sm:$0xff]  }
 0x179   : > { %7005 = vmatpush3.bf16.msra.mxu0 %v7654_v38 }
 0x17a   : > { %7027 = vmatpush3.bf16.msra.mxu1 %v7655_v40  ;;  %7006 = vmatprep.subr.bf16.mxu0 %v7656_v43  ;;  %v7698_v43 = vld [vmem:[%s9499_s1 + $0xc30] sm:$0xff]  }
 0x17b   : > { %v6704_v37 = vpop.f32.mrb[16].mxu0  ;;  %7028 = vmatprep.subr.bf16.mxu1 %v7657_v46  ;;  %v7701_v46 = vld [vmem:[%s9499_s1 + $0xcf8] sm:$0xff]  }
 0x17c   : > { %v6726_v39 = vpop.f32.mrb[16].mxu1  ;;  %v6705_v41 = vpop.f32.mrb[17].mxu0 }
 0x17d   : > { %v6727_v42 = vpop.f32.mrb[17].mxu1  ;;  %v6706_v44 = vadd.f32 %v6705_v41, %v6704_v37  ;;  %v6707_v47 = vpop.f32.mrb[18].mxu0  ;;  %7007 = vmatpush3.bf16.msra.mxu0 %v7658_v49  ;;  %v7695_v37 = vld [vmem:[%s9499_s1 + $0xca8] sm:$0xff]   ;;  %v7696_v41 = vld [vmem:[%s9499_s1 + $0xc70] sm:$0xff]   ;;  %v228_v49 = vld [vmem:[%s7978_s6 + $0xc0] sm:$0xff] }
 0x17e   : > { %v6728_v45 = vadd.f32 %v6727_v42, %v6726_v39  ;;  %v6729_v48 = vpop.f32.mrb[18].mxu1  ;;  %v6708_v52 = vpop.f32.mrb[19].mxu0  ;;  %7029 = vmatpush3.bf16.msra.mxu1 %v7659_v51  ;;  %7008 = vmatprep.subr.bf16.mxu0 %v7660_v54  ;;  %v7697_v42 = vld [vmem:[%s9499_s1 + $0xcf0] sm:$0xff]   ;;  %v7702_v47 = vld [vmem:[%s9499_s1 + $0xc38] sm:$0xff]   ;;  %v5981_v51 = vcombine.low %v228_v49, %v228_v49  ;;  %v7708_v54 = vld [vmem:[%s9499_s1 + $0xd40] sm:$0xff]  }
 0x17f   : > { %v4918_v50 = vadd.f32 %v6706_v44, %v8957_v5  ;;  %v6730_v53 = vpop.f32.mrb[19].mxu1  ;;  %7030 = vmatprep.subr.bf16.mxu1 %v7661_v56  ;;  %v7672_v5 = vld [vmem:[%s9499_s1 + $0xc40] sm:$0xff]   ;;  %v7699_v44 = vld [vmem:[%s9499_s1 + $0xcb0] sm:$0xff]   ;;  %v7703_v48 = vld [vmem:[%s9499_s1 + $0xcb8] sm:$0xff]   ;;  %v5982_v52 = vcombine.high %v228_v49, %v228_v49 }
 0x180   : > { %v7709_v56 = vld [vmem:[%s9499_s1 + $0xdc0] sm:$0xff]   ;;  %v7752_v49 = vld [vmem:[%s9499_s1 + $0xe50] sm:$0xff]  }
 0x181   : > { %v9058_v55 = vadd.f32 %v6728_v45, %v4918_v50  ;;  %7009 = vmatpush3.bf16.msra.mxu0 %v7662_v57  ;;  %v7700_v45 = vld [vmem:[%s9499_s1 + $0xc78] sm:$0xff]   ;;  %v229_v50 = vld [vmem:[%s7978_s6 + $0xc8] sm:$0xff]  ;;  %v7710_v57 = vld [vmem:[%s9499_s1 + $0xd00] sm:$0xff]  }
 0x182   : > { %7031 = vmatpush3.bf16.msra.mxu1 %v7663_v58  ;;  %7010 = vmatprep.subr.bf16.mxu0 %v7664_v59  ;;  %v5983_v53 = vcombine.low %v229_v50, %v229_v50  ;;  %v7711_v58 = vld [vmem:[%s9499_s1 + $0xd80] sm:$0xff]   ;;  %v7712_v59 = vld [vmem:[%s9499_s1 + $0xd48] sm:$0xff]  }
 0x183   : > { %7032 = vmatprep.subr.bf16.mxu1 %v7665_v60  ;;  %v7713_v60 = vld [vmem:[%s9499_s1 + $0xdc8] sm:$0xff]  }
 0x185   : > { %7011 = vmatpush3.bf16.msra.mxu0 %v7666_v61  ;;  %v7714_v61 = vld [vmem:[%s9499_s1 + $0xd08] sm:$0xff]  }
 0x186   : > { %7033 = vmatpush3.bf16.msra.mxu1 %v7667_v62  ;;  %7040 = vmatprep.subr.bf16.mxu0 %v7672_v5  ;;  %v7715_v62 = vld [vmem:[%s9499_s1 + $0xd88] sm:$0xff]   ;;  %v7722_v5 = vld [vmem:[%s9499_s1 + $0xd18] sm:$0xff]  }
 0x187   : > { %7062 = vmatprep.subr.bf16.mxu1 %v7673_v6  ;;  %v7723_v6 = vld [vmem:[%s9499_s1 + $0xd98] sm:$0xff]  }
 0x188   : > { %5476 = vmatmul.mubr.bf16.vlgmr.msra.gmra.mrb[44].mxu0 %v5977_v1  ;;  %v7718_v1 = vld [vmem:[%s9499_s1 + $0xd10] sm:$0xff]  }
 0x189   : > { %5516 = vmatmul.mubr.bf16.vlgmr.msra.gmra.mrb[44].mxu1 %v5979_v3  ;;  %7041 = vmatpush3.bf16.msra.mxu0 %v7674_v7  ;;  %v7720_v3 = vld [vmem:[%s9499_s1 + $0xd58] sm:$0xff]   ;;  %v7724_v7 = vld [vmem:[%s9499_s1 + $0xd60] sm:$0xff]  }
 0x18a   : > { %7063 = vmatpush3.bf16.msra.mxu1 %v7675_v8  ;;  %7042 = vmatprep.subr.bf16.mxu0 %v7676_v9  ;;  %v7725_v8 = vld [vmem:[%s9499_s1 + $0xde0] sm:$0xff]  }
 0x18b   : > { %7064 = vmatprep.subr.bf16.mxu1 %v7677_v10  ;;  %5555 = vmatprep.mubr.bf16.mxu0 %v5982_v52  ;;  %v7726_v10 = vld [vmem:[%s9499_s1 + $0xd20] sm:$0xff]   ;;  %v7755_v52 = vld [vmem:[%s9499_s1 + $0xe90] sm:$0xff]  }
 0x18d   : > { %7043 = vmatpush3.bf16.msra.mxu0 %v7678_v11 }
 0x18e   : > { %7065 = vmatpush3.bf16.msra.mxu1 %v7679_v12  ;;  %7044 = vmatprep.subr.bf16.mxu0 %v7680_v13  ;;  %v7727_v12 = vld [vmem:[%s9499_s1 + $0xda0] sm:$0xff]  }
 0x18f   : > { %7066 = vmatprep.subr.bf16.mxu1 %v7681_v14 }
 0x191   : > { %7045 = vmatpush3.bf16.msra.mxu0 %v7682_v15  ;;  %v7728_v15 = vld [vmem:[%s9499_s1 + $0xd68] sm:$0xff]  }
 0x192   : > { %7067 = vmatpush3.bf16.msra.mxu1 %v7683_v16  ;;  %7046 = vmatprep.subr.bf16.mxu0 %v7684_v17 }
 0x193   : > { %7068 = vmatprep.subr.bf16.mxu1 %v7685_v18  ;;  %v7729_v18 = vld [vmem:[%s9499_s1 + $0xde8] sm:$0xff]  }
 0x195   : > { %7047 = vmatpush3.bf16.msra.mxu0 %v7686_v19 }
 0x196   : > { %7069 = vmatpush3.bf16.msra.mxu1 %v7687_v20  ;;  %7048 = vmatprep.subr.bf16.mxu0 %v7688_v21  ;;  %v7730_v21 = vld [vmem:[%s9499_s1 + $0xd28] sm:$0xff]  }
 0x197   : > { %7070 = vmatprep.subr.bf16.mxu1 %v7689_v22 }
 0x199   : > { %7049 = vmatpush3.bf16.msra.mxu0 %v7690_v24 }
 0x19a   : > { %7071 = vmatpush3.bf16.msra.mxu1 %v7691_v26  ;;  %7050 = vmatprep.subr.bf16.mxu0 %v7692_v30  ;;  %v7732_v26 = vld [vmem:[%s9499_s1 + $0xd70] sm:$0xff]  }
 0x19b   : > { %v6748_v23 = vpop.f32.mrb[20].mxu0  ;;  %7072 = vmatprep.subr.bf16.mxu1 %v7693_v32  ;;  %v7735_v30 = vld [vmem:[%s9499_s1 + $0xdb0] sm:$0xff]   ;;  %v7737_v32 = vld [vmem:[%s9499_s1 + $0xdf8] sm:$0xff]  }
 0x19c   : > { %v6770_v25 = vpop.f32.mrb[20].mxu1  ;;  %v6749_v27 = vpop.f32.mrb[21].mxu0 }
 0x19d   : > { %v6750_v28 = vadd.f32 %v6749_v27, %v6748_v23  ;;  %v6771_v29 = vpop.f32.mrb[21].mxu1  ;;  %v6751_v33 = vpop.f32.mrb[22].mxu0  ;;  %7051 = vmatpush3.bf16.msra.mxu0 %v7694_v36  ;;  %v7731_v23 = vld [vmem:[%s9499_s1 + $0xda8] sm:$0xff]  }
 0x19e   : > { %v6772_v31 = vadd.f32 %v6771_v29, %v6770_v25  ;;  %v6773_v35 = vpop.f32.mrb[22].mxu1  ;;  %v6752_v38 = vpop.f32.mrb[23].mxu0  ;;  %7073 = vmatpush3.bf16.msra.mxu1 %v7695_v37  ;;  %7052 = vmatprep.subr.bf16.mxu0 %v7696_v41  ;;  %v7734_v29 = vld [vmem:[%s9499_s1 + $0xd30] sm:$0xff]   ;;  %v7738_v33 = vld [vmem:[%s9499_s1 + $0xd38] sm:$0xff]   ;;  %v7744_v41 = vld [vmem:[%s9499_s1 + $0xe40] sm:$0xff]  }
 0x19f   : > { %v4998_v34 = vadd.f32 %v6750_v28, %v9058_v55  ;;  %v6774_v40 = vpop.f32.mrb[23].mxu1  ;;  %7074 = vmatprep.subr.bf16.mxu1 %v7697_v42  ;;  %v5984_v55 = vcombine.high %v229_v50, %v229_v50  ;;  %v7733_v28 = vld [vmem:[%s9499_s1 + $0xdf0] sm:$0xff]   ;;  %v231_v38 = vld [vmem:[%s7978_s6 + $0xd8] sm:$0xff]  ;;  %v7745_v42 = vld [vmem:[%s9499_s1 + $0xec0] sm:$0xff]  }
 0x1a0   : > { %v230_v35 = vld [vmem:[%s7978_s6 + $0xd0] sm:$0xff]  ;;  %v5988_v40 = vcombine.high %v231_v38, %v231_v38 }
 0x1a1   : > { %v9156_v39 = vadd.f32 %v6772_v31, %v4998_v34  ;;  %7053 = vmatpush3.bf16.msra.mxu0 %v7698_v43  ;;  %5595 = vmatprep.mubr.bf16.mxu1 %v5984_v55  ;;  %v7736_v31 = vld [vmem:[%s9499_s1 + $0xd78] sm:$0xff]   ;;  %v5985_v36 = vcombine.low %v230_v35, %v230_v35  ;;  %v5986_v37 = vcombine.high %v230_v35, %v230_v35  ;;  %v7746_v43 = vld [vmem:[%s9499_s1 + $0xe00] sm:$0xff]   ;;  %v7753_v50 = vld [vmem:[%s9499_s1 + $0xed0] sm:$0xff]  }
 0x1a2   : > { %7075 = vmatpush3.bf16.msra.mxu1 %v7699_v44  ;;  %7054 = vmatprep.subr.bf16.mxu0 %v7700_v45  ;;  %v7739_v34 = vld [vmem:[%s9499_s1 + $0xdb8] sm:$0xff]   ;;  %v7747_v44 = vld [vmem:[%s9499_s1 + $0xe80] sm:$0xff]   ;;  %v7748_v45 = vld [vmem:[%s9499_s1 + $0xe48] sm:$0xff]  }
 0x1a3   : > { %7076 = vmatprep.subr.bf16.mxu1 %v7701_v46  ;;  %v7749_v46 = vld [vmem:[%s9499_s1 + $0xec8] sm:$0xff]   ;;  %v7758_v55 = vld [vmem:[%s9499_s1 + $0xe18] sm:$0xff]   ;;  %v7788_v35 = vld [vmem:[%s9499_s1 + $0xf50] sm:$0xff]  }
 0x1a5   : > { %7055 = vmatpush3.bf16.msra.mxu0 %v7702_v47  ;;  %v7750_v47 = vld [vmem:[%s9499_s1 + $0xe08] sm:$0xff]  }
 0x1a6   : > { %7077 = vmatpush3.bf16.msra.mxu1 %v7703_v48  ;;  %7084 = vmatprep.subr.bf16.mxu0 %v7708_v54  ;;  %v7751_v48 = vld [vmem:[%s9499_s1 + $0xe88] sm:$0xff]   ;;  %v7757_v54 = vld [vmem:[%s9499_s1 + $0xed8] sm:$0xff]  }
 0x1a7   : > { %7106 = vmatprep.subr.bf16.mxu1 %v7709_v56  ;;  %v7759_v56 = vld [vmem:[%s9499_s1 + $0xe98] sm:$0xff]  }
 0x1a8   : > { %5556 = vmatmul.mubr.bf16.vlgmr.msra.gmra.mrb[48].mxu0 %v5981_v51  ;;  %v7754_v51 = vld [vmem:[%s9499_s1 + $0xe10] sm:$0xff]  }
 0x1a9   : > { %5596 = vmatmul.mubr.bf16.vlgmr.msra.gmra.mrb[48].mxu1 %v5983_v53  ;;  %7085 = vmatpush3.bf16.msra.mxu0 %v7710_v57  ;;  %v7756_v53 = vld [vmem:[%s9499_s1 + $0xe58] sm:$0xff]   ;;  %v7760_v57 = vld [vmem:[%s9499_s1 + $0xe60] sm:$0xff]  }
 0x1aa   : > { %7107 = vmatpush3.bf16.msra.mxu1 %v7711_v58  ;;  %7086 = vmatprep.subr.bf16.mxu0 %v7712_v59  ;;  %v7761_v58 = vld [vmem:[%s9499_s1 + $0xee0] sm:$0xff]  }
 0x1ab   : > { %7108 = vmatprep.subr.bf16.mxu1 %v7713_v60  ;;  %5635 = vmatprep.mubr.bf16.mxu0 %v5986_v37  ;;  %v7762_v60 = vld [vmem:[%s9499_s1 + $0xe20] sm:$0xff]   ;;  %v7790_v37 = vld [vmem:[%s9499_s1 + $0xf10] sm:$0xff]  }
 0x1ac   : > { %5675 = vmatprep.mubr.bf16.mxu1 %v5988_v40  ;;  %v7793_v40 = vld [vmem:[%s9499_s1 + $0xfd8] sm:$0xff]  }
 0x1ad   : > { %7087 = vmatpush3.bf16.msra.mxu0 %v7714_v61 }
 0x1ae   : > { %7109 = vmatpush3.bf16.msra.mxu1 %v7715_v62  ;;  %7088 = vmatprep.subr.bf16.mxu0 %v7716_v63  ;;  %v7763_v62 = vld [vmem:[%s9499_s1 + $0xea0] sm:$0xff]  }
 0x1af   : > { %7110 = vmatprep.subr.bf16.mxu1 %v7717_v0 }
 0x1b1   : > { %7089 = vmatpush3.bf16.msra.mxu0 %v7718_v1  ;;  %v7764_v1 = vld [vmem:[%s9499_s1 + $0xe68] sm:$0xff]  }
 0x1b2   : > { %7111 = vmatpush3.bf16.msra.mxu1 %v7719_v2  ;;  %7090 = vmatprep.subr.bf16.mxu0 %v7720_v3 }
 0x1b3   : > { %7112 = vmatprep.subr.bf16.mxu1 %v7721_v4  ;;  %v7765_v4 = vld [vmem:[%s9499_s1 + $0xee8] sm:$0xff]  }
 0x1b5   : > { %7091 = vmatpush3.bf16.msra.mxu0 %v7722_v5 }
 0x1b6   : > { %7113 = vmatpush3.bf16.msra.mxu1 %v7723_v6  ;;  %7092 = vmatprep.subr.bf16.mxu0 %v7724_v7  ;;  %v7766_v7 = vld [vmem:[%s9499_s1 + $0xe28] sm:$0xff]  }
 0x1b7   : > { %7114 = vmatprep.subr.bf16.mxu1 %v7725_v8 }
 0x1b9   : > { %7093 = vmatpush3.bf16.msra.mxu0 %v7726_v10 }
 0x1ba   : > { %7115 = vmatpush3.bf16.msra.mxu1 %v7727_v12  ;;  %7094 = vmatprep.subr.bf16.mxu0 %v7728_v15  ;;  %v7768_v12 = vld [vmem:[%s9499_s1 + $0xe70] sm:$0xff]  }
 0x1bb   : > { %v6792_v9 = vpop.f32.mrb[24].mxu0  ;;  %7116 = vmatprep.subr.bf16.mxu1 %v7729_v18  ;;  %v7770_v15 = vld [vmem:[%s9499_s1 + $0xe30] sm:$0xff]   ;;  %v7773_v18 = vld [vmem:[%s9499_s1 + $0xef8] sm:$0xff]  }
 0x1bc   : > { %v6814_v11 = vpop.f32.mrb[24].mxu1  ;;  %v6793_v13 = vpop.f32.mrb[25].mxu0 }
 0x1bd   : > { %v6815_v14 = vpop.f32.mrb[25].mxu1  ;;  %v6794_v16 = vadd.f32 %v6793_v13, %v6792_v9  ;;  %v6795_v19 = vpop.f32.mrb[26].mxu0  ;;  %7095 = vmatpush3.bf16.msra.mxu0 %v7730_v21  ;;  %v7767_v9 = vld [vmem:[%s9499_s1 + $0xea8] sm:$0xff]   ;;  %v232_v21 = vld [vmem:[%s7978_s6 + $0xe0] sm:$0xff] }
 0x1be   : > { %v6816_v17 = vadd.f32 %v6815_v14, %v6814_v11  ;;  %v6817_v20 = vpop.f32.mrb[26].mxu1  ;;  %v6796_v24 = vpop.f32.mrb[27].mxu0  ;;  %7117 = vmatpush3.bf16.msra.mxu1 %v7731_v23  ;;  %7096 = vmatprep.subr.bf16.mxu0 %v7732_v26  ;;  %v7769_v14 = vld [vmem:[%s9499_s1 + $0xef0] sm:$0xff]   ;;  %v7774_v19 = vld [vmem:[%s9499_s1 + $0xe38] sm:$0xff]   ;;  %v5989_v23 = vcombine.low %v232_v21, %v232_v21 }
 0x1bf   : > { %v5078_v22 = vadd.f32 %v6794_v16, %v9156_v39  ;;  %v6818_v25 = vpop.f32.mrb[27].mxu1  ;;  %7118 = vmatprep.subr.bf16.mxu1 %v7733_v28  ;;  %v5987_v39 = vcombine.low %v231_v38, %v231_v38  ;;  %v7771_v16 = vld [vmem:[%s9499_s1 + $0xeb0] sm:$0xff]   ;;  %v7775_v20 = vld [vmem:[%s9499_s1 + $0xeb8] sm:$0xff]   ;;  %v5990_v24 = vcombine.high %v232_v21, %v232_v21  ;;  %v7781_v28 = vld [vmem:[%s9499_s1 + $0xfc0] sm:$0xff]  }
 0x1c0   : > { %v7791_v38 = vld [vmem:[%s9499_s1 + $0xf90] sm:$0xff]  }
 0x1c1   : > { %v9260_v27 = vadd.f32 %v6816_v17, %v5078_v22  ;;  %7097 = vmatpush3.bf16.msra.mxu0 %v7734_v29  ;;  %v7772_v17 = vld [vmem:[%s9499_s1 + $0xe78] sm:$0xff]   ;;  %v233_v22 = vld [vmem:[%s7978_s6 + $0xe8] sm:$0xff]  ;;  %v7782_v29 = vld [vmem:[%s9499_s1 + $0xf00] sm:$0xff]  }
 0x1c2   : > { %7119 = vmatpush3.bf16.msra.mxu1 %v7735_v30  ;;  %7098 = vmatprep.subr.bf16.mxu0 %v7736_v31  ;;  %v5991_v25 = vcombine.low %v233_v22, %v233_v22  ;;  %v5992_v26 = vcombine.high %v233_v22, %v233_v22  ;;  %v7783_v30 = vld [vmem:[%s9499_s1 + $0xf80] sm:$0xff]   ;;  %v7784_v31 = vld [vmem:[%s9499_s1 + $0xf48] sm:$0xff]  }
 0x1c3   : > { %7120 = vmatprep.subr.bf16.mxu1 %v7737_v32  ;;  %v7785_v32 = vld [vmem:[%s9499_s1 + $0xfc8] sm:$0xff]  }
 0x1c5   : > { %7099 = vmatpush3.bf16.msra.mxu0 %v7738_v33  ;;  %v7786_v33 = vld [vmem:[%s9499_s1 + $0xf08] sm:$0xff]  }
 0x1c6   : > { %7121 = vmatpush3.bf16.msra.mxu1 %v7739_v34  ;;  %7128 = vmatprep.subr.bf16.mxu0 %v7744_v41  ;;  %v7787_v34 = vld [vmem:[%s9499_s1 + $0xf88] sm:$0xff]   ;;  %v7794_v41 = vld [vmem:[%s9499_s1 + $0xf18] sm:$0xff]  }
 0x1c7   : > { %7150 = vmatprep.subr.bf16.mxu1 %v7745_v42  ;;  %v7795_v42 = vld [vmem:[%s9499_s1 + $0xf98] sm:$0xff]  }
 0x1c8   : > { %5636 = vmatmul.mubr.bf16.vlgmr.msra.gmra.mrb[52].mxu0 %v5985_v36  ;;  %v7789_v36 = vld [vmem:[%s9499_s1 + $0xfd0] sm:$0xff]  }
 0x1c9   : > { %5676 = vmatmul.mubr.bf16.vlgmr.msra.gmra.mrb[52].mxu1 %v5987_v39  ;;  %7129 = vmatpush3.bf16.msra.mxu0 %v7746_v43  ;;  %v7792_v39 = vld [vmem:[%s9499_s1 + $0xf58] sm:$0xff]   ;;  %v7796_v43 = vld [vmem:[%s9499_s1 + $0xf60] sm:$0xff]  }
 0x1ca   : > { %7151 = vmatpush3.bf16.msra.mxu1 %v7747_v44  ;;  %7130 = vmatprep.subr.bf16.mxu0 %v7748_v45  ;;  %v7797_v44 = vld [vmem:[%s9499_s1 + $0xfe0] sm:$0xff]  }
 0x1cb   : > { %7152 = vmatprep.subr.bf16.mxu1 %v7749_v46  ;;  %5715 = vmatprep.mubr.bf16.mxu0 %v5990_v24  ;;  %v7798_v45 = vld [vmem:[%s9499_s1 + $0xf20] sm:$0xff]  }
 0x1cc   : > { %5755 = vmatprep.mubr.bf16.mxu1 %v5992_v26 }
 0x1cd   : > { %7131 = vmatpush3.bf16.msra.mxu0 %v7750_v47  ;;  %v7799_v47 = vld [vmem:[%s9499_s1 + $0xfa0] sm:$0xff]  }
 0x1ce   : > { %7153 = vmatpush3.bf16.msra.mxu1 %v7751_v48  ;;  %7132 = vmatprep.subr.bf16.mxu0 %v7752_v49 }
 0x1cf   : > { %7154 = vmatprep.subr.bf16.mxu1 %v7753_v50 }
 0x1d1   : > { %7133 = vmatpush3.bf16.msra.mxu0 %v7754_v51 }
 0x1d2   : > { %7155 = vmatpush3.bf16.msra.mxu1 %v7755_v52  ;;  %7134 = vmatprep.subr.bf16.mxu0 %v7756_v53  ;;  %v7800_v53 = vld [vmem:[%s9499_s1 + $0xf68] sm:$0xff]  }
 0x1d3   : > { %7156 = vmatprep.subr.bf16.mxu1 %v7757_v54 }
 0x1d5   : > { %7135 = vmatpush3.bf16.msra.mxu0 %v7758_v55  ;;  %v7801_v55 = vld [vmem:[%s9499_s1 + $0xfe8] sm:$0xff]  }
 0x1d6   : > { %7157 = vmatpush3.bf16.msra.mxu1 %v7759_v56  ;;  %7136 = vmatprep.subr.bf16.mxu0 %v7760_v57 }
 0x1d7   : > { %7158 = vmatprep.subr.bf16.mxu1 %v7761_v58  ;;  %v7802_v58 = vld [vmem:[%s9499_s1 + $0xf28] sm:$0xff]  }
 0x1d9   : > { %7137 = vmatpush3.bf16.msra.mxu0 %v7762_v60  ;;  %v7803_v60 = vld [vmem:[%s9499_s1 + $0xfa8] sm:$0xff]  }
 0x1da   : > { %7159 = vmatpush3.bf16.msra.mxu1 %v7763_v62  ;;  %7138 = vmatprep.subr.bf16.mxu0 %v7764_v1  ;;  %v7806_v1 = vld [vmem:[%s9499_s1 + $0xf30] sm:$0xff]  }
 0x1db   : > { %v6836_v59 = vpop.f32.mrb[28].mxu0  ;;  %7160 = vmatprep.subr.bf16.mxu1 %v7765_v4  ;;  %v7809_v4 = vld [vmem:[%s9499_s1 + $0xff8] sm:$0xff]  }
 0x1dc   : > { %v6858_v61 = vpop.f32.mrb[28].mxu1  ;;  %v6837_v63 = vpop.f32.mrb[29].mxu0 }
 0x1dd   : > { %v6859_v0 = vpop.f32.mrb[29].mxu1  ;;  %v6838_v2 = vadd.f32 %v6837_v63, %v6836_v59  ;;  %v6839_v5 = vpop.f32.mrb[30].mxu0  ;;  %7139 = vmatpush3.bf16.msra.mxu0 %v7766_v7  ;;  %v7804_v63 = vld [vmem:[%s9499_s1 + $0xf70] sm:$0xff]  }
 0x1de   : > { %v6860_v3 = vadd.f32 %v6859_v0, %v6858_v61  ;;  %v6861_v6 = vpop.f32.mrb[30].mxu1  ;;  %v6840_v10 = vpop.f32.mrb[31].mxu0  ;;  %7161 = vmatpush3.bf16.msra.mxu1 %v7767_v9  ;;  %7140 = vmatprep.subr.bf16.mxu0 %v7768_v12  ;;  %v7805_v0 = vld [vmem:[%s9499_s1 + $0xff0] sm:$0xff]   ;;  %v7810_v5 = vld [vmem:[%s9499_s1 + $0xf38] sm:$0xff]  }
 0x1df   : > { %v5158_v8 = vadd.f32 %v6838_v2, %v9260_v27  ;;  %v6862_v11 = vpop.f32.mrb[31].mxu1  ;;  %7162 = vmatprep.subr.bf16.mxu1 %v7769_v14  ;;  %v7780_v27 = vld [vmem:[%s9499_s1 + $0xf40] sm:$0xff]   ;;  %v7807_v2 = vld [vmem:[%s9499_s1 + $0xfb0] sm:$0xff]   ;;  %v7811_v6 = vld [vmem:[%s9499_s1 + $0xfb8] sm:$0xff]  }
 0x1e0   : > { %v234_v7 = vld [vmem:[%s7978_s6 + $0xf0] sm:$0xff] }
 0x1e1   : > { %v9361_v13 = vadd.f32 %v6860_v3, %v5158_v8  ;;  %7141 = vmatpush3.bf16.msra.mxu0 %v7770_v15  ;;  %v7808_v3 = vld [vmem:[%s9499_s1 + $0xf78] sm:$0xff]   ;;  %v5993_v9 = vcombine.low %v234_v7, %v234_v7  ;;  %v5994_v10 = vcombine.high %v234_v7, %v234_v7 }
 0x1e2   : > { %7163 = vmatpush3.bf16.msra.mxu1 %v7771_v16  ;;  %7142 = vmatprep.subr.bf16.mxu0 %v7772_v17  ;;  %v235_v8 = vld [vmem:[%s7978_s6 + $0xf8] sm:$0xff]  ;;  %s5931_s6 = sshll.u32 %s9507_s12, 3 }
 0x1e3   : > { %7164 = vmatprep.subr.bf16.mxu1 %v7773_v18  ;;  %v5995_v11 = vcombine.low %v235_v8, %v235_v8  ;;  %v5996_v12 = vcombine.high %v235_v8, %v235_v8  ;;  %s202_s7 = scalar_lea.vmem %s9501_s3, %s5931_s6 }
 0x1e5   : > { %7143 = vmatpush3.bf16.msra.mxu0 %v7774_v19 }
 0x1e6   : > { %7165 = vmatpush3.bf16.msra.mxu1 %v7775_v20  ;;  %7172 = vmatprep.subr.bf16.mxu0 %v7780_v27 }
 0x1e7   : > { %7194 = vmatprep.subr.bf16.mxu1 %v7781_v28 }
 0x1e8   : > { %5716 = vmatmul.mubr.bf16.vlgmr.msra.gmra.mrb[56].mxu0 %v5989_v23 }
 0x1e9   : > { %5756 = vmatmul.mubr.bf16.vlgmr.msra.gmra.mrb[56].mxu1 %v5991_v25  ;;  %7173 = vmatpush3.bf16.msra.mxu0 %v7782_v29 }
 0x1ea   : > { %7195 = vmatpush3.bf16.msra.mxu1 %v7783_v30  ;;  %7174 = vmatprep.subr.bf16.mxu0 %v7784_v31 }
 0x1eb   : > { %7196 = vmatprep.subr.bf16.mxu1 %v7785_v32  ;;  %5795 = vmatprep.mubr.bf16.mxu0 %v5994_v10 }
 0x1ec   : > { %5835 = vmatprep.mubr.bf16.mxu1 %v5996_v12 }
 0x1ed   : > { %7175 = vmatpush3.bf16.msra.mxu0 %v7786_v33 }
 0x1ee   : > { %7197 = vmatpush3.bf16.msra.mxu1 %v7787_v34  ;;  %7176 = vmatprep.subr.bf16.mxu0 %v7788_v35 }
 0x1ef   : > { %7198 = vmatprep.subr.bf16.mxu1 %v7789_v36 }
 0x1f1   : > { %7177 = vmatpush3.bf16.msra.mxu0 %v7790_v37 }
 0x1f2   : > { %7199 = vmatpush3.bf16.msra.mxu1 %v7791_v38  ;;  %7178 = vmatprep.subr.bf16.mxu0 %v7792_v39 }
 0x1f3   : > { %7200 = vmatprep.subr.bf16.mxu1 %v7793_v40 }
 0x1f5   : > { %7179 = vmatpush3.bf16.msra.mxu0 %v7794_v41 }
 0x1f6   : > { %7201 = vmatpush3.bf16.msra.mxu1 %v7795_v42  ;;  %7180 = vmatprep.subr.bf16.mxu0 %v7796_v43 }
 0x1f7   : > { %7202 = vmatprep.subr.bf16.mxu1 %v7797_v44 }
 0x1f9   : > { %7181 = vmatpush3.bf16.msra.mxu0 %v7798_v45 }
 0x1fa   : > { %7203 = vmatpush3.bf16.msra.mxu1 %v7799_v47  ;;  %7182 = vmatprep.subr.bf16.mxu0 %v7800_v53 }
 0x1fb   : > { %v6880_v46 = vpop.f32.mrb[32].mxu0  ;;  %7204 = vmatprep.subr.bf16.mxu1 %v7801_v55 }
 0x1fc   : > { %v6902_v48 = vpop.f32.mrb[32].mxu1  ;;  %v6881_v49 = vpop.f32.mrb[33].mxu0 }
 0x1fd   : > { %v6903_v50 = vpop.f32.mrb[33].mxu1  ;;  %v6882_v51 = vadd.f32 %v6881_v49, %v6880_v46  ;;  %v6883_v54 = vpop.f32.mrb[34].mxu0  ;;  %7183 = vmatpush3.bf16.msra.mxu0 %v7802_v58 }
 0x1fe   : > { %v6904_v52 = vadd.f32 %v6903_v50, %v6902_v48  ;;  %v6905_v56 = vpop.f32.mrb[34].mxu1  ;;  %v6884_v59 = vpop.f32.mrb[35].mxu0  ;;  %7205 = vmatpush3.bf16.msra.mxu1 %v7803_v60  ;;  %7184 = vmatprep.subr.bf16.mxu0 %v7804_v63 }
 0x1ff   : > { %v5238_v57 = vadd.f32 %v6882_v51, %v9361_v13  ;;  %v6906_v61 = vpop.f32.mrb[35].mxu1  ;;  %7206 = vmatprep.subr.bf16.mxu1 %v7805_v0 }
 0x201   : > { %v5278_v62 = vadd.f32 %v6904_v52, %v5238_v57  ;;  %7185 = vmatpush3.bf16.msra.mxu0 %v7806_v1 }
 0x202   : > { %7207 = vmatpush3.bf16.msra.mxu1 %v7807_v2  ;;  %7186 = vmatprep.subr.bf16.mxu0 %v7808_v3 }
 0x203   : > { %7208 = vmatprep.subr.bf16.mxu1 %v7809_v4 }
 0x205   : > { %7187 = vmatpush3.bf16.msra.mxu0 %v7810_v5 }
 0x206   : > { %7209 = vmatpush3.bf16.msra.mxu1 %v7811_v6 }
 0x208   : > { %5796 = vmatmul.mubr.bf16.vlgmr.msra.gmra.mrb[60].mxu0 %v5993_v9 }
 0x209   : > { %5836 = vmatmul.mubr.bf16.vlgmr.msra.gmra.mrb[60].mxu1 %v5995_v11 }
 0x21b   : > { %v6924_v13 = vpop.f32.mrb[36].mxu0 }
 0x21c   : > { %v6946_v14 = vpop.f32.mrb[36].mxu1  ;;  %v6925_v15 = vpop.f32.mrb[37].mxu0 }
 0x21d   : > { %v6926_v16 = vadd.f32 %v6925_v15, %v6924_v13  ;;  %v6947_v17 = vpop.f32.mrb[37].mxu1  ;;  %v6927_v18 = vpop.f32.mrb[38].mxu0 }
 0x21e   : > { %v6948_v19 = vadd.f32 %v6947_v17, %v6946_v14  ;;  %v6949_v20 = vpop.f32.mrb[38].mxu1  ;;  %v6928_v21 = vpop.f32.mrb[39].mxu0 }
 0x21f   : > { %v5318_v22 = vadd.f32 %v6926_v16, %v5278_v62  ;;  %v6950_v23 = vpop.f32.mrb[39].mxu1 }
 0x221   : > { %v5358_v24 = vadd.f32 %v6948_v19, %v5318_v22 }
 0x23b   : > { %v6968_v25 = vpop.f32.mrb[40].mxu0 }
 0x23c   : > { %v6990_v26 = vpop.f32.mrb[40].mxu1  ;;  %v6969_v27 = vpop.f32.mrb[41].mxu0 }
 0x23d   : > { %v6991_v28 = vpop.f32.mrb[41].mxu1  ;;  %v6970_v29 = vadd.f32 %v6969_v27, %v6968_v25  ;;  %v6971_v31 = vpop.f32.mrb[42].mxu0 }
 0x23e   : > { %v6992_v30 = vadd.f32 %v6991_v28, %v6990_v26  ;;  %v6993_v32 = vpop.f32.mrb[42].mxu1  ;;  %v6972_v33 = vpop.f32.mrb[43].mxu0 }
 0x23f   : > { %v6994_v34 = vpop.f32.mrb[43].mxu1  ;;  %v5398_v35 = vadd.f32 %v6970_v29, %v5358_v24 }
 0x241   : > { %v5438_v36 = vadd.f32 %v6992_v30, %v5398_v35 }
 0x25b   : > { %v7012_v37 = vpop.f32.mrb[44].mxu0 }
 0x25c   : > { %v7034_v38 = vpop.f32.mrb[44].mxu1  ;;  %v7013_v39 = vpop.f32.mrb[45].mxu0 }
 0x25d   : > { %v7014_v40 = vadd.f32 %v7013_v39, %v7012_v37  ;;  %v7035_v41 = vpop.f32.mrb[45].mxu1  ;;  %v7015_v42 = vpop.f32.mrb[46].mxu0 }
 0x25e   : > { %v7036_v43 = vadd.f32 %v7035_v41, %v7034_v38  ;;  %v7037_v44 = vpop.f32.mrb[46].mxu1  ;;  %v7016_v45 = vpop.f32.mrb[47].mxu0 }
 0x25f   : > { %v5478_v46 = vadd.f32 %v7014_v40, %v5438_v36  ;;  %v7038_v47 = vpop.f32.mrb[47].mxu1 }
 0x261   : > { %v5518_v48 = vadd.f32 %v7036_v43, %v5478_v46 }
 0x27b   : > { %v7056_v49 = vpop.f32.mrb[48].mxu0 }
 0x27c   : > { %v7078_v50 = vpop.f32.mrb[48].mxu1  ;;  %v7057_v51 = vpop.f32.mrb[49].mxu0 }
 0x27d   : > { %v7058_v52 = vadd.f32 %v7057_v51, %v7056_v49  ;;  %v7079_v53 = vpop.f32.mrb[49].mxu1  ;;  %v7059_v54 = vpop.f32.mrb[50].mxu0 }
 0x27e   : > { %v7080_v55 = vadd.f32 %v7079_v53, %v7078_v50  ;;  %v7081_v56 = vpop.f32.mrb[50].mxu1  ;;  %v7060_v57 = vpop.f32.mrb[51].mxu0 }
 0x27f   : > { %v5558_v58 = vadd.f32 %v7058_v52, %v5518_v48  ;;  %v7082_v59 = vpop.f32.mrb[51].mxu1 }
 0x281   : > { %v5598_v60 = vadd.f32 %v7080_v55, %v5558_v58 }
 0x29b   : > { %v7100_v61 = vpop.f32.mrb[52].mxu0 }
 0x29c   : > { %v7122_v62 = vpop.f32.mrb[52].mxu1  ;;  %v7101_v63 = vpop.f32.mrb[53].mxu0 }
 0x29d   : > { %v7123_v0 = vpop.f32.mrb[53].mxu1  ;;  %v7102_v1 = vadd.f32 %v7101_v63, %v7100_v61  ;;  %v7103_v3 = vpop.f32.mrb[54].mxu0 }
 0x29e   : > { %v7124_v2 = vadd.f32 %v7123_v0, %v7122_v62  ;;  %v7125_v4 = vpop.f32.mrb[54].mxu1  ;;  %v7104_v5 = vpop.f32.mrb[55].mxu0 }
 0x29f   : > { %v7126_v6 = vpop.f32.mrb[55].mxu1  ;;  %v5638_v7 = vadd.f32 %v7102_v1, %v5598_v60 }
 0x2a1   : > { %v5678_v8 = vadd.f32 %v7124_v2, %v5638_v7 }
 0x2bb   : > { %v7144_v9 = vpop.f32.mrb[56].mxu0 }
 0x2bc   : > { %v7166_v10 = vpop.f32.mrb[56].mxu1  ;;  %v7145_v11 = vpop.f32.mrb[57].mxu0 }
 0x2bd   : > { %v7146_v12 = vadd.f32 %v7145_v11, %v7144_v9  ;;  %v7167_v13 = vpop.f32.mrb[57].mxu1  ;;  %v7147_v14 = vpop.f32.mrb[58].mxu0 }
 0x2be   : > { %v7168_v15 = vadd.f32 %v7167_v13, %v7166_v10  ;;  %v7169_v16 = vpop.f32.mrb[58].mxu1  ;;  %v7148_v17 = vpop.f32.mrb[59].mxu0 }
 0x2bf   : > { %v5718_v18 = vadd.f32 %v7146_v12, %v5678_v8  ;;  %v7170_v19 = vpop.f32.mrb[59].mxu1 }
 0x2c1   : > { %v5758_v20 = vadd.f32 %v7168_v15, %v5718_v18 }
 0x2db   : > { %v7188_v21 = vpop.f32.mrb[60].mxu0 }
 0x2dc   : > { %v7210_v22 = vpop.f32.mrb[60].mxu1  ;;  %v7189_v23 = vpop.f32.mrb[61].mxu0 }
 0x2dd   : > { %v7190_v24 = vadd.f32 %v7189_v23, %v7188_v21  ;;  %v7211_v25 = vpop.f32.mrb[61].mxu1  ;;  %v7191_v26 = vpop.f32.mrb[62].mxu0 }
 0x2de   : > { %v7212_v27 = vadd.f32 %v7211_v25, %v7210_v22  ;;  %v7213_v28 = vpop.f32.mrb[62].mxu1  ;;  %v7192_v29 = vpop.f32.mrb[63].mxu0 }
 0x2df   : > { %v5798_v30 = vadd.f32 %v7190_v24, %v5758_v20  ;;  %v7214_v31 = vpop.f32.mrb[63].mxu1 }
 0x2e1   : > { %v5838_v32 = vadd.f32 %v7212_v27, %v5798_v30 }
 0x2e3   : > { %5843 = vst [vmem:[%s202_s7] sm:$0xff] %v5838_v32 }
 0x2e4 PF: > { %s13_s14 = sadd.s32 1, %s7838_s14   ;;  %s9502_s12 = smov %s7834_s13 }
 0x2e5   : > { %p10_p5 = scmp.ge.s32.totalorder %s13_s14, 4   ;;  %s9503_s13 = smov %s9505_s15 }
 0x2e7   :  { %12 = sbr.rel (!%p10_p5) target bundleno = 2 (0x2), region = 62 }

</bundles_post_ra>
